<compile_context>
chip_gen: v7x
topology: tpu7x:2x2x1
jax: 0.10.0
libtpu: 0.0.40
codegen_flags: <defaults>
</compile_context>

<pallas_src>
import functools
import math

import numpy as np
import jax
import jax.numpy as jnp
from jax import lax
from jax.experimental import pallas as pl
from jax.experimental.pallas import tpu as pltpu


# ---------------------------------------------------------------------------
# Fused kernel: 6x (conv 3x3 [+ BN + ELU]) with activations resident in VMEM
# ---------------------------------------------------------------------------
def _post_layer_kernel(mask_ref, x_ref, *rest, img_w, bn_flags, eps):
    num_layers = len(bn_flags)
    w_refs = rest[:num_layers]
    o_ref = rest[num_layers]
    m = x_ref.shape[1]                       # flattened N*H*W (lane axis)
    inv_m = 1.0 / m

    # Tap t = dh*3 + dw reads pixel (h+dh-1, w+dw-1): a flat shift of s.
    tap_shifts = tuple((dh - 1) * img_w + (dw - 1)
                       for dh in range(3) for dw in range(3))

    # Hoisted: one (1, M) boundary mask per non-center tap, read ONCE at kernel
    # entry and reused by all layers (JAX does not CSE the per-layer
    # load+broadcast these would otherwise re-emit).
    masks = [mask_ref[pl.ds(ti, 1), :] if ti != 4 else None for ti in range(9)]

    def tap(x, ti):
        # shifted[m] = x[(m + s) mod M]; out-of-image taps zeroed by the mask.
        s = tap_shifts[ti]
        if ti == 4:                          # center tap: no shift, always valid
            return x
        shifted = pltpu.roll(x, shift=(-s) % m, axis=1)
        return shifted * masks[ti]           # (IC, M) * (1, M)

    def conv_mxu(x, w_ref):
        # Per-tap accumulated matmuls: no (9*IC, M) im2col staging buffer; taps
        # are consumed straight out of vregs by the MXU.  Also covers the final
        # 32->1 layer (9 tiny (1,32)x(32,M) matmuls, zero staging).
        # TODO(synk): on v7x, confirm the 9 partials accumulate in the MRB
        #             (else drive pltpu.matmul_acc_lhs explicitly).
        y = None
        for ti in range(9):
            p = jnp.dot(w_ref[ti], tap(x, ti),
                        preferred_element_type=jnp.float32)   # (OC,IC)@(IC,M)
            y = p if y is None else y + p
        return y

    def conv_ic1(x, w_ref):
        # IC == 1 first layer: 9 broadcast outer products on the VPU
        # (K = 9 is too small to be worth MXU staging).
        oc = w_ref.shape[1]
        y = jnp.zeros((oc, m), jnp.float32)
        for ti in range(9):
            y = y + w_ref[ti] * tap(x, ti)   # (OC,1)*(1,M) -> (OC,M)
        return y

    def bn_elu(y):
        # BatchNorm2d (training-mode batch stats over all N*H*W, identity
        # affine) with FUSED reductions: sum and sum-of-squares in one pass,
        # var = E[y^2] - mean^2 (biased).  Cancellation negligible in f32 at
        # this M; re-check if stats move to lower precision / much larger M.
        s1 = jnp.sum(y, axis=1, keepdims=True)
        s2 = jnp.sum(y * y, axis=1, keepdims=True)
        mean = s1 * inv_m
        var = s2 * inv_m - mean * mean
        yn = (y - mean) * lax.rsqrt(var + eps)
        # ELU(alpha=1).  TODO(synk): expm1 marginally more accurate near 0.
        return jnp.where(yn > 0.0, yn, jnp.exp(yn) - 1.0)

    a = x_ref[...]                           # (C0, M), lane-dense M
    for w_ref_l, apply_bn in zip(w_refs, bn_flags):
        if w_ref_l.shape[-1] == 1:
            a = conv_ic1(a, w_ref_l)
        else:
            a = conv_mxu(a, w_ref_l)
        if apply_bn:
            a = bn_elu(a)
    o_ref[...] = a.astype(o_ref.dtype)


# ---------------------------------------------------------------------------
# Parameter construction (mirrors Conv.__init__ / Conv.forward)
# ---------------------------------------------------------------------------
def make_conv_params(key, ic, oc):
    # kaiming_uniform_(a=sqrt(5)) on (oc, ic, 9): U(-b, b), b = 1/sqrt(ic*9)
    bound = 1.0 / math.sqrt(ic * 9)
    w = jax.random.uniform(key, (oc, ic, 9), jnp.float32, -bound, bound)
    init_p = jnp.zeros((ic, 9, 9), jnp.float32)          # self.init (zeros)
    return w, init_p


def build_weight(w, init_p):
    # Conv.forward: init = self.init + eye(9); weight[d,a,b] = sum_c init[a,b,c]*w[d,a,c]
    oc, ic, _ = w.shape
    init_mat = init_p + jnp.tile(jnp.eye(9, dtype=jnp.float32)[None], (ic, 1, 1))
    return jnp.einsum("abc,dac->dab", init_mat, w).reshape(oc, ic, 3, 3)


def pack_weight(weight):
    # (OC, IC, 3, 3) torch layout -> (9, OC, IC), tap index ti = kh*3 + kw,
    # matching the per-tap accumulation path in the kernel.
    oc, ic, _, _ = weight.shape
    return jnp.transpose(weight.reshape(oc, ic, 9), (2, 0, 1))


def _make_tap_masks(n, h, w):
    # mask[t, m] = 1 if tap t of output pixel m lands inside the image.  (9, M)
    idx = np.arange(n * h * w)
    col = idx % w
    row = (idx // w) % h
    masks = []
    for dh in range(3):
        for dw in range(3):
            rr = row + dh - 1
            cc = col + dw - 1
            masks.append(((rr >= 0) & (rr < h) & (cc >= 0) & (cc < w))
                         .astype(np.float32))
    return jnp.asarray(np.stack(masks, axis=0))          # (9, M)


# ---------------------------------------------------------------------------
# Wrapper: NCHW in -> NCHW out, one pallas_call for the whole stack
# ---------------------------------------------------------------------------
def _full_spec(shape):
    if len(shape) == 2:
        return pl.BlockSpec(shape, lambda i: (0, 0))
    return pl.BlockSpec(shape, lambda i: (0, 0, 0))


def post_layer_forward(x_nchw, weights, bn_flags):
    N, C, H, W = x_nchw.shape
    M = N * H * W
    # channels-on-sublane, flattened-space-on-lane layout: (C, M), M mult. of 128
    x2d = jnp.transpose(x_nchw.astype(jnp.float32), (1, 0, 2, 3)).reshape(C, M)
    masks = _make_tap_masks(N, H, W)

    oc_out = weights[-1].shape[1]            # weights are (9, OC, IC)

    # Advisory cost estimate for the XLA scheduler.
    flops, transcendentals = 0, 0
    bytes_accessed = (x2d.size + masks.size + oc_out * M) * 4
    for wt, bn in zip(weights, bn_flags):
        _, oc, ic = wt.shape
        flops += 2 * M * 9 * ic * oc
        bytes_accessed += wt.size * 4
        if bn:
            transcendentals += M * oc
            flops += 8 * M * oc
    cost = pl.CostEstimate(flops=flops, transcendentals=transcendentals,
                           bytes_accessed=int(bytes_accessed))

    kernel = functools.partial(_post_layer_kernel, img_w=W,
                               bn_flags=tuple(bn_flags), eps=1e-5)

    in_specs = [_full_spec(masks.shape), _full_spec(x2d.shape)]
    in_specs += [_full_spec(tuple(wt.shape)) for wt in weights]

    out = pl.pallas_call(
        kernel,
        out_shape=jax.ShapeDtypeStruct((oc_out, M), jnp.float32),
        grid=(1,),
        in_specs=in_specs,
        out_specs=pl.BlockSpec((oc_out, M), lambda i: (0, 0)),
        compiler_params=pltpu.CompilerParams(dimension_semantics=("arbitrary",)),
        cost_estimate=cost,
    )(masks, x2d, *weights)

    return jnp.transpose(out.reshape(oc_out, N, H, W), (1, 0, 2, 3))   # NCHW


# ---------------------------------------------------------------------------
# Pure-XLA reference (conv2d pad=1 -> train-mode BN (identity affine) -> ELU)
# ---------------------------------------------------------------------------
def _reference_forward(x_nchw, conv_weights, bn_flags, eps=1e-5):
    a = x_nchw.astype(jnp.float32)
    for w, bn in zip(conv_weights, bn_flags):
        a = lax.conv_general_dilated(
            a, w, window_strides=(1, 1), padding=((1, 1), (1, 1)),
            dimension_numbers=("NCHW", "OIHW", "NCHW"),
            precision=lax.Precision.HIGHEST)
        if bn:
            mean = jnp.mean(a, axis=(0, 2, 3), keepdims=True)
            var = jnp.mean(jnp.square(a - mean), axis=(0, 2, 3), keepdims=True)
            a = (a - mean) * lax.rsqrt(var + eps)
            a = jnp.where(a > 0.0, a, jnp.exp(a) - 1.0)   # ELU(alpha=1)
    return a


if __name__ == "__main__":
    key = jax.random.PRNGKey(0)
    keys = jax.random.split(key, 7)

    # x_recon: (N=2, C=1, H=16, W=16), PyTorch NCHW convention
    x = jax.random.normal(keys[0], (2, 1, 16, 16), jnp.float32)

    # conv_in (1->32)+BN+ELU, 4x conv (32->32)+BN+ELU, conv_out (32->1) plain
    layer_cfg = [(1, 32, True)] + [(32, 32, True)] * 4 + [(32, 1, False)]
    torch_weights, kernel_weights, bn_flags = [], [], []
    for i, (ic, oc, bn) in enumerate(layer_cfg):
        w, init_p = make_conv_params(keys[i + 1], ic, oc)
        wt = build_weight(w, init_p)                 # (OC, IC, 3, 3)
        torch_weights.append(wt)
        kernel_weights.append(pack_weight(wt))       # (9, OC, IC)
        bn_flags.append(bn)

    out = post_layer_forward(x, kernel_weights, bn_flags)
    out = jax.block_until_ready(out)
    assert out.shape == (2, 1, 16, 16), out.shape
    assert out.dtype == jnp.float32

    # Numerical check against the XLA conv/BN/ELU reference (tolerance covers
    # MXU f32-matmul precision-mode differences; structural bugs give O(1) err).
    ref = _reference_forward(x, torch_weights, bn_flags)
    rel = float(jnp.linalg.norm(out - ref) / (jnp.linalg.norm(ref) + 1e-12))
    assert rel < 5e-2, f"relative L2 error vs reference too large: {rel}"

    print("KERNEL_OK")
</pallas_src>

<mosaic_0001>
module attributes {stable_mosaic.version = 11 : i64} {
  func.func @_post_layer_kernel(%arg0: i32, %arg1: memref<9x512xf32, #tpu.memory_space<vmem>>, %arg2: memref<1x512xf32, #tpu.memory_space<vmem>>, %arg3: memref<9x32x1xf32, #tpu.memory_space<vmem>>, %arg4: memref<9x32x32xf32, #tpu.memory_space<vmem>>, %arg5: memref<9x32x32xf32, #tpu.memory_space<vmem>>, %arg6: memref<9x32x32xf32, #tpu.memory_space<vmem>>, %arg7: memref<9x32x32xf32, #tpu.memory_space<vmem>>, %arg8: memref<9x1x32xf32, #tpu.memory_space<vmem>>, %arg9: memref<1x512xf32, #tpu.memory_space<vmem>>) attributes {dimension_semantics = [#tpu.dimension_semantics<arbitrary>], iteration_bounds = array<i64: 1>, scalar_prefetch = 0 : i64, scratch_operands = 0 : i64, tpu.core_type = #tpu.core_type<tc>, window_params = [{pipeline_mode = #tpu.pipeline_mode<synchronous>, transform_indices = @transform_0, window_bounds = array<i64: 9, 512>}, {pipeline_mode = #tpu.pipeline_mode<synchronous>, transform_indices = @transform_1, window_bounds = array<i64: 1, 512>}, {pipeline_mode = #tpu.pipeline_mode<synchronous>, transform_indices = @transform_2, window_bounds = array<i64: 9, 32, 1>}, {pipeline_mode = #tpu.pipeline_mode<synchronous>, transform_indices = @transform_3, window_bounds = array<i64: 9, 32, 32>}, {pipeline_mode = #tpu.pipeline_mode<synchronous>, transform_indices = @transform_4, window_bounds = array<i64: 9, 32, 32>}, {pipeline_mode = #tpu.pipeline_mode<synchronous>, transform_indices = @transform_5, window_bounds = array<i64: 9, 32, 32>}, {pipeline_mode = #tpu.pipeline_mode<synchronous>, transform_indices = @transform_6, window_bounds = array<i64: 9, 32, 32>}, {pipeline_mode = #tpu.pipeline_mode<synchronous>, transform_indices = @transform_7, window_bounds = array<i64: 9, 1, 32>}, {pipeline_mode = #tpu.pipeline_mode<synchronous>, transform_indices = @transform_8, window_bounds = array<i64: 1, 512>}]} {
    %c0 = arith.constant 0 : index
    %c0_0 = arith.constant 0 : index
    %0 = vector.load %arg1[%c0, %c0_0] : memref<9x512xf32, #tpu.memory_space<vmem>>, vector<1x512xf32>
    %c1 = arith.constant 1 : index
    %c0_1 = arith.constant 0 : index
    %1 = vector.load %arg1[%c1, %c0_1] : memref<9x512xf32, #tpu.memory_space<vmem>>, vector<1x512xf32>
    %c2 = arith.constant 2 : index
    %c0_2 = arith.constant 0 : index
    %2 = vector.load %arg1[%c2, %c0_2] : memref<9x512xf32, #tpu.memory_space<vmem>>, vector<1x512xf32>
    %c3 = arith.constant 3 : index
    %c0_3 = arith.constant 0 : index
    %3 = vector.load %arg1[%c3, %c0_3] : memref<9x512xf32, #tpu.memory_space<vmem>>, vector<1x512xf32>
    %c5 = arith.constant 5 : index
    %c0_4 = arith.constant 0 : index
    %4 = vector.load %arg1[%c5, %c0_4] : memref<9x512xf32, #tpu.memory_space<vmem>>, vector<1x512xf32>
    %c6 = arith.constant 6 : index
    %c0_5 = arith.constant 0 : index
    %5 = vector.load %arg1[%c6, %c0_5] : memref<9x512xf32, #tpu.memory_space<vmem>>, vector<1x512xf32>
    %c7 = arith.constant 7 : index
    %c0_6 = arith.constant 0 : index
    %6 = vector.load %arg1[%c7, %c0_6] : memref<9x512xf32, #tpu.memory_space<vmem>>, vector<1x512xf32>
    %c8 = arith.constant 8 : index
    %c0_7 = arith.constant 0 : index
    %7 = vector.load %arg1[%c8, %c0_7] : memref<9x512xf32, #tpu.memory_space<vmem>>, vector<1x512xf32>
    %c0_8 = arith.constant 0 : index
    %c0_9 = arith.constant 0 : index
    %8 = vector.load %arg2[%c0_8, %c0_9] : memref<1x512xf32, #tpu.memory_space<vmem>>, vector<1x512xf32>
    %cst = arith.constant 0.000000e+00 : f32
    %9 = vector.broadcast %cst : f32 to vector<32x512xf32>
    %c0_10 = arith.constant 0 : index
    %c0_11 = arith.constant 0 : index
    %c0_12 = arith.constant 0 : index
    %10 = vector.load %arg3[%c0_10, %c0_11, %c0_12] : memref<9x32x1xf32, #tpu.memory_space<vmem>>, vector<1x32x1xf32>
    %11 = vector.shape_cast %10 : vector<1x32x1xf32> to vector<32x1xf32>
    %c17_i32 = arith.constant 17 : i32
    %12 = tpu.dynamic_rotate %8 by %c17_i32 dim 1 : vector<1x512xf32>, i32 -> vector<1x512xf32>
    %13 = arith.mulf %12, %0 : vector<1x512xf32>
    %14 = vector.broadcast %11 : vector<32x1xf32> to vector<32x512xf32>
    %15 = vector.broadcast %13 : vector<1x512xf32> to vector<32x512xf32>
    %16 = arith.mulf %14, %15 : vector<32x512xf32>
    %17 = arith.addf %9, %16 : vector<32x512xf32>
    %c1_13 = arith.constant 1 : index
    %c0_14 = arith.constant 0 : index
    %c0_15 = arith.constant 0 : index
    %18 = vector.load %arg3[%c1_13, %c0_14, %c0_15] : memref<9x32x1xf32, #tpu.memory_space<vmem>>, vector<1x32x1xf32>
    %19 = vector.shape_cast %18 : vector<1x32x1xf32> to vector<32x1xf32>
    %c16_i32 = arith.constant 16 : i32
    %20 = tpu.dynamic_rotate %8 by %c16_i32 dim 1 : vector<1x512xf32>, i32 -> vector<1x512xf32>
    %21 = arith.mulf %20, %1 : vector<1x512xf32>
    %22 = vector.broadcast %19 : vector<32x1xf32> to vector<32x512xf32>
    %23 = vector.broadcast %21 : vector<1x512xf32> to vector<32x512xf32>
    %24 = arith.mulf %22, %23 : vector<32x512xf32>
    %25 = arith.addf %17, %24 : vector<32x512xf32>
    %c2_16 = arith.constant 2 : index
    %c0_17 = arith.constant 0 : index
    %c0_18 = arith.constant 0 : index
    %26 = vector.load %arg3[%c2_16, %c0_17, %c0_18] : memref<9x32x1xf32, #tpu.memory_space<vmem>>, vector<1x32x1xf32>
    %27 = vector.shape_cast %26 : vector<1x32x1xf32> to vector<32x1xf32>
    %c15_i32 = arith.constant 15 : i32
    %28 = tpu.dynamic_rotate %8 by %c15_i32 dim 1 : vector<1x512xf32>, i32 -> vector<1x512xf32>
    %29 = arith.mulf %28, %2 : vector<1x512xf32>
    %30 = vector.broadcast %27 : vector<32x1xf32> to vector<32x512xf32>
    %31 = vector.broadcast %29 : vector<1x512xf32> to vector<32x512xf32>
    %32 = arith.mulf %30, %31 : vector<32x512xf32>
    %33 = arith.addf %25, %32 : vector<32x512xf32>
    %c3_19 = arith.constant 3 : index
    %c0_20 = arith.constant 0 : index
    %c0_21 = arith.constant 0 : index
    %34 = vector.load %arg3[%c3_19, %c0_20, %c0_21] : memref<9x32x1xf32, #tpu.memory_space<vmem>>, vector<1x32x1xf32>
    %35 = vector.shape_cast %34 : vector<1x32x1xf32> to vector<32x1xf32>
    %c1_i32 = arith.constant 1 : i32
    %36 = tpu.dynamic_rotate %8 by %c1_i32 dim 1 : vector<1x512xf32>, i32 -> vector<1x512xf32>
    %37 = arith.mulf %36, %3 : vector<1x512xf32>
    %38 = vector.broadcast %35 : vector<32x1xf32> to vector<32x512xf32>
    %39 = vector.broadcast %37 : vector<1x512xf32> to vector<32x512xf32>
    %40 = arith.mulf %38, %39 : vector<32x512xf32>
    %41 = arith.addf %33, %40 : vector<32x512xf32>
    %c4 = arith.constant 4 : index
    %c0_22 = arith.constant 0 : index
    %c0_23 = arith.constant 0 : index
    %42 = vector.load %arg3[%c4, %c0_22, %c0_23] : memref<9x32x1xf32, #tpu.memory_space<vmem>>, vector<1x32x1xf32>
    %43 = vector.shape_cast %42 : vector<1x32x1xf32> to vector<32x1xf32>
    %44 = vector.broadcast %43 : vector<32x1xf32> to vector<32x512xf32>
    %45 = vector.broadcast %8 : vector<1x512xf32> to vector<32x512xf32>
    %46 = arith.mulf %44, %45 : vector<32x512xf32>
    %47 = arith.addf %41, %46 : vector<32x512xf32>
    %c5_24 = arith.constant 5 : index
    %c0_25 = arith.constant 0 : index
    %c0_26 = arith.constant 0 : index
    %48 = vector.load %arg3[%c5_24, %c0_25, %c0_26] : memref<9x32x1xf32, #tpu.memory_space<vmem>>, vector<1x32x1xf32>
    %49 = vector.shape_cast %48 : vector<1x32x1xf32> to vector<32x1xf32>
    %c511_i32 = arith.constant 511 : i32
    %50 = tpu.dynamic_rotate %8 by %c511_i32 dim 1 : vector<1x512xf32>, i32 -> vector<1x512xf32>
    %51 = arith.mulf %50, %4 : vector<1x512xf32>
    %52 = vector.broadcast %49 : vector<32x1xf32> to vector<32x512xf32>
    %53 = vector.broadcast %51 : vector<1x512xf32> to vector<32x512xf32>
    %54 = arith.mulf %52, %53 : vector<32x512xf32>
    %55 = arith.addf %47, %54 : vector<32x512xf32>
    %c6_27 = arith.constant 6 : index
    %c0_28 = arith.constant 0 : index
    %c0_29 = arith.constant 0 : index
    %56 = vector.load %arg3[%c6_27, %c0_28, %c0_29] : memref<9x32x1xf32, #tpu.memory_space<vmem>>, vector<1x32x1xf32>
    %57 = vector.shape_cast %56 : vector<1x32x1xf32> to vector<32x1xf32>
    %c497_i32 = arith.constant 497 : i32
    %58 = tpu.dynamic_rotate %8 by %c497_i32 dim 1 : vector<1x512xf32>, i32 -> vector<1x512xf32>
    %59 = arith.mulf %58, %5 : vector<1x512xf32>
    %60 = vector.broadcast %57 : vector<32x1xf32> to vector<32x512xf32>
    %61 = vector.broadcast %59 : vector<1x512xf32> to vector<32x512xf32>
    %62 = arith.mulf %60, %61 : vector<32x512xf32>
    %63 = arith.addf %55, %62 : vector<32x512xf32>
    %c7_30 = arith.constant 7 : index
    %c0_31 = arith.constant 0 : index
    %c0_32 = arith.constant 0 : index
    %64 = vector.load %arg3[%c7_30, %c0_31, %c0_32] : memref<9x32x1xf32, #tpu.memory_space<vmem>>, vector<1x32x1xf32>
    %65 = vector.shape_cast %64 : vector<1x32x1xf32> to vector<32x1xf32>
    %c496_i32 = arith.constant 496 : i32
    %66 = tpu.dynamic_rotate %8 by %c496_i32 dim 1 : vector<1x512xf32>, i32 -> vector<1x512xf32>
    %67 = arith.mulf %66, %6 : vector<1x512xf32>
    %68 = vector.broadcast %65 : vector<32x1xf32> to vector<32x512xf32>
    %69 = vector.broadcast %67 : vector<1x512xf32> to vector<32x512xf32>
    %70 = arith.mulf %68, %69 : vector<32x512xf32>
    %71 = arith.addf %63, %70 : vector<32x512xf32>
    %c8_33 = arith.constant 8 : index
    %c0_34 = arith.constant 0 : index
    %c0_35 = arith.constant 0 : index
    %72 = vector.load %arg3[%c8_33, %c0_34, %c0_35] : memref<9x32x1xf32, #tpu.memory_space<vmem>>, vector<1x32x1xf32>
    %73 = vector.shape_cast %72 : vector<1x32x1xf32> to vector<32x1xf32>
    %c495_i32 = arith.constant 495 : i32
    %74 = tpu.dynamic_rotate %8 by %c495_i32 dim 1 : vector<1x512xf32>, i32 -> vector<1x512xf32>
    %75 = arith.mulf %74, %7 : vector<1x512xf32>
    %76 = vector.broadcast %73 : vector<32x1xf32> to vector<32x512xf32>
    %77 = vector.broadcast %75 : vector<1x512xf32> to vector<32x512xf32>
    %78 = arith.mulf %76, %77 : vector<32x512xf32>
    %79 = arith.addf %71, %78 : vector<32x512xf32>
    %cst_36 = arith.constant dense<0.000000e+00> : vector<32xf32>
    %80 = vector.multi_reduction <add>, %79, %cst_36 [1] : vector<32x512xf32> to vector<32xf32>
    %81 = vector.shape_cast %80 : vector<32xf32> to vector<32x1xf32>
    %82 = arith.mulf %79, %79 : vector<32x512xf32>
    %cst_37 = arith.constant dense<0.000000e+00> : vector<32xf32>
    %83 = vector.multi_reduction <add>, %82, %cst_37 [1] : vector<32x512xf32> to vector<32xf32>
    %84 = vector.shape_cast %83 : vector<32xf32> to vector<32x1xf32>
    %cst_38 = arith.constant 0.001953125 : f32
    %85 = vector.broadcast %cst_38 : f32 to vector<32x1xf32>
    %86 = arith.mulf %81, %85 : vector<32x1xf32>
    %cst_39 = arith.constant 0.001953125 : f32
    %87 = vector.broadcast %cst_39 : f32 to vector<32x1xf32>
    %88 = arith.mulf %84, %87 : vector<32x1xf32>
    %89 = arith.mulf %86, %86 : vector<32x1xf32>
    %90 = arith.subf %88, %89 : vector<32x1xf32>
    %91 = vector.broadcast %86 : vector<32x1xf32> to vector<32x512xf32>
    %92 = arith.subf %79, %91 : vector<32x512xf32>
    %cst_40 = arith.constant 9.99999974E-6 : f32
    %93 = vector.broadcast %cst_40 : f32 to vector<32x1xf32>
    %94 = arith.addf %90, %93 : vector<32x1xf32>
    %95 = math.rsqrt %94 : vector<32x1xf32>
    %96 = vector.broadcast %95 : vector<32x1xf32> to vector<32x512xf32>
    %97 = arith.mulf %92, %96 : vector<32x512xf32>
    %cst_41 = arith.constant 0.000000e+00 : f32
    %98 = vector.broadcast %cst_41 : f32 to vector<32x512xf32>
    %99 = arith.cmpf ogt, %97, %98 : vector<32x512xf32>
    %100 = math.exp %97 : vector<32x512xf32>
    %cst_42 = arith.constant 1.000000e+00 : f32
    %101 = vector.broadcast %cst_42 : f32 to vector<32x512xf32>
    %102 = arith.subf %100, %101 : vector<32x512xf32>
    %103 = arith.select %99, %97, %102 : vector<32x512xi1>, vector<32x512xf32>
    %c0_43 = arith.constant 0 : index
    %c0_44 = arith.constant 0 : index
    %c0_45 = arith.constant 0 : index
    %104 = vector.load %arg4[%c0_43, %c0_44, %c0_45] : memref<9x32x32xf32, #tpu.memory_space<vmem>>, vector<1x32x32xf32>
    %105 = vector.shape_cast %104 : vector<1x32x32xf32> to vector<32x32xf32>
    %c17_i32_46 = arith.constant 17 : i32
    %106 = tpu.dynamic_rotate %103 by %c17_i32_46 dim 1 : vector<32x512xf32>, i32 -> vector<32x512xf32>
    %107 = vector.broadcast %0 : vector<1x512xf32> to vector<32x512xf32>
    %108 = arith.mulf %106, %107 : vector<32x512xf32>
    %cst_47 = arith.constant dense<0.000000e+00> : vector<32x512xf32>
    %109 = tpu.matmul %105, %108, %cst_47 {dimension_numbers = #tpu.dot_dimension_numbers<[1], [0], [0], [1], [0, 0, 1, 1], [], []>} : vector<32x32xf32>, vector<32x512xf32>, vector<32x512xf32> -> vector<32x512xf32>
    %c1_48 = arith.constant 1 : index
    %c0_49 = arith.constant 0 : index
    %c0_50 = arith.constant 0 : index
    %110 = vector.load %arg4[%c1_48, %c0_49, %c0_50] : memref<9x32x32xf32, #tpu.memory_space<vmem>>, vector<1x32x32xf32>
    %111 = vector.shape_cast %110 : vector<1x32x32xf32> to vector<32x32xf32>
    %c16_i32_51 = arith.constant 16 : i32
    %112 = tpu.dynamic_rotate %103 by %c16_i32_51 dim 1 : vector<32x512xf32>, i32 -> vector<32x512xf32>
    %113 = vector.broadcast %1 : vector<1x512xf32> to vector<32x512xf32>
    %114 = arith.mulf %112, %113 : vector<32x512xf32>
    %cst_52 = arith.constant dense<0.000000e+00> : vector<32x512xf32>
    %115 = tpu.matmul %111, %114, %cst_52 {dimension_numbers = #tpu.dot_dimension_numbers<[1], [0], [0], [1], [0, 0, 1, 1], [], []>} : vector<32x32xf32>, vector<32x512xf32>, vector<32x512xf32> -> vector<32x512xf32>
    %116 = arith.addf %109, %115 : vector<32x512xf32>
    %c2_53 = arith.constant 2 : index
    %c0_54 = arith.constant 0 : index
    %c0_55 = arith.constant 0 : index
    %117 = vector.load %arg4[%c2_53, %c0_54, %c0_55] : memref<9x32x32xf32, #tpu.memory_space<vmem>>, vector<1x32x32xf32>
    %118 = vector.shape_cast %117 : vector<1x32x32xf32> to vector<32x32xf32>
    %c15_i32_56 = arith.constant 15 : i32
    %119 = tpu.dynamic_rotate %103 by %c15_i32_56 dim 1 : vector<32x512xf32>, i32 -> vector<32x512xf32>
    %120 = vector.broadcast %2 : vector<1x512xf32> to vector<32x512xf32>
    %121 = arith.mulf %119, %120 : vector<32x512xf32>
    %cst_57 = arith.constant dense<0.000000e+00> : vector<32x512xf32>
    %122 = tpu.matmul %118, %121, %cst_57 {dimension_numbers = #tpu.dot_dimension_numbers<[1], [0], [0], [1], [0, 0, 1, 1], [], []>} : vector<32x32xf32>, vector<32x512xf32>, vector<32x512xf32> -> vector<32x512xf32>
    %123 = arith.addf %116, %122 : vector<32x512xf32>
    %c3_58 = arith.constant 3 : index
    %c0_59 = arith.constant 0 : index
    %c0_60 = arith.constant 0 : index
    %124 = vector.load %arg4[%c3_58, %c0_59, %c0_60] : memref<9x32x32xf32, #tpu.memory_space<vmem>>, vector<1x32x32xf32>
    %125 = vector.shape_cast %124 : vector<1x32x32xf32> to vector<32x32xf32>
    %c1_i32_61 = arith.constant 1 : i32
    %126 = tpu.dynamic_rotate %103 by %c1_i32_61 dim 1 : vector<32x512xf32>, i32 -> vector<32x512xf32>
    %127 = vector.broadcast %3 : vector<1x512xf32> to vector<32x512xf32>
    %128 = arith.mulf %126, %127 : vector<32x512xf32>
    %cst_62 = arith.constant dense<0.000000e+00> : vector<32x512xf32>
    %129 = tpu.matmul %125, %128, %cst_62 {dimension_numbers = #tpu.dot_dimension_numbers<[1], [0], [0], [1], [0, 0, 1, 1], [], []>} : vector<32x32xf32>, vector<32x512xf32>, vector<32x512xf32> -> vector<32x512xf32>
    %130 = arith.addf %123, %129 : vector<32x512xf32>
    %c4_63 = arith.constant 4 : index
    %c0_64 = arith.constant 0 : index
    %c0_65 = arith.constant 0 : index
    %131 = vector.load %arg4[%c4_63, %c0_64, %c0_65] : memref<9x32x32xf32, #tpu.memory_space<vmem>>, vector<1x32x32xf32>
    %132 = vector.shape_cast %131 : vector<1x32x32xf32> to vector<32x32xf32>
    %cst_66 = arith.constant dense<0.000000e+00> : vector<32x512xf32>
    %133 = tpu.matmul %132, %103, %cst_66 {dimension_numbers = #tpu.dot_dimension_numbers<[1], [0], [0], [1], [0, 0, 1, 1], [], []>} : vector<32x32xf32>, vector<32x512xf32>, vector<32x512xf32> -> vector<32x512xf32>
    %134 = arith.addf %130, %133 : vector<32x512xf32>
    %c5_67 = arith.constant 5 : index
    %c0_68 = arith.constant 0 : index
    %c0_69 = arith.constant 0 : index
    %135 = vector.load %arg4[%c5_67, %c0_68, %c0_69] : memref<9x32x32xf32, #tpu.memory_space<vmem>>, vector<1x32x32xf32>
    %136 = vector.shape_cast %135 : vector<1x32x32xf32> to vector<32x32xf32>
    %c511_i32_70 = arith.constant 511 : i32
    %137 = tpu.dynamic_rotate %103 by %c511_i32_70 dim 1 : vector<32x512xf32>, i32 -> vector<32x512xf32>
    %138 = vector.broadcast %4 : vector<1x512xf32> to vector<32x512xf32>
    %139 = arith.mulf %137, %138 : vector<32x512xf32>
    %cst_71 = arith.constant dense<0.000000e+00> : vector<32x512xf32>
    %140 = tpu.matmul %136, %139, %cst_71 {dimension_numbers = #tpu.dot_dimension_numbers<[1], [0], [0], [1], [0, 0, 1, 1], [], []>} : vector<32x32xf32>, vector<32x512xf32>, vector<32x512xf32> -> vector<32x512xf32>
    %141 = arith.addf %134, %140 : vector<32x512xf32>
    %c6_72 = arith.constant 6 : index
    %c0_73 = arith.constant 0 : index
    %c0_74 = arith.constant 0 : index
    %142 = vector.load %arg4[%c6_72, %c0_73, %c0_74] : memref<9x32x32xf32, #tpu.memory_space<vmem>>, vector<1x32x32xf32>
    %143 = vector.shape_cast %142 : vector<1x32x32xf32> to vector<32x32xf32>
    %c497_i32_75 = arith.constant 497 : i32
    %144 = tpu.dynamic_rotate %103 by %c497_i32_75 dim 1 : vector<32x512xf32>, i32 -> vector<32x512xf32>
    %145 = vector.broadcast %5 : vector<1x512xf32> to vector<32x512xf32>
    %146 = arith.mulf %144, %145 : vector<32x512xf32>
    %cst_76 = arith.constant dense<0.000000e+00> : vector<32x512xf32>
    %147 = tpu.matmul %143, %146, %cst_76 {dimension_numbers = #tpu.dot_dimension_numbers<[1], [0], [0], [1], [0, 0, 1, 1], [], []>} : vector<32x32xf32>, vector<32x512xf32>, vector<32x512xf32> -> vector<32x512xf32>
    %148 = arith.addf %141, %147 : vector<32x512xf32>
    %c7_77 = arith.constant 7 : index
    %c0_78 = arith.constant 0 : index
    %c0_79 = arith.constant 0 : index
    %149 = vector.load %arg4[%c7_77, %c0_78, %c0_79] : memref<9x32x32xf32, #tpu.memory_space<vmem>>, vector<1x32x32xf32>
    %150 = vector.shape_cast %149 : vector<1x32x32xf32> to vector<32x32xf32>
    %c496_i32_80 = arith.constant 496 : i32
    %151 = tpu.dynamic_rotate %103 by %c496_i32_80 dim 1 : vector<32x512xf32>, i32 -> vector<32x512xf32>
    %152 = vector.broadcast %6 : vector<1x512xf32> to vector<32x512xf32>
    %153 = arith.mulf %151, %152 : vector<32x512xf32>
    %cst_81 = arith.constant dense<0.000000e+00> : vector<32x512xf32>
    %154 = tpu.matmul %150, %153, %cst_81 {dimension_numbers = #tpu.dot_dimension_numbers<[1], [0], [0], [1], [0, 0, 1, 1], [], []>} : vector<32x32xf32>, vector<32x512xf32>, vector<32x512xf32> -> vector<32x512xf32>
    %155 = arith.addf %148, %154 : vector<32x512xf32>
    %c8_82 = arith.constant 8 : index
    %c0_83 = arith.constant 0 : index
    %c0_84 = arith.constant 0 : index
    %156 = vector.load %arg4[%c8_82, %c0_83, %c0_84] : memref<9x32x32xf32, #tpu.memory_space<vmem>>, vector<1x32x32xf32>
    %157 = vector.shape_cast %156 : vector<1x32x32xf32> to vector<32x32xf32>
    %c495_i32_85 = arith.constant 495 : i32
    %158 = tpu.dynamic_rotate %103 by %c495_i32_85 dim 1 : vector<32x512xf32>, i32 -> vector<32x512xf32>
    %159 = vector.broadcast %7 : vector<1x512xf32> to vector<32x512xf32>
    %160 = arith.mulf %158, %159 : vector<32x512xf32>
    %cst_86 = arith.constant dense<0.000000e+00> : vector<32x512xf32>
    %161 = tpu.matmul %157, %160, %cst_86 {dimension_numbers = #tpu.dot_dimension_numbers<[1], [0], [0], [1], [0, 0, 1, 1], [], []>} : vector<32x32xf32>, vector<32x512xf32>, vector<32x512xf32> -> vector<32x512xf32>
    %162 = arith.addf %155, %161 : vector<32x512xf32>
    %cst_87 = arith.constant dense<0.000000e+00> : vector<32xf32>
    %163 = vector.multi_reduction <add>, %162, %cst_87 [1] : vector<32x512xf32> to vector<32xf32>
    %164 = vector.shape_cast %163 : vector<32xf32> to vector<32x1xf32>
    %165 = arith.mulf %162, %162 : vector<32x512xf32>
    %cst_88 = arith.constant dense<0.000000e+00> : vector<32xf32>
    %166 = vector.multi_reduction <add>, %165, %cst_88 [1] : vector<32x512xf32> to vector<32xf32>
    %167 = vector.shape_cast %166 : vector<32xf32> to vector<32x1xf32>
    %cst_89 = arith.constant 0.001953125 : f32
    %168 = vector.broadcast %cst_89 : f32 to vector<32x1xf32>
    %169 = arith.mulf %164, %168 : vector<32x1xf32>
    %cst_90 = arith.constant 0.001953125 : f32
    %170 = vector.broadcast %cst_90 : f32 to vector<32x1xf32>
    %171 = arith.mulf %167, %170 : vector<32x1xf32>
    %172 = arith.mulf %169, %169 : vector<32x1xf32>
    %173 = arith.subf %171, %172 : vector<32x1xf32>
    %174 = vector.broadcast %169 : vector<32x1xf32> to vector<32x512xf32>
    %175 = arith.subf %162, %174 : vector<32x512xf32>
    %cst_91 = arith.constant 9.99999974E-6 : f32
    %176 = vector.broadcast %cst_91 : f32 to vector<32x1xf32>
    %177 = arith.addf %173, %176 : vector<32x1xf32>
    %178 = math.rsqrt %177 : vector<32x1xf32>
    %179 = vector.broadcast %178 : vector<32x1xf32> to vector<32x512xf32>
    %180 = arith.mulf %175, %179 : vector<32x512xf32>
    %cst_92 = arith.constant 0.000000e+00 : f32
    %181 = vector.broadcast %cst_92 : f32 to vector<32x512xf32>
    %182 = arith.cmpf ogt, %180, %181 : vector<32x512xf32>
    %183 = math.exp %180 : vector<32x512xf32>
    %cst_93 = arith.constant 1.000000e+00 : f32
    %184 = vector.broadcast %cst_93 : f32 to vector<32x512xf32>
    %185 = arith.subf %183, %184 : vector<32x512xf32>
    %186 = arith.select %182, %180, %185 : vector<32x512xi1>, vector<32x512xf32>
    %c0_94 = arith.constant 0 : index
    %c0_95 = arith.constant 0 : index
    %c0_96 = arith.constant 0 : index
    %187 = vector.load %arg5[%c0_94, %c0_95, %c0_96] : memref<9x32x32xf32, #tpu.memory_space<vmem>>, vector<1x32x32xf32>
    %188 = vector.shape_cast %187 : vector<1x32x32xf32> to vector<32x32xf32>
    %c17_i32_97 = arith.constant 17 : i32
    %189 = tpu.dynamic_rotate %186 by %c17_i32_97 dim 1 : vector<32x512xf32>, i32 -> vector<32x512xf32>
    %190 = vector.broadcast %0 : vector<1x512xf32> to vector<32x512xf32>
    %191 = arith.mulf %189, %190 : vector<32x512xf32>
    %cst_98 = arith.constant dense<0.000000e+00> : vector<32x512xf32>
    %192 = tpu.matmul %188, %191, %cst_98 {dimension_numbers = #tpu.dot_dimension_numbers<[1], [0], [0], [1], [0, 0, 1, 1], [], []>} : vector<32x32xf32>, vector<32x512xf32>, vector<32x512xf32> -> vector<32x512xf32>
    %c1_99 = arith.constant 1 : index
    %c0_100 = arith.constant 0 : index
    %c0_101 = arith.constant 0 : index
    %193 = vector.load %arg5[%c1_99, %c0_100, %c0_101] : memref<9x32x32xf32, #tpu.memory_space<vmem>>, vector<1x32x32xf32>
    %194 = vector.shape_cast %193 : vector<1x32x32xf32> to vector<32x32xf32>
    %c16_i32_102 = arith.constant 16 : i32
    %195 = tpu.dynamic_rotate %186 by %c16_i32_102 dim 1 : vector<32x512xf32>, i32 -> vector<32x512xf32>
    %196 = vector.broadcast %1 : vector<1x512xf32> to vector<32x512xf32>
    %197 = arith.mulf %195, %196 : vector<32x512xf32>
    %cst_103 = arith.constant dense<0.000000e+00> : vector<32x512xf32>
    %198 = tpu.matmul %194, %197, %cst_103 {dimension_numbers = #tpu.dot_dimension_numbers<[1], [0], [0], [1], [0, 0, 1, 1], [], []>} : vector<32x32xf32>, vector<32x512xf32>, vector<32x512xf32> -> vector<32x512xf32>
    %199 = arith.addf %192, %198 : vector<32x512xf32>
    %c2_104 = arith.constant 2 : index
    %c0_105 = arith.constant 0 : index
    %c0_106 = arith.constant 0 : index
    %200 = vector.load %arg5[%c2_104, %c0_105, %c0_106] : memref<9x32x32xf32, #tpu.memory_space<vmem>>, vector<1x32x32xf32>
    %201 = vector.shape_cast %200 : vector<1x32x32xf32> to vector<32x32xf32>
    %c15_i32_107 = arith.constant 15 : i32
    %202 = tpu.dynamic_rotate %186 by %c15_i32_107 dim 1 : vector<32x512xf32>, i32 -> vector<32x512xf32>
    %203 = vector.broadcast %2 : vector<1x512xf32> to vector<32x512xf32>
    %204 = arith.mulf %202, %203 : vector<32x512xf32>
    %cst_108 = arith.constant dense<0.000000e+00> : vector<32x512xf32>
    %205 = tpu.matmul %201, %204, %cst_108 {dimension_numbers = #tpu.dot_dimension_numbers<[1], [0], [0], [1], [0, 0, 1, 1], [], []>} : vector<32x32xf32>, vector<32x512xf32>, vector<32x512xf32> -> vector<32x512xf32>
    %206 = arith.addf %199, %205 : vector<32x512xf32>
    %c3_109 = arith.constant 3 : index
    %c0_110 = arith.constant 0 : index
    %c0_111 = arith.constant 0 : index
    %207 = vector.load %arg5[%c3_109, %c0_110, %c0_111] : memref<9x32x32xf32, #tpu.memory_space<vmem>>, vector<1x32x32xf32>
    %208 = vector.shape_cast %207 : vector<1x32x32xf32> to vector<32x32xf32>
    %c1_i32_112 = arith.constant 1 : i32
    %209 = tpu.dynamic_rotate %186 by %c1_i32_112 dim 1 : vector<32x512xf32>, i32 -> vector<32x512xf32>
    %210 = vector.broadcast %3 : vector<1x512xf32> to vector<32x512xf32>
    %211 = arith.mulf %209, %210 : vector<32x512xf32>
    %cst_113 = arith.constant dense<0.000000e+00> : vector<32x512xf32>
    %212 = tpu.matmul %208, %211, %cst_113 {dimension_numbers = #tpu.dot_dimension_numbers<[1], [0], [0], [1], [0, 0, 1, 1], [], []>} : vector<32x32xf32>, vector<32x512xf32>, vector<32x512xf32> -> vector<32x512xf32>
    %213 = arith.addf %206, %212 : vector<32x512xf32>
    %c4_114 = arith.constant 4 : index
    %c0_115 = arith.constant 0 : index
    %c0_116 = arith.constant 0 : index
    %214 = vector.load %arg5[%c4_114, %c0_115, %c0_116] : memref<9x32x32xf32, #tpu.memory_space<vmem>>, vector<1x32x32xf32>
    %215 = vector.shape_cast %214 : vector<1x32x32xf32> to vector<32x32xf32>
    %cst_117 = arith.constant dense<0.000000e+00> : vector<32x512xf32>
    %216 = tpu.matmul %215, %186, %cst_117 {dimension_numbers = #tpu.dot_dimension_numbers<[1], [0], [0], [1], [0, 0, 1, 1], [], []>} : vector<32x32xf32>, vector<32x512xf32>, vector<32x512xf32> -> vector<32x512xf32>
    %217 = arith.addf %213, %216 : vector<32x512xf32>
    %c5_118 = arith.constant 5 : index
    %c0_119 = arith.constant 0 : index
    %c0_120 = arith.constant 0 : index
    %218 = vector.load %arg5[%c5_118, %c0_119, %c0_120] : memref<9x32x32xf32, #tpu.memory_space<vmem>>, vector<1x32x32xf32>
    %219 = vector.shape_cast %218 : vector<1x32x32xf32> to vector<32x32xf32>
    %c511_i32_121 = arith.constant 511 : i32
    %220 = tpu.dynamic_rotate %186 by %c511_i32_121 dim 1 : vector<32x512xf32>, i32 -> vector<32x512xf32>
    %221 = vector.broadcast %4 : vector<1x512xf32> to vector<32x512xf32>
    %222 = arith.mulf %220, %221 : vector<32x512xf32>
    %cst_122 = arith.constant dense<0.000000e+00> : vector<32x512xf32>
    %223 = tpu.matmul %219, %222, %cst_122 {dimension_numbers = #tpu.dot_dimension_numbers<[1], [0], [0], [1], [0, 0, 1, 1], [], []>} : vector<32x32xf32>, vector<32x512xf32>, vector<32x512xf32> -> vector<32x512xf32>
    %224 = arith.addf %217, %223 : vector<32x512xf32>
    %c6_123 = arith.constant 6 : index
    %c0_124 = arith.constant 0 : index
    %c0_125 = arith.constant 0 : index
    %225 = vector.load %arg5[%c6_123, %c0_124, %c0_125] : memref<9x32x32xf32, #tpu.memory_space<vmem>>, vector<1x32x32xf32>
    %226 = vector.shape_cast %225 : vector<1x32x32xf32> to vector<32x32xf32>
    %c497_i32_126 = arith.constant 497 : i32
    %227 = tpu.dynamic_rotate %186 by %c497_i32_126 dim 1 : vector<32x512xf32>, i32 -> vector<32x512xf32>
    %228 = vector.broadcast %5 : vector<1x512xf32> to vector<32x512xf32>
    %229 = arith.mulf %227, %228 : vector<32x512xf32>
    %cst_127 = arith.constant dense<0.000000e+00> : vector<32x512xf32>
    %230 = tpu.matmul %226, %229, %cst_127 {dimension_numbers = #tpu.dot_dimension_numbers<[1], [0], [0], [1], [0, 0, 1, 1], [], []>} : vector<32x32xf32>, vector<32x512xf32>, vector<32x512xf32> -> vector<32x512xf32>
    %231 = arith.addf %224, %230 : vector<32x512xf32>
    %c7_128 = arith.constant 7 : index
    %c0_129 = arith.constant 0 : index
    %c0_130 = arith.constant 0 : index
    %232 = vector.load %arg5[%c7_128, %c0_129, %c0_130] : memref<9x32x32xf32, #tpu.memory_space<vmem>>, vector<1x32x32xf32>
    %233 = vector.shape_cast %232 : vector<1x32x32xf32> to vector<32x32xf32>
    %c496_i32_131 = arith.constant 496 : i32
    %234 = tpu.dynamic_rotate %186 by %c496_i32_131 dim 1 : vector<32x512xf32>, i32 -> vector<32x512xf32>
    %235 = vector.broadcast %6 : vector<1x512xf32> to vector<32x512xf32>
    %236 = arith.mulf %234, %235 : vector<32x512xf32>
    %cst_132 = arith.constant dense<0.000000e+00> : vector<32x512xf32>
    %237 = tpu.matmul %233, %236, %cst_132 {dimension_numbers = #tpu.dot_dimension_numbers<[1], [0], [0], [1], [0, 0, 1, 1], [], []>} : vector<32x32xf32>, vector<32x512xf32>, vector<32x512xf32> -> vector<32x512xf32>
    %238 = arith.addf %231, %237 : vector<32x512xf32>
    %c8_133 = arith.constant 8 : index
    %c0_134 = arith.constant 0 : index
    %c0_135 = arith.constant 0 : index
    %239 = vector.load %arg5[%c8_133, %c0_134, %c0_135] : memref<9x32x32xf32, #tpu.memory_space<vmem>>, vector<1x32x32xf32>
    %240 = vector.shape_cast %239 : vector<1x32x32xf32> to vector<32x32xf32>
    %c495_i32_136 = arith.constant 495 : i32
    %241 = tpu.dynamic_rotate %186 by %c495_i32_136 dim 1 : vector<32x512xf32>, i32 -> vector<32x512xf32>
    %242 = vector.broadcast %7 : vector<1x512xf32> to vector<32x512xf32>
    %243 = arith.mulf %241, %242 : vector<32x512xf32>
    %cst_137 = arith.constant dense<0.000000e+00> : vector<32x512xf32>
    %244 = tpu.matmul %240, %243, %cst_137 {dimension_numbers = #tpu.dot_dimension_numbers<[1], [0], [0], [1], [0, 0, 1, 1], [], []>} : vector<32x32xf32>, vector<32x512xf32>, vector<32x512xf32> -> vector<32x512xf32>
    %245 = arith.addf %238, %244 : vector<32x512xf32>
    %cst_138 = arith.constant dense<0.000000e+00> : vector<32xf32>
    %246 = vector.multi_reduction <add>, %245, %cst_138 [1] : vector<32x512xf32> to vector<32xf32>
    %247 = vector.shape_cast %246 : vector<32xf32> to vector<32x1xf32>
    %248 = arith.mulf %245, %245 : vector<32x512xf32>
    %cst_139 = arith.constant dense<0.000000e+00> : vector<32xf32>
    %249 = vector.multi_reduction <add>, %248, %cst_139 [1] : vector<32x512xf32> to vector<32xf32>
    %250 = vector.shape_cast %249 : vector<32xf32> to vector<32x1xf32>
    %cst_140 = arith.constant 0.001953125 : f32
    %251 = vector.broadcast %cst_140 : f32 to vector<32x1xf32>
    %252 = arith.mulf %247, %251 : vector<32x1xf32>
    %cst_141 = arith.constant 0.001953125 : f32
    %253 = vector.broadcast %cst_141 : f32 to vector<32x1xf32>
    %254 = arith.mulf %250, %253 : vector<32x1xf32>
    %255 = arith.mulf %252, %252 : vector<32x1xf32>
    %256 = arith.subf %254, %255 : vector<32x1xf32>
    %257 = vector.broadcast %252 : vector<32x1xf32> to vector<32x512xf32>
    %258 = arith.subf %245, %257 : vector<32x512xf32>
    %cst_142 = arith.constant 9.99999974E-6 : f32
    %259 = vector.broadcast %cst_142 : f32 to vector<32x1xf32>
    %260 = arith.addf %256, %259 : vector<32x1xf32>
    %261 = math.rsqrt %260 : vector<32x1xf32>
    %262 = vector.broadcast %261 : vector<32x1xf32> to vector<32x512xf32>
    %263 = arith.mulf %258, %262 : vector<32x512xf32>
    %cst_143 = arith.constant 0.000000e+00 : f32
    %264 = vector.broadcast %cst_143 : f32 to vector<32x512xf32>
    %265 = arith.cmpf ogt, %263, %264 : vector<32x512xf32>
    %266 = math.exp %263 : vector<32x512xf32>
    %cst_144 = arith.constant 1.000000e+00 : f32
    %267 = vector.broadcast %cst_144 : f32 to vector<32x512xf32>
    %268 = arith.subf %266, %267 : vector<32x512xf32>
    %269 = arith.select %265, %263, %268 : vector<32x512xi1>, vector<32x512xf32>
    %c0_145 = arith.constant 0 : index
    %c0_146 = arith.constant 0 : index
    %c0_147 = arith.constant 0 : index
    %270 = vector.load %arg6[%c0_145, %c0_146, %c0_147] : memref<9x32x32xf32, #tpu.memory_space<vmem>>, vector<1x32x32xf32>
    %271 = vector.shape_cast %270 : vector<1x32x32xf32> to vector<32x32xf32>
    %c17_i32_148 = arith.constant 17 : i32
    %272 = tpu.dynamic_rotate %269 by %c17_i32_148 dim 1 : vector<32x512xf32>, i32 -> vector<32x512xf32>
    %273 = vector.broadcast %0 : vector<1x512xf32> to vector<32x512xf32>
    %274 = arith.mulf %272, %273 : vector<32x512xf32>
    %cst_149 = arith.constant dense<0.000000e+00> : vector<32x512xf32>
    %275 = tpu.matmul %271, %274, %cst_149 {dimension_numbers = #tpu.dot_dimension_numbers<[1], [0], [0], [1], [0, 0, 1, 1], [], []>} : vector<32x32xf32>, vector<32x512xf32>, vector<32x512xf32> -> vector<32x512xf32>
    %c1_150 = arith.constant 1 : index
    %c0_151 = arith.constant 0 : index
    %c0_152 = arith.constant 0 : index
    %276 = vector.load %arg6[%c1_150, %c0_151, %c0_152] : memref<9x32x32xf32, #tpu.memory_space<vmem>>, vector<1x32x32xf32>
    %277 = vector.shape_cast %276 : vector<1x32x32xf32> to vector<32x32xf32>
    %c16_i32_153 = arith.constant 16 : i32
    %278 = tpu.dynamic_rotate %269 by %c16_i32_153 dim 1 : vector<32x512xf32>, i32 -> vector<32x512xf32>
    %279 = vector.broadcast %1 : vector<1x512xf32> to vector<32x512xf32>
    %280 = arith.mulf %278, %279 : vector<32x512xf32>
    %cst_154 = arith.constant dense<0.000000e+00> : vector<32x512xf32>
    %281 = tpu.matmul %277, %280, %cst_154 {dimension_numbers = #tpu.dot_dimension_numbers<[1], [0], [0], [1], [0, 0, 1, 1], [], []>} : vector<32x32xf32>, vector<32x512xf32>, vector<32x512xf32> -> vector<32x512xf32>
    %282 = arith.addf %275, %281 : vector<32x512xf32>
    %c2_155 = arith.constant 2 : index
    %c0_156 = arith.constant 0 : index
    %c0_157 = arith.constant 0 : index
    %283 = vector.load %arg6[%c2_155, %c0_156, %c0_157] : memref<9x32x32xf32, #tpu.memory_space<vmem>>, vector<1x32x32xf32>
    %284 = vector.shape_cast %283 : vector<1x32x32xf32> to vector<32x32xf32>
    %c15_i32_158 = arith.constant 15 : i32
    %285 = tpu.dynamic_rotate %269 by %c15_i32_158 dim 1 : vector<32x512xf32>, i32 -> vector<32x512xf32>
    %286 = vector.broadcast %2 : vector<1x512xf32> to vector<32x512xf32>
    %287 = arith.mulf %285, %286 : vector<32x512xf32>
    %cst_159 = arith.constant dense<0.000000e+00> : vector<32x512xf32>
    %288 = tpu.matmul %284, %287, %cst_159 {dimension_numbers = #tpu.dot_dimension_numbers<[1], [0], [0], [1], [0, 0, 1, 1], [], []>} : vector<32x32xf32>, vector<32x512xf32>, vector<32x512xf32> -> vector<32x512xf32>
    %289 = arith.addf %282, %288 : vector<32x512xf32>
    %c3_160 = arith.constant 3 : index
    %c0_161 = arith.constant 0 : index
    %c0_162 = arith.constant 0 : index
    %290 = vector.load %arg6[%c3_160, %c0_161, %c0_162] : memref<9x32x32xf32, #tpu.memory_space<vmem>>, vector<1x32x32xf32>
    %291 = vector.shape_cast %290 : vector<1x32x32xf32> to vector<32x32xf32>
    %c1_i32_163 = arith.constant 1 : i32
    %292 = tpu.dynamic_rotate %269 by %c1_i32_163 dim 1 : vector<32x512xf32>, i32 -> vector<32x512xf32>
    %293 = vector.broadcast %3 : vector<1x512xf32> to vector<32x512xf32>
    %294 = arith.mulf %292, %293 : vector<32x512xf32>
    %cst_164 = arith.constant dense<0.000000e+00> : vector<32x512xf32>
    %295 = tpu.matmul %291, %294, %cst_164 {dimension_numbers = #tpu.dot_dimension_numbers<[1], [0], [0], [1], [0, 0, 1, 1], [], []>} : vector<32x32xf32>, vector<32x512xf32>, vector<32x512xf32> -> vector<32x512xf32>
    %296 = arith.addf %289, %295 : vector<32x512xf32>
    %c4_165 = arith.constant 4 : index
    %c0_166 = arith.constant 0 : index
    %c0_167 = arith.constant 0 : index
    %297 = vector.load %arg6[%c4_165, %c0_166, %c0_167] : memref<9x32x32xf32, #tpu.memory_space<vmem>>, vector<1x32x32xf32>
    %298 = vector.shape_cast %297 : vector<1x32x32xf32> to vector<32x32xf32>
    %cst_168 = arith.constant dense<0.000000e+00> : vector<32x512xf32>
    %299 = tpu.matmul %298, %269, %cst_168 {dimension_numbers = #tpu.dot_dimension_numbers<[1], [0], [0], [1], [0, 0, 1, 1], [], []>} : vector<32x32xf32>, vector<32x512xf32>, vector<32x512xf32> -> vector<32x512xf32>
    %300 = arith.addf %296, %299 : vector<32x512xf32>
    %c5_169 = arith.constant 5 : index
    %c0_170 = arith.constant 0 : index
    %c0_171 = arith.constant 0 : index
    %301 = vector.load %arg6[%c5_169, %c0_170, %c0_171] : memref<9x32x32xf32, #tpu.memory_space<vmem>>, vector<1x32x32xf32>
    %302 = vector.shape_cast %301 : vector<1x32x32xf32> to vector<32x32xf32>
    %c511_i32_172 = arith.constant 511 : i32
    %303 = tpu.dynamic_rotate %269 by %c511_i32_172 dim 1 : vector<32x512xf32>, i32 -> vector<32x512xf32>
    %304 = vector.broadcast %4 : vector<1x512xf32> to vector<32x512xf32>
    %305 = arith.mulf %303, %304 : vector<32x512xf32>
    %cst_173 = arith.constant dense<0.000000e+00> : vector<32x512xf32>
    %306 = tpu.matmul %302, %305, %cst_173 {dimension_numbers = #tpu.dot_dimension_numbers<[1], [0], [0], [1], [0, 0, 1, 1], [], []>} : vector<32x32xf32>, vector<32x512xf32>, vector<32x512xf32> -> vector<32x512xf32>
    %307 = arith.addf %300, %306 : vector<32x512xf32>
    %c6_174 = arith.constant 6 : index
    %c0_175 = arith.constant 0 : index
    %c0_176 = arith.constant 0 : index
    %308 = vector.load %arg6[%c6_174, %c0_175, %c0_176] : memref<9x32x32xf32, #tpu.memory_space<vmem>>, vector<1x32x32xf32>
    %309 = vector.shape_cast %308 : vector<1x32x32xf32> to vector<32x32xf32>
    %c497_i32_177 = arith.constant 497 : i32
    %310 = tpu.dynamic_rotate %269 by %c497_i32_177 dim 1 : vector<32x512xf32>, i32 -> vector<32x512xf32>
    %311 = vector.broadcast %5 : vector<1x512xf32> to vector<32x512xf32>
    %312 = arith.mulf %310, %311 : vector<32x512xf32>
    %cst_178 = arith.constant dense<0.000000e+00> : vector<32x512xf32>
    %313 = tpu.matmul %309, %312, %cst_178 {dimension_numbers = #tpu.dot_dimension_numbers<[1], [0], [0], [1], [0, 0, 1, 1], [], []>} : vector<32x32xf32>, vector<32x512xf32>, vector<32x512xf32> -> vector<32x512xf32>
    %314 = arith.addf %307, %313 : vector<32x512xf32>
    %c7_179 = arith.constant 7 : index
    %c0_180 = arith.constant 0 : index
    %c0_181 = arith.constant 0 : index
    %315 = vector.load %arg6[%c7_179, %c0_180, %c0_181] : memref<9x32x32xf32, #tpu.memory_space<vmem>>, vector<1x32x32xf32>
    %316 = vector.shape_cast %315 : vector<1x32x32xf32> to vector<32x32xf32>
    %c496_i32_182 = arith.constant 496 : i32
    %317 = tpu.dynamic_rotate %269 by %c496_i32_182 dim 1 : vector<32x512xf32>, i32 -> vector<32x512xf32>
    %318 = vector.broadcast %6 : vector<1x512xf32> to vector<32x512xf32>
    %319 = arith.mulf %317, %318 : vector<32x512xf32>
    %cst_183 = arith.constant dense<0.000000e+00> : vector<32x512xf32>
    %320 = tpu.matmul %316, %319, %cst_183 {dimension_numbers = #tpu.dot_dimension_numbers<[1], [0], [0], [1], [0, 0, 1, 1], [], []>} : vector<32x32xf32>, vector<32x512xf32>, vector<32x512xf32> -> vector<32x512xf32>
    %321 = arith.addf %314, %320 : vector<32x512xf32>
    %c8_184 = arith.constant 8 : index
    %c0_185 = arith.constant 0 : index
    %c0_186 = arith.constant 0 : index
    %322 = vector.load %arg6[%c8_184, %c0_185, %c0_186] : memref<9x32x32xf32, #tpu.memory_space<vmem>>, vector<1x32x32xf32>
    %323 = vector.shape_cast %322 : vector<1x32x32xf32> to vector<32x32xf32>
    %c495_i32_187 = arith.constant 495 : i32
    %324 = tpu.dynamic_rotate %269 by %c495_i32_187 dim 1 : vector<32x512xf32>, i32 -> vector<32x512xf32>
    %325 = vector.broadcast %7 : vector<1x512xf32> to vector<32x512xf32>
    %326 = arith.mulf %324, %325 : vector<32x512xf32>
    %cst_188 = arith.constant dense<0.000000e+00> : vector<32x512xf32>
    %327 = tpu.matmul %323, %326, %cst_188 {dimension_numbers = #tpu.dot_dimension_numbers<[1], [0], [0], [1], [0, 0, 1, 1], [], []>} : vector<32x32xf32>, vector<32x512xf32>, vector<32x512xf32> -> vector<32x512xf32>
    %328 = arith.addf %321, %327 : vector<32x512xf32>
    %cst_189 = arith.constant dense<0.000000e+00> : vector<32xf32>
    %329 = vector.multi_reduction <add>, %328, %cst_189 [1] : vector<32x512xf32> to vector<32xf32>
    %330 = vector.shape_cast %329 : vector<32xf32> to vector<32x1xf32>
    %331 = arith.mulf %328, %328 : vector<32x512xf32>
    %cst_190 = arith.constant dense<0.000000e+00> : vector<32xf32>
    %332 = vector.multi_reduction <add>, %331, %cst_190 [1] : vector<32x512xf32> to vector<32xf32>
    %333 = vector.shape_cast %332 : vector<32xf32> to vector<32x1xf32>
    %cst_191 = arith.constant 0.001953125 : f32
    %334 = vector.broadcast %cst_191 : f32 to vector<32x1xf32>
    %335 = arith.mulf %330, %334 : vector<32x1xf32>
    %cst_192 = arith.constant 0.001953125 : f32
    %336 = vector.broadcast %cst_192 : f32 to vector<32x1xf32>
    %337 = arith.mulf %333, %336 : vector<32x1xf32>
    %338 = arith.mulf %335, %335 : vector<32x1xf32>
    %339 = arith.subf %337, %338 : vector<32x1xf32>
    %340 = vector.broadcast %335 : vector<32x1xf32> to vector<32x512xf32>
    %341 = arith.subf %328, %340 : vector<32x512xf32>
    %cst_193 = arith.constant 9.99999974E-6 : f32
    %342 = vector.broadcast %cst_193 : f32 to vector<32x1xf32>
    %343 = arith.addf %339, %342 : vector<32x1xf32>
    %344 = math.rsqrt %343 : vector<32x1xf32>
    %345 = vector.broadcast %344 : vector<32x1xf32> to vector<32x512xf32>
    %346 = arith.mulf %341, %345 : vector<32x512xf32>
    %cst_194 = arith.constant 0.000000e+00 : f32
    %347 = vector.broadcast %cst_194 : f32 to vector<32x512xf32>
    %348 = arith.cmpf ogt, %346, %347 : vector<32x512xf32>
    %349 = math.exp %346 : vector<32x512xf32>
    %cst_195 = arith.constant 1.000000e+00 : f32
    %350 = vector.broadcast %cst_195 : f32 to vector<32x512xf32>
    %351 = arith.subf %349, %350 : vector<32x512xf32>
    %352 = arith.select %348, %346, %351 : vector<32x512xi1>, vector<32x512xf32>
    %c0_196 = arith.constant 0 : index
    %c0_197 = arith.constant 0 : index
    %c0_198 = arith.constant 0 : index
    %353 = vector.load %arg7[%c0_196, %c0_197, %c0_198] : memref<9x32x32xf32, #tpu.memory_space<vmem>>, vector<1x32x32xf32>
    %354 = vector.shape_cast %353 : vector<1x32x32xf32> to vector<32x32xf32>
    %c17_i32_199 = arith.constant 17 : i32
    %355 = tpu.dynamic_rotate %352 by %c17_i32_199 dim 1 : vector<32x512xf32>, i32 -> vector<32x512xf32>
    %356 = vector.broadcast %0 : vector<1x512xf32> to vector<32x512xf32>
    %357 = arith.mulf %355, %356 : vector<32x512xf32>
    %cst_200 = arith.constant dense<0.000000e+00> : vector<32x512xf32>
    %358 = tpu.matmul %354, %357, %cst_200 {dimension_numbers = #tpu.dot_dimension_numbers<[1], [0], [0], [1], [0, 0, 1, 1], [], []>} : vector<32x32xf32>, vector<32x512xf32>, vector<32x512xf32> -> vector<32x512xf32>
    %c1_201 = arith.constant 1 : index
    %c0_202 = arith.constant 0 : index
    %c0_203 = arith.constant 0 : index
    %359 = vector.load %arg7[%c1_201, %c0_202, %c0_203] : memref<9x32x32xf32, #tpu.memory_space<vmem>>, vector<1x32x32xf32>
    %360 = vector.shape_cast %359 : vector<1x32x32xf32> to vector<32x32xf32>
    %c16_i32_204 = arith.constant 16 : i32
    %361 = tpu.dynamic_rotate %352 by %c16_i32_204 dim 1 : vector<32x512xf32>, i32 -> vector<32x512xf32>
    %362 = vector.broadcast %1 : vector<1x512xf32> to vector<32x512xf32>
    %363 = arith.mulf %361, %362 : vector<32x512xf32>
    %cst_205 = arith.constant dense<0.000000e+00> : vector<32x512xf32>
    %364 = tpu.matmul %360, %363, %cst_205 {dimension_numbers = #tpu.dot_dimension_numbers<[1], [0], [0], [1], [0, 0, 1, 1], [], []>} : vector<32x32xf32>, vector<32x512xf32>, vector<32x512xf32> -> vector<32x512xf32>
    %365 = arith.addf %358, %364 : vector<32x512xf32>
    %c2_206 = arith.constant 2 : index
    %c0_207 = arith.constant 0 : index
    %c0_208 = arith.constant 0 : index
    %366 = vector.load %arg7[%c2_206, %c0_207, %c0_208] : memref<9x32x32xf32, #tpu.memory_space<vmem>>, vector<1x32x32xf32>
    %367 = vector.shape_cast %366 : vector<1x32x32xf32> to vector<32x32xf32>
    %c15_i32_209 = arith.constant 15 : i32
    %368 = tpu.dynamic_rotate %352 by %c15_i32_209 dim 1 : vector<32x512xf32>, i32 -> vector<32x512xf32>
    %369 = vector.broadcast %2 : vector<1x512xf32> to vector<32x512xf32>
    %370 = arith.mulf %368, %369 : vector<32x512xf32>
    %cst_210 = arith.constant dense<0.000000e+00> : vector<32x512xf32>
    %371 = tpu.matmul %367, %370, %cst_210 {dimension_numbers = #tpu.dot_dimension_numbers<[1], [0], [0], [1], [0, 0, 1, 1], [], []>} : vector<32x32xf32>, vector<32x512xf32>, vector<32x512xf32> -> vector<32x512xf32>
    %372 = arith.addf %365, %371 : vector<32x512xf32>
    %c3_211 = arith.constant 3 : index
    %c0_212 = arith.constant 0 : index
    %c0_213 = arith.constant 0 : index
    %373 = vector.load %arg7[%c3_211, %c0_212, %c0_213] : memref<9x32x32xf32, #tpu.memory_space<vmem>>, vector<1x32x32xf32>
    %374 = vector.shape_cast %373 : vector<1x32x32xf32> to vector<32x32xf32>
    %c1_i32_214 = arith.constant 1 : i32
    %375 = tpu.dynamic_rotate %352 by %c1_i32_214 dim 1 : vector<32x512xf32>, i32 -> vector<32x512xf32>
    %376 = vector.broadcast %3 : vector<1x512xf32> to vector<32x512xf32>
    %377 = arith.mulf %375, %376 : vector<32x512xf32>
    %cst_215 = arith.constant dense<0.000000e+00> : vector<32x512xf32>
    %378 = tpu.matmul %374, %377, %cst_215 {dimension_numbers = #tpu.dot_dimension_numbers<[1], [0], [0], [1], [0, 0, 1, 1], [], []>} : vector<32x32xf32>, vector<32x512xf32>, vector<32x512xf32> -> vector<32x512xf32>
    %379 = arith.addf %372, %378 : vector<32x512xf32>
    %c4_216 = arith.constant 4 : index
    %c0_217 = arith.constant 0 : index
    %c0_218 = arith.constant 0 : index
    %380 = vector.load %arg7[%c4_216, %c0_217, %c0_218] : memref<9x32x32xf32, #tpu.memory_space<vmem>>, vector<1x32x32xf32>
    %381 = vector.shape_cast %380 : vector<1x32x32xf32> to vector<32x32xf32>
    %cst_219 = arith.constant dense<0.000000e+00> : vector<32x512xf32>
    %382 = tpu.matmul %381, %352, %cst_219 {dimension_numbers = #tpu.dot_dimension_numbers<[1], [0], [0], [1], [0, 0, 1, 1], [], []>} : vector<32x32xf32>, vector<32x512xf32>, vector<32x512xf32> -> vector<32x512xf32>
    %383 = arith.addf %379, %382 : vector<32x512xf32>
    %c5_220 = arith.constant 5 : index
    %c0_221 = arith.constant 0 : index
    %c0_222 = arith.constant 0 : index
    %384 = vector.load %arg7[%c5_220, %c0_221, %c0_222] : memref<9x32x32xf32, #tpu.memory_space<vmem>>, vector<1x32x32xf32>
    %385 = vector.shape_cast %384 : vector<1x32x32xf32> to vector<32x32xf32>
    %c511_i32_223 = arith.constant 511 : i32
    %386 = tpu.dynamic_rotate %352 by %c511_i32_223 dim 1 : vector<32x512xf32>, i32 -> vector<32x512xf32>
    %387 = vector.broadcast %4 : vector<1x512xf32> to vector<32x512xf32>
    %388 = arith.mulf %386, %387 : vector<32x512xf32>
    %cst_224 = arith.constant dense<0.000000e+00> : vector<32x512xf32>
    %389 = tpu.matmul %385, %388, %cst_224 {dimension_numbers = #tpu.dot_dimension_numbers<[1], [0], [0], [1], [0, 0, 1, 1], [], []>} : vector<32x32xf32>, vector<32x512xf32>, vector<32x512xf32> -> vector<32x512xf32>
    %390 = arith.addf %383, %389 : vector<32x512xf32>
    %c6_225 = arith.constant 6 : index
    %c0_226 = arith.constant 0 : index
    %c0_227 = arith.constant 0 : index
    %391 = vector.load %arg7[%c6_225, %c0_226, %c0_227] : memref<9x32x32xf32, #tpu.memory_space<vmem>>, vector<1x32x32xf32>
    %392 = vector.shape_cast %391 : vector<1x32x32xf32> to vector<32x32xf32>
    %c497_i32_228 = arith.constant 497 : i32
    %393 = tpu.dynamic_rotate %352 by %c497_i32_228 dim 1 : vector<32x512xf32>, i32 -> vector<32x512xf32>
    %394 = vector.broadcast %5 : vector<1x512xf32> to vector<32x512xf32>
    %395 = arith.mulf %393, %394 : vector<32x512xf32>
    %cst_229 = arith.constant dense<0.000000e+00> : vector<32x512xf32>
    %396 = tpu.matmul %392, %395, %cst_229 {dimension_numbers = #tpu.dot_dimension_numbers<[1], [0], [0], [1], [0, 0, 1, 1], [], []>} : vector<32x32xf32>, vector<32x512xf32>, vector<32x512xf32> -> vector<32x512xf32>
    %397 = arith.addf %390, %396 : vector<32x512xf32>
    %c7_230 = arith.constant 7 : index
    %c0_231 = arith.constant 0 : index
    %c0_232 = arith.constant 0 : index
    %398 = vector.load %arg7[%c7_230, %c0_231, %c0_232] : memref<9x32x32xf32, #tpu.memory_space<vmem>>, vector<1x32x32xf32>
    %399 = vector.shape_cast %398 : vector<1x32x32xf32> to vector<32x32xf32>
    %c496_i32_233 = arith.constant 496 : i32
    %400 = tpu.dynamic_rotate %352 by %c496_i32_233 dim 1 : vector<32x512xf32>, i32 -> vector<32x512xf32>
    %401 = vector.broadcast %6 : vector<1x512xf32> to vector<32x512xf32>
    %402 = arith.mulf %400, %401 : vector<32x512xf32>
    %cst_234 = arith.constant dense<0.000000e+00> : vector<32x512xf32>
    %403 = tpu.matmul %399, %402, %cst_234 {dimension_numbers = #tpu.dot_dimension_numbers<[1], [0], [0], [1], [0, 0, 1, 1], [], []>} : vector<32x32xf32>, vector<32x512xf32>, vector<32x512xf32> -> vector<32x512xf32>
    %404 = arith.addf %397, %403 : vector<32x512xf32>
    %c8_235 = arith.constant 8 : index
    %c0_236 = arith.constant 0 : index
    %c0_237 = arith.constant 0 : index
    %405 = vector.load %arg7[%c8_235, %c0_236, %c0_237] : memref<9x32x32xf32, #tpu.memory_space<vmem>>, vector<1x32x32xf32>
    %406 = vector.shape_cast %405 : vector<1x32x32xf32> to vector<32x32xf32>
    %c495_i32_238 = arith.constant 495 : i32
    %407 = tpu.dynamic_rotate %352 by %c495_i32_238 dim 1 : vector<32x512xf32>, i32 -> vector<32x512xf32>
    %408 = vector.broadcast %7 : vector<1x512xf32> to vector<32x512xf32>
    %409 = arith.mulf %407, %408 : vector<32x512xf32>
    %cst_239 = arith.constant dense<0.000000e+00> : vector<32x512xf32>
    %410 = tpu.matmul %406, %409, %cst_239 {dimension_numbers = #tpu.dot_dimension_numbers<[1], [0], [0], [1], [0, 0, 1, 1], [], []>} : vector<32x32xf32>, vector<32x512xf32>, vector<32x512xf32> -> vector<32x512xf32>
    %411 = arith.addf %404, %410 : vector<32x512xf32>
    %cst_240 = arith.constant dense<0.000000e+00> : vector<32xf32>
    %412 = vector.multi_reduction <add>, %411, %cst_240 [1] : vector<32x512xf32> to vector<32xf32>
    %413 = vector.shape_cast %412 : vector<32xf32> to vector<32x1xf32>
    %414 = arith.mulf %411, %411 : vector<32x512xf32>
    %cst_241 = arith.constant dense<0.000000e+00> : vector<32xf32>
    %415 = vector.multi_reduction <add>, %414, %cst_241 [1] : vector<32x512xf32> to vector<32xf32>
    %416 = vector.shape_cast %415 : vector<32xf32> to vector<32x1xf32>
    %cst_242 = arith.constant 0.001953125 : f32
    %417 = vector.broadcast %cst_242 : f32 to vector<32x1xf32>
    %418 = arith.mulf %413, %417 : vector<32x1xf32>
    %cst_243 = arith.constant 0.001953125 : f32
    %419 = vector.broadcast %cst_243 : f32 to vector<32x1xf32>
    %420 = arith.mulf %416, %419 : vector<32x1xf32>
    %421 = arith.mulf %418, %418 : vector<32x1xf32>
    %422 = arith.subf %420, %421 : vector<32x1xf32>
    %423 = vector.broadcast %418 : vector<32x1xf32> to vector<32x512xf32>
    %424 = arith.subf %411, %423 : vector<32x512xf32>
    %cst_244 = arith.constant 9.99999974E-6 : f32
    %425 = vector.broadcast %cst_244 : f32 to vector<32x1xf32>
    %426 = arith.addf %422, %425 : vector<32x1xf32>
    %427 = math.rsqrt %426 : vector<32x1xf32>
    %428 = vector.broadcast %427 : vector<32x1xf32> to vector<32x512xf32>
    %429 = arith.mulf %424, %428 : vector<32x512xf32>
    %cst_245 = arith.constant 0.000000e+00 : f32
    %430 = vector.broadcast %cst_245 : f32 to vector<32x512xf32>
    %431 = arith.cmpf ogt, %429, %430 : vector<32x512xf32>
    %432 = math.exp %429 : vector<32x512xf32>
    %cst_246 = arith.constant 1.000000e+00 : f32
    %433 = vector.broadcast %cst_246 : f32 to vector<32x512xf32>
    %434 = arith.subf %432, %433 : vector<32x512xf32>
    %435 = arith.select %431, %429, %434 : vector<32x512xi1>, vector<32x512xf32>
    %c0_247 = arith.constant 0 : index
    %c0_248 = arith.constant 0 : index
    %c0_249 = arith.constant 0 : index
    %436 = vector.load %arg8[%c0_247, %c0_248, %c0_249] : memref<9x1x32xf32, #tpu.memory_space<vmem>>, vector<1x1x32xf32>
    %437 = vector.shape_cast %436 : vector<1x1x32xf32> to vector<1x32xf32>
    %c17_i32_250 = arith.constant 17 : i32
    %438 = tpu.dynamic_rotate %435 by %c17_i32_250 dim 1 : vector<32x512xf32>, i32 -> vector<32x512xf32>
    %439 = vector.broadcast %0 : vector<1x512xf32> to vector<32x512xf32>
    %440 = arith.mulf %438, %439 : vector<32x512xf32>
    %cst_251 = arith.constant dense<0.000000e+00> : vector<1x512xf32>
    %441 = tpu.matmul %437, %440, %cst_251 {dimension_numbers = #tpu.dot_dimension_numbers<[1], [0], [0], [1], [0, 0, 1, 1], [], []>} : vector<1x32xf32>, vector<32x512xf32>, vector<1x512xf32> -> vector<1x512xf32>
    %c1_252 = arith.constant 1 : index
    %c0_253 = arith.constant 0 : index
    %c0_254 = arith.constant 0 : index
    %442 = vector.load %arg8[%c1_252, %c0_253, %c0_254] : memref<9x1x32xf32, #tpu.memory_space<vmem>>, vector<1x1x32xf32>
    %443 = vector.shape_cast %442 : vector<1x1x32xf32> to vector<1x32xf32>
    %c16_i32_255 = arith.constant 16 : i32
    %444 = tpu.dynamic_rotate %435 by %c16_i32_255 dim 1 : vector<32x512xf32>, i32 -> vector<32x512xf32>
    %445 = vector.broadcast %1 : vector<1x512xf32> to vector<32x512xf32>
    %446 = arith.mulf %444, %445 : vector<32x512xf32>
    %cst_256 = arith.constant dense<0.000000e+00> : vector<1x512xf32>
    %447 = tpu.matmul %443, %446, %cst_256 {dimension_numbers = #tpu.dot_dimension_numbers<[1], [0], [0], [1], [0, 0, 1, 1], [], []>} : vector<1x32xf32>, vector<32x512xf32>, vector<1x512xf32> -> vector<1x512xf32>
    %448 = arith.addf %441, %447 : vector<1x512xf32>
    %c2_257 = arith.constant 2 : index
    %c0_258 = arith.constant 0 : index
    %c0_259 = arith.constant 0 : index
    %449 = vector.load %arg8[%c2_257, %c0_258, %c0_259] : memref<9x1x32xf32, #tpu.memory_space<vmem>>, vector<1x1x32xf32>
    %450 = vector.shape_cast %449 : vector<1x1x32xf32> to vector<1x32xf32>
    %c15_i32_260 = arith.constant 15 : i32
    %451 = tpu.dynamic_rotate %435 by %c15_i32_260 dim 1 : vector<32x512xf32>, i32 -> vector<32x512xf32>
    %452 = vector.broadcast %2 : vector<1x512xf32> to vector<32x512xf32>
    %453 = arith.mulf %451, %452 : vector<32x512xf32>
    %cst_261 = arith.constant dense<0.000000e+00> : vector<1x512xf32>
    %454 = tpu.matmul %450, %453, %cst_261 {dimension_numbers = #tpu.dot_dimension_numbers<[1], [0], [0], [1], [0, 0, 1, 1], [], []>} : vector<1x32xf32>, vector<32x512xf32>, vector<1x512xf32> -> vector<1x512xf32>
    %455 = arith.addf %448, %454 : vector<1x512xf32>
    %c3_262 = arith.constant 3 : index
    %c0_263 = arith.constant 0 : index
    %c0_264 = arith.constant 0 : index
    %456 = vector.load %arg8[%c3_262, %c0_263, %c0_264] : memref<9x1x32xf32, #tpu.memory_space<vmem>>, vector<1x1x32xf32>
    %457 = vector.shape_cast %456 : vector<1x1x32xf32> to vector<1x32xf32>
    %c1_i32_265 = arith.constant 1 : i32
    %458 = tpu.dynamic_rotate %435 by %c1_i32_265 dim 1 : vector<32x512xf32>, i32 -> vector<32x512xf32>
    %459 = vector.broadcast %3 : vector<1x512xf32> to vector<32x512xf32>
    %460 = arith.mulf %458, %459 : vector<32x512xf32>
    %cst_266 = arith.constant dense<0.000000e+00> : vector<1x512xf32>
    %461 = tpu.matmul %457, %460, %cst_266 {dimension_numbers = #tpu.dot_dimension_numbers<[1], [0], [0], [1], [0, 0, 1, 1], [], []>} : vector<1x32xf32>, vector<32x512xf32>, vector<1x512xf32> -> vector<1x512xf32>
    %462 = arith.addf %455, %461 : vector<1x512xf32>
    %c4_267 = arith.constant 4 : index
    %c0_268 = arith.constant 0 : index
    %c0_269 = arith.constant 0 : index
    %463 = vector.load %arg8[%c4_267, %c0_268, %c0_269] : memref<9x1x32xf32, #tpu.memory_space<vmem>>, vector<1x1x32xf32>
    %464 = vector.shape_cast %463 : vector<1x1x32xf32> to vector<1x32xf32>
    %cst_270 = arith.constant dense<0.000000e+00> : vector<1x512xf32>
    %465 = tpu.matmul %464, %435, %cst_270 {dimension_numbers = #tpu.dot_dimension_numbers<[1], [0], [0], [1], [0, 0, 1, 1], [], []>} : vector<1x32xf32>, vector<32x512xf32>, vector<1x512xf32> -> vector<1x512xf32>
    %466 = arith.addf %462, %465 : vector<1x512xf32>
    %c5_271 = arith.constant 5 : index
    %c0_272 = arith.constant 0 : index
    %c0_273 = arith.constant 0 : index
    %467 = vector.load %arg8[%c5_271, %c0_272, %c0_273] : memref<9x1x32xf32, #tpu.memory_space<vmem>>, vector<1x1x32xf32>
    %468 = vector.shape_cast %467 : vector<1x1x32xf32> to vector<1x32xf32>
    %c511_i32_274 = arith.constant 511 : i32
    %469 = tpu.dynamic_rotate %435 by %c511_i32_274 dim 1 : vector<32x512xf32>, i32 -> vector<32x512xf32>
    %470 = vector.broadcast %4 : vector<1x512xf32> to vector<32x512xf32>
    %471 = arith.mulf %469, %470 : vector<32x512xf32>
    %cst_275 = arith.constant dense<0.000000e+00> : vector<1x512xf32>
    %472 = tpu.matmul %468, %471, %cst_275 {dimension_numbers = #tpu.dot_dimension_numbers<[1], [0], [0], [1], [0, 0, 1, 1], [], []>} : vector<1x32xf32>, vector<32x512xf32>, vector<1x512xf32> -> vector<1x512xf32>
    %473 = arith.addf %466, %472 : vector<1x512xf32>
    %c6_276 = arith.constant 6 : index
    %c0_277 = arith.constant 0 : index
    %c0_278 = arith.constant 0 : index
    %474 = vector.load %arg8[%c6_276, %c0_277, %c0_278] : memref<9x1x32xf32, #tpu.memory_space<vmem>>, vector<1x1x32xf32>
    %475 = vector.shape_cast %474 : vector<1x1x32xf32> to vector<1x32xf32>
    %c497_i32_279 = arith.constant 497 : i32
    %476 = tpu.dynamic_rotate %435 by %c497_i32_279 dim 1 : vector<32x512xf32>, i32 -> vector<32x512xf32>
    %477 = vector.broadcast %5 : vector<1x512xf32> to vector<32x512xf32>
    %478 = arith.mulf %476, %477 : vector<32x512xf32>
    %cst_280 = arith.constant dense<0.000000e+00> : vector<1x512xf32>
    %479 = tpu.matmul %475, %478, %cst_280 {dimension_numbers = #tpu.dot_dimension_numbers<[1], [0], [0], [1], [0, 0, 1, 1], [], []>} : vector<1x32xf32>, vector<32x512xf32>, vector<1x512xf32> -> vector<1x512xf32>
    %480 = arith.addf %473, %479 : vector<1x512xf32>
    %c7_281 = arith.constant 7 : index
    %c0_282 = arith.constant 0 : index
    %c0_283 = arith.constant 0 : index
    %481 = vector.load %arg8[%c7_281, %c0_282, %c0_283] : memref<9x1x32xf32, #tpu.memory_space<vmem>>, vector<1x1x32xf32>
    %482 = vector.shape_cast %481 : vector<1x1x32xf32> to vector<1x32xf32>
    %c496_i32_284 = arith.constant 496 : i32
    %483 = tpu.dynamic_rotate %435 by %c496_i32_284 dim 1 : vector<32x512xf32>, i32 -> vector<32x512xf32>
    %484 = vector.broadcast %6 : vector<1x512xf32> to vector<32x512xf32>
    %485 = arith.mulf %483, %484 : vector<32x512xf32>
    %cst_285 = arith.constant dense<0.000000e+00> : vector<1x512xf32>
    %486 = tpu.matmul %482, %485, %cst_285 {dimension_numbers = #tpu.dot_dimension_numbers<[1], [0], [0], [1], [0, 0, 1, 1], [], []>} : vector<1x32xf32>, vector<32x512xf32>, vector<1x512xf32> -> vector<1x512xf32>
    %487 = arith.addf %480, %486 : vector<1x512xf32>
    %c8_286 = arith.constant 8 : index
    %c0_287 = arith.constant 0 : index
    %c0_288 = arith.constant 0 : index
    %488 = vector.load %arg8[%c8_286, %c0_287, %c0_288] : memref<9x1x32xf32, #tpu.memory_space<vmem>>, vector<1x1x32xf32>
    %489 = vector.shape_cast %488 : vector<1x1x32xf32> to vector<1x32xf32>
    %c495_i32_289 = arith.constant 495 : i32
    %490 = tpu.dynamic_rotate %435 by %c495_i32_289 dim 1 : vector<32x512xf32>, i32 -> vector<32x512xf32>
    %491 = vector.broadcast %7 : vector<1x512xf32> to vector<32x512xf32>
    %492 = arith.mulf %490, %491 : vector<32x512xf32>
    %cst_290 = arith.constant dense<0.000000e+00> : vector<1x512xf32>
    %493 = tpu.matmul %489, %492, %cst_290 {dimension_numbers = #tpu.dot_dimension_numbers<[1], [0], [0], [1], [0, 0, 1, 1], [], []>} : vector<1x32xf32>, vector<32x512xf32>, vector<1x512xf32> -> vector<1x512xf32>
    %494 = arith.addf %487, %493 : vector<1x512xf32>
    %c0_291 = arith.constant 0 : index
    %c0_292 = arith.constant 0 : index
    %495 = vector.load %arg9[%c0_291, %c0_292] : memref<1x512xf32, #tpu.memory_space<vmem>>, vector<1x512xf32>
    tpu.vector_store %arg9[%c0_291, %c0_292], %494 {strides = array<i32>} : memref<1x512xf32, #tpu.memory_space<vmem>>, vector<1x512xf32>,
    return
  }
  func.func @transform_0(%arg0: i32) -> (i32, i32) {
    %c0_i32 = arith.constant 0 : i32
    %c0_i32_0 = arith.constant 0 : i32
    %c0_i32_1 = arith.constant 0 : i32
    return %c0_i32, %c0_i32_0 : i32, i32
  }
  func.func @transform_1(%arg0: i32) -> (i32, i32) {
    %c0_i32 = arith.constant 0 : i32
    %c0_i32_0 = arith.constant 0 : i32
    %c0_i32_1 = arith.constant 0 : i32
    return %c0_i32, %c0_i32_0 : i32, i32
  }
  func.func @transform_2(%arg0: i32) -> (i32, i32, i32) {
    %c0_i32 = arith.constant 0 : i32
    %c0_i32_0 = arith.constant 0 : i32
    %c0_i32_1 = arith.constant 0 : i32
    %c0_i32_2 = arith.constant 0 : i32
    return %c0_i32, %c0_i32_0, %c0_i32_1 : i32, i32, i32
  }
  func.func @transform_3(%arg0: i32) -> (i32, i32, i32) {
    %c0_i32 = arith.constant 0 : i32
    %c0_i32_0 = arith.constant 0 : i32
    %c0_i32_1 = arith.constant 0 : i32
    %c0_i32_2 = arith.constant 0 : i32
    return %c0_i32, %c0_i32_0, %c0_i32_1 : i32, i32, i32
  }
  func.func @transform_4(%arg0: i32) -> (i32, i32, i32) {
    %c0_i32 = arith.constant 0 : i32
    %c0_i32_0 = arith.constant 0 : i32
    %c0_i32_1 = arith.constant 0 : i32
    %c0_i32_2 = arith.constant 0 : i32
    return %c0_i32, %c0_i32_0, %c0_i32_1 : i32, i32, i32
  }
  func.func @transform_5(%arg0: i32) -> (i32, i32, i32) {
    %c0_i32 = arith.constant 0 : i32
    %c0_i32_0 = arith.constant 0 : i32
    %c0_i32_1 = arith.constant 0 : i32
    %c0_i32_2 = arith.constant 0 : i32
    return %c0_i32, %c0_i32_0, %c0_i32_1 : i32, i32, i32
  }
  func.func @transform_6(%arg0: i32) -> (i32, i32, i32) {
    %c0_i32 = arith.constant 0 : i32
    %c0_i32_0 = arith.constant 0 : i32
    %c0_i32_1 = arith.constant 0 : i32
    %c0_i32_2 = arith.constant 0 : i32
    return %c0_i32, %c0_i32_0, %c0_i32_1 : i32, i32, i32
  }
  func.func @transform_7(%arg0: i32) -> (i32, i32, i32) {
    %c0_i32 = arith.constant 0 : i32
    %c0_i32_0 = arith.constant 0 : i32
    %c0_i32_1 = arith.constant 0 : i32
    %c0_i32_2 = arith.constant 0 : i32
    return %c0_i32, %c0_i32_0, %c0_i32_1 : i32, i32, i32
  }
  func.func @transform_8(%arg0: i32) -> (i32, i32) {
    %c0_i32 = arith.constant 0 : i32
    %c0_i32_0 = arith.constant 0 : i32
    %c0_i32_1 = arith.constant 0 : i32
    return %c0_i32, %c0_i32_0 : i32, i32
  }
}

</mosaic_0001>

<bundles_post_ra>
// kernel: tpu_custom_call.1
= control target key start
LH: loop header
LB: loop body
LE: loop exit
PB: predicated region body
PF: predicated region fallthrough
CT: control target
= control target key end

     0   :  { %13 = vsyncpa [#allocation3], 0  ;;  %s22380_s0 = inlined_call_operand.hbm [shape: f32[9,512], index: 0, kind: input, shape index: {}]   ;;  %s22381_s1 = inlined_call_operand.vmem [shape: f32[1,512], index: 1, kind: input, shape index: {}]   ;;  %s22382_s2 = inlined_call_operand.vmem [shape: f32[9,32,1], index: 2, kind: input, shape index: {}]   ;;  %s22383_s3 = inlined_call_operand.vmem [shape: f32[9,32,32], index: 3, kind: input, shape index: {}]   ;;  %s22384_s4 = inlined_call_operand.hbm [shape: f32[9,32,32], index: 4, kind: input, shape index: {}]   ;;  %s22385_s5 = inlined_call_operand.hbm [shape: f32[9,32,32], index: 5, kind: input, shape index: {}]   ;;  %s22386_s6 = inlined_call_operand.hbm [shape: f32[9,32,32], index: 6, kind: input, shape index: {}]   ;;  %s22387_s7 = inlined_call_operand.vmem [shape: f32[9,1,32], index: 7, kind: input, shape index: {}]   ;;  %s22388_s8 = inlined_call_operand.hbm [shape: f32[1,512], index: 8, kind: output, shape index: {}]  }
   0x1   :  { %14 = vsyncpa [#allocation6], 0 }
   0x2   :  { %15 = vsyncpa [#allocation9], 0 }
   0x3   :  { %16 = vsyncpa [#allocation4], 0  ;;  %s15516_s27 = smov [#allocation5]   ;;  %s15398_s9 = scalar_lea.hbm %s22384_s4, 4608 }
   0x4   :  { %s40_s28 = sshll.u32 %s15516_s27, 4  ;;  %p15399_p0 = scmp.ne.s32.totalorder %s22384_s4, %s15398_s9  ;;  %s41_s28 = int_to_ptr.vmem [resolvable:$true] %s40_s28 }
   0x5   :  { %p15402_p1 = scmp.lt.u32.totalorder %s15398_s9, %s22384_s4 }
   0x7   :  { %p15404_p2 = pnand %p15402_p1, %p15399_p0 }
   0x9   :  { %15407 = shalt.err (!%p15404_p2)
}
   0xa   :  { %s15408_s14 = scalar_lea.vmem %s41_s28, 4608  ;;  %p15413_p4 = scmp.lt.s32.totalorder %s41_s28, %s41_s28 }
   0xb   :  { %p15409_p3 = scmp.ne.s32.totalorder %s41_s28, %s15408_s14  ;;  %p15414_p5 = scmp.lt.s32.totalorder %s15408_s14, %s15408_s14 }
   0xd   :  { %p15415_p6 = por %p15414_p5, %p15413_p4 }
   0xf   :  { %p15416_p7 = pnand %p15415_p6, %p15409_p3 }
  0x11   :  { %15419 = shalt.err (!%p15416_p7)
}
  0x12   :  { %s15517_s15 = smov 128   ;;  %s15518_s16 = smov 8  }
  0x13   :  { %46 = dma.hbm_to_vmem [thread:$0]  %s22384_s4, 4608, %s41_s28, [#allocation6], %s15517_s15, %s15517_s15, %s15518_s16  }
  0x14   :  { %s15519_s19 = smov [#allocation2]   ;;  %s15420_s23 = scalar_lea.hbm %s22380_s0, 1024 }
  0x15   :  { %s22_s20 = sshll.u32 %s15519_s19, 4  ;;  %p15421_p8 = scmp.ne.s32.totalorder %s22380_s0, %s15420_s23  ;;  %s23_s20 = int_to_ptr.vmem [resolvable:$true] %s22_s20 }
  0x16   :  { %p15424_p9 = scmp.lt.u32.totalorder %s15420_s23, %s22380_s0 }
  0x18   :  { %p15426_p10 = pnand %p15424_p9, %p15421_p8 }
  0x1a   :  { %15429 = shalt.err (!%p15426_p10)
}
  0x1b   :  { %s15430_s29 = scalar_lea.vmem %s23_s20, 1024  ;;  %p15435_p12 = scmp.lt.s32.totalorder %s23_s20, %s23_s20 }
  0x1c   :  { %p15431_p11 = scmp.ne.s32.totalorder %s23_s20, %s15430_s29  ;;  %p15436_p13 = scmp.lt.s32.totalorder %s15430_s29, %s15430_s29 }
  0x1e   :  { %p15437_p0 = por %p15436_p13, %p15435_p12 }
  0x20   :  { %p15438_p1 = pnand %p15437_p0, %p15431_p11 }
  0x22   :  { %15441 = shalt.err (!%p15438_p1)
}
  0x23   :  { %s15520_s4 = smov 512   ;;  %s15521_s28 = smov 32  }
  0x24   :  { %28 = dma.hbm_to_vmem [thread:$0]  %s22380_s0, 1024, %s23_s20, [#allocation3], %s15520_s4, %s15520_s4, %s15521_s28  }
  0x25   :  { %s15522_s10 = smov [#allocation7]   ;;  %s15523_s12 = smov [#allocation8]  }
  0x26   :  { %s52_s11 = sshll.u32 %s15522_s10, 4  ;;  %s64_s13 = sshll.u32 %s15523_s12, 4  ;;  %s53_s11 = int_to_ptr.vmem [resolvable:$true] %s52_s11  ;;  %s15608_s13 = int_to_ptr.vmem [resolvable:$true] %s64_s13 }
  0x27   :  { %s15442_s18 = scalar_lea.hbm %s22385_s5, 4608 }
  0x28   :  { %p15443_p2 = scmp.ne.s32.totalorder %s22385_s5, %s15442_s18  ;;  %p15446_p3 = scmp.lt.u32.totalorder %s15442_s18, %s22385_s5 }
  0x2a   :  { %p15448_p4 = pnand %p15446_p3, %p15443_p2 }
  0x2c   :  { %15451 = shalt.err (!%p15448_p4)
}
  0x2d   :  { %s15452_s0 = scalar_lea.vmem %s53_s11, 4608  ;;  %p15457_p6 = scmp.lt.s32.totalorder %s53_s11, %s53_s11 }
  0x2e   :  { %p15453_p5 = scmp.ne.s32.totalorder %s53_s11, %s15452_s0  ;;  %p15458_p7 = scmp.lt.s32.totalorder %s15452_s0, %s15452_s0 }
  0x30   :  { %p15459_p8 = por %p15458_p7, %p15457_p6 }
  0x32   :  { %p15460_p9 = pnand %p15459_p8, %p15453_p5 }
  0x34   :  { %15463 = shalt.err (!%p15460_p9)
}
  0x35   :  { %58 = dma.hbm_to_vmem [thread:$0]  %s22385_s5, 4608, %s53_s11, [#allocation6], %s15517_s15, %s15517_s15, %s15518_s16  }
  0x36   :  { %s15464_s27 = scalar_lea.hbm %s22386_s6, 4608 }
  0x37   :  { %p15465_p10 = scmp.ne.s32.totalorder %s22386_s6, %s15464_s27  ;;  %p15468_p11 = scmp.lt.u32.totalorder %s15464_s27, %s22386_s6 }
  0x39   :  { %p15470_p12 = pnand %p15468_p11, %p15465_p10 }
  0x3b   :  { %15473 = shalt.err (!%p15470_p12)
}
  0x3c   :  { %s15474_s9 = scalar_lea.vmem %s15608_s13, 4608  ;;  %p15479_p0 = scmp.lt.s32.totalorder %s15608_s13, %s15608_s13 }
  0x3d   :  { %p15475_p13 = scmp.ne.s32.totalorder %s15608_s13, %s15474_s9  ;;  %p15480_p1 = scmp.lt.s32.totalorder %s15474_s9, %s15474_s9 }
  0x3f   :  { %p15481_p2 = por %p15480_p1, %p15479_p0 }
  0x41   :  { %p15482_p3 = pnand %p15481_p2, %p15475_p13 }
  0x43   :  { %15485 = shalt.err (!%p15482_p3)
}
  0x44   :  { %70 = dma.hbm_to_vmem [thread:$0]  %s22386_s6, 4608, %s15608_s13, [#allocation9], %s15517_s15, %s15517_s15, %s15518_s16  }
  0x45   :  { %15508 = dma.done.wait [#allocation3], 1024  }
  0x46   :  { %15509 = vsyncadd [#allocation3], 4294966272 }
  0x47   :  { %15510 = dma.done.wait [#allocation6], 9216  }
  0x48   :  { %15511 = vsyncadd [#allocation6], 4294958080 }
  0x49   :  { %15512 = dma.done.wait [#allocation9], 4608  }
  0x4a   :  { %15513 = vsyncadd [#allocation9], 4294962688  ;;  %v22389_v0 = vlaneseq  ;;  %v15524_v1 = vmov 0   ;;  %v13454_v3 = vld [vmem:[%s22382_s2 + $0x20] sm:$0xff]  ;;  %v13455_v7 = vld [vmem:[%s22382_s2 + $0x28] sm:$0xff]  ;;  %s15525_s21 = smov 17  }
  0x4b   :  { %15197 = vset.pattern.permute.xlu1 %v15524_v1  ;;  %15196 = vset.pattern.permute.xlu0 %v15524_v1  ;;  %v101_v4 = vld [vmem:[%s22382_s2] sm:$0xff]  ;;  %v102_v8 = vld [vmem:[%s22382_s2 + $0x8] sm:$0xff]  ;;  %v103_v18 = vld [vmem:[%s22382_s2 + $0x10] sm:$0xff]  ;;  %s15527_s9 = smov 15   ;;  %s15528_s16 = smov 1  }
  0x4c   :  { %v15646_v2 = vshrl.u32 %v22389_v0, 7  ;;  %279 = vperm.xlu1 %15197, %v13454_v3   ;;  %168 = vperm.xlu0 %15196, %v101_v4   ;;  %v100_v9 = vld [vmem:[%s22381_s1] sm:$0xf]  ;;  %s15526_s1 = smov 16   ;;  %v13459_v15 = vld [vmem:[%s22382_s2 + $0x48] sm:$0xff]  ;;  %v104_v19 = vld [vmem:[%s22382_s2 + $0x18] sm:$0xff] }
  0x4d   :  { %v13458_v16 = vld [vmem:[%s22382_s2 + $0x40] sm:$0xff]  ;;  %v13457_v20 = vld [vmem:[%s22382_s2 + $0x38] sm:$0xff]  ;;  %v13456_v21 = vld [vmem:[%s22382_s2 + $0x30] sm:$0xff]  ;;  %s15529_s10 = smov 127   ;;  %s15530_s19 = smov 113  }
  0x4e   :  { %22677 = vst [vmem:[#allocation15_spill] sm:$0xff] %v15646_v2  ;;  %v15655_v5 = vsub.s32 0, %v15646_v2  ;;  %v15658_v6 = vsub.s32 1, %v15646_v2  ;;  %v15676_v12 = vsub.s32 3, %v15646_v2  ;;  %v15694_v14 = vsub.s32 2, %v15646_v2  ;;  %v13462_v22 = vld [vmem:[%s22382_s2 + $0x60] sm:$0xff] }
  0x4f   :  { %v13463_v23 = vld [vmem:[%s22382_s2 + $0x68] sm:$0xff]  ;;  %v13461_v24 = vld [vmem:[%s22382_s2 + $0x58] sm:$0xff]  ;;  %v13460_v25 = vld [vmem:[%s22382_s2 + $0x50] sm:$0xff]  ;;  %s15531_s29 = smov 112   ;;  %s15532_s6 = smov 111  }
  0x50   :  { %284 = vperm.xlu1 %15197, %v13455_v7   ;;  %173 = vperm.xlu0 %15196, %v102_v8   ;;  %v15670_v10 = vrot.slane %v100_v9, %v15658_v6  ;;  %v15673_v11 = vrot.slane %v100_v9, %v15655_v5  ;;  %v15683_v13 = vrot.slane %v100_v9, %v15676_v12  ;;  %v13466_v26 = vld [vmem:[%s22382_s2 + $0x80] sm:$0xff]  ;;  %v13467_v27 = vld [vmem:[%s22382_s2 + $0x88] sm:$0xff]  ;;  %v13465_v28 = vld [vmem:[%s22382_s2 + $0x78] sm:$0xff]  ;;  %v15882_v8 = vand.u32 127, %v22389_v0 }
  0x51   :  { %v15703_v17 = vrot.slane %v100_v9, %v15694_v14  ;;  %v13464_v29 = vld [vmem:[%s22382_s2 + $0x70] sm:$0xff]  ;;  %v13471_v30 = vld [vmem:[%s22382_s2 + $0xa8] sm:$0xff]  ;;  %v13470_v31 = vld [vmem:[%s22382_s2 + $0xa0] sm:$0xff] }
  0x52   :  { %22678 = vst [vmem:[#allocation16_spill] sm:$0xff] %v15670_v10  ;;  %22679 = vst [vmem:[#allocation17_spill] sm:$0xff] %v15673_v11  ;;  %v13469_v32 = vld [vmem:[%s22382_s2 + $0x98] sm:$0xff]  ;;  %v13468_v33 = vld [vmem:[%s22382_s2 + $0x90] sm:$0xff]  ;;  %vm247_vm0 = vcmp.lt.s32.totalorder %v15882_v8, 16  ;;  %vm136_vm1 = vcmp.lt.s32.totalorder %v15882_v8, 17 }
  0x53   :  { %22680 = vst [vmem:[#allocation18_spill] sm:$0xff] %v15683_v13  ;;  %22681 = vst [vmem:[#allocation19_spill] sm:$0xff] %v15703_v17  ;;  %v13474_v34 = vld [vmem:[%s22382_s2 + $0xc0] sm:$0xff]  ;;  %v13475_v35 = vld [vmem:[%s22382_s2 + $0xc8] sm:$0xff]  ;;  %vm358_vm2 = vcmp.lt.s32.totalorder %v15882_v8, 15  ;;  %vm469_vm3 = vcmp.lt.s32.totalorder %v15882_v8, 1 }
  0x54   :  { %128 = vrot.lane.b32.xlu1 %v15670_v10, %s15525_s21  ;;  %126 = vrot.lane.b32.xlu0 %v15673_v11, %s15525_s21  ;;  %v13473_v36 = vld [vmem:[%s22382_s2 + $0xb8] sm:$0xff]  ;;  %v13472_v37 = vld [vmem:[%s22382_s2 + $0xb0] sm:$0xff]  ;;  %vm637_vm4 = vcmp.lt.s32.totalorder %v15882_v8, 127  ;;  %vm748_vm5 = vcmp.lt.s32.totalorder %v15882_v8, 113  ;;  %vm859_vm6 = vcmp.lt.s32.totalorder %v15882_v8, 112  ;;  %vm970_vm7 = vcmp.lt.s32.totalorder %v15882_v8, 111 }
  0x55   :  { %v13478_v38 = vld [vmem:[%s22382_s2 + $0xe0] sm:$0xff]  ;;  %v13479_v39 = vld [vmem:[%s22382_s2 + $0xe8] sm:$0xff]  ;;  %v13477_v40 = vld [vmem:[%s22382_s2 + $0xd8] sm:$0xff]  ;;  %v15534_v8 = vmov 1966171168  }
  0x56   :  { %v13476_v41 = vld [vmem:[%s22382_s2 + $0xd0] sm:$0xff]  ;;  %v13482_v42 = vld [vmem:[%s22382_s2 + $0x100] sm:$0xff]  ;;  %v13483_v43 = vld [vmem:[%s22382_s2 + $0x108] sm:$0xff] }
  0x57   :  { %v13481_v44 = vld [vmem:[%s22382_s2 + $0xf8] sm:$0xff]  ;;  %v13480_v45 = vld [vmem:[%s22382_s2 + $0xf0] sm:$0xff] }
  0x58   :  { %239 = vrot.lane.b32.xlu1 %v15673_v11, %s15526_s1  ;;  %132 = vrot.lane.b32.xlu0 %v15683_v13, %s15525_s21  ;;  %v13485_v48 = vld [vmem:[%s22382_s2 + $0x118] sm:$0xff]  ;;  %v13484_v49 = vld [vmem:[%s22382_s2 + $0x110] sm:$0xff] }
  0x59   :  { %v87_v9 = vld [vmem:[#allocation2 + $0x1] ss:$8 sm:$0xf] }
  0x5c   :  { %245 = vrot.lane.b32.xlu1 %v15683_v13, %s15526_s1  ;;  %241 = vrot.lane.b32.xlu0 %v15670_v10, %s15526_s1 }
  0x60   :  { %395 = vperm.xlu1 %15197, %v13459_v15   ;;  %390 = vperm.xlu0 %15196, %v13458_v16   ;;  %v85_v15 = vld [vmem:[#allocation2] ss:$8 sm:$0xf]  ;;  %v89_v16 = vld [vmem:[#allocation2 + $0x2] ss:$8 sm:$0xf] }
  0x61   :  { %v15966_v2 = vrot.slane %v85_v15, %v15694_v14 }
  0x63   :  { %22700 = vst [vmem:[#allocation38_spill] sm:$0xff] %v15966_v2 }
  0x64   :  { %178 = vperm.xlu1 %15197, %v103_v18   ;;  %130 = vrot.lane.b32.xlu0 %v15703_v17, %s15525_s21 }
  0x68   :  { %243 = vrot.lane.b32.xlu1 %v15703_v17, %s15526_s1  ;;  %183 = vperm.xlu0 %15196, %v104_v19  }
  0x6c   :  { %294 = vperm.xlu1 %15197, %v13457_v20   ;;  %289 = vperm.xlu0 %15196, %v13456_v21   ;;  %v15891_v20 = vrot.slane %v87_v9, %v15655_v5  ;;  %v91_v21 = vld [vmem:[#allocation2 + $0x3] ss:$8 sm:$0xf] }
  0x6e   :  { %22682 = vst [vmem:[#allocation20_spill] sm:$0xff] %v15891_v20 }
  0x70   :  { %352 = vrot.lane.b32.xlu1 %v15670_v10, %s15527_s9  ;;  %350 = vrot.lane.b32.xlu0 %v15673_v11, %s15527_s9 }
  0x74   :  { %501 = vperm.xlu1 %15197, %v13462_v22   ;;  %356 = vrot.lane.b32.xlu0 %v15683_v13, %s15527_s9  ;;  %v15894_v22 = vrot.slane %v87_v9, %v15658_v6 }
  0x76   :  { %22683 = vst [vmem:[#allocation21_spill] sm:$0xff] %v15894_v22 }
  0x78   :  { %354 = vrot.lane.b32.xlu1 %v15703_v17, %s15527_s9  ;;  %506 = vperm.xlu0 %15196, %v13463_v23  }
  0x7c   :  { %405 = vperm.xlu1 %15197, %v13461_v24   ;;  %400 = vperm.xlu0 %15196, %v13460_v25   ;;  %v15900_v24 = vrot.slane %v85_v15, %v15658_v6  ;;  %v15903_v25 = vrot.slane %v89_v16, %v15658_v6 }
  0x7e   :  { %22684 = vst [vmem:[#allocation22_spill] sm:$0xff] %v15900_v24  ;;  %22685 = vst [vmem:[#allocation23_spill] sm:$0xff] %v15903_v25 }
  0x80   :  { %463 = vrot.lane.b32.xlu1 %v15670_v10, %s15528_s16  ;;  %461 = vrot.lane.b32.xlu0 %v15673_v11, %s15528_s16 }
  0x84   :  { %574 = vperm.xlu1 %15197, %v13466_v26   ;;  %467 = vrot.lane.b32.xlu0 %v15683_v13, %s15528_s16  ;;  %v15906_v26 = vrot.slane %v85_v15, %v15655_v5 }
  0x86   :  { %22686 = vst [vmem:[#allocation24_spill] sm:$0xff] %v15906_v26 }
  0x88   :  { %465 = vrot.lane.b32.xlu1 %v15703_v17, %s15528_s16  ;;  %579 = vperm.xlu0 %15196, %v13467_v27  }
  0x8c   :  { %516 = vperm.xlu1 %15197, %v13465_v28   ;;  %511 = vperm.xlu0 %15196, %v13464_v29   ;;  %v93_v28 = vld [vmem:[#allocation2 + $0x5] ss:$8 sm:$0xf]  ;;  %v15912_v29 = vrot.slane %v85_v15, %v15676_v12  ;;  %v15985_v15 = vrot.slane %v91_v21, %v15694_v14 }
  0x8e   :  { %22687 = vst [vmem:[#allocation25_spill] sm:$0xff] %v15912_v29  ;;  %22703 = vst [vmem:[#allocation41_spill] sm:$0xff] %v15985_v15 }
  0x90   :  { %674 = vperm.xlu1 %15197, %v13471_v30   ;;  %669 = vperm.xlu0 %15196, %v13470_v31   ;;  %v15915_v30 = vrot.slane %v87_v9, %v15676_v12 }
  0x92   :  { %22688 = vst [vmem:[#allocation26_spill] sm:$0xff] %v15915_v30 }
  0x94   :  { %589 = vperm.xlu1 %15197, %v13469_v32   ;;  %584 = vperm.xlu0 %15196, %v13468_v33  }
  0x98   :  { %631 = vrot.lane.b32.xlu1 %v15670_v10, %s15529_s10  ;;  %629 = vrot.lane.b32.xlu0 %v15673_v11, %s15529_s10 }
  0x9c   :  { %780 = vperm.xlu1 %15197, %v13474_v34   ;;  %633 = vrot.lane.b32.xlu0 %v15703_v17, %s15529_s10 }
  0xa0   :  { %635 = vrot.lane.b32.xlu1 %v15683_v13, %s15529_s10  ;;  %785 = vperm.xlu0 %15196, %v13475_v35   ;;  %v95_v35 = vld [vmem:[#allocation2 + $0x6] ss:$8 sm:$0xf] }
  0xa4   :  { %684 = vperm.xlu1 %15197, %v13473_v36   ;;  %679 = vperm.xlu0 %15196, %v13472_v37   ;;  %v97_v36 = vld [vmem:[#allocation2 + $0x7] ss:$8 sm:$0xf]  ;;  %v15928_v37 = vrot.slane %v91_v21, %v15658_v6 }
  0xa5   :  { %v15960_v0 = vrot.slane %v97_v36, %v15676_v12 }
  0xa6   :  { %22689 = vst [vmem:[#allocation27_spill] sm:$0xff] %v15928_v37 }
  0xa7   :  { %22698 = vst [vmem:[#allocation36_spill] sm:$0xff] %v15960_v0 }
  0xa8   :  { %742 = vrot.lane.b32.xlu1 %v15670_v10, %s15530_s19  ;;  %740 = vrot.lane.b32.xlu0 %v15673_v11, %s15530_s19 }
  0xac   :  { %891 = vperm.xlu1 %15197, %v13478_v38   ;;  %744 = vrot.lane.b32.xlu0 %v15703_v17, %s15530_s19  ;;  %v15931_v38 = vrot.slane %v93_v28, %v15658_v6 }
  0xae   :  { %22690 = vst [vmem:[#allocation28_spill] sm:$0xff] %v15931_v38 }
  0xb0   :  { %746 = vrot.lane.b32.xlu1 %v15683_v13, %s15530_s19  ;;  %896 = vperm.xlu0 %15196, %v13479_v39   ;;  %v15934_v39 = vrot.slane %v89_v16, %v15676_v12 }
  0xb2   :  { %22691 = vst [vmem:[#allocation29_spill] sm:$0xff] %v15934_v39 }
  0xb4   :  { %795 = vperm.xlu1 %15197, %v13477_v40   ;;  %790 = vperm.xlu0 %15196, %v13476_v41   ;;  %v99_v41 = vld [vmem:[#allocation2 + $0x20] ss:$8 sm:$0xf] }
  0xb5   :  { %v16005_v0 = vrot.slane %v99_v41, %v15694_v14 }
  0xb7   :  { %22707 = vst [vmem:[#allocation45_spill] sm:$0xff] %v16005_v0 }
  0xb8   :  { %853 = vrot.lane.b32.xlu1 %v15670_v10, %s15531_s29  ;;  %851 = vrot.lane.b32.xlu0 %v15673_v11, %s15531_s29 }
  0xbc   :  { %1002 = vperm.xlu1 %15197, %v13482_v42   ;;  %855 = vrot.lane.b32.xlu0 %v15703_v17, %s15531_s29  ;;  %v15938_v42 = vrot.slane %v95_v35, %v15658_v6 }
  0xbe   :  { %22692 = vst [vmem:[#allocation30_spill] sm:$0xff] %v15938_v42 }
  0xc0   :  { %857 = vrot.lane.b32.xlu1 %v15683_v13, %s15531_s29  ;;  %1007 = vperm.xlu0 %15196, %v13483_v43   ;;  %v15941_v43 = vrot.slane %v97_v36, %v15658_v6 }
  0xc2   :  { %22693 = vst [vmem:[#allocation31_spill] sm:$0xff] %v15941_v43  ;;  %v16009_v43 = vrot.slane %v89_v16, %v15655_v5 }
  0xc4   :  { %906 = vperm.xlu1 %15197, %v13481_v44   ;;  %901 = vperm.xlu0 %15196, %v13480_v45   ;;  %v15944_v44 = vrot.slane %v91_v21, %v15676_v12  ;;  %22708 = vst [vmem:[#allocation46_spill] sm:$0xff] %v16009_v43 }
  0xc6   :  { %22694 = vst [vmem:[#allocation32_spill] sm:$0xff] %v15944_v44 }
  0xc8   :  { %964 = vrot.lane.b32.xlu1 %v15670_v10, %s15532_s6  ;;  %962 = vrot.lane.b32.xlu0 %v15673_v11, %s15532_s6 }
  0xcb   :  { %v15837_v46 = vpop.permute.xlu1 %279  ;;  %v15839_v47 = vpop.permute.xlu0 %168 }
  0xcc   :  { %968 = vrot.lane.b32.xlu1 %v15683_v13, %s15532_s6  ;;  %966 = vrot.lane.b32.xlu0 %v15703_v17, %s15532_s6 }
  0xcf   :  { %v15851_v50 = vpop.permute.xlu1 %284  ;;  %v15853_v51 = vpop.permute.xlu0 %173 }
  0xd0   :  { %1017 = vperm.xlu1 %15197, %v13485_v48   ;;  %1012 = vperm.xlu0 %15196, %v13484_v49   ;;  %v15949_v48 = vrot.slane %v99_v41, %v15658_v6  ;;  %v15952_v49 = vrot.slane %v93_v28, %v15676_v12 }
  0xd2   :  { %22695 = vst [vmem:[#allocation33_spill] sm:$0xff] %v15949_v48  ;;  %22696 = vst [vmem:[#allocation34_spill] sm:$0xff] %v15952_v49  ;;  %v16000_v48 = vrot.slane %v97_v36, %v15694_v14 }
  0xd3   :  { %v15855_v52 = vpop.permute.xlu1 %128  ;;  %v127_v53 = vpop.permute.xlu0 %126 }
  0xd4   :  { %v139_v31 = vsel %vm136_vm1, %v127_v53, %v15855_v52  ;;  %22706 = vst [vmem:[#allocation44_spill] sm:$0xff] %v16000_v48 }
  0xd7   :  { %v240_v54 = vpop.permute.xlu1 %239  ;;  %v15857_v55 = vpop.permute.xlu0 %132 }
  0xd8   :  { %v140_v32 = vsel %vm136_vm1, %v15857_v55, %v127_v53  ;;  %v163_v53 = vmul.f32 %v15900_v24, %v139_v31  ;;  %v15973_v31 = vrot.slane %v87_v9, %v15694_v14  ;;  %v15988_v24 = vrot.slane %v93_v28, %v15694_v14 }
  0xda   :  { %22701 = vst [vmem:[#allocation39_spill] sm:$0xff] %v15973_v31  ;;  %22704 = vst [vmem:[#allocation42_spill] sm:$0xff] %v15988_v24 }
  0xdb   :  { %v15859_v56 = vpop.permute.xlu1 %245  ;;  %v15861_v57 = vpop.permute.xlu0 %241 }
  0xdc   :  { %v251_v23 = vsel %vm247_vm0, %v15859_v56, %v240_v54  ;;  %v250_v27 = vsel %vm247_vm0, %v240_v54, %v15861_v57  ;;  %v162_v54 = vmul.f32 %v15906_v26, %v140_v32  ;;  %v15976_v32 = vrot.slane %v89_v16, %v15694_v14 }
  0xdd   :  { %v273_v40 = vmul.f32 %v15891_v20, %v251_v23  ;;  %v274_v45 = vmul.f32 %v15894_v22, %v250_v27  ;;  %v15957_v23 = vrot.slane %v95_v35, %v15676_v12  ;;  %v15963_v27 = vrot.slane %v99_v41, %v15676_v12 }
  0xde   :  { %22702 = vst [vmem:[#allocation40_spill] sm:$0xff] %v15976_v32 }
  0xdf   :  { %v15863_v58 = vpop.permute.xlu1 %395  ;;  %v15865_v59 = vpop.permute.xlu0 %390  ;;  %22697 = vst [vmem:[#allocation35_spill] sm:$0xff] %v15957_v23  ;;  %22699 = vst [vmem:[#allocation37_spill] sm:$0xff] %v15963_v27  ;;  %v15979_v26 = vrot.slane %v273_v40, %v15655_v5  ;;  %v15991_v22 = vrot.slane %v274_v45, %v15655_v5  ;;  %v15997_v40 = vrot.slane %v95_v35, %v15694_v14 }
  0xe0   :  { %v189_v27 = vrot.slane %v162_v54, %v15655_v5 }
  0xe1   :  { %22705 = vst [vmem:[#allocation43_spill] sm:$0xff] %v15997_v40 }
  0xe2   :  { %v206_v0 = vmul.f32 %v189_v27, %v15853_v51 }
  0xe3   :  { %v15867_v60 = vpop.permute.xlu1 %178  ;;  %v131_v61 = vpop.permute.xlu0 %130 }
  0xe4   :  { %v138_v12 = vsel %vm136_vm1, %v15855_v52, %v131_v61  ;;  %v137_v9 = vsel %vm136_vm1, %v131_v61, %v15857_v55  ;;  %v193_v52 = vrot.slane %v163_v53, %v15655_v5  ;;  %v16016_v61 = vrot.slane %v91_v21, %v15655_v5 }
  0xe5   :  { %v164_v45 = vmul.f32 %v15966_v2, %v138_v12  ;;  %v313_v53 = vmul.f32 %v15979_v26, %v15837_v46  ;;  %v165_v54 = vmul.f32 %v15912_v29, %v137_v9  ;;  %v317_v12 = vmul.f32 %v15979_v26, %v15851_v50 }
  0xe6   :  { %22709 = vst [vmem:[#allocation47_spill] sm:$0xff] %v16016_v61  ;;  %v314_v21 = vmul.f32 %v15991_v22, %v15837_v46  ;;  %v318_v2 = vmul.f32 %v15991_v22, %v15851_v50  ;;  %v16036_v9 = vrot.slane %v93_v28, %v15655_v5  ;;  %v207_v29 = vmul.f32 %v193_v52, %v15853_v51 }
  0xe7   :  { %v15869_v62 = vpop.permute.xlu1 %243  ;;  %v15871_v63 = vpop.permute.xlu0 %183  ;;  %v197_v48 = vrot.slane %v164_v45, %v15655_v5  ;;  %v201_v38 = vrot.slane %v165_v54, %v15655_v5  ;;  %v211_v54 = vmul.f32 %v193_v52, %v15867_v60 }
  0xe8   :  { %v248_v14 = vsel %vm247_vm0, %v15869_v62, %v15859_v56  ;;  %v249_v16 = vsel %vm247_vm0, %v15861_v57, %v15869_v62  ;;  %22710 = vst [vmem:[#allocation48_spill] sm:$0xff] %v16036_v9  ;;  %v203_v56 = vmul.f32 %v193_v52, %v15839_v47  ;;  %v202_v57 = vmul.f32 %v189_v27, %v15839_v47 }
  0xe9   :  { %v16043_v62 = vrot.slane %v95_v35, %v15655_v5  ;;  %v275_v40 = vmul.f32 %v15973_v31, %v249_v16  ;;  %v276_v28 = vmul.f32 %v15915_v30, %v248_v14  ;;  %v16057_v9 = vrot.slane %v97_v36, %v15655_v5 }
  0xea   :  { %v16053_v24 = vadd.f32 %v313_v53, %v202_v57  ;;  %v16060_v35 = vrot.slane %v99_v41, %v15655_v5  ;;  %v16066_v14 = vadd.f32 %v314_v21, %v203_v56  ;;  %v16068_v16 = vadd.f32 %v317_v12, %v206_v0 }
  0xeb   :  { %v15873_v1 = vpop.permute.xlu1 %294  ;;  %v15875_v3 = vpop.permute.xlu0 %289  ;;  %22711 = vst [vmem:[#allocation49_spill] sm:$0xff] %v16043_v62  ;;  %22713 = vst [vmem:[#allocation51_spill] sm:$0xff] %v16057_v9  ;;  %v16070_v31 = vadd.f32 %v318_v2, %v207_v29  ;;  %v210_v53 = vmul.f32 %v189_v27, %v15867_v60  ;;  %v214_v36 = vmul.f32 %v189_v27, %v15871_v63 }
  0xec   :  { %22714 = vst [vmem:[#allocation52_spill] sm:$0xff] %v16060_v35  ;;  %v204_v57 = vmul.f32 %v197_v48, %v15839_v47  ;;  %v308_v21 = vrot.slane %v275_v40, %v15655_v5  ;;  %v312_v0 = vrot.slane %v276_v28, %v15655_v5  ;;  %v215_v2 = vmul.f32 %v193_v52, %v15871_v63 }
  0xed   :  { %v205_v56 = vmul.f32 %v201_v38, %v15839_v47  ;;  %v208_v27 = vmul.f32 %v197_v48, %v15853_v51  ;;  %v209_v30 = vmul.f32 %v201_v38, %v15853_v51  ;;  %v216_v35 = vmul.f32 %v197_v48, %v15871_v63 }
  0xee   :  { %v217_v40 = vmul.f32 %v201_v38, %v15871_v63  ;;  %v212_v28 = vmul.f32 %v197_v48, %v15867_v60  ;;  %v325_v9 = vmul.f32 %v15979_v26, %v15873_v1  ;;  %v326_v47 = vmul.f32 %v15991_v22, %v15873_v1 }
  0xef   :  { %v15877_v4 = vpop.permute.xlu1 %352  ;;  %v15879_v7 = vpop.permute.xlu0 %350  ;;  %v213_v62 = vmul.f32 %v201_v38, %v15867_v60  ;;  %v321_v51 = vmul.f32 %v15979_v26, %v15875_v3  ;;  %v319_v26 = vmul.f32 %v308_v21, %v15851_v50  ;;  %v327_v38 = vmul.f32 %v308_v21, %v15873_v1 }
  0xf0   :  { %v361_v45 = vsel %vm358_vm2, %v15879_v7, %v15877_v4  ;;  %v328_v13 = vmul.f32 %v312_v0, %v15873_v1 }
  0xf3   :  { %v15885_v18 = vpop.permute.xlu1 %501  ;;  %v15887_v19 = vpop.permute.xlu0 %356 }
  0xf4   :  { %v362_v41 = vsel %vm358_vm2, %v15887_v19, %v15879_v7  ;;  %v385_v7 = vmul.f32 %v15903_v25, %v361_v45  ;;  %v315_v45 = vmul.f32 %v308_v21, %v15837_v46  ;;  %v316_v25 = vmul.f32 %v312_v0, %v15837_v46 }
  0xf5   :  { %v384_v52 = vmul.f32 %v16009_v43, %v362_v41  ;;  %v322_v46 = vmul.f32 %v15991_v22, %v15875_v3 }
  0xf6   :  { %v415_v43 = vrot.slane %v385_v7, %v15655_v5  ;;  %v331_v22 = vadd.f32 %v315_v45, %v204_v57  ;;  %v332_v10 = vadd.f32 %v316_v25, %v205_v56  ;;  %v323_v7 = vmul.f32 %v308_v21, %v15875_v3 }
  0xf7   :  { %v15923_v33 = vpop.permute.xlu1 %354  ;;  %v15925_v34 = vpop.permute.xlu0 %506  ;;  %v338_v21 = vadd.f32 %v322_v46, %v211_v54 }
  0xf8   :  { %v359_v63 = vsel %vm358_vm2, %v15923_v33, %v15887_v19  ;;  %v360_v48 = vsel %vm358_vm2, %v15877_v4, %v15923_v33  ;;  %v320_v19 = vmul.f32 %v312_v0, %v15851_v50  ;;  %v341_v33 = vadd.f32 %v325_v9, %v214_v36 }
  0xf9   :  { %v387_v17 = vmul.f32 %v15934_v39, %v359_v63  ;;  %v324_v50 = vmul.f32 %v312_v0, %v15875_v3  ;;  %v425_v11 = vmul.f32 %v415_v43, %v15865_v59  ;;  %v429_v9 = vmul.f32 %v415_v43, %v15863_v58 }
  0xfa   :  { %v339_v56 = vadd.f32 %v323_v7, %v212_v28  ;;  %v335_v63 = vadd.f32 %v319_v26, %v208_v27 }
  0xfb   :  { %v15968_v6 = vpop.permute.xlu1 %405  ;;  %v15970_v20 = vpop.permute.xlu0 %400  ;;  %v423_v0 = vrot.slane %v387_v17, %v15655_v5  ;;  %v340_v45 = vadd.f32 %v324_v50, %v213_v62  ;;  %v441_v54 = vadd.f32 %v425_v11, %v16066_v14 }
  0xfd   :  { %v427_v14 = vmul.f32 %v423_v0, %v15865_v59 }
  0xff   :  { %v16011_v23 = vpop.permute.xlu1 %463  ;;  %v16013_v55 = vpop.permute.xlu0 %461  ;;  %v16187_v50 = vadd.f32 %v427_v14, %v332_v10 }
 0x100   :  { %v472_v4 = vsel %vm469_vm3, %v16013_v55, %v16011_v23 }
 0x101   :  { %v496_v36 = vmul.f32 %v15928_v37, %v472_v4 }
 0x103   :  { %v16049_v42 = vpop.permute.xlu1 %574  ;;  %v16051_v49 = vpop.permute.xlu0 %467 }
 0x104   :  { %22712 = vst [vmem:[#allocation50_spill] sm:$0xff] %v16049_v42  ;;  %v343_v42 = vadd.f32 %v327_v38, %v216_v35  ;;  %v473_v35 = vsel %vm469_vm3, %v16051_v49, %v16013_v55  ;;  %v445_v55 = vadd.f32 %v429_v9, %v16070_v31 }
 0x107   :  { %v16083_v29 = vpop.permute.xlu1 %465  ;;  %v16085_v12 = vpop.permute.xlu0 %579 }
 0x108   :  { %22715 = vst [vmem:[#allocation53_spill] sm:$0xff] %v16085_v12  ;;  %v411_v12 = vrot.slane %v384_v52, %v15655_v5  ;;  %v471_v17 = vsel %vm469_vm3, %v16011_v23, %v16083_v29  ;;  %v470_v27 = vsel %vm469_vm3, %v16083_v29, %v16051_v49  ;;  %v437_v23 = vmul.f32 %v415_v43, %v15968_v6 }
 0x109   :  { %v497_v26 = vmul.f32 %v15985_v15, %v471_v17  ;;  %v498_v46 = vmul.f32 %v15944_v44, %v470_v27 }
 0x10a   :  { %v424_v57 = vmul.f32 %v411_v12, %v15865_v59  ;;  %v428_v25 = vmul.f32 %v411_v12, %v15863_v58 }
 0x10b   :  { %v16112_v41 = vpop.permute.xlu1 %516  ;;  %v16114_v60 = vpop.permute.xlu0 %511 }
 0x10c   :  { %22716 = vst [vmem:[#allocation54_spill] sm:$0xff] %v16112_v41  ;;  %22717 = vst [vmem:[#allocation55_spill] sm:$0xff] %v16114_v60  ;;  %v342_v60 = vadd.f32 %v326_v47, %v215_v2  ;;  %v386_v41 = vmul.f32 %v15976_v32, %v360_v48  ;;  %v344_v2 = vadd.f32 %v328_v13, %v217_v40 }
 0x10d   :  { %v337_v47 = vadd.f32 %v321_v51, %v210_v53  ;;  %v336_v48 = vadd.f32 %v320_v19, %v209_v30  ;;  %v16152_v40 = vrot.slane %v496_v36, %v15655_v5  ;;  %v440_v62 = vadd.f32 %v424_v57, %v16053_v24 }
 0x10e   :  { %v419_v3 = vrot.slane %v386_v41, %v15655_v5  ;;  %v495_v30 = vmul.f32 %v16016_v61, %v473_v35  ;;  %v444_v28 = vadd.f32 %v428_v25, %v16068_v16  ;;  %v436_v51 = vmul.f32 %v411_v12, %v15968_v6 }
 0x10f   :  { %v16132_v1 = vpop.permute.xlu1 %674  ;;  %v16134_v52 = vpop.permute.xlu0 %669  ;;  %v439_v24 = vmul.f32 %v423_v0, %v15968_v6  ;;  %v432_v41 = vmul.f32 %v411_v12, %v15970_v20  ;;  %v536_v29 = vmul.f32 %v16152_v40, %v15885_v18  ;;  %v435_v19 = vmul.f32 %v423_v0, %v15970_v20 }
 0x110   :  { %v426_v11 = vmul.f32 %v419_v3, %v15865_v59  ;;  %v438_v31 = vmul.f32 %v419_v3, %v15968_v6  ;;  %v430_v16 = vmul.f32 %v419_v3, %v15863_v58  ;;  %v433_v59 = vmul.f32 %v415_v43, %v15970_v20 }
 0x111   :  { %v431_v6 = vmul.f32 %v423_v0, %v15863_v58  ;;  %v434_v12 = vmul.f32 %v419_v3, %v15970_v20  ;;  %v522_v4 = vrot.slane %v495_v30, %v15655_v5  ;;  %v452_v9 = vadd.f32 %v436_v51, %v341_v33  ;;  %v22720_v33 = vld [vmem:[#allocation50_spill] sm:$0xff] }
 0x112   :  { %v442_v7 = vadd.f32 %v426_v11, %v331_v22  ;;  %v453_v36 = vadd.f32 %v437_v23, %v342_v60  ;;  %v454_v57 = vadd.f32 %v438_v31, %v343_v42  ;;  %v455_v43 = vadd.f32 %v439_v24, %v344_v2  ;;  %v22719_v42 = vld [vmem:[#allocation17_spill] sm:$0xff]  ;;  %v22721_v11 = vld [vmem:[#allocation16_spill] sm:$0xff]  ;;  %v22722_v31 = vld [vmem:[#allocation19_spill] sm:$0xff] }
 0x113   :  { %v16147_v13 = vpop.permute.xlu1 %589  ;;  %v16149_v53 = vpop.permute.xlu0 %584  ;;  %v530_v25 = vrot.slane %v497_v26, %v15655_v5  ;;  %v540_v35 = vmul.f32 %v16152_v40, %v15925_v34  ;;  %v448_v3 = vadd.f32 %v432_v41, %v337_v47  ;;  %v449_v27 = vadd.f32 %v433_v59, %v338_v21  ;;  %v22725_v41 = vld [vmem:[#allocation18_spill] sm:$0xff]  ;;  %v22728_v15 = vld [vmem:[#allocation55_spill] sm:$0xff] }
 0x114   :  { %v552_v20 = vadd.f32 %v536_v29, %v441_v54  ;;  %v534_v0 = vrot.slane %v498_v46, %v15655_v5  ;;  %v450_v22 = vadd.f32 %v434_v12, %v339_v56  ;;  %v451_v10 = vadd.f32 %v435_v19, %v340_v45  ;;  %v22723_v56 = vld [vmem:[#allocation53_spill] sm:$0xff]  ;;  %v22726_v46 = vld [vmem:[#allocation54_spill] sm:$0xff] }
 0x115   :  { %v446_v30 = vadd.f32 %v430_v16, %v335_v63  ;;  %v539_v60 = vmul.f32 %v522_v4, %v15925_v34  ;;  %v592_v2 = vmul.f32 %v22720_v33, %v22719_v42  ;;  %v593_v14 = vmul.f32 %v22720_v33, %v22721_v11 }
 0x116   :  { %v535_v51 = vmul.f32 %v522_v4, %v15885_v18  ;;  %v447_v23 = vadd.f32 %v431_v6, %v336_v48  ;;  %v594_v47 = vmul.f32 %v22720_v33, %v22722_v31  ;;  %v541_v21 = vmul.f32 %v530_v25, %v15925_v34 }
 0x117   :  { %v632_v38 = vpop.permute.xlu1 %631  ;;  %v16175_v49 = vpop.permute.xlu0 %629  ;;  %v556_v54 = vadd.f32 %v540_v35, %v445_v55  ;;  %v597_v45 = vmul.f32 %v22723_v56, %v22721_v11  ;;  %v16210_v26 = vmul.f32 %v22720_v33, %v22725_v41  ;;  %v16212_v16 = vadd.f32 %v593_v14, %v552_v20 }
 0x118   :  { %v542_v48 = vmul.f32 %v534_v0, %v15925_v34  ;;  %v596_v59 = vmul.f32 %v22723_v56, %v22719_v42  ;;  %v537_v29 = vmul.f32 %v530_v25, %v15885_v18  ;;  %v555_v55 = vadd.f32 %v539_v60, %v444_v28 }
 0x119   :  { %v547_v6 = vmul.f32 %v522_v4, %v22726_v46  ;;  %v548_v12 = vmul.f32 %v16152_v40, %v22726_v46  ;;  %v551_v19 = vadd.f32 %v535_v51, %v440_v62  ;;  %v598_v35 = vmul.f32 %v22723_v56, %v22722_v31 }
 0x11a   :  { %v599_v20 = vmul.f32 %v22723_v56, %v22725_v41  ;;  %v549_v34 = vmul.f32 %v530_v25, %v22726_v46  ;;  %v557_v33 = vadd.f32 %v541_v21, %v446_v30  ;;  %v16227_v14 = vadd.f32 %v597_v45, %v556_v54 }
 0x11b   :  { %v16192_v17 = vpop.permute.xlu1 %780  ;;  %v634_v58 = vpop.permute.xlu0 %633  ;;  %v550_v28 = vmul.f32 %v534_v0, %v22726_v46  ;;  %v640_v60 = vsel %vm637_vm4, %v16175_v49, %v632_v38  ;;  %v538_v44 = vmul.f32 %v534_v0, %v15885_v18  ;;  %v558_v56 = vadd.f32 %v542_v48, %v447_v23  ;;  %v22730_v23 = vld [vmem:[#allocation28_spill] sm:$0xff] }
 0x11c   :  { %22718 = vst [vmem:[#allocation56_spill] sm:$0xff] %v16192_v17  ;;  %v543_v61 = vmul.f32 %v522_v4, %v22728_v15  ;;  %v639_v30 = vsel %vm637_vm4, %v632_v38, %v634_v58  ;;  %v553_v21 = vadd.f32 %v537_v29, %v442_v7  ;;  %v612_v54 = vadd.f32 %v596_v59, %v555_v55 }
 0x11d   :  { %v563_v45 = vadd.f32 %v547_v6, %v452_v9  ;;  %v564_v46 = vadd.f32 %v548_v12, %v453_v36  ;;  %v565_v37 = vadd.f32 %v549_v34, %v454_v57  ;;  %v544_v39 = vmul.f32 %v16152_v40, %v22728_v15 }
 0x11e   :  { %v545_v32 = vmul.f32 %v530_v25, %v22728_v15  ;;  %v566_v18 = vadd.f32 %v550_v28, %v455_v43  ;;  %v546_v4 = vmul.f32 %v534_v0, %v22728_v15  ;;  %v664_v48 = vmul.f32 %v22730_v23, %v639_v30 }
 0x11f   :  { %v636_v63 = vpop.permute.xlu1 %635  ;;  %v16206_v24 = vpop.permute.xlu0 %785  ;;  %v16249_v59 = vadd.f32 %v599_v20, %v558_v56  ;;  %v559_v9 = vadd.f32 %v543_v61, %v448_v3  ;;  %v554_v40 = vadd.f32 %v538_v44, %v16187_v50  ;;  %v604_v57 = vmul.f32 %v16147_v13, %v22719_v42  ;;  %v22731_v50 = vld [vmem:[#allocation42_spill] sm:$0xff] }
 0x120   :  { %22724 = vst [vmem:[#allocation17_spill] sm:$0xff] %v16206_v24  ;;  %v22729_v24 = vld [vmem:[#allocation48_spill] sm:$0xff]  ;;  %v638_v36 = vsel %vm637_vm4, %v634_v58, %v636_v63  ;;  %v605_v43 = vmul.f32 %v16147_v13, %v22721_v11  ;;  %v641_v15 = vsel %vm637_vm4, %v636_v63, %v16175_v49  ;;  %v608_v25 = vadd.f32 %v592_v2, %v551_v19 }
 0x121   :  { %v663_v17 = vmul.f32 %v22729_v24, %v640_v60  ;;  %v560_v0 = vadd.f32 %v544_v39, %v449_v27  ;;  %v561_v29 = vadd.f32 %v545_v32, %v450_v22  ;;  %v606_v61 = vmul.f32 %v16147_v13, %v22722_v31 }
 0x122   :  { %v562_v3 = vadd.f32 %v546_v4, %v451_v10  ;;  %v694_v44 = vrot.slane %v664_v48, %v15655_v5  ;;  %v665_v55 = vmul.f32 %v22731_v50, %v638_v36  ;;  %v607_v49 = vmul.f32 %v16147_v13, %v22725_v41  ;;  %v22734_v48 = vld [vmem:[#allocation30_spill] sm:$0xff] }
 0x123   :  { %v16233_v62 = vpop.permute.xlu1 %684  ;;  %v16235_v51 = vpop.permute.xlu0 %679  ;;  %v690_v58 = vrot.slane %v663_v17, %v15655_v5  ;;  %v600_v39 = vmul.f32 %v16149_v53, %v22719_v42  ;;  %v601_v32 = vmul.f32 %v16149_v53, %v22721_v11  ;;  %v22732_v17 = vld [vmem:[#allocation34_spill] sm:$0xff]  ;;  %v620_v22 = vadd.f32 %v604_v57, %v563_v45 }
 0x124   :  { %22727 = vst [vmem:[#allocation50_spill] sm:$0xff] %v16235_v51  ;;  %v16245_v51 = vadd.f32 %v598_v35, %v557_v33  ;;  %v16268_v35 = vadd.f32 %v594_v47, %v553_v21  ;;  %v666_v27 = vmul.f32 %v22732_v17, %v641_v15  ;;  %v621_v10 = vadd.f32 %v605_v43, %v564_v46  ;;  %v22733_v21 = vld [vmem:[#allocation49_spill] sm:$0xff] }
 0x125   :  { %v602_v2 = vmul.f32 %v16149_v53, %v22722_v31  ;;  %v603_v47 = vmul.f32 %v16149_v53, %v22725_v41  ;;  %v622_v63 = vadd.f32 %v606_v61, %v565_v37  ;;  %v703_v13 = vmul.f32 %v690_v58, %v16134_v52 }
 0x126   :  { %v707_v42 = vmul.f32 %v690_v58, %v16132_v1  ;;  %v704_v19 = vmul.f32 %v694_v44, %v16134_v52  ;;  %v708_v20 = vmul.f32 %v694_v44, %v16132_v1  ;;  %v698_v34 = vrot.slane %v665_v55, %v15655_v5 }
 0x127   :  { %v743_v38 = vpop.permute.xlu1 %742  ;;  %v741_v7 = vpop.permute.xlu0 %740  ;;  %v623_v37 = vadd.f32 %v607_v49, %v566_v18  ;;  %v616_v53 = vadd.f32 %v600_v39, %v559_v9  ;;  %v617_v41 = vadd.f32 %v601_v32, %v560_v0  ;;  %v702_v60 = vrot.slane %v666_v27, %v15655_v5  ;;  %v22736_v27 = vld [vmem:[#allocation43_spill] sm:$0xff] }
 0x128   :  { %v751_v11 = vsel %vm748_vm5, %v741_v7, %v743_v38  ;;  %v618_v56 = vadd.f32 %v602_v2, %v561_v29  ;;  %v619_v30 = vadd.f32 %v603_v47, %v562_v3  ;;  %v611_v46 = vadd.f32 %v16210_v26, %v554_v40 }
 0x129   :  { %v774_v45 = vmul.f32 %v22733_v21, %v751_v11  ;;  %v715_v4 = vmul.f32 %v690_v58, %v16233_v62  ;;  %v723_v57 = vadd.f32 %v707_v42, %v612_v54  ;;  %v716_v43 = vmul.f32 %v694_v44, %v16233_v62 }
 0x12a   :  { %v717_v18 = vmul.f32 %v698_v34, %v16233_v62  ;;  %v724_v0 = vadd.f32 %v708_v20, %v16227_v14  ;;  %v720_v29 = vadd.f32 %v704_v19, %v16212_v16  ;;  %v718_v61 = vmul.f32 %v702_v60, %v16233_v62 }
 0x12b   :  { %v16266_v6 = vpop.permute.xlu1 %891  ;;  %v745_v12 = vpop.permute.xlu0 %744  ;;  %v22735_v26 = vld [vmem:[#allocation50_spill] sm:$0xff]  ;;  %v709_v55 = vmul.f32 %v698_v34, %v16132_v1  ;;  %v801_v14 = vrot.slane %v774_v45, %v15655_v5  ;;  %v731_v39 = vadd.f32 %v715_v4, %v620_v22  ;;  %v732_v32 = vadd.f32 %v716_v43, %v621_v10 }
 0x12c   :  { %v750_v31 = vsel %vm748_vm5, %v743_v38, %v745_v12  ;;  %v719_v38 = vadd.f32 %v703_v13, %v608_v25  ;;  %v711_v40 = vmul.f32 %v690_v58, %v22735_v26  ;;  %v705_v25 = vmul.f32 %v698_v34, %v16134_v52 }
 0x12d   :  { %v775_v36 = vmul.f32 %v22734_v48, %v750_v31  ;;  %v712_v49 = vmul.f32 %v694_v44, %v22735_v26  ;;  %v713_v16 = vmul.f32 %v698_v34, %v22735_v26  ;;  %v714_v62 = vmul.f32 %v702_v60, %v22735_v26  ;;  %v22738_v31 = vld [vmem:[#allocation56_spill] sm:$0xff] }
 0x12e   :  { %v16319_v11 = vadd.f32 %v718_v61, %v623_v37  ;;  %v710_v22 = vmul.f32 %v702_v60, %v16132_v1  ;;  %v706_v19 = vmul.f32 %v702_v60, %v16134_v52  ;;  %v727_v20 = vadd.f32 %v711_v40, %v616_v53  ;;  %v22740_v61 = vld [vmem:[#allocation51_spill] sm:$0xff] }
 0x12f   :  { %v747_v33 = vpop.permute.xlu1 %746  ;;  %v16291_v28 = vpop.permute.xlu0 %896  ;;  %v805_v58 = vrot.slane %v775_v36, %v15655_v5  ;;  %v728_v34 = vadd.f32 %v712_v49, %v617_v41  ;;  %v814_v10 = vmul.f32 %v801_v14, %v22738_v31  ;;  %v729_v45 = vadd.f32 %v713_v16, %v618_v56 }
 0x130   :  { %v749_v3 = vsel %vm748_vm5, %v745_v12, %v747_v33  ;;  %v752_v54 = vsel %vm748_vm5, %v747_v33, %v741_v7  ;;  %v733_v12 = vadd.f32 %v717_v18, %v622_v63  ;;  %v22737_v7 = vld [vmem:[#allocation35_spill] sm:$0xff]  ;;  %v22739_v63 = vld [vmem:[#allocation17_spill] sm:$0xff]  ;;  %v730_v4 = vadd.f32 %v714_v62, %v619_v30 }
 0x131   :  { %v776_v2 = vmul.f32 %v22736_v27, %v749_v3  ;;  %v777_v47 = vmul.f32 %v22737_v7, %v752_v54  ;;  %v818_v33 = vmul.f32 %v801_v14, %v22739_v63  ;;  %v815_v36 = vmul.f32 %v805_v58, %v22738_v31  ;;  %v22741_v3 = vld [vmem:[#allocation31_spill] sm:$0xff] }
 0x132   :  { %v819_v37 = vmul.f32 %v805_v58, %v22739_v63  ;;  %v725_v53 = vadd.f32 %v709_v55, %v16245_v51  ;;  %v726_v60 = vadd.f32 %v710_v22, %v16249_v59  ;;  %v721_v56 = vadd.f32 %v705_v25, %v16268_v35 }
 0x133   :  { %v796_v9 = vpop.permute.xlu1 %795  ;;  %v16300_v15 = vpop.permute.xlu0 %790  ;;  %v809_v43 = vrot.slane %v776_v2, %v15655_v5  ;;  %v813_v18 = vrot.slane %v777_v47, %v15655_v5  ;;  %v722_v30 = vadd.f32 %v706_v19, %v611_v46  ;;  %v834_v49 = vadd.f32 %v818_v33, %v723_v57  ;;  %v22743_v33 = vld [vmem:[#allocation36_spill] sm:$0xff] }
 0x134   :  { %v826_v40 = vmul.f32 %v801_v14, %v796_v9  ;;  %v830_v16 = vadd.f32 %v814_v10, %v719_v38  ;;  %v827_v62 = vmul.f32 %v805_v58, %v796_v9  ;;  %v822_v2 = vmul.f32 %v801_v14, %v16300_v15 }
 0x135   :  { %v835_v47 = vadd.f32 %v819_v37, %v724_v0  ;;  %v831_v51 = vadd.f32 %v815_v36, %v720_v29  ;;  %v828_v55 = vmul.f32 %v809_v43, %v796_v9  ;;  %v824_v25 = vmul.f32 %v809_v43, %v16300_v15  ;;  %v22742_v29 = vld [vmem:[#allocation44_spill] sm:$0xff] }
 0x136   :  { %v842_v0 = vadd.f32 %v826_v40, %v731_v39  ;;  %v843_v19 = vadd.f32 %v827_v62, %v732_v32  ;;  %v838_v10 = vadd.f32 %v822_v2, %v727_v20  ;;  %v821_v37 = vmul.f32 %v813_v18, %v22739_v63 }
 0x137   :  { %v854_v13 = vpop.permute.xlu1 %853  ;;  %v852_v42 = vpop.permute.xlu0 %851  ;;  %v817_v39 = vmul.f32 %v813_v18, %v22738_v31  ;;  %v840_v62 = vadd.f32 %v824_v25, %v729_v45 }
 0x138   :  { %v862_v44 = vsel %vm859_vm6, %v852_v42, %v854_v13 }
 0x139   :  { %v885_v1 = vmul.f32 %v22740_v61, %v862_v44  ;;  %v829_v44 = vmul.f32 %v813_v18, %v796_v9  ;;  %v825_v9 = vmul.f32 %v813_v18, %v16300_v15 }
 0x13b   :  { %v16332_v26 = vpop.permute.xlu1 %1002  ;;  %v856_v52 = vpop.permute.xlu0 %855  ;;  %v912_v59 = vrot.slane %v885_v1, %v15655_v5  ;;  %v841_v2 = vadd.f32 %v825_v9, %v730_v4 }
 0x13c   :  { %v861_v41 = vsel %vm859_vm6, %v854_v13, %v856_v52  ;;  %v823_v13 = vmul.f32 %v805_v58, %v16300_v15  ;;  %v820_v58 = vmul.f32 %v809_v43, %v22739_v63  ;;  %v16360_v15 = vadd.f32 %v828_v55, %v733_v12 }
 0x13d   :  { %v886_v54 = vmul.f32 %v22741_v3, %v861_v41  ;;  %v925_v32 = vmul.f32 %v912_v59, %v16266_v6 }
 0x13e   :  { %v839_v1 = vadd.f32 %v823_v13, %v728_v34  ;;  %v836_v34 = vadd.f32 %v820_v58, %v725_v53 }
 0x13f   :  { %v858_v35 = vpop.permute.xlu1 %857  ;;  %v16344_v46 = vpop.permute.xlu0 %1007  ;;  %v916_v22 = vrot.slane %v886_v54, %v15655_v5 }
 0x140   :  { %v860_v57 = vsel %vm859_vm6, %v856_v52, %v858_v35  ;;  %v863_v38 = vsel %vm859_vm6, %v858_v35, %v852_v42  ;;  %v929_v52 = vmul.f32 %v912_v59, %v16291_v28  ;;  %v816_v42 = vmul.f32 %v809_v43, %v22738_v31 }
 0x141   :  { %v887_v14 = vmul.f32 %v22742_v29, %v860_v57  ;;  %v888_v36 = vmul.f32 %v22743_v33, %v863_v38  ;;  %v930_v40 = vmul.f32 %v916_v22, %v16291_v28  ;;  %v926_v20 = vmul.f32 %v916_v22, %v16266_v6 }
 0x142   :  { %v837_v57 = vadd.f32 %v821_v37, %v726_v60  ;;  %v16368_v43 = vadd.f32 %v829_v44, %v16319_v11  ;;  %v945_v55 = vadd.f32 %v929_v52, %v834_v49  ;;  %v832_v38 = vadd.f32 %v816_v42, %v721_v56  ;;  %v22744_v60 = vld [vmem:[#allocation52_spill] sm:$0xff]  ;;  %v22746_v42 = vld [vmem:[#allocation33_spill] sm:$0xff] }
 0x143   :  { %v907_v41 = vpop.permute.xlu1 %906  ;;  %v902_v54 = vpop.permute.xlu0 %901  ;;  %v920_v63 = vrot.slane %v887_v14, %v15655_v5  ;;  %v924_v13 = vrot.slane %v888_v36, %v15655_v5  ;;  %v833_v33 = vadd.f32 %v817_v39, %v722_v30  ;;  %v946_v25 = vadd.f32 %v930_v40, %v835_v47  ;;  %v22747_v40 = vld [vmem:[#allocation45_spill] sm:$0xff] }
 0x144   :  { %v937_v35 = vmul.f32 %v912_v59, %v907_v41  ;;  %v938_v12 = vmul.f32 %v916_v22, %v907_v41  ;;  %v941_v14 = vadd.f32 %v925_v32, %v830_v16  ;;  %v942_v53 = vadd.f32 %v926_v20, %v831_v51 }
 0x145   :  { %v16372_v4 = vmul.f32 %v920_v63, %v907_v41  ;;  %v933_v9 = vmul.f32 %v912_v59, %v902_v54  ;;  %v934_v58 = vmul.f32 %v916_v22, %v902_v54  ;;  %v16375_v11 = vmul.f32 %v924_v13, %v907_v41  ;;  %v22745_v41 = vld [vmem:[#allocation37_spill] sm:$0xff] }
 0x146   :  { %v16377_v44 = vadd.f32 %v937_v35, %v842_v0  ;;  %v935_v37 = vmul.f32 %v920_v63, %v902_v54  ;;  %v936_v49 = vmul.f32 %v924_v13, %v902_v54  ;;  %v16379_v56 = vadd.f32 %v938_v12, %v843_v19 }
 0x147   :  { %v965_v31 = vpop.permute.xlu1 %964  ;;  %v963_v18 = vpop.permute.xlu0 %962  ;;  %v931_v16 = vmul.f32 %v920_v63, %v16291_v28  ;;  %v932_v51 = vmul.f32 %v924_v13, %v16291_v28  ;;  %v927_v19 = vmul.f32 %v920_v63, %v16266_v6  ;;  %v928_v20 = vmul.f32 %v924_v13, %v16266_v6 }
 0x148   :  { %v973_v45 = vsel %vm970_vm7, %v963_v18, %v965_v31  ;;  %v949_v28 = vadd.f32 %v933_v9, %v838_v10  ;;  %v950_v35 = vadd.f32 %v934_v58, %v839_v1 }
 0x149   :  { %v996_v36 = vmul.f32 %v22744_v60, %v973_v45  ;;  %v943_v1 = vadd.f32 %v927_v19, %v832_v38  ;;  %v944_v13 = vadd.f32 %v928_v20, %v833_v33 }
 0x14b   :  { %v1023_v30 = vrot.slane %v996_v36, %v15655_v5  ;;  %v969_v52 = vpop.permute.xlu1 %968  ;;  %v967_v47 = vpop.permute.xlu0 %966 }
 0x14c   :  { %v974_v59 = vsel %vm970_vm7, %v969_v52, %v963_v18  ;;  %v971_v22 = vsel %vm970_vm7, %v967_v47, %v969_v52  ;;  %v972_v0 = vsel %vm970_vm7, %v965_v31, %v967_v47  ;;  %v951_v18 = vadd.f32 %v935_v37, %v840_v62 }
 0x14d   :  { %v999_v54 = vmul.f32 %v22745_v41, %v974_v59  ;;  %v997_v39 = vmul.f32 %v22746_v42, %v972_v0  ;;  %v998_v32 = vmul.f32 %v22747_v40, %v971_v22  ;;  %v1036_v12 = vmul.f32 %v1023_v30, %v16332_v26 }
 0x14e   :  { %v952_v52 = vadd.f32 %v936_v49, %v841_v2  ;;  %v947_v59 = vadd.f32 %v931_v16, %v836_v34  ;;  %v948_v0 = vadd.f32 %v932_v51, %v837_v57  ;;  %v1040_v22 = vmul.f32 %v1023_v30, %v16344_v46 }
 0x14f   :  { %v16397_v45 = vrot.slane %v999_v54, %v15655_v5  ;;  %v1027_v31 = vrot.slane %v997_v39, %v15655_v5  ;;  %v1031_v63 = vrot.slane %v998_v32, %v15655_v5  ;;  %v1013_v36 = vpop.permute.xlu0 %1012  ;;  %v16402_v6 = vpop.permute.xlu1 %1017  ;;  %v16404_v62 = vadd.f32 %v1036_v12, %v941_v14 }
 0x150   :  { %v1044_v47 = vmul.f32 %v1023_v30, %v1013_v36  ;;  %v1048_v33 = vmul.f32 %v1023_v30, %v16402_v6  ;;  %v16417_v38 = vadd.f32 %v1040_v22, %v945_v55 }
 0x151   :  { %v1045_v10 = vmul.f32 %v1027_v31, %v1013_v36  ;;  %v1041_v9 = vmul.f32 %v1027_v31, %v16344_v46  ;;  %v1042_v58 = vmul.f32 %v1031_v63, %v16344_v46  ;;  %v1043_v5 = vmul.f32 %v16397_v45, %v16344_v46 }
 0x152   :  { %v1037_v2 = vmul.f32 %v1027_v31, %v16332_v26  ;;  %v1046_v34 = vmul.f32 %v1031_v63, %v1013_v36  ;;  %v1038_v57 = vmul.f32 %v1031_v63, %v16332_v26  ;;  %v1039_v37 = vmul.f32 %v16397_v45, %v16332_v26 }
 0x153   :  { %v16414_v49 = vadd.f32 %v1044_v47, %v949_v28  ;;  %v16419_v14 = vadd.f32 %v1041_v9, %v946_v25  ;;  %v16423_v51 = vadd.f32 %v1042_v58, %v947_v59  ;;  %v1047_v19 = vmul.f32 %v16397_v45, %v1013_v36 }
 0x154   :  { %v16421_v16 = vadd.f32 %v1037_v2, %v942_v53  ;;  %v16425_v46 = vadd.f32 %v1038_v57, %v943_v1  ;;  %v16428_v54 = vadd.f32 %v1045_v10, %v950_v35  ;;  %v16430_v39 = vadd.f32 %v1043_v5, %v948_v0 }
 0x155   :  { %v1073_v26 = vadd.f32 %v16419_v14, %v16417_v38  ;;  %v16434_v30 = vadd.f32 %v1039_v37, %v944_v13  ;;  %v16438_v25 = vadd.f32 %v1046_v34, %v951_v18  ;;  %v1088_v32 = vmul.f32 %v16404_v62, %v16404_v62 }
 0x156   :  { %v1068_v55 = vadd.f32 %v16421_v16, %v16404_v62  ;;  %v1078_v53 = vadd.f32 %v16428_v54, %v16414_v49  ;;  %v1089_v20 = vmul.f32 %v16421_v16, %v16421_v16  ;;  %v1096_v12 = vmul.f32 %v16414_v49, %v16414_v49 }
 0x157   :  { %v1074_v28 = vadd.f32 %v1073_v26, %v16423_v51  ;;  %v1097_v18 = vmul.f32 %v16428_v54, %v16428_v54  ;;  %v1049_v36 = vmul.f32 %v1027_v31, %v16402_v6  ;;  %v16453_v47 = vadd.f32 %v1047_v19, %v952_v52 }
 0x158   :  { %v1069_v35 = vadd.f32 %v1068_v55, %v16425_v46  ;;  %v1090_v59 = vmul.f32 %v16425_v46, %v16425_v46  ;;  %v1104_v0 = vadd.f32 %v1089_v20, %v1088_v32  ;;  %v1079_v1 = vadd.f32 %v1078_v53, %v16438_v25 }
 0x159   :  { %v1075_v22 = vadd.f32 %v1074_v28, %v16430_v39  ;;  %v1114_v13 = vadd.f32 %v1097_v18, %v1096_v12  ;;  %v1092_v58 = vmul.f32 %v16417_v38, %v16417_v38  ;;  %v1093_v31 = vmul.f32 %v16419_v14, %v16419_v14 }
 0x15a   :  { %v1070_v10 = vadd.f32 %v1069_v35, %v16434_v30  ;;  %v1105_v9 = vadd.f32 %v1104_v0, %v1090_v59  ;;  %v955_v52 = vadd.f32 %v16372_v4, %v16360_v15  ;;  %v1050_v5 = vmul.f32 %v1031_v63, %v16402_v6 }
 0x15b   :  { %1076 = vadd.xlane.f32.xlu1 %v1075_v22  ;;  %v1091_v2 = vmul.f32 %v16434_v30, %v16434_v30  ;;  %v1098_v34 = vmul.f32 %v16438_v25, %v16438_v25  ;;  %v1094_v57 = vmul.f32 %v16423_v51, %v16423_v51  ;;  %v1109_v37 = vadd.f32 %v1093_v31, %v1092_v58 }
 0x15c   :  { %1071 = vadd.xlane.f32.xlu0 %v1070_v10  ;;  %v16474_v19 = vadd.f32 %v1048_v33, %v16377_v44  ;;  %v16477_v26 = vadd.f32 %v1049_v36, %v16379_v56  ;;  %v1080_v15 = vadd.f32 %v1079_v1, %v16453_v47  ;;  %v1099_v63 = vmul.f32 %v16453_v47, %v16453_v47 }
 0x15d   :  { %v1106_v4 = vadd.f32 %v1105_v9, %v1091_v2  ;;  %v1115_v55 = vadd.f32 %v1114_v13, %v1098_v34  ;;  %v1110_v53 = vadd.f32 %v1109_v37, %v1094_v57  ;;  %v1095_v56 = vmul.f32 %v16430_v39, %v16430_v39 }
 0x15e   :  { %v1083_v32 = vadd.f32 %v16477_v26, %v16474_v19  ;;  %v1100_v20 = vmul.f32 %v16474_v19, %v16474_v19  ;;  %v1101_v44 = vmul.f32 %v16477_v26, %v16477_v26  ;;  %v1051_v33 = vmul.f32 %v16397_v45, %v16402_v6 }
 0x15f   :  { %1081 = vadd.xlane.f32.xlu1 %v1080_v15  ;;  %v16492_v28 = vadd.f32 %v1050_v5, %v955_v52  ;;  %v956_v35 = vadd.f32 %v16375_v11, %v16368_v43  ;;  %v1116_v12 = vadd.f32 %v1115_v55, %v1099_v63  ;;  %v1111_v18 = vadd.f32 %v1110_v53, %v1095_v56 }
 0x160   :  { %1107 = vadd.xlane.f32.xlu0 %v1106_v4  ;;  %v1119_v59 = vadd.f32 %v1101_v44, %v1100_v20 }
 0x161   :  { %v1084_v36 = vadd.f32 %v1083_v32, %v16492_v28  ;;  %v16497_v0 = vadd.f32 %v1051_v33, %v956_v35  ;;  %v1102_v22 = vmul.f32 %v16492_v28, %v16492_v28 }
 0x163   :  { %1117 = vadd.xlane.f32.xlu1 %v1116_v12  ;;  %v1085_v10 = vadd.f32 %v1084_v36, %v16497_v0  ;;  %v1120_v45 = vadd.f32 %v1119_v59, %v1102_v22  ;;  %v1103_v6 = vmul.f32 %v16497_v0, %v16497_v0 }
 0x164   :  { %1112 = vadd.xlane.f32.xlu0 %v1111_v18 }
 0x165   :  { %v1121_v43 = vadd.f32 %v1120_v45, %v1103_v6 }
 0x168   :  { %1086 = vadd.xlane.f32.xlu0 %v1085_v10 }
 0x16c   :  { %1122 = vadd.xlane.f32.xlu0 %v1121_v43 }
 0x1e8   :  { %v1077_v11 = vpop.xlane.xlu1 %1076 }
 0x1e9   :  { %v1072_v1 = vpop.xlane.xlu0 %1071  ;;  %v1125_v31 = vmul.f32 0.001953125, %v1077_v11 }
 0x1ea   :  { %v1124_v13 = vmul.f32 0.001953125, %v1072_v1 }
 0x1eb   :  { %v1133_v63 = vmul.f32 %v1125_v31, %v1125_v31 }
 0x1ec   :  { %v1082_v9 = vpop.xlane.xlu1 %1081  ;;  %v1132_v2 = vmul.f32 %v1124_v13, %v1124_v13  ;;  %v1140_v22 = vsub.f32 %v16404_v62, %v1124_v13  ;;  %v1141_v10 = vsub.f32 %v16421_v16, %v1124_v13  ;;  %v1143_v45 = vsub.f32 %v16434_v30, %v1124_v13 }
 0x1ed   :  { %v1108_v58 = vpop.xlane.xlu0 %1107  ;;  %v16504_v52 = vmul.f32 0.001953125, %v1082_v9  ;;  %v1147_v62 = vsub.f32 %v16430_v39, %v1125_v31 }
 0x1ee   :  { %v1128_v5 = vmul.f32 0.001953125, %v1108_v58  ;;  %v1144_v58 = vsub.f32 %v16417_v38, %v1125_v31 }
 0x1ef   :  { %v1134_v15 = vmul.f32 %v16504_v52, %v16504_v52 }
 0x1f0   :  { %v1136_v34 = vsub.f32 %v1128_v5, %v1132_v2  ;;  %v1118_v57 = vpop.xlane.xlu1 %1117  ;;  %v1142_v5 = vsub.f32 %v16425_v46, %v1124_v13  ;;  %v1145_v2 = vsub.f32 %v16419_v14, %v1125_v31  ;;  %v1146_v46 = vsub.f32 %v16423_v51, %v1125_v31 }
 0x1f1   :  { %v1113_v37 = vpop.xlane.xlu0 %1112  ;;  %v1130_v4 = vmul.f32 0.001953125, %v1118_v57  ;;  %v1148_v14 = vsub.f32 %v16414_v49, %v16504_v52  ;;  %v1149_v51 = vsub.f32 %v16428_v54, %v16504_v52 }
 0x1f2   :  { %v1129_v55 = vmul.f32 0.001953125, %v1113_v37  ;;  %v1156_v53 = vadd.f32 1e-05, %v1136_v34 }
 0x1f3   :  { %v1138_v32 = vsub.f32 %v1130_v4, %v1134_v15 }
 0x1f4   :  { %v1137_v20 = vsub.f32 %v1129_v55, %v1133_v63  ;;  %15198 = vrsqrt.f32 %v1156_v53 }
 0x1f5   :  { %v1087_v44 = vpop.xlane.xlu0 %1086  ;;  %v1158_v35 = vadd.f32 1e-05, %v1138_v32 }
 0x1f6   :  { %v1157_v56 = vadd.f32 1e-05, %v1137_v20  ;;  %v16508_v33 = vmul.f32 0.001953125, %v1087_v44 }
 0x1f8   :  { %15200 = vrsqrt.f32 %v1157_v56  ;;  %v1135_v18 = vmul.f32 %v16508_v33, %v16508_v33  ;;  %v1152_v49 = vsub.f32 %v16474_v19, %v16508_v33  ;;  %v1153_v54 = vsub.f32 %v16477_v26, %v16508_v33 }
 0x1f9   :  { %v1123_v12 = vpop.xlane.xlu0 %1122  ;;  %15202 = vrsqrt.f32 %v1158_v35 }
 0x1fa   :  { %v1131_v36 = vmul.f32 0.001953125, %v1123_v12 }
 0x1fc   :  { %v1139_v59 = vsub.f32 %v1131_v36, %v1135_v18  ;;  %v1151_v18 = vsub.f32 %v16453_v47, %v16504_v52  ;;  %v1150_v47 = vsub.f32 %v16438_v25, %v16504_v52 }
 0x1fe   :  { %v1159_v6 = vadd.f32 1e-05, %v1139_v59  ;;  %v15199_v43 = vpop.eup %15198 }
 0x1ff   :  { %v1164_v11 = vmul.f32 %v15199_v43, %v1140_v22  ;;  %v16515_v1 = vmul.f32 %v15199_v43, %v1141_v10  ;;  %v16517_v9 = vmul.f32 %v15199_v43, %v1143_v45  ;;  %v16525_v37 = vmul.f32 %v15199_v43, %v1142_v5 }
 0x200   :  { %15204 = vrsqrt.f32 %v1159_v6 }
 0x201   :  { %v1196_v34 = vmul.f32 1.442695, %v1164_v11  ;;  %v1198_v16 = vmul.f32 1.442695, %v16515_v1  ;;  %v1202_v57 = vmul.f32 1.442695, %v16517_v9 }
 0x202   :  { %v15201_v30 = vpop.eup %15200  ;;  %v1200_v32 = vmul.f32 1.442695, %v16525_v37  ;;  %vm1180_vm8 = vcmp.gt.f32.partialorder %v1164_v11, 0.0  ;;  %vm1181_vm9 = vcmp.gt.f32.partialorder %v16515_v1, 0.0  ;;  %vm1183_vm11 = vcmp.gt.f32.partialorder %v16517_v9, 0.0 }
 0x203   :  { %15206 = vpow2.f32 %v1196_v34  ;;  %v1168_v15 = vmul.f32 %v15201_v30, %v1144_v58  ;;  %v16527_v4 = vmul.f32 %v15201_v30, %v1145_v2  ;;  %v16529_v63 = vmul.f32 %v15201_v30, %v1147_v62  ;;  %v15203_v38 = vpop.eup %15202 }
 0x204   :  { %15208 = vpow2.f32 %v1198_v16  ;;  %v16536_v53 = vmul.f32 %v15201_v30, %v1146_v46  ;;  %v16539_v20 = vmul.f32 %v15203_v38, %v1148_v14  ;;  %v16546_v56 = vmul.f32 %v15203_v38, %v1149_v51 }
 0x205   :  { %v1204_v39 = vmul.f32 1.442695, %v1168_v15  ;;  %v1206_v13 = vmul.f32 1.442695, %v16527_v4  ;;  %15210 = vpow2.f32 %v1202_v57  ;;  %v1210_v55 = vmul.f32 1.442695, %v16529_v63 }
 0x206   :  { %v1208_v44 = vmul.f32 1.442695, %v16536_v53  ;;  %v1212_v35 = vmul.f32 1.442695, %v16539_v20  ;;  %v1214_v19 = vmul.f32 1.442695, %v16546_v56  ;;  %v16556_v10 = vmul.f32 %v15203_v38, %v1151_v18 }
 0x207   :  { %15212 = vpow2.f32 %v1204_v39  ;;  %v1155_v2 = vsub.f32 %v16497_v0, %v16508_v33  ;;  %v16571_v30 = vmul.f32 %v15203_v38, %v1150_v47  ;;  %vm1184_vm10 = vcmp.gt.f32.partialorder %v1168_v15, 0.0 }
 0x208   :  { %15214 = vpow2.f32 %v1206_v13  ;;  %v1218_v16 = vmul.f32 1.442695, %v16556_v10  ;;  %v1154_v13 = vsub.f32 %v16492_v28, %v16508_v33  ;;  %vm1185_vm12 = vcmp.gt.f32.partialorder %v16527_v4, 0.0 }
 0x209   :  { %15216 = vpow2.f32 %v1210_v55  ;;  %vm1187_vm13 = vcmp.gt.f32.partialorder %v16529_v63, 0.0  ;;  %vm1182_vm14 = vcmp.gt.f32.partialorder %v16525_v37, 0.0  ;;  %vm1186_vm15 = vcmp.gt.f32.partialorder %v16536_v53, 0.0 }
 0x20a   :  { %v15205_v31 = vpop.eup %15204  ;;  %15218 = vpow2.f32 %v1200_v32 }
 0x20b   :  { %v16549_v12 = vmul.f32 %v15205_v31, %v1152_v49  ;;  %15220 = vpow2.f32 %v1208_v44  ;;  %v16559_v6 = vmul.f32 %v15205_v31, %v1153_v54  ;;  %v16574_v52 = vmul.f32 %v15205_v31, %v1155_v2 }
 0x20c   :  { %15222 = vpow2.f32 %v1212_v35  ;;  %v1178_v38 = vmul.f32 %v15205_v31, %v1154_v13 }
 0x20d   :  { %v15207_v36 = vpop.eup %15206  ;;  %v1220_v45 = vmul.f32 1.442695, %v16549_v12  ;;  %15224 = vpow2.f32 %v1214_v19  ;;  %v1222_v25 = vmul.f32 1.442695, %v16559_v6 }
 0x20e   :  { %v15209_v59 = vpop.eup %15208  ;;  %v13486_v22 = vadd.f32 -1.0, %v15207_v36 }
 0x20f   :  { %v15211_v43 = vpop.eup %15210  ;;  %v13487_v26 = vadd.f32 -1.0, %v15209_v59  ;;  %15226 = vpow2.f32 %v1220_v45 }
 0x210   :  { %v16563_v58 = vsel %vm1180_vm8, %v1164_v11, %v13486_v22  ;;  %v13489_v14 = vadd.f32 -1.0, %v15211_v43  ;;  %15228 = vpow2.f32 %v1218_v16  ;;  %vm1188_vm8 = vcmp.gt.f32.partialorder %v16539_v20, 0.0 }
 0x211   :  { %v15213_v5 = vpop.eup %15212  ;;  %1333 = vrot.lane.b32.xlu1 %v16563_v58, %s15526_s1  ;;  %v16577_v0 = vsel %vm1181_vm9, %v16515_v1, %v13487_v26  ;;  %v1216_v1 = vmul.f32 1.442695, %v16571_v30  ;;  %15230 = vpow2.f32 %v1222_v25  ;;  %vm1189_vm9 = vcmp.gt.f32.partialorder %v16546_v56, 0.0 }
 0x212   :  { %v15215_v62 = vpop.eup %15214  ;;  %v13490_v34 = vadd.f32 -1.0, %v15213_v5  ;;  %v16595_v33 = vsel %vm1183_vm11, %v16517_v9, %v13489_v14  ;;  %vm1191_vm11 = vcmp.gt.f32.partialorder %v16556_v10, 0.0 }
 0x213   :  { %v15217_v11 = vpop.eup %15216  ;;  %v13491_v46 = vadd.f32 -1.0, %v15215_v62  ;;  %15232 = vpow2.f32 %v1216_v1  ;;  %v22748_v1 = vld [vmem:[#allocation21_spill] sm:$0xff] }
 0x214   :  { %v16579_v57 = vsel %vm1184_vm10, %v1168_v15, %v13490_v34  ;;  %v15219_v39 = vpop.eup %15218  ;;  %v1226_v15 = vmul.f32 1.442695, %v16574_v52  ;;  %v13493_v32 = vadd.f32 -1.0, %v15217_v11  ;;  %vm1192_vm10 = vcmp.gt.f32.partialorder %v16549_v12, 0.0 }
 0x215   :  { %1341 = vrot.lane.b32.xlu1 %v16577_v0, %s15526_s1  ;;  %1335 = vrot.lane.b32.xlu0 %v16579_v57, %s15526_s1  ;;  %v15221_v55 = vpop.eup %15220  ;;  %v16592_v28 = vsel %vm1185_vm12, %v16527_v4, %v13491_v46  ;;  %v13488_v51 = vadd.f32 -1.0, %v15219_v39  ;;  %v1224_v4 = vmul.f32 1.442695, %v1178_v38  ;;  %vm1193_vm12 = vcmp.gt.f32.partialorder %v16559_v6, 0.0 }
 0x216   :  { %v15223_v49 = vpop.eup %15222  ;;  %15234 = vpow2.f32 %v1226_v15  ;;  %v16604_v9 = vsel %vm1187_vm13, %v16529_v63, %v13493_v32  ;;  %v13492_v35 = vadd.f32 -1.0, %v15221_v55  ;;  %vm1190_vm13 = vcmp.gt.f32.partialorder %v16571_v30, 0.0 }
 0x217   :  { %v15225_v31 = vpop.eup %15224  ;;  %v16607_v44 = vsel %vm1182_vm14, %v16525_v37, %v13488_v51  ;;  %v13494_v18 = vadd.f32 -1.0, %v15223_v49  ;;  %15236 = vpow2.f32 %v1224_v4  ;;  %vm1195_vm14 = vcmp.gt.f32.partialorder %v16574_v52, 0.0 }
 0x218   :  { %v16616_v63 = vsel %vm1186_vm15, %v16536_v53, %v13492_v35  ;;  %v13495_v59 = vadd.f32 -1.0, %v15225_v31  ;;  %vm1194_vm15 = vcmp.gt.f32.partialorder %v1178_v38, 0.0  ;;  %v22749_v31 = vld [vmem:[#allocation20_spill] sm:$0xff] }
 0x219   :  { %1343 = vrot.lane.b32.xlu1 %v16592_v28, %s15526_s1  ;;  %1357 = vrot.lane.b32.xlu0 %v16595_v33, %s15526_s1  ;;  %v15227_v36 = vpop.eup %15226  ;;  %v16619_v37 = vsel %vm1188_vm8, %v16539_v20, %v13494_v18  ;;  %vm1397_vm8 = vcmask 261120  }
 0x21a   :  { %v15229_v54 = vpop.eup %15228  ;;  %v13498_v22 = vadd.f32 -1.0, %v15227_v36  ;;  %v16628_v53 = vsel %vm1189_vm9, %v16546_v56, %v13495_v59 }
 0x21b   :  { %v15231_v19 = vpop.eup %15230  ;;  %v13497_v43 = vadd.f32 -1.0, %v15229_v54 }
 0x21c   :  { %v16631_v20 = vsel %vm1192_vm10, %v16549_v12, %v13498_v22  ;;  %v13499_v47 = vadd.f32 -1.0, %v15231_v19 }
 0x21d   :  { %1359 = vrot.lane.b32.xlu1 %v16604_v9, %s15526_s1  ;;  %1349 = vrot.lane.b32.xlu0 %v16607_v44, %s15526_s1  ;;  %v15233_v45 = vpop.eup %15232  ;;  %v16640_v5 = vsel %vm1191_vm11, %v16556_v10, %v13497_v43 }
 0x21e   :  { %v16643_v56 = vsel %vm1193_vm12, %v16559_v6, %v13499_v47  ;;  %v13496_v12 = vadd.f32 -1.0, %v15233_v45  ;;  %v22750_v47 = vld [vmem:[#allocation26_spill] sm:$0xff] }
 0x220   :  { %v15235_v26 = vpop.eup %15234  ;;  %v16652_v34 = vsel %vm1190_vm13, %v16571_v30, %v13496_v12  ;;  %v22455_v30 = vmov 0.0  }
 0x221   :  { %1351 = vrot.lane.b32.xlu1 %v16616_v63, %s15526_s1  ;;  %1337 = vrot.lane.b32.xlu0 %v16619_v37, %s15526_s1  ;;  %v13501_v2 = vadd.f32 -1.0, %v15235_v26  ;;  %v15237_v62 = vpop.eup %15236 }
 0x222   :  { %v13500_v6 = vadd.f32 -1.0, %v15237_v62  ;;  %1474 = vmatprep.mubr.f32.mxu0 %v22455_v30  ;;  %1563 = vmatprep.mubr.f32.mxu1 %v22455_v30 }
 0x223   :  { %v16655_v10 = vsel %vm1195_vm14, %v16574_v52, %v13501_v2  ;;  %v22751_v2 = vld [vmem:[#allocation39_spill] sm:$0xff] }
 0x224   :  { %v16661_v16 = vsel %vm1194_vm15, %v1178_v38, %v13500_v6 }
 0x225   :  { %1345 = vrot.lane.b32.xlu0 %v16628_v53, %s15526_s1  ;;  %1339 = vrot.lane.b32.xlu1 %v16631_v20, %s15526_s1 }
 0x229   :  { %1361 = vrot.lane.b32.xlu0 %v16640_v5, %s15526_s1  ;;  %1347 = vrot.lane.b32.xlu1 %v16643_v56, %s15526_s1 }
 0x22d   :  { %1353 = vrot.lane.b32.xlu0 %v16652_v34, %s15526_s1  ;;  %1363 = vrot.lane.b32.xlu1 %v16655_v10, %s15526_s1 }
 0x231   :  { %1264 = vrot.lane.b32.xlu0 %v16563_v58, %s15525_s21  ;;  %1355 = vrot.lane.b32.xlu1 %v16661_v16, %s15526_s1 }
 0x235   :  { %1272 = vrot.lane.b32.xlu0 %v16577_v0, %s15525_s21  ;;  %1266 = vrot.lane.b32.xlu1 %v16579_v57, %s15525_s21 }
 0x239   :  { %1288 = vrot.lane.b32.xlu0 %v16595_v33, %s15525_s21  ;;  %1274 = vrot.lane.b32.xlu1 %v16592_v28, %s15525_s21 }
 0x23d   :  { %1280 = vrot.lane.b32.xlu0 %v16607_v44, %s15525_s21  ;;  %1290 = vrot.lane.b32.xlu1 %v16604_v9, %s15525_s21 }
 0x241   :  { %1268 = vrot.lane.b32.xlu0 %v16619_v37, %s15525_s21  ;;  %1282 = vrot.lane.b32.xlu1 %v16616_v63, %s15525_s21 }
 0x245   :  { %1276 = vrot.lane.b32.xlu0 %v16628_v53, %s15525_s21  ;;  %1270 = vrot.lane.b32.xlu1 %v16631_v20, %s15525_s21 }
 0x249   :  { %1292 = vrot.lane.b32.xlu0 %v16640_v5, %s15525_s21  ;;  %1278 = vrot.lane.b32.xlu1 %v16643_v56, %s15525_s21 }
 0x24d   :  { %1284 = vrot.lane.b32.xlu0 %v16652_v34, %s15525_s21  ;;  %1294 = vrot.lane.b32.xlu1 %v16655_v10, %s15525_s21 }
 0x251   :  { %1783 = vrot.lane.b32.xlu0 %v16563_v58, %s15527_s9  ;;  %1286 = vrot.lane.b32.xlu1 %v16661_v16, %s15525_s21 }
 0x255   :  { %1791 = vrot.lane.b32.xlu0 %v16577_v0, %s15527_s9  ;;  %1785 = vrot.lane.b32.xlu1 %v16579_v57, %s15527_s9 }
 0x259   :  { %1807 = vrot.lane.b32.xlu0 %v16595_v33, %s15527_s9  ;;  %1793 = vrot.lane.b32.xlu1 %v16592_v28, %s15527_s9 }
 0x25d   :  { %1799 = vrot.lane.b32.xlu0 %v16607_v44, %s15527_s9  ;;  %1809 = vrot.lane.b32.xlu1 %v16604_v9, %s15527_s9 }
 0x261   :  { %1787 = vrot.lane.b32.xlu0 %v16619_v37, %s15527_s9  ;;  %1801 = vrot.lane.b32.xlu1 %v16616_v63, %s15527_s9 }
 0x265   :  { %1795 = vrot.lane.b32.xlu0 %v16628_v53, %s15527_s9  ;;  %1789 = vrot.lane.b32.xlu1 %v16631_v20, %s15527_s9 }
 0x269   :  { %1811 = vrot.lane.b32.xlu0 %v16640_v5, %s15527_s9  ;;  %1797 = vrot.lane.b32.xlu1 %v16643_v56, %s15527_s9 }
 0x26d   :  { %1803 = vrot.lane.b32.xlu0 %v16652_v34, %s15527_s9  ;;  %1813 = vrot.lane.b32.xlu1 %v16655_v10, %s15527_s9 }
 0x271   :  { %2058 = vrot.lane.b32.xlu0 %v16563_v58, %s15528_s16  ;;  %1805 = vrot.lane.b32.xlu1 %v16661_v16, %s15527_s9 }
 0x275   :  { %2066 = vrot.lane.b32.xlu0 %v16577_v0, %s15528_s16  ;;  %2060 = vrot.lane.b32.xlu1 %v16579_v57, %s15528_s16 }
 0x279   :  { %2082 = vrot.lane.b32.xlu0 %v16595_v33, %s15528_s16  ;;  %2068 = vrot.lane.b32.xlu1 %v16592_v28, %s15528_s16 }
 0x27d   :  { %2074 = vrot.lane.b32.xlu0 %v16607_v44, %s15528_s16  ;;  %2084 = vrot.lane.b32.xlu1 %v16604_v9, %s15528_s16 }
 0x281   :  { %2062 = vrot.lane.b32.xlu0 %v16619_v37, %s15528_s16  ;;  %2076 = vrot.lane.b32.xlu1 %v16616_v63, %s15528_s16 }
 0x283   :  { %v1334_v25 = vpop.permute.xlu1 %1333 }
 0x285   :  { %2070 = vrot.lane.b32.xlu0 %v16628_v53, %s15528_s16  ;;  %2064 = vrot.lane.b32.xlu1 %v16631_v20, %s15528_s16 }
 0x287   :  { %v1342_v52 = vpop.permute.xlu1 %1341  ;;  %v1336_v11 = vpop.permute.xlu0 %1335 }
 0x288   :  { %v1373_v46 = vsel %vm247_vm0, %v1334_v25, %v1342_v52 }
 0x289   :  { %2086 = vrot.lane.b32.xlu0 %v16640_v5, %s15528_s16  ;;  %2072 = vrot.lane.b32.xlu1 %v16643_v56, %s15528_s16  ;;  %v1382_v15 = vmul.f32 %v1373_v46, %v22748_v1 }
 0x28b   :  { %v1344_v14 = vpop.permute.xlu1 %1343  ;;  %v1358_v39 = vpop.permute.xlu0 %1357 }
 0x28c   :  { %v1374_v13 = vsel %vm247_vm0, %v1336_v11, %v1344_v14  ;;  %v1377_v55 = vsel %vm247_vm0, %v1358_v39, %v1334_v25 }
 0x28d   :  { %2078 = vrot.lane.b32.xlu0 %v16652_v34, %s15528_s16  ;;  %2088 = vrot.lane.b32.xlu1 %v16655_v10, %s15528_s16  ;;  %v1386_v38 = vmul.f32 %v1374_v13, %v22748_v1  ;;  %v1381_v35 = vmul.f32 %v1377_v55, %v22749_v31 }
 0x28f   :  { %v1360_v32 = vpop.permute.xlu1 %1359  ;;  %v1350_v51 = vpop.permute.xlu0 %1349  ;;  %v13912_v49 = vpack.c.bf16 %v1386_v38, %v1382_v15 }
 0x290   :  { %v1378_v4 = vsel %vm247_vm0, %v1360_v32, %v1336_v11  ;;  %v1365_v36 = vsel %vm247_vm0, %v1350_v51, %v1358_v39  ;;  %v1369_v54 = vsel %vm247_vm0, %v1342_v52, %v1350_v51 }
 0x291   :  { %2552 = vrot.lane.b32.xlu0 %v16577_v0, %s15529_s10  ;;  %2080 = vrot.lane.b32.xlu1 %v16661_v16, %s15528_s16  ;;  %v1385_v18 = vmul.f32 %v1378_v4, %v22749_v31  ;;  %v1384_v26 = vmul.f32 %v1365_v36, %v22750_v47  ;;  %v1383_v62 = vmul.f32 %v1369_v54, %v22751_v2 }
 0x292   :  { %13913 = vmatprep.subr.bf16.mxu0 %v13912_v49 }
 0x293   :  { %v1352_v59 = vpop.permute.xlu1 %1351  ;;  %v1338_v22 = vpop.permute.xlu0 %1337  ;;  %v13914_v19 = vpack.c.bf16 %v1385_v18, %v1381_v35 }
 0x294   :  { %v1370_v45 = vsel %vm247_vm0, %v1344_v14, %v1352_v59  ;;  %v1366_v43 = vsel %vm247_vm0, %v1352_v59, %v1360_v32 }
 0x295   :  { %2560 = vrot.lane.b32.xlu0 %v16607_v44, %s15529_s10  ;;  %2554 = vrot.lane.b32.xlu1 %v16592_v28, %s15529_s10  ;;  %v1388_v12 = vmul.f32 %v1366_v43, %v22750_v47  ;;  %v1387_v6 = vmul.f32 %v1370_v45, %v22751_v2 }
 0x296   :  { %13915 = vmatpush1.bf16.msra.mxu0 %v13914_v19 }
 0x297   :  { %v1340_v25 = vpop.permute.xlu1 %1339  ;;  %v1346_v52 = vpop.permute.xlu0 %1345  ;;  %v13920_v11 = vpack.c.bf16 %v1388_v12, %v1384_v26  ;;  %v13922_v46 = vpack.c.bf16 %v1387_v6, %v1383_v62 }
 0x298   :  { %v1375_v14 = vsel %vm247_vm0, %v1338_v22, %v1346_v52 }
 0x299   :  { %2544 = vrot.lane.b32.xlu0 %v16563_v58, %s15529_s10  ;;  %2562 = vrot.lane.b32.xlu1 %v16616_v63, %s15529_s10  ;;  %v1390_v38 = vmul.f32 %v1375_v14, %v22748_v1 }
 0x29a   :  { %13921 = vmatprep.subr.bf16.mxu1 %v13920_v11 }
 0x29b   :  { %13923 = vmatpush1.bf16.msra.mxu1 %v13922_v46  ;;  %v1348_v39 = vpop.permute.xlu1 %1347  ;;  %v1362_v13 = vpop.permute.xlu0 %1361 }
 0x29c   :  { %v1376_v15 = vsel %vm247_vm0, %v1340_v25, %v1348_v39  ;;  %v1379_v32 = vsel %vm247_vm0, %v1362_v13, %v1338_v22 }
 0x29d   :  { %v1394_v55 = vmul.f32 %v1376_v15, %v22748_v1  ;;  %2568 = vrot.lane.b32.xlu0 %v16595_v33, %s15529_s10  ;;  %2546 = vrot.lane.b32.xlu1 %v16579_v57, %s15529_s10  ;;  %v1389_v18 = vmul.f32 %v1379_v32, %v22749_v31 }
 0x29f   :  { %v1364_v51 = vpop.permute.xlu1 %1363  ;;  %v1354_v49 = vpop.permute.xlu0 %1353  ;;  %v13916_v4 = vpack.c.bf16 %v1394_v55, %v1390_v38  ;;  %v13503_v55 = vld [vmem:[%s22383_s3 + $0x28] sm:$0xff] }
 0x2a0   :  { %v1380_v35 = vsel %vm247_vm0, %v1364_v51, %v1340_v25  ;;  %v1371_v54 = vsel %vm247_vm0, %v1346_v52, %v1354_v49  ;;  %v1367_v59 = vsel %vm247_vm0, %v1354_v49, %v1362_v13 }
 0x2a1   :  { %v1393_v36 = vmul.f32 %v1380_v35, %v22749_v31  ;;  %2556 = vrot.lane.b32.xlu0 %v16628_v53, %s15529_s10  ;;  %2570 = vrot.lane.b32.xlu1 %v16604_v9, %s15529_s10  ;;  %v1391_v43 = vmul.f32 %v1371_v54, %v22751_v2  ;;  %v1392_v62 = vmul.f32 %v1367_v59, %v22750_v47  ;;  %v13504_v59 = vld [vmem:[%s22383_s3 + $0x30] sm:$0xff] }
 0x2a2   :  { %13917 = vmatprep.subr.bf16.mxu0 %v13916_v4 }
 0x2a3   :  { %v1356_v22 = vpop.permute.xlu1 %1355  ;;  %v1265_v19 = vpop.permute.xlu0 %1264  ;;  %v13918_v45 = vpack.c.bf16 %v1393_v36, %v1389_v18 }
 0x2a4   :  { %v1368_v26 = vsel %vm247_vm0, %v1356_v22, %v1364_v51  ;;  %v1372_v12 = vsel %vm247_vm0, %v1348_v39, %v1356_v22  ;;  %v13502_v39 = vld [vmem:[%s22383_s3 + $0x20] sm:$0xff] }
 0x2a5   :  { %v1395_v6 = vmul.f32 %v1372_v12, %v22751_v2  ;;  %v1396_v25 = vmul.f32 %v1368_v26, %v22750_v47  ;;  %2564 = vrot.lane.b32.xlu0 %v16652_v34, %s15529_s10  ;;  %2558 = vrot.lane.b32.xlu1 %v16643_v56, %s15529_s10  ;;  %v22752_v51 = vld [vmem:[#allocation22_spill] sm:$0xff] }
 0x2a6   :  { %13919 = vmatpush1.bf16.msra.mxu0 %v13918_v45  ;;  %v22753_v45 = vld [vmem:[#allocation24_spill] sm:$0xff] }
 0x2a7   :  { %v1267_v52 = vpop.permute.xlu1 %1266  ;;  %v1273_v11 = vpop.permute.xlu0 %1272  ;;  %v13924_v46 = vpack.c.bf16 %v1396_v25, %v1392_v62  ;;  %v13926_v14 = vpack.c.bf16 %v1395_v6, %v1391_v43 }
 0x2a8   :  { %v1304_v13 = vsel %vm136_vm1, %v1265_v19, %v1273_v11 }
 0x2a9   :  { %2548 = vrot.lane.b32.xlu0 %v16619_v37, %s15529_s10  ;;  %2566 = vrot.lane.b32.xlu1 %v16661_v16, %s15529_s10  ;;  %v1313_v49 = vmul.f32 %v1304_v13, %v22752_v51  ;;  %v22755_v13 = vld [vmem:[#allocation25_spill] sm:$0xff] }
 0x2aa   :  { %13925 = vmatprep.subr.bf16.mxu1 %v13924_v46  ;;  %13506 = vmatmul.mubr.msk.f32.vlgmr.msra.gmra.mrb[0].mxu0 %vm1397_vm8, %v13502_v39 }
 0x2ab   :  { %13927 = vmatpush1.bf16.msra.mxu1 %v13926_v14  ;;  %v1275_v15 = vpop.permute.xlu1 %1274  ;;  %v1289_v38 = vpop.permute.xlu0 %1288  ;;  %1480 = vmatprep.mubr.f32.mxu0 %v22455_v30 }
 0x2ac   :  { %v1305_v32 = vsel %vm136_vm1, %v1267_v52, %v1275_v15  ;;  %v1308_v35 = vsel %vm136_vm1, %v1289_v38, %v1265_v19 }
 0x2ad   :  { %v1317_v4 = vmul.f32 %v1305_v32, %v22752_v51  ;;  %2572 = vrot.lane.b32.xlu0 %v16640_v5, %s15529_s10  ;;  %2550 = vrot.lane.b32.xlu1 %v16631_v20, %s15529_s10  ;;  %v1312_v19 = vmul.f32 %v1308_v35, %v22753_v45 }
 0x2ae   :  { %13510 = vmatmul.mubr.msk.f32.vlgmr.msra.gmra.mrb[0].mxu1 %vm1397_vm8, %v13502_v39  ;;  %13507 = vmatmul.mubr.msk.f32.gmra.mrb[2].mxu0 %vm1397_vm8, %v13503_v55  ;;  %v13505_v39 = vld [vmem:[%s22383_s3 + $0x38] sm:$0xff] }
 0x2af   :  { %v1291_v18 = vpop.permute.xlu1 %1290  ;;  %v1281_v36 = vpop.permute.xlu0 %1280  ;;  %v13928_v54 = vpack.c.bf16 %v1317_v4, %v1313_v49  ;;  %1486 = vmatprep.mubr.f32.mxu0 %v22455_v30  ;;  %1569 = vmatprep.mubr.f32.mxu1 %v22455_v30 }
 0x2b0   :  { %v1309_v22 = vsel %vm136_vm1, %v1291_v18, %v1267_v52  ;;  %v1300_v26 = vsel %vm136_vm1, %v1273_v11, %v1281_v36  ;;  %v1296_v12 = vsel %vm136_vm1, %v1281_v36, %v1289_v38  ;;  %v22754_v52 = vld [vmem:[#allocation38_spill] sm:$0xff] }
 0x2b1   :  { %v1316_v43 = vmul.f32 %v1309_v22, %v22753_v45  ;;  %2827 = vrot.lane.b32.xlu0 %v16577_v0, %s15530_s19  ;;  %2574 = vrot.lane.b32.xlu1 %v16655_v10, %s15529_s10  ;;  %v1314_v11 = vmul.f32 %v1300_v26, %v22754_v52  ;;  %v1315_v38 = vmul.f32 %v1296_v12, %v22755_v13 }
 0x2b2   :  { %13929 = vmatprep.subr.bf16.mxu0 %v13928_v54  ;;  %13508 = vmatmul.mubr.msk.f32.gmra.mrb[4].mxu0 %vm1397_vm8, %v13504_v59 }
 0x2b3   :  { %v13930_v62 = vpack.c.bf16 %v1316_v43, %v1312_v19  ;;  %v1283_v6 = vpop.permute.xlu1 %1282  ;;  %v1269_v25 = vpop.permute.xlu0 %1268  ;;  %13511 = vmatmul.mubr.msk.f32.gmra.mrb[2].mxu1 %vm1397_vm8, %v13503_v55  ;;  %1492 = vmatprep.mubr.f32.mxu0 %v22455_v30 }
 0x2b4   :  { %v1297_v46 = vsel %vm136_vm1, %v1283_v6, %v1291_v18  ;;  %v1301_v14 = vsel %vm136_vm1, %v1275_v15, %v1283_v6  ;;  %1575 = vmatprep.mubr.f32.mxu1 %v22455_v30 }
 0x2b5   :  { %v1318_v55 = vmul.f32 %v1301_v14, %v22754_v52  ;;  %v1319_v32 = vmul.f32 %v1297_v46, %v22755_v13  ;;  %2835 = vrot.lane.b32.xlu0 %v16607_v44, %s15530_s19  ;;  %2829 = vrot.lane.b32.xlu1 %v16592_v28, %s15530_s19 }
 0x2b6   :  { %13931 = vmatpush1.bf16.msra.mxu0 %v13930_v62 }
 0x2b7   :  { %v13938_v15 = vpack.c.bf16 %v1318_v55, %v1314_v11  ;;  %v1271_v49 = vpop.permute.xlu1 %1270  ;;  %v1277_v4 = vpop.permute.xlu0 %1276  ;;  %v13936_v35 = vpack.c.bf16 %v1319_v32, %v1315_v38  ;;  %13509 = vmatmul.mubr.msk.f32.gmra.mrb[6].mxu0 %vm1397_vm8, %v13505_v39  ;;  %13512 = vmatmul.mubr.msk.f32.gmra.mrb[4].mxu1 %vm1397_vm8, %v13504_v59 }
 0x2b8   :  { %1664 = vmatprep.mubr.f32.mxu0 %v22455_v30  ;;  %1581 = vmatprep.mubr.f32.mxu1 %v22455_v30  ;;  %v1306_v18 = vsel %vm136_vm1, %v1269_v25, %v1277_v4 }
 0x2b9   :  { %2819 = vrot.lane.b32.xlu0 %v16563_v58, %s15530_s19  ;;  %2837 = vrot.lane.b32.xlu1 %v16616_v63, %s15530_s19  ;;  %v1321_v22 = vmul.f32 %v1306_v18, %v22752_v51 }
 0x2ba   :  { %13937 = vmatprep.subr.bf16.mxu1 %v13936_v35 }
 0x2bb   :  { %13939 = vmatpush1.bf16.msra.mxu1 %v13938_v15  ;;  %v1279_v36 = vpop.permute.xlu1 %1278  ;;  %v1293_v54 = vpop.permute.xlu0 %1292 }
 0x2bc   :  { %v1307_v59 = vsel %vm136_vm1, %v1271_v49, %v1279_v36  ;;  %13513 = vmatmul.mubr.msk.f32.gmra.mrb[6].mxu1 %vm1397_vm8, %v13505_v39  ;;  %v1310_v43 = vsel %vm136_vm1, %v1293_v54, %v1269_v25 }
 0x2bd   :  { %v1325_v19 = vmul.f32 %v1307_v59, %v22752_v51  ;;  %2843 = vrot.lane.b32.xlu0 %v16595_v33, %s15530_s19  ;;  %2821 = vrot.lane.b32.xlu1 %v16579_v57, %s15530_s19  ;;  %v1320_v11 = vmul.f32 %v1310_v43, %v22753_v45 }
 0x2be   :  { %1753 = vmatprep.mubr.f32.mxu1 %v22455_v30 }
 0x2bf   :  { %v1295_v26 = vpop.permute.xlu1 %1294  ;;  %v1285_v12 = vpop.permute.xlu0 %1284  ;;  %v13932_v62 = vpack.c.bf16 %v1325_v19, %v1321_v22 }
 0x2c0   :  { %v1311_v6 = vsel %vm136_vm1, %v1295_v26, %v1271_v49  ;;  %v1302_v14 = vsel %vm136_vm1, %v1277_v4, %v1285_v12  ;;  %v1298_v25 = vsel %vm136_vm1, %v1285_v12, %v1293_v54 }
 0x2c1   :  { %v1324_v46 = vmul.f32 %v1311_v6, %v22753_v45  ;;  %2831 = vrot.lane.b32.xlu0 %v16628_v53, %s15530_s19  ;;  %2845 = vrot.lane.b32.xlu1 %v16604_v9, %s15530_s19  ;;  %v1322_v32 = vmul.f32 %v1302_v14, %v22754_v52  ;;  %v1323_v4 = vmul.f32 %v1298_v25, %v22755_v13 }
 0x2c2   :  { %13933 = vmatprep.subr.bf16.mxu0 %v13932_v62  ;;  %v1261_v62 = vld [vmem:[%s22383_s3 + $0x8] sm:$0xff] }
 0x2c3   :  { %v13934_v39 = vpack.c.bf16 %v1324_v46, %v1320_v11  ;;  %v1287_v38 = vpop.permute.xlu1 %1286  ;;  %v1784_v55 = vpop.permute.xlu0 %1783  ;;  %v22756_v11 = vld [vmem:[#allocation23_spill] sm:$0xff] }
 0x2c4   :  { %v1299_v15 = vsel %vm136_vm1, %v1287_v38, %v1295_v26  ;;  %v1303_v49 = vsel %vm136_vm1, %v1279_v36, %v1287_v38  ;;  %v1260_v36 = vld [vmem:[%s22383_s3] sm:$0xff] }
 0x2c5   :  { %v1326_v35 = vmul.f32 %v1303_v49, %v22754_v52  ;;  %v1327_v18 = vmul.f32 %v1299_v15, %v22755_v13  ;;  %2839 = vrot.lane.b32.xlu0 %v16652_v34, %s15530_s19  ;;  %2833 = vrot.lane.b32.xlu1 %v16643_v56, %s15530_s19  ;;  %v1262_v15 = vld [vmem:[%s22383_s3 + $0x10] sm:$0xff] }
 0x2c6   :  { %13935 = vmatpush1.bf16.msra.mxu0 %v13934_v39 }
 0x2c7   :  { %v13942_v54 = vpack.c.bf16 %v1326_v35, %v1322_v32  ;;  %v1786_v59 = vpop.permute.xlu1 %1785  ;;  %v1792_v22 = vpop.permute.xlu0 %1791  ;;  %v13940_v19 = vpack.c.bf16 %v1327_v18, %v1323_v4  ;;  %v22757_v4 = vld [vmem:[#allocation46_spill] sm:$0xff] }
 0x2c8   :  { %v1823_v43 = vsel %vm358_vm2, %v1784_v55, %v1792_v22 }
 0x2c9   :  { %2823 = vrot.lane.b32.xlu0 %v16619_v37, %s15530_s19  ;;  %2841 = vrot.lane.b32.xlu1 %v16661_v16, %s15530_s19  ;;  %v1832_v46 = vmul.f32 %v1823_v43, %v22756_v11 }
 0x2ca   :  { %13941 = vmatprep.subr.bf16.mxu1 %v13940_v19  ;;  %13514 = vmatmul.mubr.msk.f32.vlgmr.msra.gmra.mrb[0].mxu0 %vm1397_vm8, %v1260_v36 }
 0x2cb   :  { %13943 = vmatpush1.bf16.msra.mxu1 %v13942_v54  ;;  %v1794_v26 = vpop.permute.xlu1 %1793  ;;  %v1808_v12 = vpop.permute.xlu0 %1807  ;;  %1670 = vmatprep.mubr.f32.mxu0 %v22455_v30 }
 0x2cc   :  { %v1824_v6 = vsel %vm358_vm2, %v1786_v59, %v1794_v26  ;;  %v1827_v25 = vsel %vm358_vm2, %v1808_v12, %v1784_v55 }
 0x2cd   :  { %v1836_v14 = vmul.f32 %v1824_v6, %v22756_v11  ;;  %2847 = vrot.lane.b32.xlu0 %v16640_v5, %s15530_s19  ;;  %2825 = vrot.lane.b32.xlu1 %v16631_v20, %s15530_s19  ;;  %v1831_v55 = vmul.f32 %v1827_v25, %v22757_v4 }
 0x2ce   :  { %13518 = vmatmul.mubr.msk.f32.vlgmr.msra.gmra.mrb[0].mxu1 %vm1397_vm8, %v1260_v36  ;;  %13515 = vmatmul.mubr.msk.f32.gmra.mrb[2].mxu0 %vm1397_vm8, %v1261_v62 }
 0x2cf   :  { %v1810_v39 = vpop.permute.xlu1 %1809  ;;  %v1800_v38 = vpop.permute.xlu0 %1799  ;;  %v13944_v32 = vpack.c.bf16 %v1836_v14, %v1832_v46  ;;  %1676 = vmatprep.mubr.f32.mxu0 %v22455_v30  ;;  %1759 = vmatprep.mubr.f32.mxu1 %v22455_v30  ;;  %v22759_v14 = vld [vmem:[#allocation29_spill] sm:$0xff] }
 0x2d0   :  { %v1828_v49 = vsel %vm358_vm2, %v1810_v39, %v1786_v59  ;;  %v1819_v18 = vsel %vm358_vm2, %v1792_v22, %v1800_v38  ;;  %v1815_v54 = vsel %vm358_vm2, %v1800_v38, %v1808_v12  ;;  %v22758_v22 = vld [vmem:[#allocation40_spill] sm:$0xff]  ;;  %v1263_v12 = vld [vmem:[%s22383_s3 + $0x18] sm:$0xff] }
 0x2d1   :  { %v1835_v35 = vmul.f32 %v1828_v49, %v22757_v4  ;;  %3102 = vrot.lane.b32.xlu0 %v16577_v0, %s15531_s29  ;;  %2849 = vrot.lane.b32.xlu1 %v16655_v10, %s15530_s19  ;;  %v1833_v43 = vmul.f32 %v1819_v18, %v22758_v22  ;;  %v1834_v25 = vmul.f32 %v1815_v54, %v22759_v14 }
 0x2d2   :  { %13945 = vmatprep.subr.bf16.mxu0 %v13944_v32  ;;  %13516 = vmatmul.mubr.msk.f32.gmra.mrb[4].mxu0 %vm1397_vm8, %v1262_v15 }
 0x2d3   :  { %v13946_v59 = vpack.c.bf16 %v1835_v35, %v1831_v55  ;;  %v1802_v19 = vpop.permute.xlu1 %1801  ;;  %v1788_v36 = vpop.permute.xlu0 %1787  ;;  %13519 = vmatmul.mubr.msk.f32.gmra.mrb[2].mxu1 %vm1397_vm8, %v1261_v62  ;;  %1682 = vmatprep.mubr.f32.mxu0 %v22455_v30 }
 0x2d4   :  { %v1816_v6 = vsel %vm358_vm2, %v1802_v19, %v1810_v39  ;;  %v1820_v46 = vsel %vm358_vm2, %v1794_v26, %v1802_v19  ;;  %1765 = vmatprep.mubr.f32.mxu1 %v22455_v30 }
 0x2d5   :  { %v1837_v62 = vmul.f32 %v1820_v46, %v22758_v22  ;;  %v1838_v38 = vmul.f32 %v1816_v6, %v22759_v14  ;;  %3104 = vrot.lane.b32.xlu1 %v16592_v28, %s15531_s29  ;;  %3110 = vrot.lane.b32.xlu0 %v16607_v44, %s15531_s29 }
 0x2d6   :  { %13947 = vmatpush1.bf16.msra.mxu0 %v13946_v59 }
 0x2d7   :  { %v13954_v26 = vpack.c.bf16 %v1837_v62, %v1833_v43  ;;  %v1790_v39 = vpop.permute.xlu1 %1789  ;;  %v1796_v32 = vpop.permute.xlu0 %1795  ;;  %v13952_v49 = vpack.c.bf16 %v1838_v38, %v1834_v25  ;;  %13517 = vmatmul.mubr.msk.f32.gmra.mrb[6].mxu0 %vm1397_vm8, %v1263_v12  ;;  %13520 = vmatmul.mubr.msk.f32.gmra.mrb[4].mxu1 %vm1397_vm8, %v1262_v15 }
 0x2d8   :  { %1923 = vmatprep.mubr.f32.mxu0 %v22455_v30  ;;  %1771 = vmatprep.mubr.f32.mxu1 %v22455_v30  ;;  %v1825_v55 = vsel %vm358_vm2, %v1788_v36, %v1796_v32 }
 0x2d9   :  { %3112 = vrot.lane.b32.xlu1 %v16616_v63, %s15531_s29  ;;  %3094 = vrot.lane.b32.xlu0 %v16563_v58, %s15531_s29  ;;  %v1840_v54 = vmul.f32 %v1825_v55, %v22756_v11 }
 0x2da   :  { %13953 = vmatprep.subr.bf16.mxu1 %v13952_v49 }
 0x2db   :  { %13955 = vmatpush1.bf16.msra.mxu1 %v13954_v26  ;;  %v1798_v35 = vpop.permute.xlu1 %1797  ;;  %v1812_v18 = vpop.permute.xlu0 %1811 }
 0x2dc   :  { %v1826_v15 = vsel %vm358_vm2, %v1790_v39, %v1798_v35  ;;  %13521 = vmatmul.mubr.msk.f32.gmra.mrb[6].mxu1 %vm1397_vm8, %v1263_v12  ;;  %v1829_v19 = vsel %vm358_vm2, %v1812_v18, %v1788_v36 }
 0x2dd   :  { %v1844_v59 = vmul.f32 %v1826_v15, %v22756_v11  ;;  %3096 = vrot.lane.b32.xlu1 %v16579_v57, %s15531_s29  ;;  %3118 = vrot.lane.b32.xlu0 %v16595_v33, %s15531_s29  ;;  %v1839_v25 = vmul.f32 %v1829_v19, %v22757_v4 }
 0x2de   :  { %2012 = vmatprep.mubr.f32.mxu1 %v22455_v30 }
 0x2df   :  { %v1814_v43 = vpop.permute.xlu1 %1813  ;;  %v1804_v6 = vpop.permute.xlu0 %1803  ;;  %v13948_v46 = vpack.c.bf16 %v1844_v59, %v1840_v54 }
 0x2e0   :  { %v1830_v12 = vsel %vm358_vm2, %v1814_v43, %v1790_v39  ;;  %v1821_v38 = vsel %vm358_vm2, %v1796_v32, %v1804_v6  ;;  %v1817_v36 = vsel %vm358_vm2, %v1804_v6, %v1812_v18 }
 0x2e1   :  { %v1843_v62 = vmul.f32 %v1830_v12, %v22757_v4  ;;  %3120 = vrot.lane.b32.xlu1 %v16604_v9, %s15531_s29  ;;  %3106 = vrot.lane.b32.xlu0 %v16628_v53, %s15531_s29  ;;  %v1841_v55 = vmul.f32 %v1821_v38, %v22758_v22  ;;  %v1842_v54 = vmul.f32 %v1817_v36, %v22759_v14  ;;  %v13523_v38 = vld [vmem:[%s22383_s3 + $0x48] sm:$0xff] }
 0x2e2   :  { %13949 = vmatprep.subr.bf16.mxu0 %v13948_v46 }
 0x2e3   :  { %v13950_v26 = vpack.c.bf16 %v1843_v62, %v1839_v25  ;;  %v1806_v49 = vpop.permute.xlu1 %1805  ;;  %v2059_v39 = vpop.permute.xlu0 %2058 }
 0x2e4   :  { %v1818_v15 = vsel %vm358_vm2, %v1806_v49, %v1814_v43  ;;  %v1822_v32 = vsel %vm358_vm2, %v1798_v35, %v1806_v49  ;;  %v13522_v35 = vld [vmem:[%s22383_s3 + $0x40] sm:$0xff] }
 0x2e5   :  { %v1845_v59 = vmul.f32 %v1822_v32, %v22758_v22  ;;  %v1846_v19 = vmul.f32 %v1818_v15, %v22759_v14  ;;  %3108 = vrot.lane.b32.xlu1 %v16643_v56, %s15531_s29  ;;  %3114 = vrot.lane.b32.xlu0 %v16652_v34, %s15531_s29 }
 0x2e6   :  { %13951 = vmatpush1.bf16.msra.mxu0 %v13950_v26  ;;  %v22760_v26 = vld [vmem:[#allocation27_spill] sm:$0xff] }
 0x2e7   :  { %v13958_v18 = vpack.c.bf16 %v1845_v59, %v1841_v55  ;;  %v2061_v6 = vpop.permute.xlu1 %2060  ;;  %v2067_v46 = vpop.permute.xlu0 %2066  ;;  %v13956_v43 = vpack.c.bf16 %v1846_v19, %v1842_v54  ;;  %v13524_v19 = vld [vmem:[%s22383_s3 + $0x50] sm:$0xff] }
 0x2e8   :  { %v2098_v12 = vsel %vm469_vm3, %v2059_v39, %v2067_v46 }
 0x2e9   :  { %3116 = vrot.lane.b32.xlu1 %v16661_v16, %s15531_s29  ;;  %3098 = vrot.lane.b32.xlu0 %v16619_v37, %s15531_s29  ;;  %v2107_v49 = vmul.f32 %v2098_v12, %v22760_v26 }
 0x2ea   :  { %13957 = vmatprep.subr.bf16.mxu1 %v13956_v43  ;;  %13526 = vmatmul.mubr.msk.f32.vlgmr.msra.gmra.mrb[0].mxu0 %vm1397_vm8, %v13522_v35  ;;  %v22761_v43 = vld [vmem:[#allocation47_spill] sm:$0xff] }
 0x2eb   :  { %13959 = vmatpush1.bf16.msra.mxu1 %v13958_v18  ;;  %v2069_v25 = vpop.permute.xlu1 %2068  ;;  %v2083_v62 = vpop.permute.xlu0 %2082  ;;  %1929 = vmatprep.mubr.f32.mxu0 %v22455_v30 }
 0x2ec   :  { %v2099_v36 = vsel %vm469_vm3, %v2061_v6, %v2069_v25  ;;  %v2102_v15 = vsel %vm469_vm3, %v2083_v62, %v2059_v39 }
 0x2ed   :  { %v2111_v55 = vmul.f32 %v2099_v36, %v22760_v26  ;;  %3100 = vrot.lane.b32.xlu1 %v16631_v20, %s15531_s29  ;;  %3122 = vrot.lane.b32.xlu0 %v16640_v5, %s15531_s29  ;;  %v2106_v39 = vmul.f32 %v2102_v15, %v22761_v43 }
 0x2ee   :  { %13530 = vmatmul.mubr.msk.f32.vlgmr.msra.gmra.mrb[0].mxu1 %vm1397_vm8, %v13522_v35  ;;  %13527 = vmatmul.mubr.msk.f32.gmra.mrb[2].mxu0 %vm1397_vm8, %v13523_v38 }
 0x2ef   :  { %v2085_v32 = vpop.permute.xlu1 %2084  ;;  %v2075_v54 = vpop.permute.xlu0 %2074  ;;  %v13960_v59 = vpack.c.bf16 %v2111_v55, %v2107_v49  ;;  %1935 = vmatprep.mubr.f32.mxu0 %v22455_v30  ;;  %2018 = vmatprep.mubr.f32.mxu1 %v22455_v30 }
 0x2f0   :  { %v2103_v18 = vsel %vm469_vm3, %v2085_v32, %v2061_v6  ;;  %v2094_v12 = vsel %vm469_vm3, %v2067_v46, %v2075_v54  ;;  %v2090_v36 = vsel %vm469_vm3, %v2075_v54, %v2083_v62  ;;  %v22762_v46 = vld [vmem:[#allocation41_spill] sm:$0xff]  ;;  %v22763_v54 = vld [vmem:[#allocation32_spill] sm:$0xff] }
 0x2f1   :  { %v2110_v35 = vmul.f32 %v2103_v18, %v22761_v43  ;;  %3124 = vrot.lane.b32.xlu1 %v16655_v10, %s15531_s29  ;;  %3377 = vrot.lane.b32.xlu0 %v16577_v0, %s15532_s6  ;;  %v2108_v15 = vmul.f32 %v2094_v12, %v22762_v46  ;;  %v13525_v62 = vld [vmem:[%s22383_s3 + $0x58] sm:$0xff] }
 0x2f2   :  { %13961 = vmatprep.subr.bf16.mxu0 %v13960_v59  ;;  %13528 = vmatmul.mubr.msk.f32.gmra.mrb[4].mxu0 %vm1397_vm8, %v13524_v19  ;;  %v2109_v59 = vmul.f32 %v2090_v36, %v22763_v54 }
 0x2f3   :  { %v13962_v6 = vpack.c.bf16 %v2110_v35, %v2106_v39  ;;  %v2077_v49 = vpop.permute.xlu1 %2076  ;;  %v2063_v55 = vpop.permute.xlu0 %2062  ;;  %13531 = vmatmul.mubr.msk.f32.gmra.mrb[2].mxu1 %vm1397_vm8, %v13523_v38  ;;  %1941 = vmatprep.mubr.f32.mxu0 %v22455_v30 }
 0x2f4   :  { %v2091_v18 = vsel %vm469_vm3, %v2077_v49, %v2085_v32  ;;  %v2095_v22 = vsel %vm469_vm3, %v2069_v25, %v2077_v49  ;;  %2024 = vmatprep.mubr.f32.mxu1 %v22455_v30 }
 0x2f5   :  { %v2112_v38 = vmul.f32 %v2095_v22, %v22762_v46  ;;  %v2113_v39 = vmul.f32 %v2091_v18, %v22763_v54  ;;  %3379 = vrot.lane.b32.xlu1 %v16592_v28, %s15532_s6  ;;  %3385 = vrot.lane.b32.xlu0 %v16607_v44, %s15532_s6 }
 0x2f6   :  { %13963 = vmatpush1.bf16.msra.mxu0 %v13962_v6 }
 0x2f7   :  { %v13970_v25 = vpack.c.bf16 %v2112_v38, %v2108_v15  ;;  %v2065_v32 = vpop.permute.xlu1 %2064  ;;  %v2071_v35 = vpop.permute.xlu0 %2070  ;;  %v13968_v12 = vpack.c.bf16 %v2113_v39, %v2109_v59  ;;  %13529 = vmatmul.mubr.msk.f32.gmra.mrb[6].mxu0 %vm1397_vm8, %v13525_v62  ;;  %13532 = vmatmul.mubr.msk.f32.gmra.mrb[4].mxu1 %vm1397_vm8, %v13524_v19 }
 0x2f8   :  { %2198 = vmatprep.mubr.f32.mxu0 %v22455_v30  ;;  %2030 = vmatprep.mubr.f32.mxu1 %v22455_v30  ;;  %v2100_v22 = vsel %vm469_vm3, %v2063_v55, %v2071_v35 }
 0x2f9   :  { %3387 = vrot.lane.b32.xlu1 %v16616_v63, %s15532_s6  ;;  %3369 = vrot.lane.b32.xlu0 %v16563_v58, %s15532_s6  ;;  %v2115_v49 = vmul.f32 %v2100_v22, %v22760_v26 }
 0x2fa   :  { %13969 = vmatprep.subr.bf16.mxu1 %v13968_v12 }
 0x2fb   :  { %13971 = vmatpush1.bf16.msra.mxu1 %v13970_v25  ;;  %v2073_v36 = vpop.permute.xlu1 %2072  ;;  %v2087_v6 = vpop.permute.xlu0 %2086 }
 0x2fc   :  { %v2101_v19 = vsel %vm469_vm3, %v2065_v32, %v2073_v36  ;;  %13533 = vmatmul.mubr.msk.f32.gmra.mrb[6].mxu1 %vm1397_vm8, %v13525_v62  ;;  %v2104_v18 = vsel %vm469_vm3, %v2087_v6, %v2063_v55 }
 0x2fd   :  { %v2119_v15 = vmul.f32 %v2101_v19, %v22760_v26  ;;  %3371 = vrot.lane.b32.xlu1 %v16579_v57, %s15532_s6  ;;  %3393 = vrot.lane.b32.xlu0 %v16595_v33, %s15532_s6  ;;  %v2114_v25 = vmul.f32 %v2104_v18, %v22761_v43 }
 0x2fe   :  { %2287 = vmatprep.mubr.f32.mxu1 %v22455_v30 }
 0x2ff   :  { %v2089_v59 = vpop.permute.xlu1 %2088  ;;  %v2079_v38 = vpop.permute.xlu0 %2078  ;;  %v13964_v39 = vpack.c.bf16 %v2119_v15, %v2115_v49 }
 0x300   :  { %v2105_v62 = vsel %vm469_vm3, %v2089_v59, %v2065_v32  ;;  %v2096_v22 = vsel %vm469_vm3, %v2071_v35, %v2079_v38  ;;  %v2092_v55 = vsel %vm469_vm3, %v2079_v38, %v2087_v6 }
 0x301   :  { %v2118_v12 = vmul.f32 %v2105_v62, %v22761_v43  ;;  %3395 = vrot.lane.b32.xlu1 %v16604_v9, %s15532_s6  ;;  %3381 = vrot.lane.b32.xlu0 %v16628_v53, %s15532_s6  ;;  %v2116_v15 = vmul.f32 %v2096_v22, %v22762_v46  ;;  %v13976_v62 = vpack.c.bf16 %v16592_v28, %v16577_v0 }
 0x302   :  { %13965 = vmatprep.subr.bf16.mxu0 %v13964_v39  ;;  %v2117_v30 = vmul.f32 %v2092_v55, %v22763_v54  ;;  %v13978_v39 = vpack.c.bf16 %v16579_v57, %v16563_v58  ;;  %v13984_v58 = vpack.c.bf16 %v16604_v9, %v16595_v33  ;;  %v22764_v55 = vmov 0.0   ;;  %v13536_v9 = vld [vmem:[%s22383_s3 + $0x70] sm:$0xff] }
 0x303   :  { %v13966_v19 = vpack.c.bf16 %v2118_v12, %v2114_v25  ;;  %v2081_v49 = vpop.permute.xlu1 %2080  ;;  %v2553_v32 = vpop.permute.xlu0 %2552  ;;  %v13986_v33 = vpack.c.bf16 %v16616_v63, %v16607_v44  ;;  %v13990_v63 = vpack.c.bf16 %v16661_v16, %v16652_v34 }
 0x304   :  { %v2093_v18 = vsel %vm469_vm3, %v2081_v49, %v2089_v59  ;;  %v2097_v35 = vsel %vm469_vm3, %v2073_v36, %v2081_v49  ;;  %v13534_v36 = vld [vmem:[%s22383_s3 + $0x60] sm:$0xff] }
 0x305   :  { %v2120_v43 = vmul.f32 %v2097_v35, %v22762_v46  ;;  %v2121_v6 = vmul.f32 %v2093_v18, %v22763_v54  ;;  %3383 = vrot.lane.b32.xlu1 %v16643_v56, %s15532_s6  ;;  %3389 = vrot.lane.b32.xlu0 %v16652_v34, %s15532_s6 }
 0x306   :  { %13967 = vmatpush1.bf16.msra.mxu0 %v13966_v19 }
 0x307   :  { %v13974_v59 = vpack.c.bf16 %v2120_v43, %v2116_v15  ;;  %13977 = vmatprep.subr.bf16.mxu0 %v13976_v62  ;;  %v2555_v0 = vpop.permute.xlu1 %2554  ;;  %v17162_v28 = vpop.permute.xlu0 %2560  ;;  %v13972_v38 = vpack.c.bf16 %v2121_v6, %v2117_v30  ;;  %v13980_v43 = vpack.c.bf16 %v16643_v56, %v16628_v53  ;;  %v13535_v30 = vld [vmem:[%s22383_s3 + $0x68] sm:$0xff]  ;;  %v13982_v56 = vpack.c.bf16 %v16631_v20, %v16619_v37 }
 0x308   :  { %v2580_v25 = vsel %vm637_vm4, %v2553_v32, %v17162_v28 }
 0x309   :  { %13538 = vmatmul.mubr.msk.f32.vlgmr.msra.gmra.mrb[0].mxu0 %vm1397_vm8, %v13534_v36  ;;  %3391 = vrot.lane.b32.xlu1 %v16661_v16, %s15532_s6  ;;  %v2593_v19 = vmul.f32 %v2580_v25, %v22730_v23 }
 0x30a   :  { %3373 = vrot.lane.b32.xlu0 %v16619_v37, %s15532_s6  ;;  %13973 = vmatprep.subr.bf16.mxu1 %v13972_v38  ;;  %v13988_v37 = vpack.c.bf16 %v16655_v10, %v16640_v5 }
 0x30b   :  { %13979 = vmatpush1.bf16.msra.mxu0 %v13978_v39  ;;  %13975 = vmatpush1.bf16.msra.mxu1 %v13974_v59  ;;  %v2563_v12 = vpop.permute.xlu1 %2562  ;;  %v2545_v57 = vpop.permute.xlu0 %2544  ;;  %v13546_v59 = vld [vmem:[%s22383_s3 + $0x80] sm:$0xff] }
 0x30c   :  { %13981 = vmatprep.subr.bf16.mxu0 %v13980_v43  ;;  %v2581_v22 = vsel %vm637_vm4, %v2555_v0, %v2563_v12  ;;  %2204 = vmatprep.mubr.f32.mxu0 %v22764_v55  ;;  %v2584_v35 = vsel %vm637_vm4, %v2545_v57, %v2553_v32 }
 0x30d   :  { %v2597_v53 = vmul.f32 %v2581_v22, %v22730_v23  ;;  %13985 = vmatprep.subr.bf16.mxu1 %v13984_v58  ;;  %13539 = vmatmul.mubr.msk.f32.gmra.mrb[2].mxu0 %vm1397_vm8, %v13535_v30  ;;  %v2592_v32 = vmul.f32 %v2584_v35, %v22729_v24 }
 0x30e   :  { %3375 = vrot.lane.b32.xlu1 %v16631_v20, %s15532_s6  ;;  %3397 = vrot.lane.b32.xlu0 %v16640_v5, %s15532_s6  ;;  %v13537_v5 = vld [vmem:[%s22383_s3 + $0x78] sm:$0xff] }
 0x30f   :  { %13542 = vmatmul.mubr.msk.f32.vlgmr.msra.gmra.mrb[0].mxu1 %vm1397_vm8, %v13534_v36  ;;  %13983 = vmatpush1.bf16.msra.mxu0 %v13982_v56  ;;  %v2547_v49 = vpop.permute.xlu1 %2546  ;;  %v2569_v15 = vpop.permute.xlu0 %2568  ;;  %v13992_v18 = vpack.c.bf16 %v2597_v53, %v2593_v19 }
 0x310   :  { %13987 = vmatpush1.bf16.msra.mxu1 %v13986_v33  ;;  %2210 = vmatprep.mubr.f32.mxu0 %v22764_v55  ;;  %v2585_v20 = vsel %vm637_vm4, %v2547_v49, %v2555_v0  ;;  %v2588_v44 = vsel %vm637_vm4, %v2569_v15, %v2545_v57  ;;  %v13547_v57 = vld [vmem:[%s22383_s3 + $0x88] sm:$0xff] }
 0x311   :  { %13989 = vmatprep.subr.bf16.mxu1 %v13988_v37  ;;  %13540 = vmatmul.mubr.msk.f32.gmra.mrb[4].mxu0 %vm1397_vm8, %v13536_v9  ;;  %v2596_v36 = vmul.f32 %v2585_v20, %v22729_v24  ;;  %v2595_v34 = vmul.f32 %v2588_v44, %v22732_v17  ;;  %v13548_v37 = vld [vmem:[%s22383_s3 + $0x90] sm:$0xff] }
 0x312   :  { %2293 = vmatprep.mubr.f32.mxu1 %v22764_v55  ;;  %3399 = vrot.lane.b32.xlu1 %v16655_v10, %s15532_s6 }
 0x313   :  { %13543 = vmatmul.mubr.msk.f32.gmra.mrb[2].mxu1 %vm1397_vm8, %v13535_v30  ;;  %13993 = vmatprep.subr.bf16.mxu0 %v13992_v18  ;;  %v2571_v62 = vpop.permute.xlu1 %2570  ;;  %v2557_v6 = vpop.permute.xlu0 %2556  ;;  %v13994_v43 = vpack.c.bf16 %v2596_v36, %v2592_v32  ;;  %v2576_v30 = vsel %vm637_vm4, %v17162_v28, %v2569_v15 }
 0x314   :  { %13991 = vmatpush1.bf16.msra.mxu1 %v13990_v63  ;;  %v2589_v10 = vsel %vm637_vm4, %v2571_v62, %v2547_v49  ;;  %2216 = vmatprep.mubr.f32.mxu0 %v22764_v55  ;;  %v2577_v0 = vsel %vm637_vm4, %v2563_v12, %v2571_v62  ;;  %v2594_v28 = vmul.f32 %v2576_v30, %v22731_v50 }
 0x315   :  { %v2599_v16 = vmul.f32 %v2589_v10, %v22732_v17  ;;  %13541 = vmatmul.mubr.msk.f32.gmra.mrb[6].mxu0 %vm1397_vm8, %v13537_v5  ;;  %2299 = vmatprep.mubr.f32.mxu1 %v22764_v55  ;;  %v2598_v58 = vmul.f32 %v2577_v0, %v22731_v50 }
 0x316   :  { %2409 = vmatprep.mubr.f32.mxu0 %v22764_v55 }
 0x317   :  { %13544 = vmatmul.mubr.msk.f32.gmra.mrb[4].mxu1 %vm1397_vm8, %v13536_v9  ;;  %v2559_v38 = vpop.permute.xlu1 %2558  ;;  %v2565_v39 = vpop.permute.xlu0 %2564  ;;  %v14000_v25 = vpack.c.bf16 %v2599_v16, %v2595_v34  ;;  %v14002_v9 = vpack.c.bf16 %v2598_v58, %v2594_v28  ;;  %v13549_v34 = vld [vmem:[%s22383_s3 + $0x98] sm:$0xff]  ;;  %v13559_v28 = vld [vmem:[%s22383_s3 + $0xa8] sm:$0xff] }
 0x318   :  { %2305 = vmatprep.mubr.f32.mxu1 %v22764_v55  ;;  %v2582_v12 = vsel %vm637_vm4, %v2557_v6, %v2565_v39 }
 0x319   :  { %13550 = vmatmul.mubr.msk.f32.vlgmr.msra.gmra.mrb[0].mxu0 %vm1397_vm8, %v13546_v59  ;;  %14001 = vmatprep.subr.bf16.mxu1 %v14000_v25  ;;  %v2601_v56 = vmul.f32 %v2582_v12, %v22730_v23  ;;  %v13558_v12 = vld [vmem:[%s22383_s3 + $0xa0] sm:$0xff] }
 0x31a   :  { %13995 = vmatpush1.bf16.msra.mxu0 %v13994_v43  ;;  %2415 = vmatprep.mubr.f32.mxu0 %v22764_v55 }
 0x31b   :  { %13545 = vmatmul.mubr.msk.f32.gmra.mrb[6].mxu1 %vm1397_vm8, %v13537_v5  ;;  %v2567_v22 = vpop.permute.xlu1 %2566  ;;  %v2549_v19 = vpop.permute.xlu0 %2548 }
 0x31c   :  { %v2583_v53 = vsel %vm637_vm4, %v2559_v38, %v2567_v22  ;;  %2498 = vmatprep.mubr.f32.mxu1 %v22764_v55  ;;  %v2586_v49 = vsel %vm637_vm4, %v2549_v19, %v2557_v6 }
 0x31d   :  { %v2605_v33 = vmul.f32 %v2583_v53, %v22730_v23  ;;  %13551 = vmatmul.mubr.msk.f32.gmra.mrb[2].mxu0 %vm1397_vm8, %v13547_v57  ;;  %v2600_v63 = vmul.f32 %v2586_v49, %v22729_v24 }
 0x31e   :  { %2421 = vmatprep.mubr.f32.mxu0 %v22764_v55 }
 0x31f   :  { %13554 = vmatmul.mubr.msk.f32.vlgmr.msra.gmra.mrb[0].mxu1 %vm1397_vm8, %v13546_v59  ;;  %v2551_v15 = vpop.permute.xlu1 %2550  ;;  %v2573_v18 = vpop.permute.xlu0 %2572  ;;  %v13996_v20 = vpack.c.bf16 %v2605_v33, %v2601_v56 }
 0x320   :  { %14003 = vmatpush1.bf16.msra.mxu1 %v14002_v9  ;;  %v2587_v44 = vsel %vm637_vm4, %v2551_v15, %v2559_v38  ;;  %2504 = vmatprep.mubr.f32.mxu1 %v22764_v55  ;;  %v2578_v35 = vsel %vm637_vm4, %v2565_v39, %v2573_v18  ;;  %v2590_v62 = vsel %vm637_vm4, %v2573_v18, %v2549_v19  ;;  %v13560_v18 = vld [vmem:[%s22383_s3 + $0xb0] sm:$0xff] }
 0x321   :  { %v2604_v5 = vmul.f32 %v2587_v44, %v22729_v24  ;;  %13997 = vmatprep.subr.bf16.mxu0 %v13996_v20  ;;  %13552 = vmatmul.mubr.msk.f32.gmra.mrb[4].mxu0 %vm1397_vm8, %v13548_v37  ;;  %v2602_v59 = vmul.f32 %v2578_v35, %v22731_v50  ;;  %v2603_v0 = vmul.f32 %v2590_v62, %v22732_v17 }
 0x322   :  { %2427 = vmatprep.mubr.f32.mxu0 %v22764_v55 }
 0x323   :  { %v13998_v6 = vpack.c.bf16 %v2604_v5, %v2600_v63  ;;  %v2575_v36 = vpop.permute.xlu1 %2574  ;;  %v2828_v10 = vpop.permute.xlu0 %2827  ;;  %13555 = vmatmul.mubr.msk.f32.gmra.mrb[2].mxu1 %vm1397_vm8, %v13547_v57 }
 0x324   :  { %v2579_v16 = vsel %vm637_vm4, %v2567_v22, %v2575_v36  ;;  %v2591_v32 = vsel %vm637_vm4, %v2575_v36, %v2551_v15  ;;  %2510 = vmatprep.mubr.f32.mxu1 %v22764_v55 }
 0x325   :  { %v2606_v38 = vmul.f32 %v2579_v16, %v22731_v50  ;;  %v2607_v39 = vmul.f32 %v2591_v32, %v22732_v17  ;;  %13999 = vmatpush1.bf16.msra.mxu0 %v13998_v6 }
 0x326   :  { %13553 = vmatmul.mubr.msk.f32.gmra.mrb[6].mxu0 %vm1397_vm8, %v13549_v34 }
 0x327   :  { %v14006_v25 = vpack.c.bf16 %v2606_v38, %v2602_v59  ;;  %v2830_v43 = vpop.permute.xlu1 %2829  ;;  %v2836_v30 = vpop.permute.xlu0 %2835  ;;  %v14004_v58 = vpack.c.bf16 %v2607_v39, %v2603_v0  ;;  %13556 = vmatmul.mubr.msk.f32.gmra.mrb[4].mxu1 %vm1397_vm8, %v13548_v37  ;;  %2684 = vmatprep.mubr.f32.mxu0 %v22764_v55 }
 0x328   :  { %2516 = vmatprep.mubr.f32.mxu1 %v22764_v55  ;;  %v2855_v57 = vsel %vm748_vm5, %v2828_v10, %v2836_v30 }
 0x329   :  { %14005 = vmatprep.subr.bf16.mxu1 %v14004_v58  ;;  %v2868_v56 = vmul.f32 %v2855_v57, %v22734_v48 }
 0x32a   :  { %14007 = vmatpush1.bf16.msra.mxu1 %v14006_v25  ;;  %13562 = vmatmul.mubr.msk.f32.vlgmr.msra.gmra.mrb[0].mxu0 %vm1397_vm8, %v13558_v12 }
 0x32b   :  { %v2838_v22 = vpop.permute.xlu1 %2837  ;;  %v2820_v19 = vpop.permute.xlu0 %2819  ;;  %13557 = vmatmul.mubr.msk.f32.gmra.mrb[6].mxu1 %vm1397_vm8, %v13549_v34  ;;  %2690 = vmatprep.mubr.f32.mxu0 %v22764_v55 }
 0x32c   :  { %v2856_v53 = vsel %vm748_vm5, %v2830_v43, %v2838_v22  ;;  %2773 = vmatprep.mubr.f32.mxu1 %v22764_v55  ;;  %v2859_v9 = vsel %vm748_vm5, %v2820_v19, %v2828_v10  ;;  %v13561_v10 = vld [vmem:[%s22383_s3 + $0xb8] sm:$0xff] }
 0x32d   :  { %v2872_v33 = vmul.f32 %v2856_v53, %v22734_v48  ;;  %v2867_v44 = vmul.f32 %v2859_v9, %v22733_v21 }
 0x32e   :  { %13563 = vmatmul.mubr.msk.f32.gmra.mrb[2].mxu0 %vm1397_vm8, %v13559_v28 }
 0x32f   :  { %v2822_v49 = vpop.permute.xlu1 %2821  ;;  %v2844_v37 = vpop.permute.xlu0 %2843  ;;  %v14008_v15 = vpack.c.bf16 %v2872_v33, %v2868_v56  ;;  %13566 = vmatmul.mubr.msk.f32.vlgmr.msra.gmra.mrb[0].mxu1 %vm1397_vm8, %v13558_v12  ;;  %2696 = vmatprep.mubr.f32.mxu0 %v22764_v55 }
 0x330   :  { %v2860_v20 = vsel %vm748_vm5, %v2822_v49, %v2830_v43  ;;  %2779 = vmatprep.mubr.f32.mxu1 %v22764_v55  ;;  %v2851_v5 = vsel %vm748_vm5, %v2836_v30, %v2844_v37  ;;  %v2863_v35 = vsel %vm748_vm5, %v2844_v37, %v2820_v19 }
 0x331   :  { %v2871_v63 = vmul.f32 %v2860_v20, %v22733_v21  ;;  %14009 = vmatprep.subr.bf16.mxu0 %v14008_v15  ;;  %v2869_v32 = vmul.f32 %v2851_v5, %v22736_v27  ;;  %v2870_v59 = vmul.f32 %v2863_v35, %v22737_v7 }
 0x332   :  { %13564 = vmatmul.mubr.msk.f32.gmra.mrb[4].mxu0 %vm1397_vm8, %v13560_v18 }
 0x333   :  { %v14010_v62 = vpack.c.bf16 %v2871_v63, %v2867_v44  ;;  %v2846_v6 = vpop.permute.xlu1 %2845  ;;  %v2832_v36 = vpop.permute.xlu0 %2831  ;;  %13567 = vmatmul.mubr.msk.f32.gmra.mrb[2].mxu1 %vm1397_vm8, %v13559_v28  ;;  %2702 = vmatprep.mubr.f32.mxu0 %v22764_v55 }
 0x334   :  { %v2852_v34 = vsel %vm748_vm5, %v2838_v22, %v2846_v6  ;;  %v2864_v16 = vsel %vm748_vm5, %v2846_v6, %v2822_v49  ;;  %2785 = vmatprep.mubr.f32.mxu1 %v22764_v55 }
 0x335   :  { %v2873_v0 = vmul.f32 %v2852_v34, %v22736_v27  ;;  %v2874_v38 = vmul.f32 %v2864_v16, %v22737_v7  ;;  %14011 = vmatpush1.bf16.msra.mxu0 %v14010_v62  ;;  %v13570_v16 = vld [vmem:[%s22383_s3 + $0xc0] sm:$0xff] }
 0x336   :  { %13565 = vmatmul.mubr.msk.f32.gmra.mrb[6].mxu0 %vm1397_vm8, %v13561_v10 }
 0x337   :  { %v14018_v39 = vpack.c.bf16 %v2873_v0, %v2869_v32  ;;  %v2834_v25 = vpop.permute.xlu1 %2833  ;;  %v2840_v43 = vpop.permute.xlu0 %2839  ;;  %v14016_v30 = vpack.c.bf16 %v2874_v38, %v2870_v59  ;;  %13568 = vmatmul.mubr.msk.f32.gmra.mrb[4].mxu1 %vm1397_vm8, %v13560_v18  ;;  %2959 = vmatprep.mubr.f32.mxu0 %v22764_v55 }
 0x338   :  { %2791 = vmatprep.mubr.f32.mxu1 %v22764_v55  ;;  %v2857_v58 = vsel %vm748_vm5, %v2832_v36, %v2840_v43 }
 0x339   :  { %14017 = vmatprep.subr.bf16.mxu1 %v14016_v30  ;;  %v2876_v19 = vmul.f32 %v2857_v58, %v22734_v48 }
 0x33a   :  { %14019 = vmatpush1.bf16.msra.mxu1 %v14018_v39  ;;  %v13571_v39 = vld [vmem:[%s22383_s3 + $0xc8] sm:$0xff] }
 0x33b   :  { %v2842_v12 = vpop.permute.xlu1 %2841  ;;  %v2824_v57 = vpop.permute.xlu0 %2823  ;;  %13569 = vmatmul.mubr.msk.f32.gmra.mrb[6].mxu1 %vm1397_vm8, %v13561_v10 }
 0x33c   :  { %v2858_v22 = vsel %vm748_vm5, %v2834_v25, %v2842_v12  ;;  %3048 = vmatprep.mubr.f32.mxu1 %v22764_v55  ;;  %v2861_v53 = vsel %vm748_vm5, %v2824_v57, %v2832_v36 }
 0x33d   :  { %v2880_v28 = vmul.f32 %v2858_v22, %v22734_v48  ;;  %v2875_v37 = vmul.f32 %v2861_v53, %v22733_v21  ;;  %v13572_v22 = vld [vmem:[%s22383_s3 + $0xd0] sm:$0xff] }
 0x33f   :  { %v2826_v56 = vpop.permute.xlu1 %2825  ;;  %v2848_v33 = vpop.permute.xlu0 %2847  ;;  %v14012_v9 = vpack.c.bf16 %v2880_v28, %v2876_v19 }
 0x340   :  { %v2862_v49 = vsel %vm748_vm5, %v2826_v56, %v2834_v25  ;;  %v2853_v18 = vsel %vm748_vm5, %v2840_v43, %v2848_v33  ;;  %v2865_v20 = vsel %vm748_vm5, %v2848_v33, %v2824_v57 }
 0x341   :  { %v2879_v15 = vmul.f32 %v2862_v49, %v22733_v21  ;;  %14013 = vmatprep.subr.bf16.mxu0 %v14012_v9  ;;  %v2877_v6 = vmul.f32 %v2853_v18, %v22736_v27  ;;  %v2878_v36 = vmul.f32 %v2865_v20, %v22737_v7 }
 0x343   :  { %v14014_v44 = vpack.c.bf16 %v2879_v15, %v2875_v37  ;;  %v2850_v63 = vpop.permute.xlu1 %2849  ;;  %v3103_v5 = vpop.permute.xlu0 %3102  ;;  %v13573_v15 = vld [vmem:[%s22383_s3 + $0xd8] sm:$0xff] }
 0x344   :  { %v2854_v35 = vsel %vm748_vm5, %v2842_v12, %v2850_v63  ;;  %v2866_v62 = vsel %vm748_vm5, %v2850_v63, %v2826_v56 }
 0x345   :  { %v2881_v10 = vmul.f32 %v2854_v35, %v22736_v27  ;;  %v2882_v34 = vmul.f32 %v2866_v62, %v22737_v7  ;;  %14015 = vmatpush1.bf16.msra.mxu0 %v14014_v44 }
 0x347   :  { %v14022_v32 = vpack.c.bf16 %v2881_v10, %v2877_v6  ;;  %v3105_v59 = vpop.permute.xlu1 %3104  ;;  %v3111_v0 = vpop.permute.xlu0 %3110  ;;  %v14020_v38 = vpack.c.bf16 %v2882_v34, %v2878_v36  ;;  %v22765_v6 = vld [vmem:[#allocation36_spill] sm:$0xff] }
 0x348   :  { %13574 = vmatmul.mubr.msk.f32.vlgmr.msra.gmra.mrb[0].mxu0 %vm1397_vm8, %v13570_v16  ;;  %v3130_v25 = vsel %vm859_vm6, %v3103_v5, %v3111_v0 }
 0x349   :  { %14021 = vmatprep.subr.bf16.mxu1 %v14020_v38  ;;  %2965 = vmatprep.mubr.f32.mxu0 %v22764_v55  ;;  %v3143_v12 = vmul.f32 %v3130_v25, %v22741_v3 }
 0x34a   :  { %14023 = vmatpush1.bf16.msra.mxu1 %v14022_v32 }
 0x34b   :  { %v3113_v43 = vpop.permute.xlu1 %3112  ;;  %v3095_v30 = vpop.permute.xlu0 %3094 }
 0x34c   :  { %v3131_v58 = vsel %vm859_vm6, %v3105_v59, %v3113_v43  ;;  %13575 = vmatmul.mubr.msk.f32.gmra.mrb[2].mxu0 %vm1397_vm8, %v13571_v39  ;;  %v3134_v19 = vsel %vm859_vm6, %v3095_v30, %v3103_v5 }
 0x34d   :  { %v3147_v57 = vmul.f32 %v3131_v58, %v22741_v3  ;;  %13578 = vmatmul.mubr.msk.f32.vlgmr.msra.gmra.mrb[0].mxu1 %vm1397_vm8, %v13570_v16  ;;  %2971 = vmatprep.mubr.f32.mxu0 %v22764_v55  ;;  %v3142_v9 = vmul.f32 %v3134_v19, %v22740_v61 }
 0x34e   :  { %3054 = vmatprep.mubr.f32.mxu1 %v22764_v55 }
 0x34f   :  { %v3097_v28 = vpop.permute.xlu1 %3096  ;;  %v3119_v53 = vpop.permute.xlu0 %3118  ;;  %v14024_v56 = vpack.c.bf16 %v3147_v57, %v3143_v12 }
 0x350   :  { %v3135_v33 = vsel %vm859_vm6, %v3097_v28, %v3105_v59  ;;  %13576 = vmatmul.mubr.msk.f32.gmra.mrb[4].mxu0 %vm1397_vm8, %v13572_v22  ;;  %v3126_v37 = vsel %vm859_vm6, %v3111_v0, %v3119_v53  ;;  %v3138_v18 = vsel %vm859_vm6, %v3119_v53, %v3095_v30 }
 0x351   :  { %v3146_v49 = vmul.f32 %v3135_v33, %v22740_v61  ;;  %14025 = vmatprep.subr.bf16.mxu0 %v14024_v56  ;;  %13579 = vmatmul.mubr.msk.f32.gmra.mrb[2].mxu1 %vm1397_vm8, %v13571_v39  ;;  %v3144_v5 = vmul.f32 %v3126_v37, %v22742_v29  ;;  %v3145_v36 = vmul.f32 %v3138_v18, %v22765_v6 }
 0x352   :  { %2977 = vmatprep.mubr.f32.mxu0 %v22764_v55  ;;  %3060 = vmatprep.mubr.f32.mxu1 %v22764_v55 }
 0x353   :  { %v14026_v20 = vpack.c.bf16 %v3146_v49, %v3142_v9  ;;  %v3121_v44 = vpop.permute.xlu1 %3120  ;;  %v3107_v63 = vpop.permute.xlu0 %3106 }
 0x354   :  { %v3127_v35 = vsel %vm859_vm6, %v3113_v43, %v3121_v44  ;;  %v3139_v62 = vsel %vm859_vm6, %v3121_v44, %v3097_v28  ;;  %13577 = vmatmul.mubr.msk.f32.gmra.mrb[6].mxu0 %vm1397_vm8, %v13573_v15 }
 0x355   :  { %v3148_v10 = vmul.f32 %v3127_v35, %v22742_v29  ;;  %v3149_v34 = vmul.f32 %v3139_v62, %v22765_v6  ;;  %14027 = vmatpush1.bf16.msra.mxu0 %v14026_v20  ;;  %13580 = vmatmul.mubr.msk.f32.gmra.mrb[4].mxu1 %vm1397_vm8, %v13572_v22  ;;  %v13582_v62 = vld [vmem:[%s22383_s3 + $0xe0] sm:$0xff] }
 0x356   :  { %3234 = vmatprep.mubr.f32.mxu0 %v22764_v55  ;;  %3066 = vmatprep.mubr.f32.mxu1 %v22764_v55 }
 0x357   :  { %v14034_v16 = vpack.c.bf16 %v3148_v10, %v3144_v5  ;;  %v3109_v32 = vpop.permute.xlu1 %3108  ;;  %v3115_v59 = vpop.permute.xlu0 %3114  ;;  %v14032_v0 = vpack.c.bf16 %v3149_v34, %v3145_v36 }
 0x358   :  { %v3132_v38 = vsel %vm859_vm6, %v3107_v63, %v3115_v59 }
 0x359   :  { %14033 = vmatprep.subr.bf16.mxu1 %v14032_v0  ;;  %13581 = vmatmul.mubr.msk.f32.gmra.mrb[6].mxu1 %vm1397_vm8, %v13573_v15  ;;  %v3151_v30 = vmul.f32 %v3132_v38, %v22741_v3 }
 0x35a   :  { %14035 = vmatpush1.bf16.msra.mxu1 %v14034_v16  ;;  %3323 = vmatprep.mubr.f32.mxu1 %v22764_v55 }
 0x35b   :  { %v3117_v39 = vpop.permute.xlu1 %3116  ;;  %v3099_v25 = vpop.permute.xlu0 %3098 }
 0x35c   :  { %v3133_v43 = vsel %vm859_vm6, %v3109_v32, %v3117_v39  ;;  %v3136_v12 = vsel %vm859_vm6, %v3099_v25, %v3107_v63 }
 0x35d   :  { %v3155_v58 = vmul.f32 %v3133_v43, %v22741_v3  ;;  %v3150_v53 = vmul.f32 %v3136_v12, %v22740_v61 }
 0x35f   :  { %v3101_v57 = vpop.permute.xlu1 %3100  ;;  %v3123_v22 = vpop.permute.xlu0 %3122  ;;  %v14028_v19 = vpack.c.bf16 %v3155_v58, %v3151_v30  ;;  %v13584_v30 = vld [vmem:[%s22383_s3 + $0xf0] sm:$0xff] }
 0x360   :  { %v3137_v28 = vsel %vm859_vm6, %v3101_v57, %v3109_v32  ;;  %v3128_v33 = vsel %vm859_vm6, %v3115_v59, %v3123_v22  ;;  %v3140_v9 = vsel %vm859_vm6, %v3123_v22, %v3099_v25  ;;  %v13583_v32 = vld [vmem:[%s22383_s3 + $0xe8] sm:$0xff] }
 0x361   :  { %v3154_v56 = vmul.f32 %v3137_v28, %v22740_v61  ;;  %14029 = vmatprep.subr.bf16.mxu0 %v14028_v19  ;;  %v3152_v44 = vmul.f32 %v3128_v33, %v22742_v29  ;;  %v3153_v63 = vmul.f32 %v3140_v9, %v22765_v6  ;;  %v13585_v33 = vld [vmem:[%s22383_s3 + $0xf8] sm:$0xff] }
 0x363   :  { %v14030_v49 = vpack.c.bf16 %v3154_v56, %v3150_v53  ;;  %v3125_v37 = vpop.permute.xlu1 %3124  ;;  %v3378_v15 = vpop.permute.xlu0 %3377 }
 0x364   :  { %v3129_v18 = vsel %vm859_vm6, %v3117_v39, %v3125_v37  ;;  %v3141_v20 = vsel %vm859_vm6, %v3125_v37, %v3101_v57 }
 0x365   :  { %v3156_v5 = vmul.f32 %v3129_v18, %v22742_v29  ;;  %v3157_v35 = vmul.f32 %v3141_v20, %v22765_v6  ;;  %14031 = vmatpush1.bf16.msra.mxu0 %v14030_v49 }
 0x367   :  { %v14038_v36 = vpack.c.bf16 %v3156_v5, %v3152_v44  ;;  %v3380_v10 = vpop.permute.xlu1 %3379  ;;  %v3386_v34 = vpop.permute.xlu0 %3385  ;;  %v14036_v16 = vpack.c.bf16 %v3157_v35, %v3153_v63 }
 0x368   :  { %13586 = vmatmul.mubr.msk.f32.vlgmr.msra.gmra.mrb[0].mxu0 %vm1397_vm8, %v13582_v62  ;;  %v3405_v59 = vsel %vm970_vm7, %v3378_v15, %v3386_v34 }
 0x369   :  { %14037 = vmatprep.subr.bf16.mxu1 %v14036_v16  ;;  %3240 = vmatprep.mubr.f32.mxu0 %v22764_v55  ;;  %v3418_v25 = vmul.f32 %v3405_v59, %v22746_v42 }
 0x36a   :  { %14039 = vmatpush1.bf16.msra.mxu1 %v14038_v36 }
 0x36b   :  { %v3388_v0 = vpop.permute.xlu1 %3387  ;;  %v3370_v38 = vpop.permute.xlu0 %3369 }
 0x36c   :  { %v3406_v39 = vsel %vm970_vm7, %v3380_v10, %v3388_v0  ;;  %13587 = vmatmul.mubr.msk.f32.gmra.mrb[2].mxu0 %vm1397_vm8, %v13583_v32  ;;  %v3409_v58 = vsel %vm970_vm7, %v3370_v38, %v3378_v15 }
 0x36d   :  { %v3422_v43 = vmul.f32 %v3406_v39, %v22746_v42  ;;  %13590 = vmatmul.mubr.msk.f32.vlgmr.msra.gmra.mrb[0].mxu1 %vm1397_vm8, %v13582_v62  ;;  %3246 = vmatprep.mubr.f32.mxu0 %v22764_v55  ;;  %v3417_v28 = vmul.f32 %v3409_v58, %v22744_v60 }
 0x36e   :  { %3329 = vmatprep.mubr.f32.mxu1 %v22764_v55 }
 0x36f   :  { %v3372_v12 = vpop.permute.xlu1 %3371  ;;  %v3394_v57 = vpop.permute.xlu0 %3393  ;;  %v14040_v22 = vpack.c.bf16 %v3422_v43, %v3418_v25 }
 0x370   :  { %v3410_v19 = vsel %vm970_vm7, %v3372_v12, %v3380_v10  ;;  %13588 = vmatmul.mubr.msk.f32.gmra.mrb[4].mxu0 %vm1397_vm8, %v13584_v30  ;;  %v3401_v56 = vsel %vm970_vm7, %v3386_v34, %v3394_v57  ;;  %v3413_v9 = vsel %vm970_vm7, %v3394_v57, %v3370_v38 }
 0x371   :  { %v3421_v53 = vmul.f32 %v3410_v19, %v22744_v60  ;;  %14041 = vmatprep.subr.bf16.mxu0 %v14040_v22  ;;  %13591 = vmatmul.mubr.msk.f32.gmra.mrb[2].mxu1 %vm1397_vm8, %v13583_v32  ;;  %v3419_v18 = vmul.f32 %v3401_v56, %v22747_v40  ;;  %v3420_v63 = vmul.f32 %v3413_v9, %v22745_v41 }
 0x372   :  { %3252 = vmatprep.mubr.f32.mxu0 %v22764_v55  ;;  %3335 = vmatprep.mubr.f32.mxu1 %v22764_v55 }
 0x373   :  { %v14042_v49 = vpack.c.bf16 %v3421_v53, %v3417_v28  ;;  %v3396_v37 = vpop.permute.xlu1 %3395  ;;  %v3382_v15 = vpop.permute.xlu0 %3381 }
 0x374   :  { %v3402_v20 = vsel %vm970_vm7, %v3388_v0, %v3396_v37  ;;  %v3414_v44 = vsel %vm970_vm7, %v3396_v37, %v3372_v12  ;;  %13589 = vmatmul.mubr.msk.f32.gmra.mrb[6].mxu0 %vm1397_vm8, %v13585_v33 }
 0x375   :  { %v3423_v5 = vmul.f32 %v3402_v20, %v22747_v40  ;;  %v3424_v35 = vmul.f32 %v3414_v44, %v22745_v41  ;;  %14043 = vmatpush1.bf16.msra.mxu0 %v14042_v49  ;;  %13592 = vmatmul.mubr.msk.f32.gmra.mrb[4].mxu1 %vm1397_vm8, %v13584_v30  ;;  %v13594_v20 = vld [vmem:[%s22383_s3 + $0x100] sm:$0xff] }
 0x376   :  { %3509 = vmatprep.mubr.f32.mxu0 %v22764_v55  ;;  %3341 = vmatprep.mubr.f32.mxu1 %v22764_v55 }
 0x377   :  { %v14050_v62 = vpack.c.bf16 %v3423_v5, %v3419_v18  ;;  %v3384_v36 = vpop.permute.xlu1 %3383  ;;  %v3390_v10 = vpop.permute.xlu0 %3389  ;;  %v14048_v34 = vpack.c.bf16 %v3424_v35, %v3420_v63  ;;  %v13595_v5 = vld [vmem:[%s22383_s3 + $0x108] sm:$0xff]  ;;  %v13596_v35 = vld [vmem:[%s22383_s3 + $0x110] sm:$0xff] }
 0x378   :  { %v3407_v16 = vsel %vm970_vm7, %v3382_v15, %v3390_v10 }
 0x379   :  { %14049 = vmatprep.subr.bf16.mxu1 %v14048_v34  ;;  %13593 = vmatmul.mubr.msk.f32.gmra.mrb[6].mxu1 %vm1397_vm8, %v13585_v33  ;;  %v3426_v38 = vmul.f32 %v3407_v16, %v22746_v42 }
 0x37a   :  { %14051 = vmatpush1.bf16.msra.mxu1 %v14050_v62  ;;  %3598 = vmatprep.mubr.f32.mxu1 %v22764_v55  ;;  %v13597_v62 = vld [vmem:[%s22383_s3 + $0x118] sm:$0xff] }
 0x37b   :  { %v3392_v32 = vpop.permute.xlu1 %3391 }
 0x37c   :  { %v3408_v59 = vsel %vm970_vm7, %v3384_v36, %v3392_v32  ;;  %v3374_v0 = vpop.permute.xlu0 %3373 }
 0x37d   :  { %v3430_v39 = vmul.f32 %v3408_v59, %v22746_v42  ;;  %v3411_v25 = vsel %vm970_vm7, %v3374_v0, %v3382_v15 }
 0x37e   :  { %v3425_v57 = vmul.f32 %v3411_v25, %v22744_v60 }
 0x37f   :  { %v14044_v43 = vpack.c.bf16 %v3430_v39, %v3426_v38 }
 0x380   :  { %v3376_v30 = vpop.permute.xlu1 %3375  ;;  %v3398_v58 = vpop.permute.xlu0 %3397 }
 0x381   :  { %v3412_v12 = vsel %vm970_vm7, %v3376_v30, %v3384_v36  ;;  %14045 = vmatprep.subr.bf16.mxu0 %v14044_v43  ;;  %v3403_v19 = vsel %vm970_vm7, %v3390_v10, %v3398_v58  ;;  %v3415_v28 = vsel %vm970_vm7, %v3398_v58, %v3374_v0 }
 0x382   :  { %v3429_v22 = vmul.f32 %v3412_v12, %v22744_v60  ;;  %v3427_v49 = vmul.f32 %v3403_v19, %v22747_v40  ;;  %v3428_v37 = vmul.f32 %v3415_v28, %v22745_v41 }
 0x384   :  { %v14046_v53 = vpack.c.bf16 %v3429_v22, %v3425_v57  ;;  %v3400_v56 = vpop.permute.xlu1 %3399 }
 0x385   :  { %v3404_v33 = vsel %vm970_vm7, %v3392_v32, %v3400_v56  ;;  %v3416_v9 = vsel %vm970_vm7, %v3400_v56, %v3376_v30 }
 0x386   :  { %v3431_v15 = vmul.f32 %v3404_v33, %v22747_v40  ;;  %v3432_v18 = vmul.f32 %v3416_v9, %v22745_v41  ;;  %14047 = vmatpush1.bf16.msra.mxu0 %v14046_v53 }
 0x388   :  { %v14054_v44 = vpack.c.bf16 %v3431_v15, %v3427_v49  ;;  %v14052_v63 = vpack.c.bf16 %v3432_v18, %v3428_v37 }
 0x389   :  { %13598 = vmatmul.mubr.msk.f32.vlgmr.msra.gmra.mrb[0].mxu0 %vm1397_vm8, %v13594_v20 }
 0x38a   :  { %14053 = vmatprep.subr.bf16.mxu1 %v14052_v63  ;;  %3515 = vmatprep.mubr.f32.mxu0 %v22764_v55 }
 0x38b   :  { %14055 = vmatpush1.bf16.msra.mxu1 %v14054_v44 }
 0x38d   :  { %13599 = vmatmul.mubr.msk.f32.gmra.mrb[2].mxu0 %vm1397_vm8, %v13595_v5 }
 0x38e   :  { %13602 = vmatmul.mubr.msk.f32.vlgmr.msra.gmra.mrb[0].mxu1 %vm1397_vm8, %v13594_v20  ;;  %3521 = vmatprep.mubr.f32.mxu0 %v22764_v55 }
 0x38f   :  { %3604 = vmatprep.mubr.f32.mxu1 %v22764_v55 }
 0x391   :  { %13600 = vmatmul.mubr.msk.f32.gmra.mrb[4].mxu0 %vm1397_vm8, %v13596_v35 }
 0x392   :  { %13603 = vmatmul.mubr.msk.f32.gmra.mrb[2].mxu1 %vm1397_vm8, %v13595_v5  ;;  %3527 = vmatprep.mubr.f32.mxu0 %v22764_v55 }
 0x393   :  { %3610 = vmatprep.mubr.f32.mxu1 %v22764_v55 }
 0x395   :  { %13601 = vmatmul.mubr.msk.f32.gmra.mrb[6].mxu0 %vm1397_vm8, %v13597_v62 }
 0x396   :  { %13604 = vmatmul.mubr.msk.f32.gmra.mrb[4].mxu1 %vm1397_vm8, %v13596_v35  ;;  %4044 = vmatprep.mubr.f32.mxu0 %v22764_v55 }
 0x397   :  { %3616 = vmatprep.mubr.f32.mxu1 %v22764_v55 }
 0x39a   :  { %13605 = vmatmul.mubr.msk.f32.gmra.mrb[6].mxu1 %vm1397_vm8, %v13597_v62 }
 0x39b   :  { %4133 = vmatprep.mubr.f32.mxu1 %v22764_v55 }
 0x45c   :  { %v17547_v36 = vpop.f32.mrb[0].mxu0 }
 0x45d   :  { %v3659_v10 = vmul.f32 %v17547_v36, %v17547_v36  ;;  %v17551_v34 = vpop.f32.mrb[1].mxu0 }
 0x45e   :  { %v3639_v16 = vadd.f32 %v17551_v34, %v17547_v36  ;;  %v3660_v32 = vmul.f32 %v17551_v34, %v17551_v34 }
 0x460   :  { %v3675_v59 = vadd.f32 %v3660_v32, %v3659_v10  ;;  %v17557_v0 = vpop.f32.mrb[2].mxu0 }
 0x461   :  { %v3663_v38 = vmul.f32 %v17557_v0, %v17557_v0  ;;  %v17561_v39 = vpop.f32.mrb[3].mxu0  ;;  %v17563_v25 = vpop.f32.mrb[0].mxu1 }
 0x462   :  { %v3644_v43 = vadd.f32 %v17561_v39, %v17557_v0  ;;  %v3664_v30 = vmul.f32 %v17561_v39, %v17561_v39  ;;  %v3640_v58 = vadd.f32 %v3639_v16, %v17563_v25  ;;  %v3661_v12 = vmul.f32 %v17563_v25, %v17563_v25  ;;  %v17572_v57 = vpop.f32.mrb[1].mxu1 }
 0x463   :  { %v3662_v22 = vmul.f32 %v17572_v57, %v17572_v57 }
 0x464   :  { %v3680_v19 = vadd.f32 %v3664_v30, %v3663_v38  ;;  %v3676_v28 = vadd.f32 %v3675_v59, %v3661_v12  ;;  %v3641_v53 = vadd.f32 %v3640_v58, %v17572_v57  ;;  %v17577_v56 = vpop.f32.mrb[4].mxu0 }
 0x465   :  { %v3667_v33 = vmul.f32 %v17577_v56, %v17577_v56  ;;  %v17581_v9 = vpop.f32.mrb[5].mxu0  ;;  %v17583_v49 = vpop.f32.mrb[2].mxu1 }
 0x466   :  { %v3649_v37 = vadd.f32 %v17581_v9, %v17577_v56  ;;  %v3668_v15 = vmul.f32 %v17581_v9, %v17581_v9  ;;  %v3645_v18 = vadd.f32 %v3644_v43, %v17583_v49  ;;  %v3665_v20 = vmul.f32 %v17583_v49, %v17583_v49  ;;  %3642 = vadd.xlane.f32.xlu0 %v3641_v53  ;;  %v17592_v44 = vpop.f32.mrb[3].mxu1 }
 0x467   :  { %v3666_v63 = vmul.f32 %v17592_v44, %v17592_v44  ;;  %v3677_v5 = vadd.f32 %v3676_v28, %v3662_v22 }
 0x468   :  { %v3685_v35 = vadd.f32 %v3668_v15, %v3667_v33  ;;  %v3681_v62 = vadd.f32 %v3680_v19, %v3665_v20  ;;  %v3646_v10 = vadd.f32 %v3645_v18, %v17592_v44  ;;  %v17597_v16 = vpop.f32.mrb[6].mxu0 }
 0x469   :  { %v3671_v32 = vmul.f32 %v17597_v16, %v17597_v16  ;;  %v17601_v59 = vpop.f32.mrb[7].mxu0  ;;  %v17603_v38 = vpop.f32.mrb[4].mxu1 }
 0x46a   :  { %v3654_v43 = vadd.f32 %v17601_v59, %v17597_v16  ;;  %v3672_v30 = vmul.f32 %v17601_v59, %v17601_v59  ;;  %v3650_v58 = vadd.f32 %v3649_v37, %v17603_v38  ;;  %v3669_v12 = vmul.f32 %v17603_v38, %v17603_v38  ;;  %3678 = vadd.xlane.f32.xlu0 %v3677_v5  ;;  %v17612_v22 = vpop.f32.mrb[5].mxu1 }
 0x46b   :  { %3647 = vadd.xlane.f32.xlu1 %v3646_v10  ;;  %v3670_v19 = vmul.f32 %v17612_v22, %v17612_v22  ;;  %v3682_v28 = vadd.f32 %v3681_v62, %v3666_v63 }
 0x46c   :  { %v3690_v53 = vadd.f32 %v3672_v30, %v3671_v32  ;;  %v3686_v33 = vadd.f32 %v3685_v35, %v3669_v12  ;;  %v3651_v15 = vadd.f32 %v3650_v58, %v17612_v22 }
 0x46d   :  { %v17617_v18 = vpop.f32.mrb[6].mxu1 }
 0x46e   :  { %v3655_v20 = vadd.f32 %v3654_v43, %v17617_v18  ;;  %v3673_v37 = vmul.f32 %v17617_v18, %v17617_v18  ;;  %3683 = vadd.xlane.f32.xlu0 %v3682_v28  ;;  %v17622_v5 = vpop.f32.mrb[7].mxu1  ;;  %v3687_v40 = vadd.f32 %v3686_v33, %v3670_v19 }
 0x46f   :  { %3652 = vadd.xlane.f32.xlu1 %v3651_v15  ;;  %v3674_v10 = vmul.f32 %v17622_v5, %v17622_v5 }
 0x470   :  { %v3691_v63 = vadd.f32 %v3690_v53, %v3673_v37  ;;  %v3656_v35 = vadd.f32 %v3655_v20, %v17622_v5 }
 0x472   :  { %3657 = vadd.xlane.f32.xlu0 %v3656_v35  ;;  %v3692_v62 = vadd.f32 %v3691_v63, %v3674_v10 }
 0x473   :  { %3688 = vadd.xlane.f32.xlu1 %v3687_v40 }
 0x476   :  { %3693 = vadd.xlane.f32.xlu0 %v3692_v62 }
 0x4f3   :  { %v3643_v32 = vpop.xlane.xlu0 %3642 }
 0x4f4   :  { %v3695_v43 = vmul.f32 0.001953125, %v3643_v32 }
 0x4f6   :  { %v3703_v58 = vmul.f32 %v3695_v43, %v3695_v43  ;;  %v3711_v20 = vsub.f32 %v17547_v36, %v3695_v43  ;;  %v3712_v40 = vsub.f32 %v17551_v34, %v3695_v43  ;;  %v3713_v10 = vsub.f32 %v17563_v25, %v3695_v43 }
 0x4f7   :  { %v3679_v30 = vpop.xlane.xlu0 %3678  ;;  %v3714_v63 = vsub.f32 %v17572_v57, %v3695_v43 }
 0x4f8   :  { %v3699_v12 = vmul.f32 0.001953125, %v3679_v30  ;;  %v3648_v28 = vpop.xlane.xlu1 %3647 }
 0x4f9   :  { %v3696_v41 = vmul.f32 0.001953125, %v3648_v28 }
 0x4fa   :  { %v3707_v60 = vsub.f32 %v3699_v12, %v3703_v58 }
 0x4fb   :  { %v3684_v19 = vpop.xlane.xlu0 %3683  ;;  %v3704_v42 = vmul.f32 %v3696_v41, %v3696_v41  ;;  %v3718_v12 = vsub.f32 %v17592_v44, %v3696_v41  ;;  %v3717_v25 = vsub.f32 %v17583_v49, %v3696_v41 }
 0x4fc   :  { %v3727_v33 = vadd.f32 1e-05, %v3707_v60  ;;  %v3700_v15 = vmul.f32 0.001953125, %v3684_v19  ;;  %v3716_v60 = vsub.f32 %v17561_v39, %v3696_v41  ;;  %v3715_v39 = vsub.f32 %v17557_v0, %v3696_v41 }
 0x4fe   :  { %15238 = vrsqrt.f32 %v3727_v33  ;;  %v3708_v53 = vsub.f32 %v3700_v15, %v3704_v42 }
 0x500   :  { %v3728_v37 = vadd.f32 1e-05, %v3708_v53 }
 0x502   :  { %15240 = vrsqrt.f32 %v3728_v37 }
 0x508   :  { %v15239_v35 = vpop.eup %15238 }
 0x509   :  { %v3735_v62 = vmul.f32 %v15239_v35, %v3711_v20  ;;  %v3738_v32 = vmul.f32 %v15239_v35, %v3714_v63  ;;  %v3736_v30 = vmul.f32 %v15239_v35, %v3712_v40  ;;  %v3737_v58 = vmul.f32 %v15239_v35, %v3713_v10 }
 0x50b   :  { %v3767_v42 = vmul.f32 1.442695, %v3735_v62  ;;  %v3773_v28 = vmul.f32 1.442695, %v3738_v32  ;;  %v3769_v33 = vmul.f32 1.442695, %v3736_v30 }
 0x50c   :  { %v15241_v19 = vpop.eup %15240  ;;  %v3771_v36 = vmul.f32 1.442695, %v3737_v58  ;;  %vm3751_vm9 = vcmp.gt.f32.partialorder %v3735_v62, 0.0  ;;  %vm3754_vm10 = vcmp.gt.f32.partialorder %v3738_v32, 0.0  ;;  %vm3752_vm11 = vcmp.gt.f32.partialorder %v3736_v30, 0.0 }
 0x50d   :  { %15242 = vpow2.f32 %v3767_v42  ;;  %v3740_v34 = vmul.f32 %v15241_v19, %v3716_v60  ;;  %v3742_v15 = vmul.f32 %v15241_v19, %v3718_v12  ;;  %v3741_v53 = vmul.f32 %v15241_v19, %v3717_v25 }
 0x50e   :  { %15244 = vpow2.f32 %v3773_v28  ;;  %v3739_v37 = vmul.f32 %v15241_v19, %v3715_v39  ;;  %vm3753_vm12 = vcmp.gt.f32.partialorder %v3737_v58, 0.0 }
 0x50f   :  { %15246 = vpow2.f32 %v3769_v33  ;;  %v3777_v57 = vmul.f32 1.442695, %v3740_v34  ;;  %v3781_v43 = vmul.f32 1.442695, %v3742_v15  ;;  %v3779_v44 = vmul.f32 1.442695, %v3741_v53 }
 0x510   :  { %15248 = vpow2.f32 %v3771_v36  ;;  %v3775_v60 = vmul.f32 1.442695, %v3739_v37  ;;  %vm3756_vm13 = vcmp.gt.f32.partialorder %v3740_v34, 0.0  ;;  %vm3758_vm14 = vcmp.gt.f32.partialorder %v3742_v15, 0.0 }
 0x511   :  { %15250 = vpow2.f32 %v3777_v57  ;;  %vm3757_vm15 = vcmp.gt.f32.partialorder %v3741_v53, 0.0 }
 0x512   :  { %15252 = vpow2.f32 %v3781_v43 }
 0x513   :  { %15254 = vpow2.f32 %v3779_v44 }
 0x514   :  { %15256 = vpow2.f32 %v3775_v60 }
 0x517   :  { %v15243_v20 = vpop.eup %15242 }
 0x518   :  { %v15245_v40 = vpop.eup %15244  ;;  %v13606_v10 = vadd.f32 -1.0, %v15243_v20  ;;  %v3658_v20 = vpop.xlane.xlu0 %3657 }
 0x519   :  { %v15247_v63 = vpop.eup %15246  ;;  %v13609_v35 = vadd.f32 -1.0, %v15245_v40  ;;  %v3698_v60 = vmul.f32 0.001953125, %v3658_v20 }
 0x51a   :  { %v15249_v49 = vpop.eup %15248  ;;  %v17635_v12 = vsel %vm3751_vm9, %v3735_v62, %v13606_v10  ;;  %v13607_v42 = vadd.f32 -1.0, %v15247_v63  ;;  %vm3755_vm9 = vcmp.gt.f32.partialorder %v3739_v37, 0.0 }
 0x51b   :  { %22766 = vst [vmem:[#allocation16_spill] sm:$0xff] %v17635_v12  ;;  %v15251_v28 = vpop.eup %15250  ;;  %3904 = vrot.lane.b32.xlu1 %v17635_v12, %s15526_s1  ;;  %v17639_v41 = vsel %vm3754_vm10, %v3738_v32, %v13609_v35  ;;  %v13608_v0 = vadd.f32 -1.0, %v15249_v49 }
 0x51c   :  { %22767 = vst [vmem:[#allocation19_spill] sm:$0xff] %v17639_v41  ;;  %3928 = vrot.lane.b32.xlu0 %v17639_v41, %s15526_s1  ;;  %v17643_v19 = vsel %vm3752_vm11, %v3736_v30, %v13607_v42  ;;  %v13611_v33 = vadd.f32 -1.0, %v15251_v28  ;;  %v15253_v62 = vpop.eup %15252  ;;  %v3694_v35 = vpop.xlane.xlu0 %3693  ;;  %v3706_v28 = vmul.f32 %v3698_v60, %v3698_v60 }
 0x51d   :  { %22768 = vst [vmem:[#allocation53_spill] sm:$0xff] %v17643_v19  ;;  %v17647_v36 = vsel %vm3753_vm12, %v3737_v58, %v13608_v0  ;;  %v13613_v25 = vadd.f32 -1.0, %v15253_v62  ;;  %v15255_v57 = vpop.eup %15254  ;;  %v3702_v49 = vmul.f32 0.001953125, %v3694_v35 }
 0x51e   :  { %22769 = vst [vmem:[#allocation18_spill] sm:$0xff] %v17647_v36  ;;  %v17651_v32 = vsel %vm3756_vm13, %v3740_v34, %v13611_v33  ;;  %v13612_v43 = vadd.f32 -1.0, %v15255_v57  ;;  %v15257_v58 = vpop.eup %15256 }
 0x51f   :  { %3912 = vrot.lane.b32.xlu1 %v17643_v19, %s15526_s1  ;;  %22770 = vst [vmem:[#allocation54_spill] sm:$0xff] %v17651_v32  ;;  %v17657_v30 = vsel %vm3758_vm14, %v3742_v15, %v13613_v25  ;;  %v13610_v39 = vadd.f32 -1.0, %v15257_v58  ;;  %v3710_v0 = vsub.f32 %v3702_v49, %v3706_v28 }
 0x520   :  { %3920 = vrot.lane.b32.xlu0 %v17647_v36, %s15526_s1  ;;  %22771 = vst [vmem:[#allocation55_spill] sm:$0xff] %v17657_v30  ;;  %v17663_v34 = vsel %vm3757_vm15, %v3741_v53, %v13612_v43  ;;  %v3653_v53 = vpop.xlane.xlu1 %3652 }
 0x521   :  { %22772 = vst [vmem:[#allocation50_spill] sm:$0xff] %v17663_v34  ;;  %v17669_v15 = vsel %vm3755_vm9, %v3739_v37, %v13610_v39  ;;  %v3697_v37 = vmul.f32 0.001953125, %v3653_v53  ;;  %v3730_v33 = vadd.f32 1e-05, %v3710_v0 }
 0x522   :  { %22773 = vst [vmem:[#allocation56_spill] sm:$0xff] %v17669_v15 }
 0x523   :  { %3914 = vrot.lane.b32.xlu1 %v17651_v32, %s15526_s1  ;;  %v3705_v10 = vmul.f32 %v3697_v37, %v3697_v37  ;;  %v3719_v25 = vsub.f32 %v17577_v56, %v3697_v37  ;;  %v3720_v43 = vsub.f32 %v17581_v9, %v3697_v37  ;;  %v3722_v56 = vsub.f32 %v17612_v22, %v3697_v37 }
 0x524   :  { %3835 = vrot.lane.b32.xlu0 %v17635_v12, %s15525_s21  ;;  %v3689_v44 = vpop.xlane.xlu1 %3688 }
 0x525   :  { %v3701_v40 = vmul.f32 0.001953125, %v3689_v44  ;;  %v3723_v44 = vsub.f32 %v17597_v16, %v3698_v60 }
 0x527   :  { %3930 = vrot.lane.b32.xlu1 %v17657_v30, %s15526_s1  ;;  %v3709_v63 = vsub.f32 %v3701_v40, %v3705_v10  ;;  %v3724_v10 = vsub.f32 %v17601_v59, %v3698_v60 }
 0x528   :  { %3843 = vrot.lane.b32.xlu0 %v17643_v19, %s15525_s21 }
 0x529   :  { %v3729_v42 = vadd.f32 1e-05, %v3709_v63  ;;  %v3721_v63 = vsub.f32 %v17603_v38, %v3697_v37  ;;  %v3725_v37 = vsub.f32 %v17617_v18, %v3698_v60 }
 0x52b   :  { %3922 = vrot.lane.b32.xlu1 %v17663_v34, %s15526_s1  ;;  %15258 = vrsqrt.f32 %v3729_v42  ;;  %v3726_v42 = vsub.f32 %v17622_v5, %v3698_v60 }
 0x52c   :  { %3859 = vrot.lane.b32.xlu0 %v17639_v41, %s15525_s21  ;;  %15260 = vrsqrt.f32 %v3730_v33 }
 0x52f   :  { %3837 = vrot.lane.b32.xlu1 %v17669_v15, %s15525_s21 }
 0x530   :  { %3851 = vrot.lane.b32.xlu0 %v17647_v36, %s15525_s21 }
 0x533   :  { %3845 = vrot.lane.b32.xlu1 %v17651_v32, %s15525_s21 }
 0x534   :  { %4353 = vrot.lane.b32.xlu0 %v17635_v12, %s15527_s9 }
 0x535   :  { %v15259_v62 = vpop.eup %15258 }
 0x536   :  { %v3743_v57 = vmul.f32 %v15259_v62, %v3719_v25  ;;  %v15261_v58 = vpop.eup %15260  ;;  %v3744_v53 = vmul.f32 %v15259_v62, %v3720_v43  ;;  %v3746_v9 = vmul.f32 %v15259_v62, %v3722_v56  ;;  %v3745_v49 = vmul.f32 %v15259_v62, %v3721_v63 }
 0x537   :  { %3861 = vrot.lane.b32.xlu1 %v17657_v30, %s15525_s21  ;;  %v3747_v20 = vmul.f32 %v15261_v58, %v3723_v44  ;;  %v3748_v35 = vmul.f32 %v15261_v58, %v3724_v10  ;;  %v3750_v28 = vmul.f32 %v15261_v58, %v3726_v42  ;;  %v3749_v33 = vmul.f32 %v15261_v58, %v3725_v37 }
 0x538   :  { %4361 = vrot.lane.b32.xlu0 %v17643_v19, %s15527_s9  ;;  %v3783_v39 = vmul.f32 1.442695, %v3743_v57  ;;  %v3785_v40 = vmul.f32 1.442695, %v3744_v53  ;;  %v3789_v22 = vmul.f32 1.442695, %v3746_v9 }
 0x539   :  { %v3791_v16 = vmul.f32 1.442695, %v3747_v20  ;;  %v3793_v59 = vmul.f32 1.442695, %v3748_v35  ;;  %v3787_v38 = vmul.f32 1.442695, %v3745_v49 }
 0x53a   :  { %15262 = vpow2.f32 %v3783_v39  ;;  %v3797_v5 = vmul.f32 1.442695, %v3750_v28  ;;  %v3795_v18 = vmul.f32 1.442695, %v3749_v33  ;;  %vm3759_vm10 = vcmp.gt.f32.partialorder %v3743_v57, 0.0 }
 0x53b   :  { %3853 = vrot.lane.b32.xlu1 %v17663_v34, %s15525_s21  ;;  %15264 = vpow2.f32 %v3785_v40  ;;  %vm3760_vm11 = vcmp.gt.f32.partialorder %v3744_v53, 0.0  ;;  %vm3763_vm12 = vcmp.gt.f32.partialorder %v3747_v20, 0.0  ;;  %vm3762_vm13 = vcmp.gt.f32.partialorder %v3746_v9, 0.0 }
 0x53c   :  { %4377 = vrot.lane.b32.xlu0 %v17639_v41, %s15527_s9  ;;  %15266 = vpow2.f32 %v3791_v16  ;;  %vm3764_vm14 = vcmp.gt.f32.partialorder %v3748_v35, 0.0  ;;  %vm3761_vm15 = vcmp.gt.f32.partialorder %v3745_v49, 0.0  ;;  %vm3766_vm9 = vcmp.gt.f32.partialorder %v3750_v28, 0.0 }
 0x53d   :  { %15268 = vpow2.f32 %v3789_v22 }
 0x53e   :  { %15270 = vpow2.f32 %v3793_v59 }
 0x53f   :  { %4355 = vrot.lane.b32.xlu1 %v17669_v15, %s15527_s9  ;;  %15272 = vpow2.f32 %v3787_v38 }
 0x540   :  { %4369 = vrot.lane.b32.xlu0 %v17647_v36, %s15527_s9  ;;  %15274 = vpow2.f32 %v3797_v5 }
 0x541   :  { %15276 = vpow2.f32 %v3795_v18 }
 0x543   :  { %4363 = vrot.lane.b32.xlu1 %v17651_v32, %s15527_s9 }
 0x544   :  { %4628 = vrot.lane.b32.xlu0 %v17635_v12, %s15528_s16  ;;  %v15263_v0 = vpop.eup %15262 }
 0x545   :  { %v13614_v62 = vadd.f32 -1.0, %v15263_v0  ;;  %v15265_v25 = vpop.eup %15264 }
 0x546   :  { %v15267_v60 = vpop.eup %15266  ;;  %v13615_v39 = vadd.f32 -1.0, %v15265_v25 }
 0x547   :  { %4379 = vrot.lane.b32.xlu1 %v17657_v30, %s15527_s9  ;;  %v17769_v43 = vsel %vm3759_vm10, %v3743_v57, %v13614_v62  ;;  %v15269_v58 = vpop.eup %15268  ;;  %v13618_v44 = vadd.f32 -1.0, %v15267_v60  ;;  %vm3765_vm10 = vcmp.gt.f32.partialorder %v3749_v33, 0.0 }
 0x548   :  { %4636 = vrot.lane.b32.xlu0 %v17643_v19, %s15528_s16  ;;  %v15271_v56 = vpop.eup %15270  ;;  %v17775_v40 = vsel %vm3760_vm11, %v3744_v53, %v13615_v39  ;;  %v13617_v10 = vadd.f32 -1.0, %v15269_v58 }
 0x549   :  { %22774 = vst [vmem:[#allocation17_spill] sm:$0xff] %v17775_v40  ;;  %v15273_v63 = vpop.eup %15272  ;;  %v17783_v22 = vsel %vm3763_vm12, %v3747_v20, %v13618_v44  ;;  %v13619_v42 = vadd.f32 -1.0, %v15271_v56 }
 0x54a   :  { %v15275_v59 = vpop.eup %15274  ;;  %v17785_v38 = vsel %vm3762_vm13, %v3746_v9, %v13617_v10  ;;  %v13616_v53 = vadd.f32 -1.0, %v15273_v63 }
 0x54b   :  { %4371 = vrot.lane.b32.xlu1 %v17663_v34, %s15527_s9  ;;  %v17793_v5 = vsel %vm3764_vm14, %v3748_v35, %v13619_v42  ;;  %v13621_v20 = vadd.f32 -1.0, %v15275_v59  ;;  %v15277_v62 = vpop.eup %15276 }
 0x54c   :  { %4652 = vrot.lane.b32.xlu0 %v17639_v41, %s15528_s16  ;;  %v17795_v25 = vsel %vm3761_vm15, %v3745_v49, %v13616_v53  ;;  %v13620_v39 = vadd.f32 -1.0, %v15277_v62 }
 0x54d   :  { %v17805_v60 = vsel %vm3766_vm9, %v3750_v28, %v13621_v20 }
 0x54e   :  { %v17815_v58 = vsel %vm3765_vm10, %v3749_v33, %v13620_v39 }
 0x54f   :  { %4630 = vrot.lane.b32.xlu1 %v17669_v15, %s15528_s16 }
 0x550   :  { %4644 = vrot.lane.b32.xlu0 %v17647_v36, %s15528_s16 }
 0x553   :  { %4638 = vrot.lane.b32.xlu1 %v17651_v32, %s15528_s16 }
 0x554   :  { %5122 = vrot.lane.b32.xlu0 %v17643_v19, %s15529_s10 }
 0x557   :  { %4654 = vrot.lane.b32.xlu1 %v17657_v30, %s15528_s16 }
 0x558   :  { %5130 = vrot.lane.b32.xlu0 %v17647_v36, %s15529_s10 }
 0x55b   :  { %4646 = vrot.lane.b32.xlu1 %v17663_v34, %s15528_s16 }
 0x55c   :  { %5114 = vrot.lane.b32.xlu0 %v17635_v12, %s15529_s10 }
 0x55f   :  { %5124 = vrot.lane.b32.xlu1 %v17651_v32, %s15529_s10 }
 0x560   :  { %5138 = vrot.lane.b32.xlu0 %v17639_v41, %s15529_s10 }
 0x563   :  { %5132 = vrot.lane.b32.xlu1 %v17663_v34, %s15529_s10 }
 0x564   :  { %5397 = vrot.lane.b32.xlu0 %v17643_v19, %s15530_s19 }
 0x567   :  { %5116 = vrot.lane.b32.xlu1 %v17669_v15, %s15529_s10 }
 0x568   :  { %5405 = vrot.lane.b32.xlu0 %v17647_v36, %s15530_s19 }
 0x56b   :  { %5140 = vrot.lane.b32.xlu1 %v17657_v30, %s15529_s10 }
 0x56c   :  { %5389 = vrot.lane.b32.xlu0 %v17635_v12, %s15530_s19 }
 0x56f   :  { %5399 = vrot.lane.b32.xlu1 %v17651_v32, %s15530_s19 }
 0x570   :  { %5413 = vrot.lane.b32.xlu0 %v17639_v41, %s15530_s19 }
 0x573   :  { %5407 = vrot.lane.b32.xlu1 %v17663_v34, %s15530_s19 }
 0x574   :  { %5672 = vrot.lane.b32.xlu0 %v17643_v19, %s15531_s29 }
 0x577   :  { %5391 = vrot.lane.b32.xlu1 %v17669_v15, %s15530_s19 }
 0x578   :  { %5680 = vrot.lane.b32.xlu0 %v17647_v36, %s15531_s29 }
 0x57b   :  { %5415 = vrot.lane.b32.xlu1 %v17657_v30, %s15530_s19 }
 0x57c   :  { %5664 = vrot.lane.b32.xlu0 %v17635_v12, %s15531_s29 }
 0x57f   :  { %5674 = vrot.lane.b32.xlu1 %v17651_v32, %s15531_s29 }
 0x580   :  { %5688 = vrot.lane.b32.xlu0 %v17639_v41, %s15531_s29 }
 0x583   :  { %5682 = vrot.lane.b32.xlu1 %v17663_v34, %s15531_s29 }
 0x584   :  { %3906 = vrot.lane.b32.xlu0 %v17669_v15, %s15526_s1 }
 0x587   :  { %5666 = vrot.lane.b32.xlu1 %v17669_v15, %s15531_s29 }
 0x588   :  { %3908 = vrot.lane.b32.xlu0 %v17769_v43, %s15526_s1 }
 0x58b   :  { %5690 = vrot.lane.b32.xlu1 %v17657_v30, %s15531_s29 }
 0x58c   :  { %3916 = vrot.lane.b32.xlu0 %v17775_v40, %s15526_s1 }
 0x58d   :  { %v17779_v57 = vpop.permute.xlu1 %3904 }
 0x58e   :  { %v17781_v16 = vpop.permute.xlu0 %3928 }
 0x58f   :  { %3910 = vrot.lane.b32.xlu1 %v17783_v22, %s15526_s1 }
 0x590   :  { %3932 = vrot.lane.b32.xlu0 %v17785_v38, %s15526_s1 }
 0x591   :  { %v17791_v37 = vpop.permute.xlu1 %3912 }
 0x592   :  { %v3921_v0 = vpop.permute.xlu0 %3920 }
 0x593   :  { %3918 = vrot.lane.b32.xlu1 %v17793_v5, %s15526_s1  ;;  %v3936_v28 = vsel %vm247_vm0, %v3921_v0, %v17781_v16  ;;  %v3940_v44 = vsel %vm247_vm0, %v17791_v37, %v3921_v0 }
 0x594   :  { %3924 = vrot.lane.b32.xlu0 %v17795_v25, %s15526_s1  ;;  %v3954_v42 = vmul.f32 %v3940_v44, %v22751_v2  ;;  %v3955_v59 = vmul.f32 %v3936_v28, %v22750_v47 }
 0x595   :  { %v17801_v9 = vpop.permute.xlu1 %3914 }
 0x596   :  { %v17803_v18 = vpop.permute.xlu0 %3835 }
 0x597   :  { %3934 = vrot.lane.b32.xlu1 %v17805_v60, %s15526_s1 }
 0x598   :  { %3839 = vrot.lane.b32.xlu0 %v17769_v43, %s15525_s21 }
 0x599   :  { %v17811_v35 = vpop.permute.xlu1 %3930 }
 0x59a   :  { %v17813_v49 = vpop.permute.xlu0 %3843 }
 0x59b   :  { %3926 = vrot.lane.b32.xlu1 %v17815_v58, %s15526_s1 }
 0x59c   :  { %3847 = vrot.lane.b32.xlu0 %v17775_v40, %s15525_s21 }
 0x59d   :  { %v3923_v56 = vpop.permute.xlu1 %3922 }
 0x59e   :  { %v3937_v33 = vsel %vm247_vm0, %v3923_v56, %v17811_v35  ;;  %v3941_v10 = vsel %vm247_vm0, %v17801_v9, %v3923_v56  ;;  %v17833_v63 = vpop.permute.xlu0 %3859 }
 0x59f   :  { %v3958_v53 = vmul.f32 %v3941_v10, %v22751_v2  ;;  %v3959_v0 = vmul.f32 %v3937_v33, %v22750_v47  ;;  %3841 = vrot.lane.b32.xlu1 %v17783_v22, %s15525_s21 }
 0x5a0   :  { %3863 = vrot.lane.b32.xlu0 %v17785_v38, %s15525_s21 }
 0x5a1   :  { %v14066_v20 = vpack.c.bf16 %v3958_v53, %v3954_v42  ;;  %v17843_v62 = vpop.permute.xlu1 %3837  ;;  %v14064_v39 = vpack.c.bf16 %v3959_v0, %v3955_v59 }
 0x5a2   :  { %v17845_v56 = vpop.permute.xlu0 %3851 }
 0x5a3   :  { %3849 = vrot.lane.b32.xlu1 %v17793_v5, %s15525_s21  ;;  %14065 = vmatprep.subr.bf16.mxu1 %v14064_v39 }
 0x5a4   :  { %3855 = vrot.lane.b32.xlu0 %v17795_v25, %s15525_s21  ;;  %14067 = vmatpush1.bf16.msra.mxu1 %v14066_v20 }
 0x5a5   :  { %v17851_v28 = vpop.permute.xlu1 %3845 }
 0x5a6   :  { %v17853_v44 = vpop.permute.xlu0 %4353 }
 0x5a7   :  { %3865 = vrot.lane.b32.xlu1 %v17805_v60, %s15525_s21 }
 0x5a8   :  { %4357 = vrot.lane.b32.xlu0 %v17769_v43, %s15527_s9 }
 0x5a9   :  { %v17859_v33 = vpop.permute.xlu1 %3861 }
 0x5aa   :  { %v17861_v10 = vpop.permute.xlu0 %4361 }
 0x5ab   :  { %3857 = vrot.lane.b32.xlu1 %v17815_v58, %s15525_s21 }
 0x5ac   :  { %4365 = vrot.lane.b32.xlu0 %v17775_v40, %s15527_s9 }
 0x5ad   :  { %v17867_v42 = vpop.permute.xlu1 %3853 }
 0x5ae   :  { %v17869_v59 = vpop.permute.xlu0 %4377 }
 0x5af   :  { %4359 = vrot.lane.b32.xlu1 %v17783_v22, %s15527_s9 }
 0x5b0   :  { %4381 = vrot.lane.b32.xlu0 %v17785_v38, %s15527_s9 }
 0x5b1   :  { %v17875_v53 = vpop.permute.xlu1 %4355 }
 0x5b2   :  { %v17877_v0 = vpop.permute.xlu0 %4369 }
 0x5b3   :  { %4367 = vrot.lane.b32.xlu1 %v17793_v5, %s15527_s9 }
 0x5b4   :  { %4373 = vrot.lane.b32.xlu0 %v17795_v25, %s15527_s9 }
 0x5b5   :  { %v17883_v20 = vpop.permute.xlu1 %4363 }
 0x5b6   :  { %v17885_v39 = vpop.permute.xlu0 %4628 }
 0x5b7   :  { %4383 = vrot.lane.b32.xlu1 %v17805_v60, %s15527_s9 }
 0x5b8   :  { %4632 = vrot.lane.b32.xlu0 %v17769_v43, %s15528_s16 }
 0x5b9   :  { %v17891_v29 = vpop.permute.xlu1 %4379 }
 0x5ba   :  { %v17893_v6 = vpop.permute.xlu0 %4636 }
 0x5bb   :  { %4375 = vrot.lane.b32.xlu1 %v17815_v58, %s15527_s9 }
 0x5bc   :  { %4640 = vrot.lane.b32.xlu0 %v17775_v40, %s15528_s16 }
 0x5bd   :  { %v17899_v61 = vpop.permute.xlu1 %4371 }
 0x5be   :  { %v17901_v3 = vpop.permute.xlu0 %4652 }
 0x5bf   :  { %4634 = vrot.lane.b32.xlu1 %v17783_v22, %s15528_s16 }
 0x5c0   :  { %4656 = vrot.lane.b32.xlu0 %v17785_v38, %s15528_s16 }
 0x5c1   :  { %v17907_v27 = vpop.permute.xlu1 %4630 }
 0x5c2   :  { %v17909_v7 = vpop.permute.xlu0 %4644 }
 0x5c3   :  { %4642 = vrot.lane.b32.xlu1 %v17793_v5, %s15528_s16 }
 0x5c4   :  { %4648 = vrot.lane.b32.xlu0 %v17795_v25, %s15528_s16 }
 0x5c5   :  { %v17915_v21 = vpop.permute.xlu1 %4638 }
 0x5c6   :  { %v17917_v48 = vpop.permute.xlu0 %5122 }
 0x5c7   :  { %22775 = vst [vmem:[#allocation20_spill] sm:$0xff] %v17917_v48  ;;  %4658 = vrot.lane.b32.xlu1 %v17805_v60, %s15528_s16 }
 0x5c8   :  { %5947 = vrot.lane.b32.xlu0 %v17643_v19, %s15532_s6 }
 0x5c9   :  { %v17923_v50 = vpop.permute.xlu1 %4654 }
 0x5ca   :  { %v17925_v24 = vpop.permute.xlu0 %5130 }
 0x5cb   :  { %22776 = vst [vmem:[#allocation26_spill] sm:$0xff] %v17925_v24  ;;  %4650 = vrot.lane.b32.xlu1 %v17815_v58, %s15528_s16 }
 0x5cc   :  { %5126 = vrot.lane.b32.xlu0 %v17775_v40, %s15529_s10 }
 0x5cd   :  { %v17931_v17 = vpop.permute.xlu1 %4646 }
 0x5ce   :  { %v17933_v23 = vpop.permute.xlu0 %5114 }
 0x5cf   :  { %22777 = vst [vmem:[#allocation39_spill] sm:$0xff] %v17933_v23  ;;  %5949 = vrot.lane.b32.xlu1 %v17651_v32, %s15532_s6 }
 0x5d0   :  { %5134 = vrot.lane.b32.xlu0 %v17795_v25, %s15529_s10 }
 0x5d1   :  { %v17939_v48 = vpop.permute.xlu1 %5124 }
 0x5d2   :  { %22778 = vst [vmem:[#allocation22_spill] sm:$0xff] %v17939_v48  ;;  %v17941_v19 = vpop.permute.xlu0 %5138 }
 0x5d3   :  { %22779 = vst [vmem:[#allocation24_spill] sm:$0xff] %v17941_v19  ;;  %5957 = vrot.lane.b32.xlu1 %v17663_v34, %s15532_s6 }
 0x5d4   :  { %5118 = vrot.lane.b32.xlu0 %v17769_v43, %s15529_s10 }
 0x5d5   :  { %v17947_v24 = vpop.permute.xlu1 %5132 }
 0x5d6   :  { %22780 = vst [vmem:[#allocation38_spill] sm:$0xff] %v17947_v24  ;;  %v17949_v46 = vpop.permute.xlu0 %5397 }
 0x5d7   :  { %22781 = vst [vmem:[#allocation25_spill] sm:$0xff] %v17949_v46  ;;  %5941 = vrot.lane.b32.xlu1 %v17669_v15, %s15532_s6 }
 0x5d8   :  { %5142 = vrot.lane.b32.xlu0 %v17785_v38, %s15529_s10 }
 0x5d9   :  { %v17955_v23 = vpop.permute.xlu1 %5116 }
 0x5da   :  { %22782 = vst [vmem:[#allocation57_spill] sm:$0xff] %v17955_v23  ;;  %v17957_v48 = vpop.permute.xlu0 %5405 }
 0x5db   :  { %22783 = vst [vmem:[#allocation58_spill] sm:$0xff] %v17957_v48  ;;  %5965 = vrot.lane.b32.xlu1 %v17657_v30, %s15532_s6 }
 0x5dc   :  { %5401 = vrot.lane.b32.xlu0 %v17775_v40, %s15530_s19 }
 0x5dd   :  { %v17963_v34 = vpop.permute.xlu1 %5140 }
 0x5de   :  { %22784 = vst [vmem:[#allocation59_spill] sm:$0xff] %v17963_v34  ;;  %v17965_v19 = vpop.permute.xlu0 %5389 }
 0x5df   :  { %22785 = vst [vmem:[#allocation60_spill] sm:$0xff] %v17965_v19  ;;  %5128 = vrot.lane.b32.xlu1 %v17793_v5, %s15529_s10 }
 0x5e0   :  { %5409 = vrot.lane.b32.xlu0 %v17795_v25, %s15530_s19 }
 0x5e1   :  { %v17971_v46 = vpop.permute.xlu1 %5399 }
 0x5e2   :  { %22786 = vst [vmem:[#allocation61_spill] sm:$0xff] %v17971_v46  ;;  %v17973_v23 = vpop.permute.xlu0 %5413 }
 0x5e3   :  { %22787 = vst [vmem:[#allocation62_spill] sm:$0xff] %v17973_v23  ;;  %5136 = vrot.lane.b32.xlu1 %v17815_v58, %s15529_s10 }
 0x5e4   :  { %5393 = vrot.lane.b32.xlu0 %v17769_v43, %s15530_s19 }
 0x5e5   :  { %v17979_v48 = vpop.permute.xlu1 %5407 }
 0x5e6   :  { %22788 = vst [vmem:[#allocation63_spill] sm:$0xff] %v17979_v48  ;;  %v17981_v34 = vpop.permute.xlu0 %5672 }
 0x5e7   :  { %22789 = vst [vmem:[#allocation64_spill] sm:$0xff] %v17981_v34  ;;  %5120 = vrot.lane.b32.xlu1 %v17783_v22, %s15529_s10 }
 0x5e8   :  { %5417 = vrot.lane.b32.xlu0 %v17785_v38, %s15530_s19 }
 0x5e9   :  { %v17987_v19 = vpop.permute.xlu1 %5391 }
 0x5ea   :  { %22790 = vst [vmem:[#allocation65_spill] sm:$0xff] %v17987_v19  ;;  %v17989_v46 = vpop.permute.xlu0 %5680 }
 0x5eb   :  { %22791 = vst [vmem:[#allocation66_spill] sm:$0xff] %v17989_v46  ;;  %5144 = vrot.lane.b32.xlu1 %v17805_v60, %s15529_s10  ;;  %v3944_v46 = vsel %vm247_vm0, %v17779_v57, %v17791_v37 }
 0x5ec   :  { %5676 = vrot.lane.b32.xlu0 %v17775_v40, %s15531_s29  ;;  %v3953_v15 = vmul.f32 %v3944_v46, %v22748_v1 }
 0x5ed   :  { %v17995_v23 = vpop.permute.xlu1 %5415 }
 0x5ee   :  { %22792 = vst [vmem:[#allocation67_spill] sm:$0xff] %v17995_v23  ;;  %v17997_v48 = vpop.permute.xlu0 %5664 }
 0x5ef   :  { %22793 = vst [vmem:[#allocation68_spill] sm:$0xff] %v17997_v48  ;;  %5403 = vrot.lane.b32.xlu1 %v17793_v5, %s15530_s19  ;;  %v3948_v48 = vsel %vm247_vm0, %v17781_v16, %v17779_v57 }
 0x5f0   :  { %5684 = vrot.lane.b32.xlu0 %v17795_v25, %s15531_s29  ;;  %v3952_v16 = vmul.f32 %v3948_v48, %v22749_v31 }
 0x5f1   :  { %v18003_v34 = vpop.permute.xlu1 %5674 }
 0x5f2   :  { %22794 = vst [vmem:[#allocation69_spill] sm:$0xff] %v18003_v34  ;;  %v18005_v19 = vpop.permute.xlu0 %5688 }
 0x5f3   :  { %22795 = vst [vmem:[#allocation70_spill] sm:$0xff] %v18005_v19  ;;  %5411 = vrot.lane.b32.xlu1 %v17815_v58, %s15530_s19 }
 0x5f4   :  { %5668 = vrot.lane.b32.xlu0 %v17769_v43, %s15531_s29 }
 0x5f5   :  { %v18019_v23 = vpop.permute.xlu1 %5682 }
 0x5f6   :  { %22796 = vst [vmem:[#allocation71_spill] sm:$0xff] %v18019_v23  ;;  %v3907_v34 = vpop.permute.xlu0 %3906 }
 0x5f7   :  { %v3945_v19 = vsel %vm247_vm0, %v3907_v34, %v17801_v9  ;;  %v3949_v30 = vsel %vm247_vm0, %v17811_v35, %v3907_v34  ;;  %5395 = vrot.lane.b32.xlu1 %v17783_v22, %s15530_s19 }
 0x5f8   :  { %v3956_v57 = vmul.f32 %v3949_v30, %v22749_v31  ;;  %v3957_v37 = vmul.f32 %v3945_v19, %v22748_v1  ;;  %5692 = vrot.lane.b32.xlu0 %v17785_v38, %s15531_s29 }
 0x5f9   :  { %v18035_v23 = vpop.permute.xlu1 %5666 }
 0x5fa   :  { %22797 = vst [vmem:[#allocation72_spill] sm:$0xff] %v18035_v23  ;;  %v14058_v9 = vpack.c.bf16 %v3956_v57, %v3952_v16  ;;  %v3909_v24 = vpop.permute.xlu0 %3908  ;;  %v14056_v32 = vpack.c.bf16 %v3957_v37, %v3953_v15  ;;  %v3876_v15 = vsel %vm136_vm1, %v17843_v62, %v17851_v28  ;;  %v3875_v57 = vsel %vm136_vm1, %v17803_v18, %v17813_v49 }
 0x5fb   :  { %5419 = vrot.lane.b32.xlu1 %v17805_v60, %s15530_s19  ;;  %v3888_v23 = vmul.f32 %v3876_v15, %v22752_v51 }
 0x5fc   :  { %5955 = vrot.lane.b32.xlu0 %v17647_v36, %s15532_s6  ;;  %14057 = vmatprep.subr.bf16.mxu0 %v14056_v32 }
 0x5fd   :  { %14059 = vmatpush1.bf16.msra.mxu0 %v14058_v9  ;;  %v18041_v48 = vpop.permute.xlu1 %5690 }
 0x5fe   :  { %22798 = vst [vmem:[#allocation73_spill] sm:$0xff] %v18041_v48  ;;  %v3917_v46 = vpop.permute.xlu0 %3916 }
 0x5ff   :  { %5678 = vrot.lane.b32.xlu1 %v17793_v5, %s15531_s29  ;;  %v3946_v34 = vsel %vm247_vm0, %v3909_v24, %v3917_v46 }
 0x600   :  { %5939 = vrot.lane.b32.xlu0 %v17635_v12, %s15532_s6  ;;  %v3961_v37 = vmul.f32 %v3946_v34, %v22748_v1  ;;  %v3884_v12 = vmul.f32 %v3875_v57, %v22752_v51  ;;  %v3880_v34 = vsel %vm136_vm1, %v17859_v33, %v17843_v62  ;;  %v3879_v62 = vsel %vm136_vm1, %v17833_v63, %v17803_v18 }
 0x601   :  { %v3911_v19 = vpop.permute.xlu1 %3910 }
 0x602   :  { %v3933_v30 = vpop.permute.xlu0 %3932 }
 0x603   :  { %5686 = vrot.lane.b32.xlu1 %v17815_v58, %s15531_s29  ;;  %v3950_v48 = vsel %vm247_vm0, %v3933_v30, %v3909_v24 }
 0x604   :  { %5963 = vrot.lane.b32.xlu0 %v17639_v41, %s15532_s6  ;;  %v3960_v24 = vmul.f32 %v3950_v48, %v22749_v31 }
 0x605   :  { %v3919_v32 = vpop.permute.xlu1 %3918 }
 0x606   :  { %v3947_v35 = vsel %vm247_vm0, %v3911_v19, %v3919_v32  ;;  %v3925_v16 = vpop.permute.xlu0 %3924 }
 0x607   :  { %v3965_v9 = vmul.f32 %v3947_v35, %v22748_v1  ;;  %5670 = vrot.lane.b32.xlu1 %v17783_v22, %s15531_s29  ;;  %v3938_v48 = vsel %vm247_vm0, %v3925_v16, %v3933_v30 }
 0x608   :  { %5951 = vrot.lane.b32.xlu0 %v17775_v40, %s15532_s6  ;;  %v3942_v40 = vsel %vm247_vm0, %v3917_v46, %v3925_v16  ;;  %v3887_v46 = vmul.f32 %v3880_v34, %v22753_v45 }
 0x609   :  { %v3935_v36 = vpop.permute.xlu1 %3934  ;;  %v14060_v41 = vpack.c.bf16 %v3965_v9, %v3961_v37  ;;  %v14072_v37 = vpack.c.bf16 %v3888_v23, %v3884_v12  ;;  %v3962_v30 = vmul.f32 %v3942_v40, %v22751_v2  ;;  %v3900_v12 = vld [vmem:[#allocation5 + $0x20] sm:$0xff]  ;;  %v3883_v40 = vmul.f32 %v3879_v62, %v22753_v45 }
 0x60a   :  { %v3951_v35 = vsel %vm247_vm0, %v3935_v36, %v3911_v19  ;;  %v3840_v1 = vpop.permute.xlu0 %3839  ;;  %v3867_v19 = vsel %vm136_vm1, %v17845_v56, %v17833_v63  ;;  %v3872_v63 = vsel %vm136_vm1, %v17851_v28, %v17867_v42 }
 0x60b   :  { %v3964_v15 = vmul.f32 %v3951_v35, %v22749_v31  ;;  %5694 = vrot.lane.b32.xlu1 %v17805_v60, %s15531_s29  ;;  %14061 = vmatprep.subr.bf16.mxu0 %v14060_v41  ;;  %v3868_v41 = vsel %vm136_vm1, %v17867_v42, %v17859_v33  ;;  %v3963_v35 = vmul.f32 %v3938_v48, %v22750_v47 }
 0x60c   :  { %5959 = vrot.lane.b32.xlu0 %v17795_v25, %s15532_s6  ;;  %v3890_v28 = vmul.f32 %v3868_v41, %v22755_v13  ;;  %v14074_v48 = vpack.c.bf16 %v3887_v46, %v3883_v40  ;;  %v3901_v41 = vld [vmem:[#allocation5 + $0x28] sm:$0xff]  ;;  %v4397_v40 = vsel %vm358_vm2, %v17869_v59, %v17853_v44 }
 0x60d   :  { %v14062_v57 = vpack.c.bf16 %v3964_v15, %v3960_v24  ;;  %v3927_v18 = vpop.permute.xlu1 %3926  ;;  %v3886_v15 = vmul.f32 %v3867_v19, %v22755_v13 }
 0x60e   :  { %v3939_v16 = vsel %vm247_vm0, %v3927_v18, %v3935_v36  ;;  %v3943_v9 = vsel %vm247_vm0, %v3919_v32, %v3927_v18  ;;  %v3848_v34 = vpop.permute.xlu0 %3847  ;;  %v3871_v36 = vsel %vm136_vm1, %v17813_v49, %v17845_v56 }
 0x60f   :  { %v3966_v33 = vmul.f32 %v3943_v9, %v22751_v2  ;;  %v3967_v23 = vmul.f32 %v3939_v16, %v22750_v47  ;;  %5953 = vrot.lane.b32.xlu1 %v17793_v5, %s15532_s6  ;;  %14063 = vmatpush1.bf16.msra.mxu0 %v14062_v57  ;;  %v3889_v57 = vmul.f32 %v3872_v63, %v22754_v52 }
 0x610   :  { %5943 = vrot.lane.b32.xlu0 %v17769_v43, %s15532_s6  ;;  %14073 = vmatprep.subr.bf16.mxu0 %v14072_v37  ;;  %v3885_v18 = vmul.f32 %v3871_v36, %v22754_v52  ;;  %v3877_v49 = vsel %vm136_vm1, %v3840_v1, %v3848_v34  ;;  %v14080_v56 = vpack.c.bf16 %v3890_v28, %v3886_v15 }
 0x611   :  { %v14070_v42 = vpack.c.bf16 %v3966_v33, %v3962_v30  ;;  %v3842_v32 = vpop.permute.xlu1 %3841  ;;  %v14068_v24 = vpack.c.bf16 %v3967_v23, %v3963_v35  ;;  %v4394_v30 = vsel %vm358_vm2, %v17875_v53, %v17883_v20  ;;  %v3892_v16 = vmul.f32 %v3877_v49, %v22752_v51  ;;  %v3902_v35 = vld [vmem:[#allocation5 + $0x30] sm:$0xff] }
 0x612   :  { %v3864_v62 = vpop.permute.xlu0 %3863  ;;  %13622 = vmatmul.mubr.msk.f32.vlgmr.msra.gmra.mrb[8].mxu0 %vm1397_vm8, %v3900_v12  ;;  %v14082_v46 = vpack.c.bf16 %v3889_v57, %v3885_v18  ;;  %v4393_v23 = vsel %vm358_vm2, %v17853_v44, %v17861_v10  ;;  %v3903_v57 = vld [vmem:[#allocation5 + $0x38] sm:$0xff] }
 0x613   :  { %5961 = vrot.lane.b32.xlu1 %v17815_v58, %s15532_s6  ;;  %14069 = vmatprep.subr.bf16.mxu1 %v14068_v24  ;;  %v3881_v33 = vsel %vm136_vm1, %v3864_v62, %v3840_v1  ;;  %v4398_v1 = vsel %vm358_vm2, %v17891_v29, %v17875_v53  ;;  %v4402_v53 = vmul.f32 %v4393_v23, %v22756_v11 }
 0x614   :  { %5967 = vrot.lane.b32.xlu0 %v17785_v38, %s15532_s6  ;;  %14075 = vmatpush1.bf16.msra.mxu0 %v14074_v48  ;;  %v3891_v44 = vmul.f32 %v3881_v33, %v22753_v45  ;;  %v4405_v49 = vmul.f32 %v4398_v1, %v22757_v4  ;;  %v3831_v33 = vld [vmem:[#allocation5] sm:$0xff]  ;;  %v4390_v23 = vsel %vm358_vm2, %v17883_v20, %v17899_v61 }
 0x615   :  { %14071 = vmatpush1.bf16.msra.mxu1 %v14070_v42  ;;  %v3850_v19 = vpop.permute.xlu1 %3849  ;;  %4050 = vmatprep.mubr.f32.mxu0 %v22764_v55  ;;  %v4406_v42 = vmul.f32 %v4394_v30, %v22756_v11  ;;  %v4389_v1 = vsel %vm358_vm2, %v17861_v10, %v17877_v0 }
 0x616   :  { %v3878_v37 = vsel %vm136_vm1, %v3842_v32, %v3850_v19  ;;  %14081 = vmatprep.subr.bf16.mxu1 %v14080_v56  ;;  %v3856_v63 = vpop.permute.xlu0 %3855  ;;  %13623 = vmatmul.mubr.msk.f32.gmra.mrb[10].mxu0 %vm1397_vm8, %v3901_v41  ;;  %v4386_v56 = vsel %vm358_vm2, %v17899_v61, %v17891_v29  ;;  %v22799_v61 = vld [vmem:[#allocation40_spill] sm:$0xff] }
 0x617   :  { %v3896_v9 = vmul.f32 %v3878_v37, %v22752_v51  ;;  %5945 = vrot.lane.b32.xlu1 %v17783_v22, %s15532_s6  ;;  %4056 = vmatprep.mubr.f32.mxu0 %v22764_v55  ;;  %v3873_v15 = vsel %vm136_vm1, %v3848_v34, %v3856_v63  ;;  %v3869_v18 = vsel %vm136_vm1, %v3856_v63, %v3864_v62 }
 0x618   :  { %13626 = vmatmul.mubr.msk.f32.vlgmr.msra.gmra.mrb[8].mxu1 %vm1397_vm8, %v3900_v12  ;;  %v4385_v34 = vsel %vm358_vm2, %v17877_v0, %v17869_v59  ;;  %v3893_v62 = vmul.f32 %v3873_v15, %v22754_v52  ;;  %v14088_v30 = vpack.c.bf16 %v4406_v42, %v4402_v53  ;;  %v4407_v20 = vmul.f32 %v4390_v23, %v22799_v61  ;;  %v3834_v23 = vld [vmem:[#allocation5 + $0x18] sm:$0xff] }
 0x619   :  { %14083 = vmatpush1.bf16.msra.mxu1 %v14082_v46  ;;  %v3866_v28 = vpop.permute.xlu1 %3865  ;;  %4139 = vmatprep.mubr.f32.mxu1 %v22764_v55  ;;  %v14076_v36 = vpack.c.bf16 %v3896_v9, %v3892_v16  ;;  %v3894_v16 = vmul.f32 %v3869_v18, %v22755_v13  ;;  %v4403_v10 = vmul.f32 %v4389_v1, %v22799_v61 }
 0x61a   :  { %v3882_v12 = vsel %vm136_vm1, %v3866_v28, %v3842_v32  ;;  %v18166_v24 = vpop.permute.xlu0 %4357  ;;  %13624 = vmatmul.mubr.msk.f32.gmra.mrb[12].mxu0 %vm1397_vm8, %v3902_v35  ;;  %v4401_v32 = vmul.f32 %v4397_v40, %v22757_v4 }
 0x61b   :  { %v3895_v48 = vmul.f32 %v3882_v12, %v22753_v45  ;;  %5969 = vrot.lane.b32.xlu1 %v17805_v60, %s15532_s6  ;;  %14077 = vmatprep.subr.bf16.mxu0 %v14076_v36  ;;  %v4404_v12 = vmul.f32 %v4385_v34, %v22759_v14  ;;  %v14098_v18 = vpack.c.bf16 %v4407_v20, %v4403_v10 }
 0x61c   :  { %13627 = vmatmul.mubr.msk.f32.gmra.mrb[10].mxu1 %vm1397_vm8, %v3901_v41  ;;  %4062 = vmatprep.mubr.f32.mxu0 %v22764_v55  ;;  %v14090_v40 = vpack.c.bf16 %v4405_v49, %v4401_v32 }
 0x61d   :  { %v14078_v46 = vpack.c.bf16 %v3895_v48, %v3891_v44  ;;  %v3858_v37 = vpop.permute.xlu1 %3857  ;;  %4145 = vmatprep.mubr.f32.mxu1 %v22764_v55 }
 0x61e   :  { %v3870_v41 = vsel %vm136_vm1, %v3858_v37, %v3866_v28  ;;  %v3874_v63 = vsel %vm136_vm1, %v3850_v19, %v3858_v37  ;;  %v4366_v59 = vpop.permute.xlu0 %4365  ;;  %13625 = vmatmul.mubr.msk.f32.gmra.mrb[14].mxu0 %vm1397_vm8, %v3903_v57  ;;  %v4408_v19 = vmul.f32 %v4386_v56, %v22759_v14  ;;  %v3833_v56 = vld [vmem:[#allocation5 + $0x10] sm:$0xff]  ;;  %v4668_v37 = vsel %vm469_vm3, %v17885_v39, %v17893_v6 }
 0x61f   :  { %v3897_v29 = vmul.f32 %v3874_v63, %v22754_v52  ;;  %v3898_v9 = vmul.f32 %v3870_v41, %v22755_v13  ;;  %14079 = vmatpush1.bf16.msra.mxu0 %v14078_v46  ;;  %4234 = vmatprep.mubr.f32.mxu0 %v22764_v55  ;;  %v4395_v15 = vsel %vm358_vm2, %v18166_v24, %v4366_v59 }
 0x620   :  { %13628 = vmatmul.mubr.msk.f32.gmra.mrb[12].mxu1 %vm1397_vm8, %v3902_v35  ;;  %14089 = vmatprep.subr.bf16.mxu0 %v14088_v30  ;;  %v3832_v35 = vld [vmem:[#allocation5 + $0x8] sm:$0xff]  ;;  %v14096_v48 = vpack.c.bf16 %v4408_v19, %v4404_v12  ;;  %v4410_v34 = vmul.f32 %v4395_v15, %v22756_v11 }
 0x621   :  { %v14086_v28 = vpack.c.bf16 %v3897_v29, %v3893_v62  ;;  %v4360_v36 = vpop.permute.xlu1 %4359  ;;  %4151 = vmatprep.mubr.f32.mxu1 %v22764_v55  ;;  %v14084_v42 = vpack.c.bf16 %v3898_v9, %v3894_v16  ;;  %v4672_v62 = vsel %vm469_vm3, %v17901_v3, %v17885_v39  ;;  %v22800_v19 = vld [vmem:[#allocation47_spill] sm:$0xff] }
 0x622   :  { %v4382_v44 = vpop.permute.xlu0 %4381  ;;  %13630 = vmatmul.mubr.msk.f32.vlgmr.msra.gmra.mrb[8].mxu0 %vm1397_vm8, %v3831_v33 }
 0x623   :  { %14085 = vmatprep.subr.bf16.mxu1 %v14084_v42  ;;  %14091 = vmatpush1.bf16.msra.mxu0 %v14090_v40  ;;  %v4399_v46 = vsel %vm358_vm2, %v4382_v44, %v18166_v24  ;;  %v4673_v24 = vsel %vm469_vm3, %v17923_v50, %v17907_v27  ;;  %v4676_v40 = vmul.f32 %v4672_v62, %v22800_v19 }
 0x624   :  { %13629 = vmatmul.mubr.msk.f32.gmra.mrb[14].mxu1 %vm1397_vm8, %v3903_v57  ;;  %4240 = vmatprep.mubr.f32.mxu0 %v22764_v55  ;;  %v4669_v57 = vsel %vm469_vm3, %v17907_v27, %v17915_v21  ;;  %v4409_v39 = vmul.f32 %v4399_v46, %v22757_v4  ;;  %v4677_v27 = vmul.f32 %v4668_v37, %v22760_v26 }
 0x625   :  { %14087 = vmatpush1.bf16.msra.mxu1 %v14086_v28  ;;  %v4368_v0 = vpop.permute.xlu1 %4367  ;;  %4323 = vmatprep.mubr.f32.mxu1 %v22764_v55  ;;  %v4681_v30 = vmul.f32 %v4669_v57, %v22760_v26  ;;  %v4661_v42 = vsel %vm469_vm3, %v17931_v17, %v17923_v50  ;;  %v4664_v46 = vsel %vm469_vm3, %v17893_v6, %v17909_v7 }
 0x626   :  { %v4396_v53 = vsel %vm358_vm2, %v4360_v36, %v4368_v0  ;;  %14097 = vmatprep.subr.bf16.mxu1 %v14096_v48  ;;  %v4374_v32 = vpop.permute.xlu0 %4373  ;;  %13631 = vmatmul.mubr.msk.f32.gmra.mrb[10].mxu0 %vm1397_vm8, %v3832_v35 }
 0x627   :  { %v4414_v49 = vmul.f32 %v4396_v53, %v22756_v11  ;;  %4246 = vmatprep.mubr.f32.mxu0 %v22764_v55  ;;  %v4391_v9 = vsel %vm358_vm2, %v4366_v59, %v4374_v32  ;;  %v4387_v28 = vsel %vm358_vm2, %v4374_v32, %v4382_v44  ;;  %v4660_v59 = vsel %vm469_vm3, %v17909_v7, %v17901_v3  ;;  %v4349_v53 = vld [vmem:[#allocation5 + $0x40] sm:$0xff] }
 0x628   :  { %13634 = vmatmul.mubr.msk.f32.vlgmr.msra.gmra.mrb[8].mxu1 %vm1397_vm8, %v3831_v33  ;;  %v4411_v44 = vmul.f32 %v4391_v9, %v22799_v61  ;;  %v14104_v15 = vpack.c.bf16 %v4681_v30, %v4677_v27  ;;  %v4412_v48 = vmul.f32 %v4387_v28, %v22759_v14  ;;  %v4665_v32 = vsel %vm469_vm3, %v17915_v21, %v17931_v17  ;;  %v22801_v17 = vld [vmem:[#allocation41_spill] sm:$0xff] }
 0x629   :  { %14099 = vmatpush1.bf16.msra.mxu1 %v14098_v18  ;;  %v4384_v41 = vpop.permute.xlu1 %4383  ;;  %4329 = vmatprep.mubr.f32.mxu1 %v22764_v55  ;;  %v14092_v63 = vpack.c.bf16 %v4414_v49, %v4410_v34  ;;  %v4679_v37 = vmul.f32 %v4660_v59, %v22763_v54  ;;  %v4682_v21 = vmul.f32 %v4665_v32, %v22801_v17 }
 0x62a   :  { %v4400_v16 = vsel %vm358_vm2, %v4384_v41, %v4360_v36  ;;  %v18252_v29 = vpop.permute.xlu0 %4632  ;;  %13632 = vmatmul.mubr.msk.f32.gmra.mrb[12].mxu0 %vm1397_vm8, %v3833_v56  ;;  %v4680_v36 = vmul.f32 %v4673_v24, %v22800_v19  ;;  %v4678_v7 = vmul.f32 %v4664_v46, %v22801_v17  ;;  %v4624_v46 = vld [vmem:[#allocation5 + $0x60] sm:$0xff] }
 0x62b   :  { %v4413_v33 = vmul.f32 %v4400_v16, %v22757_v4  ;;  %14093 = vmatprep.subr.bf16.mxu0 %v14092_v63  ;;  %4252 = vmatprep.mubr.f32.mxu0 %v22764_v55 }
 0x62c   :  { %13635 = vmatmul.mubr.msk.f32.gmra.mrb[10].mxu1 %vm1397_vm8, %v3832_v35  ;;  %v14106_v18 = vpack.c.bf16 %v4680_v36, %v4676_v40  ;;  %v14114_v16 = vpack.c.bf16 %v4682_v21, %v4678_v7  ;;  %v22808_v7 = vld [vmem:[#allocation16_spill] sm:$0xff] }
 0x62d   :  { %v14094_v1 = vpack.c.bf16 %v4413_v33, %v4409_v39  ;;  %v4376_v12 = vpop.permute.xlu1 %4375  ;;  %4335 = vmatprep.mubr.f32.mxu1 %v22764_v55  ;;  %v4351_v33 = vld [vmem:[#allocation5 + $0x50] sm:$0xff] }
 0x62e   :  { %v4388_v20 = vsel %vm358_vm2, %v4376_v12, %v4384_v41  ;;  %v4392_v35 = vsel %vm358_vm2, %v4368_v0, %v4376_v12  ;;  %v4641_v3 = vpop.permute.xlu0 %4640  ;;  %13633 = vmatmul.mubr.msk.f32.gmra.mrb[14].mxu0 %vm1397_vm8, %v3834_v23  ;;  %v4683_v0 = vmul.f32 %v4661_v42, %v22763_v54 }
 0x62f   :  { %v4415_v50 = vmul.f32 %v4392_v35, %v22799_v61  ;;  %v4416_v10 = vmul.f32 %v4388_v20, %v22759_v14  ;;  %14095 = vmatpush1.bf16.msra.mxu0 %v14094_v1  ;;  %4493 = vmatprep.mubr.f32.mxu0 %v22764_v55  ;;  %v4670_v41 = vsel %vm469_vm3, %v18252_v29, %v4641_v3  ;;  %v4352_v1 = vld [vmem:[#allocation5 + $0x58] sm:$0xff] }
 0x630   :  { %13636 = vmatmul.mubr.msk.f32.gmra.mrb[12].mxu1 %vm1397_vm8, %v3833_v56  ;;  %14105 = vmatprep.subr.bf16.mxu0 %v14104_v15  ;;  %v4350_v56 = vld [vmem:[#allocation5 + $0x48] sm:$0xff]  ;;  %v14112_v63 = vpack.c.bf16 %v4683_v0, %v4679_v37  ;;  %v4685_v39 = vmul.f32 %v4670_v41, %v22760_v26  ;;  %v22802_v35 = vld [vmem:[#allocation53_spill] sm:$0xff]  ;;  %v22803_v15 = vld [vmem:[#allocation54_spill] sm:$0xff] }
 0x631   :  { %v14102_v57 = vpack.c.bf16 %v4415_v50, %v4411_v44  ;;  %v4635_v34 = vpop.permute.xlu1 %4634  ;;  %4341 = vmatprep.mubr.f32.mxu1 %v22764_v55  ;;  %v14100_v49 = vpack.c.bf16 %v4416_v10, %v4412_v48  ;;  %v14120_v48 = vpack.c.bf16 %v22803_v15, %v22802_v35  ;;  %v22804_v50 = vld [vmem:[#allocation38_spill] sm:$0xff]  ;;  %v22816_v35 = vld [vmem:[#allocation39_spill] sm:$0xff]  ;;  %v22817_v15 = vld [vmem:[#allocation24_spill] sm:$0xff] }
 0x632   :  { %v4657_v62 = vpop.permute.xlu0 %4656  ;;  %13638 = vmatmul.mubr.msk.f32.vlgmr.msra.gmra.mrb[8].mxu0 %vm1397_vm8, %v4349_v53  ;;  %v22806_v37 = vld [vmem:[#allocation26_spill] sm:$0xff] }
 0x633   :  { %14101 = vmatprep.subr.bf16.mxu1 %v14100_v49  ;;  %14107 = vmatpush1.bf16.msra.mxu0 %v14106_v18 }
 0x634   :  { %13637 = vmatmul.mubr.msk.f32.gmra.mrb[14].mxu1 %vm1397_vm8, %v3834_v23  ;;  %4499 = vmatprep.mubr.f32.mxu0 %v22764_v55  ;;  %v4674_v23 = vsel %vm469_vm3, %v4657_v62, %v18252_v29 }
 0x635   :  { %14103 = vmatpush1.bf16.msra.mxu1 %v14102_v57  ;;  %v4643_v6 = vpop.permute.xlu1 %4642  ;;  %4582 = vmatprep.mubr.f32.mxu1 %v22764_v55  ;;  %v4684_v36 = vmul.f32 %v4674_v23, %v22800_v19  ;;  %v4625_v23 = vld [vmem:[#allocation5 + $0x68] sm:$0xff] }
 0x636   :  { %v4671_v30 = vsel %vm469_vm3, %v4635_v34, %v4643_v6  ;;  %14113 = vmatprep.subr.bf16.mxu1 %v14112_v63  ;;  %v4649_v24 = vpop.permute.xlu0 %4648  ;;  %13639 = vmatmul.mubr.msk.f32.gmra.mrb[10].mxu0 %vm1397_vm8, %v4350_v56 }
 0x637   :  { %v4689_v9 = vmul.f32 %v4671_v30, %v22760_v26  ;;  %4505 = vmatprep.mubr.f32.mxu0 %v22764_v55  ;;  %v4666_v42 = vsel %vm469_vm3, %v4641_v3, %v4649_v24  ;;  %v4662_v12 = vsel %vm469_vm3, %v4649_v24, %v4657_v62  ;;  %v22805_v3 = vld [vmem:[#allocation22_spill] sm:$0xff]  ;;  %v22807_v62 = vld [vmem:[#allocation20_spill] sm:$0xff] }
 0x638   :  { %13642 = vmatmul.mubr.msk.f32.vlgmr.msra.gmra.mrb[8].mxu1 %vm1397_vm8, %v4349_v53  ;;  %v5151_v10 = vsel %vm637_vm4, %v22805_v3, %v22804_v50  ;;  %v4686_v53 = vmul.f32 %v4666_v42, %v22801_v17  ;;  %v4687_v57 = vmul.f32 %v4662_v12, %v22763_v54  ;;  %v5150_v21 = vsel %vm637_vm4, %v22807_v62, %v22806_v37  ;;  %v22810_v24 = vld [vmem:[#allocation28_spill] sm:$0xff]  ;;  %v22814_v42 = vld [vmem:[#allocation57_spill] sm:$0xff] }
 0x639   :  { %14115 = vmatpush1.bf16.msra.mxu1 %v14114_v16  ;;  %v4659_v27 = vpop.permute.xlu1 %4658  ;;  %4588 = vmatprep.mubr.f32.mxu1 %v22764_v55  ;;  %v14108_v40 = vpack.c.bf16 %v4689_v9, %v4685_v39  ;;  %v5167_v16 = vmul.f32 %v5151_v10, %v22810_v24  ;;  %v22811_v9 = vld [vmem:[#allocation17_spill] sm:$0xff]  ;;  %v22818_v10 = vld [vmem:[#allocation18_spill] sm:$0xff] }
 0x63a   :  { %v4675_v28 = vsel %vm469_vm3, %v4659_v27, %v4635_v34  ;;  %v18319_v59 = vpop.permute.xlu0 %5947  ;;  %13640 = vmatmul.mubr.msk.f32.gmra.mrb[12].mxu0 %vm1397_vm8, %v4351_v33 }
 0x63b   :  { %v4688_v29 = vmul.f32 %v4675_v28, %v22800_v19  ;;  %14109 = vmatprep.subr.bf16.mxu0 %v14108_v40  ;;  %4511 = vmatprep.mubr.f32.mxu0 %v22764_v55  ;;  %v22812_v40 = vld [vmem:[#allocation19_spill] sm:$0xff] }
 0x63c   :  { %13643 = vmatmul.mubr.msk.f32.gmra.mrb[10].mxu1 %vm1397_vm8, %v4350_v56  ;;  %v22813_v28 = vld [vmem:[#allocation55_spill] sm:$0xff] }
 0x63d   :  { %v14110_v44 = vpack.c.bf16 %v4688_v29, %v4684_v36  ;;  %v4651_v20 = vpop.permute.xlu1 %4650  ;;  %4594 = vmatprep.mubr.f32.mxu1 %v22764_v55  ;;  %v14128_v36 = vpack.c.bf16 %v22813_v28, %v22812_v40  ;;  %v22815_v29 = vld [vmem:[#allocation59_spill] sm:$0xff] }
 0x63e   :  { %v4663_v32 = vsel %vm469_vm3, %v4651_v20, %v4659_v27  ;;  %v4667_v0 = vsel %vm469_vm3, %v4643_v6, %v4651_v20  ;;  %v18342_v18 = vpop.permute.xlu0 %5126  ;;  %13641 = vmatmul.mubr.msk.f32.gmra.mrb[14].mxu0 %vm1397_vm8, %v4352_v1  ;;  %v22809_v6 = vld [vmem:[#allocation56_spill] sm:$0xff]  ;;  %v5163_v27 = vmul.f32 %v5150_v21, %v22810_v24  ;;  %v5159_v12 = vsel %vm637_vm4, %v22815_v29, %v22814_v42 }
 0x63f   :  { %v4690_v34 = vmul.f32 %v4667_v0, %v22801_v17  ;;  %v4691_v49 = vmul.f32 %v4663_v32, %v22763_v54  ;;  %14111 = vmatpush1.bf16.msra.mxu0 %v14110_v44  ;;  %4768 = vmatprep.mubr.f32.mxu0 %v22764_v55  ;;  %v14122_v30 = vpack.c.bf16 %v22809_v6, %v22808_v7  ;;  %v4626_v0 = vld [vmem:[#allocation5 + $0x70] sm:$0xff] }
 0x640   :  { %13644 = vmatmul.mubr.msk.f32.gmra.mrb[12].mxu1 %vm1397_vm8, %v4351_v33  ;;  %14121 = vmatprep.subr.bf16.mxu0 %v14120_v48  ;;  %v14124_v33 = vpack.c.bf16 %v17793_v5, %v22811_v9  ;;  %v14126_v5 = vpack.c.bf16 %v17783_v22, %v17769_v43  ;;  %v5158_v48 = vsel %vm637_vm4, %v22817_v15, %v22816_v35 }
 0x641   :  { %v14118_v56 = vpack.c.bf16 %v4690_v34, %v4686_v53  ;;  %v18354_v41 = vpop.permute.xlu1 %5949  ;;  %4600 = vmatprep.mubr.f32.mxu1 %v22764_v55  ;;  %v14116_v63 = vpack.c.bf16 %v4691_v49, %v4687_v57  ;;  %v22819_v53 = vld [vmem:[#allocation50_spill] sm:$0xff]  ;;  %v14132_v22 = vpack.c.bf16 %v17805_v60, %v17785_v38  ;;  %v5155_v21 = vsel %vm637_vm4, %v22814_v42, %v22805_v3 }
 0x642   :  { %v18360_v39 = vpop.permute.xlu0 %5134  ;;  %13646 = vmatmul.mubr.msk.f32.vlgmr.msra.gmra.mrb[8].mxu0 %vm1397_vm8, %v4624_v46  ;;  %v14130_v32 = vpack.c.bf16 %v22819_v53, %v22818_v10  ;;  %v22820_v57 = vld [vmem:[#allocation34_spill] sm:$0xff]  ;;  %v14134_v38 = vpack.c.bf16 %v17815_v58, %v17795_v25  ;;  %v4901_v10 = vld [vmem:[#allocation5 + $0x90] sm:$0xff] }
 0x643   :  { %14117 = vmatprep.subr.bf16.mxu1 %v14116_v63  ;;  %14123 = vmatpush1.bf16.msra.mxu0 %v14122_v30  ;;  %v5169_v43 = vmul.f32 %v5159_v12, %v22820_v57  ;;  %v5165_v49 = vmul.f32 %v5158_v48, %v22820_v57  ;;  %v4627_v60 = vld [vmem:[#allocation5 + $0x78] sm:$0xff]  ;;  %v22821_v63 = vld [vmem:[#allocation48_spill] sm:$0xff]  ;;  %v5147_v30 = vsel %vm637_vm4, %v22804_v50, %v22815_v29 }
 0x644   :  { %13645 = vmatmul.mubr.msk.f32.gmra.mrb[14].mxu1 %vm1397_vm8, %v4352_v1  ;;  %14125 = vmatprep.subr.bf16.mxu0 %v14124_v33  ;;  %v14136_v1 = vpack.c.bf16 %v5167_v16, %v5163_v27  ;;  %v5166_v7 = vmul.f32 %v5155_v21, %v22821_v63  ;;  %v5146_v33 = vsel %vm637_vm4, %v22806_v37, %v22817_v15  ;;  %v22822_v27 = vld [vmem:[#allocation42_spill] sm:$0xff]  ;;  %v4900_v50 = vld [vmem:[#allocation5 + $0x88] sm:$0xff] }
 0x645   :  { %14119 = vmatpush1.bf16.msra.mxu1 %v14118_v56  ;;  %v18373_v44 = vpop.permute.xlu1 %5957  ;;  %4774 = vmatprep.mubr.f32.mxu0 %v22764_v55  ;;  %v14144_v3 = vpack.c.bf16 %v5169_v43, %v5165_v49  ;;  %v5168_v40 = vmul.f32 %v5147_v30, %v22822_v27  ;;  %v5152_v28 = vsel %vm637_vm4, %v18342_v18, %v18360_v39 }
 0x646   :  { %14129 = vmatprep.subr.bf16.mxu1 %v14128_v36  ;;  %v18378_v20 = vpop.permute.xlu0 %5118  ;;  %13647 = vmatmul.mubr.msk.f32.gmra.mrb[10].mxu0 %vm1397_vm8, %v4625_v23  ;;  %v5164_v36 = vmul.f32 %v5146_v33, %v22822_v27  ;;  %v5171_v15 = vmul.f32 %v5152_v28, %v22810_v24  ;;  %v4902_v33 = vld [vmem:[#allocation5 + $0x98] sm:$0xff] }
 0x647   :  { %4857 = vmatprep.mubr.f32.mxu1 %v22764_v55  ;;  %14127 = vmatpush1.bf16.msra.mxu0 %v14126_v5  ;;  %v22823_v5 = vld [vmem:[#allocation63_spill] sm:$0xff]  ;;  %v5156_v53 = vsel %vm637_vm4, %v18378_v20, %v18342_v18  ;;  %v22829_v18 = vld [vmem:[#allocation65_spill] sm:$0xff] }
 0x648   :  { %13650 = vmatmul.mubr.msk.f32.vlgmr.msra.gmra.mrb[8].mxu1 %vm1397_vm8, %v4624_v46  ;;  %14137 = vmatprep.subr.bf16.mxu0 %v14136_v1  ;;  %v5154_v46 = vsel %vm637_vm4, %v22816_v35, %v22807_v62  ;;  %v4899_v62 = vld [vmem:[#allocation5 + $0x80] sm:$0xff]  ;;  %v14146_v12 = vpack.c.bf16 %v5168_v40, %v5164_v36  ;;  %v22824_v1 = vld [vmem:[#allocation61_spill] sm:$0xff] }
 0x649   :  { %14131 = vmatpush1.bf16.msra.mxu1 %v14130_v32  ;;  %v18392_v34 = vpop.permute.xlu1 %5941  ;;  %4780 = vmatprep.mubr.f32.mxu0 %v22764_v55  ;;  %v5162_v58 = vmul.f32 %v5154_v46, %v22821_v63  ;;  %v5426_v35 = vsel %vm748_vm5, %v22824_v1, %v22823_v5  ;;  %v22825_v32 = vld [vmem:[#allocation58_spill] sm:$0xff] }
 0x64a   :  { %14133 = vmatprep.subr.bf16.mxu1 %v14132_v22  ;;  %v18400_v56 = vpop.permute.xlu0 %5142  ;;  %13648 = vmatmul.mubr.msk.f32.gmra.mrb[12].mxu0 %vm1397_vm8, %v4626_v0  ;;  %v22827_v22 = vld [vmem:[#allocation60_spill] sm:$0xff] }
 0x64b   :  { %4863 = vmatprep.mubr.f32.mxu1 %v22764_v55  ;;  %4786 = vmatprep.mubr.f32.mxu0 %v22764_v55  ;;  %v14138_v16 = vpack.c.bf16 %v5166_v7, %v5162_v58  ;;  %v5148_v30 = vsel %vm637_vm4, %v18360_v39, %v18400_v56  ;;  %v5160_v36 = vsel %vm637_vm4, %v18400_v56, %v18378_v20 }
 0x64c   :  { %13651 = vmatmul.mubr.msk.f32.gmra.mrb[10].mxu1 %vm1397_vm8, %v4625_v23  ;;  %v5172_v20 = vmul.f32 %v5148_v30, %v22822_v27 }
 0x64d   :  { %14135 = vmatpush1.bf16.msra.mxu1 %v14134_v38  ;;  %v18413_v6 = vpop.permute.xlu1 %5965  ;;  %4869 = vmatprep.mubr.f32.mxu1 %v22764_v55 }
 0x64e   :  { %14145 = vmatprep.subr.bf16.mxu1 %v14144_v3  ;;  %v18416_v25 = vpop.permute.xlu0 %5401  ;;  %13649 = vmatmul.mubr.msk.f32.gmra.mrb[14].mxu0 %vm1397_vm8, %v4627_v60  ;;  %v5430_v3 = vsel %vm748_vm5, %v22829_v18, %v22824_v1  ;;  %v22832_v1 = vld [vmem:[#allocation67_spill] sm:$0xff] }
 0x64f   :  { %4979 = vmatprep.mubr.f32.mxu0 %v22764_v55 }
 0x650   :  { %13652 = vmatmul.mubr.msk.f32.gmra.mrb[12].mxu1 %vm1397_vm8, %v4626_v0  ;;  %v22826_v0 = vld [vmem:[#allocation25_spill] sm:$0xff] }
 0x651   :  { %v5129_v9 = vpop.permute.xlu1 %5128  ;;  %4875 = vmatprep.mubr.f32.mxu1 %v22764_v55  ;;  %v5425_v43 = vsel %vm748_vm5, %v22826_v0, %v22825_v32  ;;  %v5429_v49 = vsel %vm748_vm5, %v22827_v22, %v22826_v0 }
 0x652   :  { %v18431_v23 = vpop.permute.xlu0 %5409  ;;  %13654 = vmatmul.mubr.msk.f32.vlgmr.msra.gmra.mrb[8].mxu0 %vm1397_vm8, %v4899_v62 }
 0x653   :  { %14139 = vmatpush1.bf16.msra.mxu0 %v14138_v16  ;;  %4985 = vmatprep.mubr.f32.mxu0 %v22764_v55 }
 0x654   :  { %13653 = vmatmul.mubr.msk.f32.gmra.mrb[14].mxu1 %vm1397_vm8, %v4627_v60  ;;  %v22828_v60 = vld [vmem:[#allocation30_spill] sm:$0xff] }
 0x655   :  { %v5137_v37 = vpop.permute.xlu1 %5136  ;;  %5068 = vmatprep.mubr.f32.mxu1 %v22764_v55  ;;  %v5442_v46 = vmul.f32 %v5426_v35, %v22828_v60  ;;  %v5438_v40 = vmul.f32 %v5425_v43, %v22828_v60  ;;  %v5434_v35 = vsel %vm748_vm5, %v22832_v1, %v22829_v18  ;;  %v5173_v43 = vmul.f32 %v5160_v36, %v22820_v57 }
 0x656   :  { %v5153_v42 = vsel %vm637_vm4, %v5129_v9, %v5137_v37  ;;  %v18445_v29 = vpop.permute.xlu0 %5393  ;;  %13655 = vmatmul.mubr.msk.f32.gmra.mrb[10].mxu0 %vm1397_vm8, %v4900_v50  ;;  %v5427_v36 = vsel %vm748_vm5, %v18416_v25, %v18431_v23 }
 0x657   :  { %v5175_v48 = vmul.f32 %v5153_v42, %v22810_v24  ;;  %4991 = vmatprep.mubr.f32.mxu0 %v22764_v55  ;;  %v22831_v42 = vld [vmem:[#allocation62_spill] sm:$0xff]  ;;  %v14152_v0 = vpack.c.bf16 %v5442_v46, %v5438_v40 }
 0x658   :  { %13658 = vmatmul.mubr.msk.f32.vlgmr.msra.gmra.mrb[8].mxu1 %vm1397_vm8, %v4899_v62  ;;  %v5170_v62 = vmul.f32 %v5156_v53, %v22821_v63  ;;  %v5433_v39 = vsel %vm748_vm5, %v22831_v42, %v22827_v22  ;;  %v5421_v30 = vsel %vm748_vm5, %v22825_v32, %v22831_v42 }
 0x659   :  { %14147 = vmatpush1.bf16.msra.mxu1 %v14146_v12  ;;  %v5121_v21 = vpop.permute.xlu1 %5120  ;;  %5074 = vmatprep.mubr.f32.mxu1 %v22764_v55  ;;  %v14140_v38 = vpack.c.bf16 %v5175_v48, %v5171_v15 }
 0x65a   :  { %v5157_v7 = vsel %vm637_vm4, %v5121_v21, %v5129_v9  ;;  %v18476_v58 = vpop.permute.xlu0 %5417  ;;  %13656 = vmatmul.mubr.msk.f32.gmra.mrb[12].mxu0 %vm1397_vm8, %v4901_v10  ;;  %v22830_v9 = vld [vmem:[#allocation49_spill] sm:$0xff] }
 0x65b   :  { %v5174_v16 = vmul.f32 %v5157_v7, %v22821_v63  ;;  %14141 = vmatprep.subr.bf16.mxu0 %v14140_v38  ;;  %4997 = vmatprep.mubr.f32.mxu0 %v22764_v55  ;;  %v5437_v28 = vmul.f32 %v5429_v49, %v22830_v9  ;;  %v5441_v12 = vmul.f32 %v5430_v3, %v22830_v9  ;;  %v5110_v38 = vld [vmem:[#allocation5 + $0xa0] sm:$0xff] }
 0x65c   :  { %13659 = vmatmul.mubr.msk.f32.gmra.mrb[10].mxu1 %vm1397_vm8, %v4900_v50 }
 0x65d   :  { %v14142_v15 = vpack.c.bf16 %v5174_v16, %v5170_v62  ;;  %v5145_v48 = vpop.permute.xlu1 %5144  ;;  %5080 = vmatprep.mubr.f32.mxu1 %v22764_v55  ;;  %v14154_v46 = vpack.c.bf16 %v5441_v12, %v5437_v28  ;;  %v5111_v28 = vld [vmem:[#allocation5 + $0xa8] sm:$0xff] }
 0x65e   :  { %v5149_v56 = vsel %vm637_vm4, %v5137_v37, %v5145_v48  ;;  %v5161_v50 = vsel %vm637_vm4, %v5145_v48, %v5121_v21  ;;  %v18508_v53 = vpop.permute.xlu0 %5676  ;;  %13657 = vmatmul.mubr.msk.f32.gmra.mrb[14].mxu0 %vm1397_vm8, %v4902_v33  ;;  %v5422_v37 = vsel %vm748_vm5, %v22823_v5, %v22832_v1  ;;  %v22833_v21 = vld [vmem:[#allocation35_spill] sm:$0xff] }
 0x65f   :  { %v5176_v22 = vmul.f32 %v5149_v56, %v22822_v27  ;;  %v5177_v49 = vmul.f32 %v5161_v50, %v22820_v57  ;;  %14143 = vmatpush1.bf16.msra.mxu0 %v14142_v15  ;;  %5254 = vmatprep.mubr.f32.mxu0 %v22764_v55  ;;  %v5444_v18 = vmul.f32 %v5434_v35, %v22833_v21  ;;  %v22834_v5 = vld [vmem:[#allocation43_spill] sm:$0xff]  ;;  %v5112_v50 = vld [vmem:[#allocation5 + $0xb0] sm:$0xff] }
 0x660   :  { %13660 = vmatmul.mubr.msk.f32.gmra.mrb[12].mxu1 %vm1397_vm8, %v4901_v10  ;;  %14153 = vmatprep.subr.bf16.mxu0 %v14152_v0  ;;  %v5440_v16 = vmul.f32 %v5433_v39, %v22833_v21  ;;  %v5443_v10 = vmul.f32 %v5422_v37, %v22834_v5  ;;  %v5439_v42 = vmul.f32 %v5421_v30, %v22834_v5  ;;  %v22835_v15 = vld [vmem:[#allocation71_spill] sm:$0xff]  ;;  %v22839_v37 = vld [vmem:[#allocation68_spill] sm:$0xff] }
 0x661   :  { %v14150_v3 = vpack.c.bf16 %v5176_v22, %v5172_v20  ;;  %v5404_v7 = vpop.permute.xlu1 %5403  ;;  %5086 = vmatprep.mubr.f32.mxu1 %v22764_v55  ;;  %v14148_v62 = vpack.c.bf16 %v5177_v49, %v5173_v43  ;;  %v5446_v20 = vmul.f32 %v5427_v36, %v22828_v60  ;;  %v5431_v0 = vsel %vm748_vm5, %v18445_v29, %v18416_v25  ;;  %v22837_v43 = vld [vmem:[#allocation66_spill] sm:$0xff]  ;;  %v22838_v22 = vld [vmem:[#allocation64_spill] sm:$0xff] }
 0x662   :  { %v18527_v40 = vpop.permute.xlu0 %5684  ;;  %13662 = vmatmul.mubr.msk.f32.vlgmr.msra.gmra.mrb[8].mxu0 %vm1397_vm8, %v5110_v38  ;;  %v14160_v32 = vpack.c.bf16 %v5444_v18, %v5440_v16  ;;  %v14162_v35 = vpack.c.bf16 %v5443_v10, %v5439_v42  ;;  %v5700_v49 = vsel %vm859_vm6, %v22838_v22, %v22837_v43  ;;  %v5704_v18 = vsel %vm859_vm6, %v22839_v37, %v22838_v22  ;;  %v22841_v25 = vld [vmem:[#allocation72_spill] sm:$0xff] }
 0x663   :  { %14149 = vmatprep.subr.bf16.mxu1 %v14148_v62  ;;  %14155 = vmatpush1.bf16.msra.mxu0 %v14154_v46  ;;  %v22840_v62 = vld [vmem:[#allocation31_spill] sm:$0xff]  ;;  %v5445_v36 = vmul.f32 %v5431_v0, %v22830_v9  ;;  %v22844_v0 = vld [vmem:[#allocation73_spill] sm:$0xff] }
 0x664   :  { %13661 = vmatmul.mubr.msk.f32.gmra.mrb[14].mxu1 %vm1397_vm8, %v4902_v33  ;;  %5260 = vmatprep.mubr.f32.mxu0 %v22764_v55  ;;  %v22836_v33 = vld [vmem:[#allocation69_spill] sm:$0xff]  ;;  %v5709_v22 = vsel %vm859_vm6, %v22844_v0, %v22841_v25 }
 0x665   :  { %14151 = vmatpush1.bf16.msra.mxu1 %v14150_v3  ;;  %v5412_v39 = vpop.permute.xlu1 %5411  ;;  %5343 = vmatprep.mubr.f32.mxu1 %v22764_v55  ;;  %v5701_v48 = vsel %vm859_vm6, %v22836_v33, %v22835_v15 }
 0x666   :  { %v5428_v12 = vsel %vm748_vm5, %v5404_v7, %v5412_v39  ;;  %14161 = vmatprep.subr.bf16.mxu1 %v14160_v32  ;;  %v18541_v1 = vpop.permute.xlu0 %5668  ;;  %13663 = vmatmul.mubr.msk.f32.gmra.mrb[10].mxu0 %vm1397_vm8, %v5111_v28  ;;  %v5717_v30 = vmul.f32 %v5701_v48, %v22840_v62  ;;  %v5423_v32 = vsel %vm748_vm5, %v18431_v23, %v18476_v58 }
 0x667   :  { %v5450_v56 = vmul.f32 %v5428_v12, %v22828_v60  ;;  %5266 = vmatprep.mubr.f32.mxu0 %v22764_v55  ;;  %v5113_v12 = vld [vmem:[#allocation5 + $0xb8] sm:$0xff]  ;;  %v5435_v48 = vsel %vm748_vm5, %v18476_v58, %v18445_v29  ;;  %v5447_v29 = vmul.f32 %v5423_v32, %v22834_v5 }
 0x668   :  { %13666 = vmatmul.mubr.msk.f32.vlgmr.msra.gmra.mrb[8].mxu1 %vm1397_vm8, %v5110_v38  ;;  %v5705_v38 = vsel %vm859_vm6, %v22841_v25, %v22836_v33 }
 0x669   :  { %14163 = vmatpush1.bf16.msra.mxu1 %v14162_v35  ;;  %v5396_v46 = vpop.permute.xlu1 %5395  ;;  %5349 = vmatprep.mubr.f32.mxu1 %v22764_v55  ;;  %v14156_v3 = vpack.c.bf16 %v5450_v56, %v5446_v20  ;;  %v5713_v35 = vmul.f32 %v5700_v49, %v22840_v62  ;;  %v22843_v20 = vld [vmem:[#allocation70_spill] sm:$0xff] }
 0x66a   :  { %v5432_v16 = vsel %vm748_vm5, %v5396_v46, %v5404_v7  ;;  %v18572_v10 = vpop.permute.xlu0 %5692  ;;  %13664 = vmatmul.mubr.msk.f32.gmra.mrb[12].mxu0 %vm1397_vm8, %v5112_v50  ;;  %v22842_v7 = vld [vmem:[#allocation51_spill] sm:$0xff]  ;;  %v5708_v23 = vsel %vm859_vm6, %v22843_v20, %v22839_v37 }
 0x66b   :  { %v5449_v42 = vmul.f32 %v5432_v16, %v22830_v9  ;;  %14157 = vmatprep.subr.bf16.mxu0 %v14156_v3  ;;  %5272 = vmatprep.mubr.f32.mxu0 %v22764_v55  ;;  %v5712_v33 = vmul.f32 %v5704_v18, %v22842_v7  ;;  %v5716_v56 = vmul.f32 %v5705_v38, %v22842_v7 }
 0x66c   :  { %13667 = vmatmul.mubr.msk.f32.gmra.mrb[10].mxu1 %vm1397_vm8, %v5111_v28  ;;  %v14168_v3 = vpack.c.bf16 %v5717_v30, %v5713_v35  ;;  %v5448_v38 = vmul.f32 %v5435_v48, %v22833_v21 }
 0x66d   :  { %v14158_v49 = vpack.c.bf16 %v5449_v42, %v5445_v36  ;;  %v5420_v18 = vpop.permute.xlu1 %5419  ;;  %5355 = vmatprep.mubr.f32.mxu1 %v22764_v55  ;;  %v5385_v36 = vld [vmem:[#allocation5 + $0xc0] sm:$0xff]  ;;  %v14170_v30 = vpack.c.bf16 %v5716_v56, %v5712_v33  ;;  %v5702_v33 = vsel %vm859_vm6, %v18508_v53, %v18527_v40 }
 0x66e   :  { %v5424_v58 = vsel %vm748_vm5, %v5412_v39, %v5420_v18  ;;  %v5436_v28 = vsel %vm748_vm5, %v5420_v18, %v5396_v46  ;;  %v18604_v37 = vpop.permute.xlu0 %5955  ;;  %13665 = vmatmul.mubr.msk.f32.gmra.mrb[14].mxu0 %vm1397_vm8, %v5113_v12  ;;  %v5697_v39 = vsel %vm859_vm6, %v22835_v15, %v22844_v0  ;;  %v22845_v46 = vld [vmem:[#allocation36_spill] sm:$0xff] }
 0x66f   :  { %v5451_v25 = vmul.f32 %v5424_v58, %v22834_v5  ;;  %v5452_v16 = vmul.f32 %v5436_v28, %v22833_v21  ;;  %14159 = vmatpush1.bf16.msra.mxu0 %v14158_v49  ;;  %5529 = vmatprep.mubr.f32.mxu0 %v22764_v55  ;;  %v5719_v32 = vmul.f32 %v5709_v22, %v22845_v46  ;;  %v22846_v15 = vld [vmem:[#allocation44_spill] sm:$0xff] }
 0x670   :  { %13668 = vmatmul.mubr.msk.f32.gmra.mrb[12].mxu1 %vm1397_vm8, %v5112_v50  ;;  %14169 = vmatprep.subr.bf16.mxu0 %v14168_v3  ;;  %v5696_v49 = vsel %vm859_vm6, %v22837_v43, %v22843_v20  ;;  %v5715_v18 = vmul.f32 %v5708_v23, %v22845_v46  ;;  %v5718_v0 = vmul.f32 %v5697_v39, %v22846_v15  ;;  %v5386_v50 = vld [vmem:[#allocation5 + $0xc8] sm:$0xff] }
 0x671   :  { %v14166_v42 = vpack.c.bf16 %v5451_v25, %v5447_v29  ;;  %v5679_v35 = vpop.permute.xlu1 %5678  ;;  %5361 = vmatprep.mubr.f32.mxu1 %v22764_v55  ;;  %v14164_v48 = vpack.c.bf16 %v5452_v16, %v5448_v38  ;;  %v5714_v20 = vmul.f32 %v5696_v49, %v22846_v15  ;;  %v5721_v28 = vmul.f32 %v5702_v33, %v22840_v62  ;;  %v5387_v38 = vld [vmem:[#allocation5 + $0xd0] sm:$0xff] }
 0x672   :  { %v5940_v58 = vpop.permute.xlu0 %5939  ;;  %13670 = vmatmul.mubr.msk.f32.vlgmr.msra.gmra.mrb[8].mxu0 %vm1397_vm8, %v5385_v36  ;;  %v14176_v43 = vpack.c.bf16 %v5719_v32, %v5715_v18  ;;  %v5706_v25 = vsel %vm859_vm6, %v18541_v1, %v18508_v53  ;;  %v5976_v16 = vsel %vm970_vm7, %v18354_v41, %v18373_v44  ;;  %v5980_v39 = vsel %vm970_vm7, %v18392_v34, %v18354_v41 }
 0x673   :  { %14165 = vmatprep.subr.bf16.mxu1 %v14164_v48  ;;  %14171 = vmatpush1.bf16.msra.mxu0 %v14170_v30  ;;  %v14178_v29 = vpack.c.bf16 %v5718_v0, %v5714_v20  ;;  %v5979_v53 = vsel %vm970_vm7, %v5940_v58, %v18319_v59  ;;  %v5720_v41 = vmul.f32 %v5706_v25, %v22842_v7 }
 0x674   :  { %13669 = vmatmul.mubr.msk.f32.gmra.mrb[14].mxu1 %vm1397_vm8, %v5113_v12  ;;  %5535 = vmatprep.mubr.f32.mxu0 %v22764_v55  ;;  %v5975_v12 = vsel %vm970_vm7, %v18319_v59, %v18604_v37  ;;  %v5698_v18 = vsel %vm859_vm6, %v18527_v40, %v18572_v10  ;;  %v5388_v59 = vld [vmem:[#allocation5 + $0xd8] sm:$0xff]  ;;  %v5710_v20 = vsel %vm859_vm6, %v18572_v10, %v18541_v1 }
 0x675   :  { %14167 = vmatpush1.bf16.msra.mxu1 %v14166_v42  ;;  %v5687_v23 = vpop.permute.xlu1 %5686  ;;  %5618 = vmatprep.mubr.f32.mxu1 %v22764_v55  ;;  %v22847_v42 = vld [vmem:[#allocation33_spill] sm:$0xff]  ;;  %v5984_v40 = vsel %vm970_vm7, %v18413_v6, %v18392_v34  ;;  %v5723_v25 = vmul.f32 %v5710_v20, %v22845_v46 }
 0x676   :  { %v5703_v56 = vsel %vm859_vm6, %v5679_v35, %v5687_v23  ;;  %14177 = vmatprep.subr.bf16.mxu1 %v14176_v43  ;;  %v5964_v22 = vpop.permute.xlu0 %5963  ;;  %13671 = vmatmul.mubr.msk.f32.gmra.mrb[10].mxu0 %vm1397_vm8, %v5386_v50  ;;  %v5988_v48 = vmul.f32 %v5975_v12, %v22847_v42  ;;  %v5992_v33 = vmul.f32 %v5976_v16, %v22847_v42 }
 0x677   :  { %v5725_v3 = vmul.f32 %v5703_v56, %v22840_v62  ;;  %5541 = vmatprep.mubr.f32.mxu0 %v22764_v55 }
 0x678   :  { %13674 = vmatmul.mubr.msk.f32.vlgmr.msra.gmra.mrb[8].mxu1 %vm1397_vm8, %v5385_v36  ;;  %v14184_v34 = vpack.c.bf16 %v5992_v33, %v5988_v48 }
 0x679   :  { %14179 = vmatpush1.bf16.msra.mxu1 %v14178_v29  ;;  %v5671_v32 = vpop.permute.xlu1 %5670  ;;  %5624 = vmatprep.mubr.f32.mxu1 %v22764_v55  ;;  %v14172_v30 = vpack.c.bf16 %v5725_v3, %v5721_v28  ;;  %v5983_v29 = vsel %vm970_vm7, %v5964_v22, %v5940_v58  ;;  %v5722_v3 = vmul.f32 %v5698_v18, %v22846_v15 }
 0x67a   :  { %v5707_v36 = vsel %vm859_vm6, %v5671_v32, %v5679_v35  ;;  %v18663_v49 = vpop.permute.xlu0 %5951  ;;  %13672 = vmatmul.mubr.msk.f32.gmra.mrb[12].mxu0 %vm1397_vm8, %v5387_v38  ;;  %v22848_v35 = vld [vmem:[#allocation52_spill] sm:$0xff]  ;;  %v5972_v18 = vsel %vm970_vm7, %v18373_v44, %v18413_v6 }
 0x67b   :  { %v5724_v0 = vmul.f32 %v5707_v36, %v22842_v7  ;;  %14173 = vmatprep.subr.bf16.mxu0 %v14172_v30  ;;  %5547 = vmatprep.mubr.f32.mxu0 %v22764_v55  ;;  %v5991_v43 = vmul.f32 %v5980_v39, %v22848_v35  ;;  %v5987_v56 = vmul.f32 %v5979_v53, %v22848_v35  ;;  %v5660_v39 = vld [vmem:[#allocation5 + $0xe0] sm:$0xff]  ;;  %v22849_v30 = vld [vmem:[#allocation37_spill] sm:$0xff] }
 0x67c   :  { %13675 = vmatmul.mubr.msk.f32.gmra.mrb[10].mxu1 %vm1397_vm8, %v5386_v50 }
 0x67d   :  { %v14174_v28 = vpack.c.bf16 %v5724_v0, %v5720_v41  ;;  %v5695_v12 = vpop.permute.xlu1 %5694  ;;  %5630 = vmatprep.mubr.f32.mxu1 %v22764_v55  ;;  %v14186_v48 = vpack.c.bf16 %v5991_v43, %v5987_v56  ;;  %v5994_v0 = vmul.f32 %v5984_v40, %v22849_v30 }
 0x67e   :  { %v5699_v1 = vsel %vm859_vm6, %v5687_v23, %v5695_v12  ;;  %v5711_v10 = vsel %vm859_vm6, %v5695_v12, %v5671_v32  ;;  %v5960_v50 = vpop.permute.xlu0 %5959  ;;  %13673 = vmatmul.mubr.msk.f32.gmra.mrb[14].mxu0 %vm1397_vm8, %v5388_v59  ;;  %v5971_v23 = vsel %vm970_vm7, %v18604_v37, %v5964_v22  ;;  %v5990_v32 = vmul.f32 %v5983_v29, %v22849_v30  ;;  %v22850_v37 = vld [vmem:[#allocation45_spill] sm:$0xff] }
 0x67f   :  { %v5726_v58 = vmul.f32 %v5699_v1, %v22846_v15  ;;  %v5727_v16 = vmul.f32 %v5711_v10, %v22845_v46  ;;  %14175 = vmatpush1.bf16.msra.mxu0 %v14174_v28  ;;  %5804 = vmatprep.mubr.f32.mxu0 %v22764_v55  ;;  %v5989_v22 = vmul.f32 %v5971_v23, %v22850_v37  ;;  %v5662_v28 = vld [vmem:[#allocation5 + $0xf0] sm:$0xff] }
 0x680   :  { %13676 = vmatmul.mubr.msk.f32.gmra.mrb[12].mxu1 %vm1397_vm8, %v5387_v38  ;;  %14185 = vmatprep.subr.bf16.mxu0 %v14184_v34  ;;  %v5661_v38 = vld [vmem:[#allocation5 + $0xe8] sm:$0xff]  ;;  %v5977_v43 = vsel %vm970_vm7, %v18663_v49, %v5960_v50  ;;  %v14192_v20 = vpack.c.bf16 %v5994_v0, %v5990_v32  ;;  %v5993_v44 = vmul.f32 %v5972_v18, %v22850_v37  ;;  %v5935_v0 = vld [vmem:[#allocation5 + $0x100] sm:$0xff] }
 0x681   :  { %v14182_v53 = vpack.c.bf16 %v5726_v58, %v5722_v3  ;;  %v5954_v36 = vpop.permute.xlu1 %5953  ;;  %5636 = vmatprep.mubr.f32.mxu1 %v22764_v55  ;;  %v14180_v41 = vpack.c.bf16 %v5727_v16, %v5723_v25  ;;  %v5996_v29 = vmul.f32 %v5977_v43, %v22847_v42  ;;  %v5663_v16 = vld [vmem:[#allocation5 + $0xf8] sm:$0xff]  ;;  %v5937_v43 = vld [vmem:[#allocation5 + $0x110] sm:$0xff] }
 0x682   :  { %v5944_v33 = vpop.permute.xlu0 %5943  ;;  %13678 = vmatmul.mubr.msk.f32.vlgmr.msra.gmra.mrb[8].mxu0 %vm1397_vm8, %v5660_v39  ;;  %v14194_v56 = vpack.c.bf16 %v5993_v44, %v5989_v22 }
 0x683   :  { %14181 = vmatprep.subr.bf16.mxu1 %v14180_v41  ;;  %14187 = vmatpush1.bf16.msra.mxu0 %v14186_v48  ;;  %v5981_v12 = vsel %vm970_vm7, %v5944_v33, %v18663_v49 }
 0x684   :  { %13677 = vmatmul.mubr.msk.f32.gmra.mrb[14].mxu1 %vm1397_vm8, %v5388_v59  ;;  %5810 = vmatprep.mubr.f32.mxu0 %v22764_v55  ;;  %v5995_v25 = vmul.f32 %v5981_v12, %v22848_v35 }
 0x685   :  { %14183 = vmatpush1.bf16.msra.mxu1 %v14182_v53  ;;  %v5962_v6 = vpop.permute.xlu1 %5961  ;;  %5893 = vmatprep.mubr.f32.mxu1 %v22764_v55 }
 0x686   :  { %v5978_v40 = vsel %vm970_vm7, %v5954_v36, %v5962_v6  ;;  %14193 = vmatprep.subr.bf16.mxu1 %v14192_v20  ;;  %13679 = vmatmul.mubr.msk.f32.gmra.mrb[10].mxu0 %vm1397_vm8, %v5661_v38  ;;  %v5968_v3 = vpop.permute.xlu0 %5967  ;;  %v5938_v20 = vld [vmem:[#allocation5 + $0x118] sm:$0xff] }
 0x687   :  { %v6000_v59 = vmul.f32 %v5978_v40, %v22847_v42  ;;  %5816 = vmatprep.mubr.f32.mxu0 %v22764_v55  ;;  %v5973_v58 = vsel %vm970_vm7, %v5960_v50, %v5968_v3 }
 0x688   :  { %13682 = vmatmul.mubr.msk.f32.vlgmr.msra.gmra.mrb[8].mxu1 %vm1397_vm8, %v5660_v39  ;;  %v5985_v39 = vsel %vm970_vm7, %v5968_v3, %v5944_v33  ;;  %v5997_v48 = vmul.f32 %v5973_v58, %v22850_v37 }
 0x689   :  { %14195 = vmatpush1.bf16.msra.mxu1 %v14194_v56  ;;  %v5946_v1 = vpop.permute.xlu1 %5945  ;;  %5899 = vmatprep.mubr.f32.mxu1 %v22764_v55  ;;  %v14188_v10 = vpack.c.bf16 %v6000_v59, %v5996_v29 }
 0x68a   :  { %v5982_v34 = vsel %vm970_vm7, %v5946_v1, %v5954_v36  ;;  %13680 = vmatmul.mubr.msk.f32.gmra.mrb[12].mxu0 %vm1397_vm8, %v5662_v28  ;;  %v5998_v36 = vmul.f32 %v5985_v39, %v22849_v30 }
 0x68b   :  { %v5999_v49 = vmul.f32 %v5982_v34, %v22848_v35  ;;  %14189 = vmatprep.subr.bf16.mxu0 %v14188_v10  ;;  %5822 = vmatprep.mubr.f32.mxu0 %v22764_v55 }
 0x68c   :  { %13683 = vmatmul.mubr.msk.f32.gmra.mrb[10].mxu1 %vm1397_vm8, %v5661_v38  ;;  %v5936_v38 = vld [vmem:[#allocation5 + $0x108] sm:$0xff] }
 0x68d   :  { %v14190_v23 = vpack.c.bf16 %v5999_v49, %v5995_v25  ;;  %v5970_v32 = vpop.permute.xlu1 %5969  ;;  %5905 = vmatprep.mubr.f32.mxu1 %v22764_v55 }
 0x68e   :  { %v5974_v50 = vsel %vm970_vm7, %v5962_v6, %v5970_v32  ;;  %v5986_v53 = vsel %vm970_vm7, %v5970_v32, %v5946_v1  ;;  %13681 = vmatmul.mubr.msk.f32.gmra.mrb[14].mxu0 %vm1397_vm8, %v5663_v16 }
 0x68f   :  { %v6001_v41 = vmul.f32 %v5974_v50, %v22850_v37  ;;  %v6002_v18 = vmul.f32 %v5986_v53, %v22849_v30  ;;  %14191 = vmatpush1.bf16.msra.mxu0 %v14190_v23  ;;  %6079 = vmatprep.mubr.f32.mxu0 %v22764_v55 }
 0x690   :  { %13684 = vmatmul.mubr.msk.f32.gmra.mrb[12].mxu1 %vm1397_vm8, %v5662_v28 }
 0x691   :  { %v14198_v33 = vpack.c.bf16 %v6001_v41, %v5997_v48  ;;  %5911 = vmatprep.mubr.f32.mxu1 %v22764_v55  ;;  %v14196_v22 = vpack.c.bf16 %v6002_v18, %v5998_v36 }
 0x692   :  { %13686 = vmatmul.mubr.msk.f32.vlgmr.msra.gmra.mrb[8].mxu0 %vm1397_vm8, %v5935_v0 }
 0x693   :  { %14197 = vmatprep.subr.bf16.mxu1 %v14196_v22  ;;  %6085 = vmatprep.mubr.f32.mxu0 %v22764_v55 }
 0x694   :  { %13685 = vmatmul.mubr.msk.f32.gmra.mrb[14].mxu1 %vm1397_vm8, %v5663_v16 }
 0x695   :  { %14199 = vmatpush1.bf16.msra.mxu1 %v14198_v33  ;;  %6168 = vmatprep.mubr.f32.mxu1 %v22764_v55 }
 0x696   :  { %13687 = vmatmul.mubr.msk.f32.gmra.mrb[10].mxu0 %vm1397_vm8, %v5936_v38 }
 0x697   :  { %6091 = vmatprep.mubr.f32.mxu0 %v22764_v55 }
 0x698   :  { %13690 = vmatmul.mubr.msk.f32.vlgmr.msra.gmra.mrb[8].mxu1 %vm1397_vm8, %v5935_v0 }
 0x699   :  { %6174 = vmatprep.mubr.f32.mxu1 %v22764_v55 }
 0x69a   :  { %13688 = vmatmul.mubr.msk.f32.gmra.mrb[12].mxu0 %vm1397_vm8, %v5937_v43 }
 0x69b   :  { %6097 = vmatprep.mubr.f32.mxu0 %v22764_v55 }
 0x69c   :  { %13691 = vmatmul.mubr.msk.f32.gmra.mrb[10].mxu1 %vm1397_vm8, %v5936_v38 }
 0x69d   :  { %6180 = vmatprep.mubr.f32.mxu1 %v22764_v55 }
 0x69e   :  { %13689 = vmatmul.mubr.msk.f32.gmra.mrb[14].mxu0 %vm1397_vm8, %v5938_v20 }
 0x69f   :  { %6614 = vmatprep.mubr.f32.mxu0 %v22764_v55 }
 0x6a0   :  { %13692 = vmatmul.mubr.msk.f32.gmra.mrb[12].mxu1 %vm1397_vm8, %v5937_v43 }
 0x6a1   :  { %6186 = vmatprep.mubr.f32.mxu1 %v22764_v55 }
 0x6a4   :  { %13693 = vmatmul.mubr.msk.f32.gmra.mrb[14].mxu1 %vm1397_vm8, %v5938_v20 }
 0x6a5   :  { %6703 = vmatprep.mubr.f32.mxu1 %v22764_v55 }
 0x765   :  { %v18771_v44 = vpop.f32.mrb[8].mxu0 }
 0x766   :  { %v6229_v6 = vmul.f32 %v18771_v44, %v18771_v44  ;;  %v18775_v40 = vpop.f32.mrb[9].mxu0 }
 0x767   :  { %v6209_v56 = vadd.f32 %v18775_v40, %v18771_v44  ;;  %v6230_v29 = vmul.f32 %v18775_v40, %v18775_v40 }
 0x769   :  { %v6245_v59 = vadd.f32 %v6230_v29, %v6229_v6  ;;  %v18781_v28 = vpop.f32.mrb[10].mxu0 }
 0x76a   :  { %v6233_v12 = vmul.f32 %v18781_v28, %v18781_v28  ;;  %v18785_v3 = vpop.f32.mrb[11].mxu0 }
 0x76b   :  { %v6214_v1 = vadd.f32 %v18785_v3, %v18781_v28  ;;  %v6234_v10 = vmul.f32 %v18785_v3, %v18785_v3  ;;  %v18791_v34 = vpop.f32.mrb[8].mxu1 }
 0x76c   :  { %v6210_v25 = vadd.f32 %v6209_v56, %v18791_v34  ;;  %v6231_v58 = vmul.f32 %v18791_v34, %v18791_v34  ;;  %v18796_v49 = vpop.f32.mrb[9].mxu1 }
 0x76d   :  { %v6250_v16 = vadd.f32 %v6234_v10, %v6233_v12  ;;  %v6232_v39 = vmul.f32 %v18796_v49, %v18796_v49  ;;  %v18800_v23 = vpop.f32.mrb[12].mxu0 }
 0x76e   :  { %v6246_v32 = vadd.f32 %v6245_v59, %v6231_v58  ;;  %v6211_v48 = vadd.f32 %v6210_v25, %v18796_v49  ;;  %v6237_v50 = vmul.f32 %v18800_v23, %v18800_v23  ;;  %v18805_v53 = vpop.f32.mrb[13].mxu0 }
 0x76f   :  { %v6219_v36 = vadd.f32 %v18805_v53, %v18800_v23  ;;  %v6238_v41 = vmul.f32 %v18805_v53, %v18805_v53  ;;  %v18811_v18 = vpop.f32.mrb[10].mxu1 }
 0x770   :  { %v6215_v0 = vadd.f32 %v6214_v1, %v18811_v18  ;;  %v6235_v33 = vmul.f32 %v18811_v18, %v18811_v18  ;;  %6212 = vadd.xlane.f32.xlu0 %v6211_v48  ;;  %v18816_v22 = vpop.f32.mrb[11].mxu1  ;;  %v6247_v38 = vadd.f32 %v6246_v32, %v6232_v39 }
 0x771   :  { %v6255_v43 = vadd.f32 %v6238_v41, %v6237_v50  ;;  %v6236_v20 = vmul.f32 %v18816_v22, %v18816_v22  ;;  %v18820_v6 = vpop.f32.mrb[14].mxu0 }
 0x772   :  { %v6251_v56 = vadd.f32 %v6250_v16, %v6235_v33  ;;  %v6216_v29 = vadd.f32 %v6215_v0, %v18816_v22  ;;  %v6241_v59 = vmul.f32 %v18820_v6, %v18820_v6  ;;  %v18825_v12 = vpop.f32.mrb[15].mxu0 }
 0x773   :  { %v6224_v1 = vadd.f32 %v18825_v12, %v18820_v6  ;;  %v6242_v10 = vmul.f32 %v18825_v12, %v18825_v12  ;;  %v18831_v25 = vpop.f32.mrb[12].mxu1 }
 0x774   :  { %v6220_v58 = vadd.f32 %v6219_v36, %v18831_v25  ;;  %v6239_v16 = vmul.f32 %v18831_v25, %v18831_v25  ;;  %6248 = vadd.xlane.f32.xlu0 %v6247_v38  ;;  %6217 = vadd.xlane.f32.xlu1 %v6216_v29  ;;  %v18836_v39 = vpop.f32.mrb[13].mxu1  ;;  %v6252_v32 = vadd.f32 %v6251_v56, %v6236_v20 }
 0x775   :  { %v6260_v48 = vadd.f32 %v6242_v10, %v6241_v59  ;;  %v6240_v50 = vmul.f32 %v18836_v39, %v18836_v39 }
 0x776   :  { %v6256_v41 = vadd.f32 %v6255_v43, %v6239_v16  ;;  %v6221_v0 = vadd.f32 %v6220_v58, %v18836_v39 }
 0x777   :  { %v18841_v33 = vpop.f32.mrb[14].mxu1 }
 0x778   :  { %v6225_v37 = vadd.f32 %v6224_v1, %v18841_v33  ;;  %v6243_v36 = vmul.f32 %v18841_v33, %v18841_v33  ;;  %6253 = vadd.xlane.f32.xlu0 %v6252_v32  ;;  %6222 = vadd.xlane.f32.xlu1 %v6221_v0  ;;  %v18846_v38 = vpop.f32.mrb[15].mxu1  ;;  %v6257_v29 = vadd.f32 %v6256_v41, %v6240_v50 }
 0x779   :  { %v6244_v20 = vmul.f32 %v18846_v38, %v18846_v38 }
 0x77a   :  { %v6261_v56 = vadd.f32 %v6260_v48, %v6243_v36  ;;  %v6226_v43 = vadd.f32 %v6225_v37, %v18846_v38 }
 0x77c   :  { %6258 = vadd.xlane.f32.xlu1 %v6257_v29  ;;  %6227 = vadd.xlane.f32.xlu0 %v6226_v43  ;;  %v6262_v59 = vadd.f32 %v6261_v56, %v6244_v20 }
 0x780   :  { %6263 = vadd.xlane.f32.xlu0 %v6262_v59 }
 0x7fd   :  { %v6213_v10 = vpop.xlane.xlu0 %6212 }
 0x7fe   :  { %v6265_v1 = vmul.f32 0.001953125, %v6213_v10 }
 0x800   :  { %v6273_v30 = vmul.f32 %v6265_v1, %v6265_v1  ;;  %v6281_v37 = vsub.f32 %v18771_v44, %v6265_v1  ;;  %v6282_v29 = vsub.f32 %v18775_v40, %v6265_v1  ;;  %v6283_v20 = vsub.f32 %v18791_v34, %v6265_v1 }
 0x801   :  { %v6249_v58 = vpop.xlane.xlu0 %6248  ;;  %v6218_v16 = vpop.xlane.xlu1 %6217  ;;  %v6284_v56 = vsub.f32 %v18796_v49, %v6265_v1 }
 0x802   :  { %v6269_v32 = vmul.f32 0.001953125, %v6249_v58  ;;  %v6266_v0 = vmul.f32 0.001953125, %v6218_v16 }
 0x804   :  { %v6277_v35 = vsub.f32 %v6269_v32, %v6273_v30  ;;  %v6274_v15 = vmul.f32 %v6266_v0, %v6266_v0  ;;  %v6287_v34 = vsub.f32 %v18811_v18, %v6266_v0 }
 0x805   :  { %v6254_v42 = vpop.xlane.xlu0 %6253 }
 0x806   :  { %v6297_v50 = vadd.f32 1e-05, %v6277_v35  ;;  %v6270_v41 = vmul.f32 0.001953125, %v6254_v42  ;;  %v6286_v42 = vsub.f32 %v18785_v3, %v6266_v0  ;;  %v6288_v35 = vsub.f32 %v18816_v22, %v6266_v0 }
 0x807   :  { %v6285_v3 = vsub.f32 %v18781_v28, %v6266_v0 }
 0x808   :  { %15278 = vrsqrt.f32 %v6297_v50  ;;  %v6278_v48 = vsub.f32 %v6270_v41, %v6274_v15 }
 0x80a   :  { %v6298_v36 = vadd.f32 1e-05, %v6278_v48 }
 0x80c   :  { %15280 = vrsqrt.f32 %v6298_v36 }
 0x812   :  { %v15279_v43 = vpop.eup %15278 }
 0x813   :  { %v6305_v59 = vmul.f32 %v15279_v43, %v6281_v37  ;;  %v6308_v10 = vmul.f32 %v15279_v43, %v6284_v56  ;;  %v6306_v30 = vmul.f32 %v15279_v43, %v6282_v29  ;;  %v6307_v58 = vmul.f32 %v15279_v43, %v6283_v20 }
 0x815   :  { %v6337_v15 = vmul.f32 1.442695, %v6305_v59  ;;  %v6343_v16 = vmul.f32 1.442695, %v6308_v10  ;;  %v6339_v50 = vmul.f32 1.442695, %v6306_v30 }
 0x816   :  { %v15281_v32 = vpop.eup %15280  ;;  %v6341_v44 = vmul.f32 1.442695, %v6307_v58  ;;  %vm6321_vm11 = vcmp.gt.f32.partialorder %v6305_v59, 0.0  ;;  %vm6324_vm12 = vcmp.gt.f32.partialorder %v6308_v10, 0.0  ;;  %vm6322_vm13 = vcmp.gt.f32.partialorder %v6306_v30, 0.0 }
 0x817   :  { %15282 = vpow2.f32 %v6337_v15  ;;  %v6310_v40 = vmul.f32 %v15281_v32, %v6286_v42  ;;  %v6312_v41 = vmul.f32 %v15281_v32, %v6288_v35  ;;  %v6311_v48 = vmul.f32 %v15281_v32, %v6287_v34 }
 0x818   :  { %15284 = vpow2.f32 %v6343_v16  ;;  %v6309_v36 = vmul.f32 %v15281_v32, %v6285_v3  ;;  %vm6323_vm14 = vcmp.gt.f32.partialorder %v6307_v58, 0.0 }
 0x819   :  { %15286 = vpow2.f32 %v6339_v50  ;;  %v6347_v49 = vmul.f32 1.442695, %v6310_v40  ;;  %v6351_v1 = vmul.f32 1.442695, %v6312_v41  ;;  %v6349_v22 = vmul.f32 1.442695, %v6311_v48 }
 0x81a   :  { %15288 = vpow2.f32 %v6341_v44  ;;  %v6345_v42 = vmul.f32 1.442695, %v6309_v36  ;;  %vm6326_vm15 = vcmp.gt.f32.partialorder %v6310_v40, 0.0  ;;  %vm6328_vm9 = vcmp.gt.f32.partialorder %v6312_v41, 0.0 }
 0x81b   :  { %15290 = vpow2.f32 %v6347_v49  ;;  %vm6327_vm10 = vcmp.gt.f32.partialorder %v6311_v48, 0.0 }
 0x81c   :  { %15292 = vpow2.f32 %v6351_v1 }
 0x81d   :  { %15294 = vpow2.f32 %v6349_v22 }
 0x81e   :  { %15296 = vpow2.f32 %v6345_v42 }
 0x821   :  { %v15283_v37 = vpop.eup %15282 }
 0x822   :  { %v15285_v29 = vpop.eup %15284  ;;  %v13694_v20 = vadd.f32 -1.0, %v15283_v37  ;;  %v6228_v37 = vpop.xlane.xlu0 %6227 }
 0x823   :  { %v15287_v56 = vpop.eup %15286  ;;  %v13697_v43 = vadd.f32 -1.0, %v15285_v29  ;;  %v6268_v42 = vmul.f32 0.001953125, %v6228_v37 }
 0x824   :  { %v15289_v18 = vpop.eup %15288  ;;  %v18859_v35 = vsel %vm6321_vm11, %v6305_v59, %v13694_v20  ;;  %v13695_v15 = vadd.f32 -1.0, %v15287_v56  ;;  %vm6325_vm11 = vcmp.gt.f32.partialorder %v6309_v36, 0.0 }
 0x825   :  { %22851 = vst [vmem:[#allocation53_spill] sm:$0xff] %v18859_v35  ;;  %v15291_v16 = vpop.eup %15290  ;;  %6474 = vrot.lane.b32.xlu1 %v18859_v35, %s15526_s1  ;;  %v18863_v28 = vsel %vm6324_vm12, %v6308_v10, %v13697_v43  ;;  %v13696_v0 = vadd.f32 -1.0, %v15289_v18 }
 0x826   :  { %22852 = vst [vmem:[#allocation54_spill] sm:$0xff] %v18863_v28  ;;  %6498 = vrot.lane.b32.xlu0 %v18863_v28, %s15526_s1  ;;  %v18867_v32 = vsel %vm6322_vm13, %v6306_v30, %v13695_v15  ;;  %v13699_v50 = vadd.f32 -1.0, %v15291_v16  ;;  %v15293_v59 = vpop.eup %15292  ;;  %v6264_v43 = vpop.xlane.xlu0 %6263  ;;  %v6276_v16 = vmul.f32 %v6268_v42, %v6268_v42 }
 0x827   :  { %22853 = vst [vmem:[#allocation38_spill] sm:$0xff] %v18867_v32  ;;  %v18871_v44 = vsel %vm6323_vm14, %v6307_v58, %v13696_v0  ;;  %v13701_v34 = vadd.f32 -1.0, %v15293_v59  ;;  %v15295_v49 = vpop.eup %15294  ;;  %v6272_v18 = vmul.f32 0.001953125, %v6264_v43 }
 0x828   :  { %22854 = vst [vmem:[#allocation22_spill] sm:$0xff] %v18871_v44  ;;  %v18875_v10 = vsel %vm6326_vm15, %v6310_v40, %v13699_v50  ;;  %v13700_v1 = vadd.f32 -1.0, %v15295_v49  ;;  %v15297_v58 = vpop.eup %15296 }
 0x829   :  { %6482 = vrot.lane.b32.xlu1 %v18867_v32, %s15526_s1  ;;  %22855 = vst [vmem:[#allocation26_spill] sm:$0xff] %v18875_v10  ;;  %v18881_v30 = vsel %vm6328_vm9, %v6312_v41, %v13701_v34  ;;  %v13698_v3 = vadd.f32 -1.0, %v15297_v58  ;;  %v6280_v0 = vsub.f32 %v6272_v18, %v6276_v16 }
 0x82a   :  { %6490 = vrot.lane.b32.xlu0 %v18871_v44, %s15526_s1  ;;  %22856 = vst [vmem:[#allocation20_spill] sm:$0xff] %v18881_v30  ;;  %v18887_v40 = vsel %vm6327_vm10, %v6311_v48, %v13700_v1  ;;  %v6223_v48 = vpop.xlane.xlu1 %6222 }
 0x82b   :  { %22857 = vst [vmem:[#allocation16_spill] sm:$0xff] %v18887_v40  ;;  %v18893_v41 = vsel %vm6325_vm11, %v6309_v36, %v13698_v3  ;;  %v6267_v36 = vmul.f32 0.001953125, %v6223_v48  ;;  %v6300_v50 = vadd.f32 1e-05, %v6280_v0 }
 0x82c   :  { %22858 = vst [vmem:[#allocation56_spill] sm:$0xff] %v18893_v41 }
 0x82d   :  { %6484 = vrot.lane.b32.xlu1 %v18875_v10, %s15526_s1  ;;  %v6275_v20 = vmul.f32 %v6267_v36, %v6267_v36  ;;  %v6289_v34 = vsub.f32 %v18800_v23, %v6267_v36  ;;  %v6290_v1 = vsub.f32 %v18805_v53, %v6267_v36  ;;  %v6292_v23 = vsub.f32 %v18836_v39, %v6267_v36 }
 0x82e   :  { %6405 = vrot.lane.b32.xlu0 %v18859_v35, %s15525_s21  ;;  %v6259_v22 = vpop.xlane.xlu1 %6258 }
 0x82f   :  { %v6271_v29 = vmul.f32 0.001953125, %v6259_v22  ;;  %v6293_v22 = vsub.f32 %v18820_v6, %v6268_v42 }
 0x831   :  { %6500 = vrot.lane.b32.xlu1 %v18881_v30, %s15526_s1  ;;  %v6279_v56 = vsub.f32 %v6271_v29, %v6275_v20  ;;  %v6294_v20 = vsub.f32 %v18825_v12, %v6268_v42 }
 0x832   :  { %6413 = vrot.lane.b32.xlu0 %v18867_v32, %s15525_s21 }
 0x833   :  { %v6299_v15 = vadd.f32 1e-05, %v6279_v56  ;;  %v6291_v56 = vsub.f32 %v18831_v25, %v6267_v36  ;;  %v6295_v36 = vsub.f32 %v18841_v33, %v6268_v42 }
 0x835   :  { %6492 = vrot.lane.b32.xlu1 %v18887_v40, %s15526_s1  ;;  %15298 = vrsqrt.f32 %v6299_v15  ;;  %v6296_v15 = vsub.f32 %v18846_v38, %v6268_v42 }
 0x836   :  { %6429 = vrot.lane.b32.xlu0 %v18863_v28, %s15525_s21  ;;  %15300 = vrsqrt.f32 %v6300_v50 }
 0x839   :  { %6407 = vrot.lane.b32.xlu1 %v18893_v41, %s15525_s21 }
 0x83a   :  { %6421 = vrot.lane.b32.xlu0 %v18871_v44, %s15525_s21 }
 0x83d   :  { %6415 = vrot.lane.b32.xlu1 %v18875_v10, %s15525_s21 }
 0x83e   :  { %6923 = vrot.lane.b32.xlu0 %v18859_v35, %s15527_s9 }
 0x83f   :  { %v15299_v59 = vpop.eup %15298 }
 0x840   :  { %v6313_v49 = vmul.f32 %v15299_v59, %v6289_v34  ;;  %v15301_v58 = vpop.eup %15300  ;;  %v6314_v48 = vmul.f32 %v15299_v59, %v6290_v1  ;;  %v6316_v53 = vmul.f32 %v15299_v59, %v6292_v23  ;;  %v6315_v18 = vmul.f32 %v15299_v59, %v6291_v56 }
 0x841   :  { %6431 = vrot.lane.b32.xlu1 %v18881_v30, %s15525_s21  ;;  %v6317_v37 = vmul.f32 %v15301_v58, %v6293_v22  ;;  %v6318_v43 = vmul.f32 %v15301_v58, %v6294_v20  ;;  %v6320_v16 = vmul.f32 %v15301_v58, %v6296_v15  ;;  %v6319_v50 = vmul.f32 %v15301_v58, %v6295_v36 }
 0x842   :  { %6931 = vrot.lane.b32.xlu0 %v18867_v32, %s15527_s9  ;;  %v6353_v3 = vmul.f32 1.442695, %v6313_v49  ;;  %v6355_v29 = vmul.f32 1.442695, %v6314_v48  ;;  %v6359_v39 = vmul.f32 1.442695, %v6316_v53 }
 0x843   :  { %v6361_v6 = vmul.f32 1.442695, %v6317_v37  ;;  %v6363_v12 = vmul.f32 1.442695, %v6318_v43  ;;  %v6357_v25 = vmul.f32 1.442695, %v6315_v18 }
 0x844   :  { %15302 = vpow2.f32 %v6353_v3  ;;  %v6367_v38 = vmul.f32 1.442695, %v6320_v16  ;;  %v6365_v33 = vmul.f32 1.442695, %v6319_v50  ;;  %vm6329_vm12 = vcmp.gt.f32.partialorder %v6313_v49, 0.0 }
 0x845   :  { %6423 = vrot.lane.b32.xlu1 %v18887_v40, %s15525_s21  ;;  %15304 = vpow2.f32 %v6355_v29  ;;  %vm6330_vm13 = vcmp.gt.f32.partialorder %v6314_v48, 0.0  ;;  %vm6333_vm14 = vcmp.gt.f32.partialorder %v6317_v37, 0.0  ;;  %vm6332_vm15 = vcmp.gt.f32.partialorder %v6316_v53, 0.0 }
 0x846   :  { %6947 = vrot.lane.b32.xlu0 %v18863_v28, %s15527_s9  ;;  %15306 = vpow2.f32 %v6361_v6  ;;  %vm6334_vm9 = vcmp.gt.f32.partialorder %v6318_v43, 0.0  ;;  %vm6331_vm10 = vcmp.gt.f32.partialorder %v6315_v18, 0.0  ;;  %vm6336_vm11 = vcmp.gt.f32.partialorder %v6320_v16, 0.0 }
 0x847   :  { %15308 = vpow2.f32 %v6359_v39 }
 0x848   :  { %15310 = vpow2.f32 %v6363_v12 }
 0x849   :  { %6925 = vrot.lane.b32.xlu1 %v18893_v41, %s15527_s9  ;;  %15312 = vpow2.f32 %v6357_v25 }
 0x84a   :  { %6939 = vrot.lane.b32.xlu0 %v18871_v44, %s15527_s9  ;;  %15314 = vpow2.f32 %v6367_v38 }
 0x84b   :  { %15316 = vpow2.f32 %v6365_v33 }
 0x84d   :  { %6933 = vrot.lane.b32.xlu1 %v18875_v10, %s15527_s9 }
 0x84e   :  { %7198 = vrot.lane.b32.xlu0 %v18859_v35, %s15528_s16  ;;  %v15303_v0 = vpop.eup %15302 }
 0x84f   :  { %v13702_v59 = vadd.f32 -1.0, %v15303_v0  ;;  %v15305_v34 = vpop.eup %15304 }
 0x850   :  { %v15307_v42 = vpop.eup %15306  ;;  %v13703_v3 = vadd.f32 -1.0, %v15305_v34 }
 0x851   :  { %6949 = vrot.lane.b32.xlu1 %v18881_v30, %s15527_s9  ;;  %v18993_v1 = vsel %vm6329_vm12, %v6313_v49, %v13702_v59  ;;  %v15309_v58 = vpop.eup %15308  ;;  %v13706_v22 = vadd.f32 -1.0, %v15307_v42  ;;  %vm6335_vm12 = vcmp.gt.f32.partialorder %v6319_v50, 0.0 }
 0x852   :  { %7206 = vrot.lane.b32.xlu0 %v18867_v32, %s15528_s16  ;;  %v15311_v23 = vpop.eup %15310  ;;  %v18999_v29 = vsel %vm6330_vm13, %v6314_v48, %v13703_v3  ;;  %v13705_v20 = vadd.f32 -1.0, %v15309_v58 }
 0x853   :  { %22859 = vst [vmem:[#allocation17_spill] sm:$0xff] %v18999_v29  ;;  %v15313_v56 = vpop.eup %15312  ;;  %v19007_v39 = vsel %vm6333_vm14, %v6317_v37, %v13706_v22  ;;  %v13707_v15 = vadd.f32 -1.0, %v15311_v23 }
 0x854   :  { %v15315_v12 = vpop.eup %15314  ;;  %v19009_v25 = vsel %vm6332_vm15, %v6316_v53, %v13705_v20  ;;  %v13704_v48 = vadd.f32 -1.0, %v15313_v56 }
 0x855   :  { %6941 = vrot.lane.b32.xlu1 %v18887_v40, %s15527_s9  ;;  %v19017_v38 = vsel %vm6334_vm9, %v6318_v43, %v13707_v15  ;;  %v13709_v37 = vadd.f32 -1.0, %v15315_v12  ;;  %v15317_v59 = vpop.eup %15316 }
 0x856   :  { %7222 = vrot.lane.b32.xlu0 %v18863_v28, %s15528_s16  ;;  %v19019_v34 = vsel %vm6331_vm10, %v6315_v18, %v13704_v48  ;;  %v13708_v3 = vadd.f32 -1.0, %v15317_v59 }
 0x857   :  { %v19029_v42 = vsel %vm6336_vm11, %v6320_v16, %v13709_v37 }
 0x858   :  { %v19039_v58 = vsel %vm6335_vm12, %v6319_v50, %v13708_v3 }
 0x859   :  { %7200 = vrot.lane.b32.xlu1 %v18893_v41, %s15528_s16 }
 0x85a   :  { %7214 = vrot.lane.b32.xlu0 %v18871_v44, %s15528_s16 }
 0x85d   :  { %7208 = vrot.lane.b32.xlu1 %v18875_v10, %s15528_s16 }
 0x85e   :  { %7692 = vrot.lane.b32.xlu0 %v18867_v32, %s15529_s10 }
 0x861   :  { %7224 = vrot.lane.b32.xlu1 %v18881_v30, %s15528_s16 }
 0x862   :  { %7700 = vrot.lane.b32.xlu0 %v18871_v44, %s15529_s10 }
 0x865   :  { %7216 = vrot.lane.b32.xlu1 %v18887_v40, %s15528_s16 }
 0x866   :  { %7684 = vrot.lane.b32.xlu0 %v18859_v35, %s15529_s10 }
 0x869   :  { %7694 = vrot.lane.b32.xlu1 %v18875_v10, %s15529_s10 }
 0x86a   :  { %7708 = vrot.lane.b32.xlu0 %v18863_v28, %s15529_s10 }
 0x86d   :  { %7702 = vrot.lane.b32.xlu1 %v18887_v40, %s15529_s10 }
 0x86e   :  { %7967 = vrot.lane.b32.xlu0 %v18867_v32, %s15530_s19 }
 0x871   :  { %7686 = vrot.lane.b32.xlu1 %v18893_v41, %s15529_s10 }
 0x872   :  { %7975 = vrot.lane.b32.xlu0 %v18871_v44, %s15530_s19 }
 0x875   :  { %7710 = vrot.lane.b32.xlu1 %v18881_v30, %s15529_s10 }
 0x876   :  { %7959 = vrot.lane.b32.xlu0 %v18859_v35, %s15530_s19 }
 0x879   :  { %7969 = vrot.lane.b32.xlu1 %v18875_v10, %s15530_s19 }
 0x87a   :  { %7983 = vrot.lane.b32.xlu0 %v18863_v28, %s15530_s19 }
 0x87d   :  { %7977 = vrot.lane.b32.xlu1 %v18887_v40, %s15530_s19 }
 0x87e   :  { %8242 = vrot.lane.b32.xlu0 %v18867_v32, %s15531_s29 }
 0x881   :  { %7961 = vrot.lane.b32.xlu1 %v18893_v41, %s15530_s19 }
 0x882   :  { %8250 = vrot.lane.b32.xlu0 %v18871_v44, %s15531_s29 }
 0x885   :  { %7985 = vrot.lane.b32.xlu1 %v18881_v30, %s15530_s19 }
 0x886   :  { %8234 = vrot.lane.b32.xlu0 %v18859_v35, %s15531_s29 }
 0x889   :  { %8244 = vrot.lane.b32.xlu1 %v18875_v10, %s15531_s29 }
 0x88a   :  { %8258 = vrot.lane.b32.xlu0 %v18863_v28, %s15531_s29 }
 0x88d   :  { %8252 = vrot.lane.b32.xlu1 %v18887_v40, %s15531_s29 }
 0x88e   :  { %6476 = vrot.lane.b32.xlu0 %v18893_v41, %s15526_s1 }
 0x891   :  { %8236 = vrot.lane.b32.xlu1 %v18893_v41, %s15531_s29 }
 0x892   :  { %6478 = vrot.lane.b32.xlu0 %v18993_v1, %s15526_s1 }
 0x895   :  { %8260 = vrot.lane.b32.xlu1 %v18881_v30, %s15531_s29 }
 0x896   :  { %6486 = vrot.lane.b32.xlu0 %v18999_v29, %s15526_s1 }
 0x897   :  { %v19003_v49 = vpop.permute.xlu1 %6474 }
 0x898   :  { %v19005_v6 = vpop.permute.xlu0 %6498 }
 0x899   :  { %6480 = vrot.lane.b32.xlu1 %v19007_v39, %s15526_s1 }
 0x89a   :  { %6502 = vrot.lane.b32.xlu0 %v19009_v25, %s15526_s1 }
 0x89b   :  { %v19015_v36 = vpop.permute.xlu1 %6482 }
 0x89c   :  { %v6491_v0 = vpop.permute.xlu0 %6490 }
 0x89d   :  { %6488 = vrot.lane.b32.xlu1 %v19017_v38, %s15526_s1  ;;  %v6506_v16 = vsel %vm247_vm0, %v6491_v0, %v19005_v6  ;;  %v6510_v22 = vsel %vm247_vm0, %v19015_v36, %v6491_v0 }
 0x89e   :  { %6494 = vrot.lane.b32.xlu0 %v19019_v34, %s15526_s1  ;;  %v6524_v15 = vmul.f32 %v6510_v22, %v22751_v2  ;;  %v6525_v12 = vmul.f32 %v6506_v16, %v22750_v47 }
 0x89f   :  { %v19025_v53 = vpop.permute.xlu1 %6484 }
 0x8a0   :  { %v19027_v33 = vpop.permute.xlu0 %6405 }
 0x8a1   :  { %6504 = vrot.lane.b32.xlu1 %v19029_v42, %s15526_s1 }
 0x8a2   :  { %6409 = vrot.lane.b32.xlu0 %v18993_v1, %s15525_s21 }
 0x8a3   :  { %v19035_v43 = vpop.permute.xlu1 %6500 }
 0x8a4   :  { %v19037_v18 = vpop.permute.xlu0 %6413 }
 0x8a5   :  { %6496 = vrot.lane.b32.xlu1 %v19039_v58, %s15526_s1 }
 0x8a6   :  { %6417 = vrot.lane.b32.xlu0 %v18999_v29, %s15525_s21 }
 0x8a7   :  { %v6493_v23 = vpop.permute.xlu1 %6492 }
 0x8a8   :  { %v6507_v50 = vsel %vm247_vm0, %v6493_v23, %v19035_v43  ;;  %v6511_v20 = vsel %vm247_vm0, %v19025_v53, %v6493_v23  ;;  %v19057_v56 = vpop.permute.xlu0 %6429 }
 0x8a9   :  { %v6528_v48 = vmul.f32 %v6511_v20, %v22751_v2  ;;  %v6529_v0 = vmul.f32 %v6507_v50, %v22750_v47  ;;  %6411 = vrot.lane.b32.xlu1 %v19007_v39, %s15525_s21 }
 0x8aa   :  { %6433 = vrot.lane.b32.xlu0 %v19009_v25, %s15525_s21 }
 0x8ab   :  { %v14210_v37 = vpack.c.bf16 %v6528_v48, %v6524_v15  ;;  %v19067_v59 = vpop.permute.xlu1 %6407  ;;  %v14208_v3 = vpack.c.bf16 %v6529_v0, %v6525_v12 }
 0x8ac   :  { %v19069_v23 = vpop.permute.xlu0 %6421 }
 0x8ad   :  { %6419 = vrot.lane.b32.xlu1 %v19017_v38, %s15525_s21  ;;  %14209 = vmatprep.subr.bf16.mxu1 %v14208_v3 }
 0x8ae   :  { %6425 = vrot.lane.b32.xlu0 %v19019_v34, %s15525_s21  ;;  %14211 = vmatpush1.bf16.msra.mxu1 %v14210_v37 }
 0x8af   :  { %v19075_v16 = vpop.permute.xlu1 %6415 }
 0x8b0   :  { %v19077_v22 = vpop.permute.xlu0 %6923 }
 0x8b1   :  { %6435 = vrot.lane.b32.xlu1 %v19029_v42, %s15525_s21 }
 0x8b2   :  { %6927 = vrot.lane.b32.xlu0 %v18993_v1, %s15527_s9 }
 0x8b3   :  { %v19083_v50 = vpop.permute.xlu1 %6431 }
 0x8b4   :  { %v19085_v20 = vpop.permute.xlu0 %6931 }
 0x8b5   :  { %6427 = vrot.lane.b32.xlu1 %v19039_v58, %s15525_s21 }
 0x8b6   :  { %6935 = vrot.lane.b32.xlu0 %v18999_v29, %s15527_s9 }
 0x8b7   :  { %v19091_v15 = vpop.permute.xlu1 %6423 }
 0x8b8   :  { %v19093_v12 = vpop.permute.xlu0 %6947 }
 0x8b9   :  { %6929 = vrot.lane.b32.xlu1 %v19007_v39, %s15527_s9 }
 0x8ba   :  { %6951 = vrot.lane.b32.xlu0 %v19009_v25, %s15527_s9 }
 0x8bb   :  { %v19099_v48 = vpop.permute.xlu1 %6925 }
 0x8bc   :  { %v19101_v0 = vpop.permute.xlu0 %6939 }
 0x8bd   :  { %6937 = vrot.lane.b32.xlu1 %v19017_v38, %s15527_s9 }
 0x8be   :  { %6943 = vrot.lane.b32.xlu0 %v19019_v34, %s15527_s9 }
 0x8bf   :  { %v19107_v37 = vpop.permute.xlu1 %6933 }
 0x8c0   :  { %v19109_v3 = vpop.permute.xlu0 %7198 }
 0x8c1   :  { %6953 = vrot.lane.b32.xlu1 %v19029_v42, %s15527_s9 }
 0x8c2   :  { %7202 = vrot.lane.b32.xlu0 %v18993_v1, %s15528_s16 }
 0x8c3   :  { %v19115_v46 = vpop.permute.xlu1 %6949 }
 0x8c4   :  { %v19117_v7 = vpop.permute.xlu0 %7206 }
 0x8c5   :  { %6945 = vrot.lane.b32.xlu1 %v19039_v58, %s15527_s9 }
 0x8c6   :  { %7210 = vrot.lane.b32.xlu0 %v18999_v29, %s15528_s16 }
 0x8c7   :  { %v19123_v62 = vpop.permute.xlu1 %6941 }
 0x8c8   :  { %v19125_v5 = vpop.permute.xlu0 %7222 }
 0x8c9   :  { %7204 = vrot.lane.b32.xlu1 %v19007_v39, %s15528_s16 }
 0x8ca   :  { %7226 = vrot.lane.b32.xlu0 %v19009_v25, %s15528_s16 }
 0x8cb   :  { %v19131_v21 = vpop.permute.xlu1 %7200 }
 0x8cc   :  { %v19133_v9 = vpop.permute.xlu0 %7214 }
 0x8cd   :  { %7212 = vrot.lane.b32.xlu1 %v19017_v38, %s15528_s16 }
 0x8ce   :  { %7218 = vrot.lane.b32.xlu0 %v19019_v34, %s15528_s16 }
 0x8cf   :  { %v19139_v60 = vpop.permute.xlu1 %7208 }
 0x8d0   :  { %v19141_v27 = vpop.permute.xlu0 %7692 }
 0x8d1   :  { %22860 = vst [vmem:[#allocation19_spill] sm:$0xff] %v19141_v27  ;;  %7228 = vrot.lane.b32.xlu1 %v19029_v42, %s15528_s16 }
 0x8d2   :  { %8517 = vrot.lane.b32.xlu0 %v18867_v32, %s15532_s6 }
 0x8d3   :  { %v19147_v63 = vpop.permute.xlu1 %7224 }
 0x8d4   :  { %v19149_v57 = vpop.permute.xlu0 %7700 }
 0x8d5   :  { %22861 = vst [vmem:[#allocation55_spill] sm:$0xff] %v19149_v57  ;;  %7220 = vrot.lane.b32.xlu1 %v19039_v58, %s15528_s16 }
 0x8d6   :  { %7696 = vrot.lane.b32.xlu0 %v18999_v29, %s15529_s10 }
 0x8d7   :  { %v19155_v24 = vpop.permute.xlu1 %7216 }
 0x8d8   :  { %22862 = vst [vmem:[#allocation57_spill] sm:$0xff] %v19155_v24  ;;  %v19157_v17 = vpop.permute.xlu0 %7684 }
 0x8d9   :  { %22863 = vst [vmem:[#allocation59_spill] sm:$0xff] %v19157_v17  ;;  %8519 = vrot.lane.b32.xlu1 %v18875_v10, %s15532_s6 }
 0x8da   :  { %7704 = vrot.lane.b32.xlu0 %v19019_v34, %s15529_s10 }
 0x8db   :  { %v19163_v27 = vpop.permute.xlu1 %7694 }
 0x8dc   :  { %22864 = vst [vmem:[#allocation39_spill] sm:$0xff] %v19163_v27  ;;  %v19165_v32 = vpop.permute.xlu0 %7708 }
 0x8dd   :  { %22865 = vst [vmem:[#allocation24_spill] sm:$0xff] %v19165_v32  ;;  %8527 = vrot.lane.b32.xlu1 %v18887_v40, %s15532_s6 }
 0x8de   :  { %7688 = vrot.lane.b32.xlu0 %v18993_v1, %s15529_s10 }
 0x8df   :  { %v19171_v57 = vpop.permute.xlu1 %7702 }
 0x8e0   :  { %22866 = vst [vmem:[#allocation18_spill] sm:$0xff] %v19171_v57  ;;  %v19173_v54 = vpop.permute.xlu0 %7967 }
 0x8e1   :  { %22867 = vst [vmem:[#allocation50_spill] sm:$0xff] %v19173_v54  ;;  %8511 = vrot.lane.b32.xlu1 %v18893_v41, %s15532_s6  ;;  %v22883_v41 = vld [vmem:[#allocation21_spill] sm:$0xff] }
 0x8e2   :  { %7712 = vrot.lane.b32.xlu0 %v19009_v25, %s15529_s10 }
 0x8e3   :  { %v19179_v17 = vpop.permute.xlu1 %7686 }
 0x8e4   :  { %22868 = vst [vmem:[#allocation63_spill] sm:$0xff] %v19179_v17  ;;  %v19181_v27 = vpop.permute.xlu0 %7975 }
 0x8e5   :  { %22869 = vst [vmem:[#allocation61_spill] sm:$0xff] %v19181_v27  ;;  %8535 = vrot.lane.b32.xlu1 %v18881_v30, %s15532_s6 }
 0x8e6   :  { %7971 = vrot.lane.b32.xlu0 %v18999_v29, %s15530_s19 }
 0x8e7   :  { %v19187_v40 = vpop.permute.xlu1 %7710 }
 0x8e8   :  { %22870 = vst [vmem:[#allocation58_spill] sm:$0xff] %v19187_v40  ;;  %v19189_v32 = vpop.permute.xlu0 %7959 }
 0x8e9   :  { %22871 = vst [vmem:[#allocation25_spill] sm:$0xff] %v19189_v32  ;;  %7698 = vrot.lane.b32.xlu1 %v19017_v38, %s15529_s10 }
 0x8ea   :  { %7979 = vrot.lane.b32.xlu0 %v19019_v34, %s15530_s19 }
 0x8eb   :  { %v19195_v54 = vpop.permute.xlu1 %7969 }
 0x8ec   :  { %22872 = vst [vmem:[#allocation60_spill] sm:$0xff] %v19195_v54  ;;  %v19197_v17 = vpop.permute.xlu0 %7983 }
 0x8ed   :  { %22873 = vst [vmem:[#allocation65_spill] sm:$0xff] %v19197_v17  ;;  %7706 = vrot.lane.b32.xlu1 %v19039_v58, %s15529_s10 }
 0x8ee   :  { %7963 = vrot.lane.b32.xlu0 %v18993_v1, %s15530_s19 }
 0x8ef   :  { %v19203_v27 = vpop.permute.xlu1 %7977 }
 0x8f0   :  { %22874 = vst [vmem:[#allocation62_spill] sm:$0xff] %v19203_v27  ;;  %v19205_v40 = vpop.permute.xlu0 %8242 }
 0x8f1   :  { %22875 = vst [vmem:[#allocation67_spill] sm:$0xff] %v19205_v40  ;;  %7690 = vrot.lane.b32.xlu1 %v19007_v39, %s15529_s10 }
 0x8f2   :  { %7987 = vrot.lane.b32.xlu0 %v19009_v25, %s15530_s19 }
 0x8f3   :  { %v19211_v32 = vpop.permute.xlu1 %7961 }
 0x8f4   :  { %22876 = vst [vmem:[#allocation71_spill] sm:$0xff] %v19211_v32  ;;  %v19213_v54 = vpop.permute.xlu0 %8250 }
 0x8f5   :  { %22877 = vst [vmem:[#allocation69_spill] sm:$0xff] %v19213_v54  ;;  %7714 = vrot.lane.b32.xlu1 %v19029_v42, %s15529_s10  ;;  %v6514_v54 = vsel %vm247_vm0, %v19003_v49, %v19015_v36 }
 0x8f6   :  { %8246 = vrot.lane.b32.xlu0 %v18999_v29, %s15531_s29  ;;  %v6523_v57 = vmul.f32 %v6514_v54, %v22883_v41 }
 0x8f7   :  { %v19219_v17 = vpop.permute.xlu1 %7985 }
 0x8f8   :  { %22878 = vst [vmem:[#allocation66_spill] sm:$0xff] %v19219_v17  ;;  %v19221_v27 = vpop.permute.xlu0 %8234 }
 0x8f9   :  { %22879 = vst [vmem:[#allocation64_spill] sm:$0xff] %v19221_v27  ;;  %7973 = vrot.lane.b32.xlu1 %v19017_v38, %s15530_s19  ;;  %v6518_v27 = vsel %vm247_vm0, %v19005_v6, %v19003_v49 }
 0x8fa   :  { %8254 = vrot.lane.b32.xlu0 %v19019_v34, %s15531_s29  ;;  %v6522_v6 = vmul.f32 %v6518_v27, %v22749_v31 }
 0x8fb   :  { %v19227_v40 = vpop.permute.xlu1 %8244 }
 0x8fc   :  { %22880 = vst [vmem:[#allocation68_spill] sm:$0xff] %v19227_v40  ;;  %v19229_v32 = vpop.permute.xlu0 %8258 }
 0x8fd   :  { %22881 = vst [vmem:[#allocation72_spill] sm:$0xff] %v19229_v32  ;;  %7981 = vrot.lane.b32.xlu1 %v19039_v58, %s15530_s19 }
 0x8fe   :  { %8238 = vrot.lane.b32.xlu0 %v18993_v1, %s15531_s29 }
 0x8ff   :  { %v19243_v17 = vpop.permute.xlu1 %8252 }
 0x900   :  { %22882 = vst [vmem:[#allocation70_spill] sm:$0xff] %v19243_v17  ;;  %v6477_v40 = vpop.permute.xlu0 %6476 }
 0x901   :  { %v6515_v32 = vsel %vm247_vm0, %v6477_v40, %v19025_v53  ;;  %v6519_v30 = vsel %vm247_vm0, %v19035_v43, %v6477_v40  ;;  %7965 = vrot.lane.b32.xlu1 %v19007_v39, %s15530_s19  ;;  %v6446_v40 = vsel %vm136_vm1, %v19067_v59, %v19075_v16 }
 0x902   :  { %v6526_v49 = vmul.f32 %v6519_v30, %v22749_v31  ;;  %v6527_v36 = vmul.f32 %v6515_v32, %v22883_v41  ;;  %8262 = vrot.lane.b32.xlu0 %v19009_v25, %s15531_s29 }
 0x903   :  { %v19259_v17 = vpop.permute.xlu1 %8236 }
 0x904   :  { %22884 = vst [vmem:[#allocation73_spill] sm:$0xff] %v19259_v17  ;;  %v14202_v53 = vpack.c.bf16 %v6526_v49, %v6522_v6  ;;  %v6479_v10 = vpop.permute.xlu0 %6478  ;;  %v14200_v24 = vpack.c.bf16 %v6527_v36, %v6523_v57  ;;  %v6445_v49 = vsel %vm136_vm1, %v19027_v33, %v19037_v18  ;;  %v6458_v17 = vmul.f32 %v6446_v40, %v22752_v51 }
 0x905   :  { %7989 = vrot.lane.b32.xlu1 %v19029_v42, %s15530_s19 }
 0x906   :  { %8525 = vrot.lane.b32.xlu0 %v18871_v44, %s15532_s6  ;;  %14201 = vmatprep.subr.bf16.mxu0 %v14200_v24 }
 0x907   :  { %14203 = vmatpush1.bf16.msra.mxu0 %v14202_v53  ;;  %v19265_v54 = vpop.permute.xlu1 %8260 }
 0x908   :  { %22885 = vst [vmem:[#allocation74_spill] sm:$0xff] %v19265_v54  ;;  %v6487_v27 = vpop.permute.xlu0 %6486 }
 0x909   :  { %8248 = vrot.lane.b32.xlu1 %v19017_v38, %s15531_s29  ;;  %v6516_v57 = vsel %vm247_vm0, %v6479_v10, %v6487_v27 }
 0x90a   :  { %8509 = vrot.lane.b32.xlu0 %v18859_v35, %s15532_s6  ;;  %v6531_v36 = vmul.f32 %v6516_v57, %v22883_v41  ;;  %v6454_v35 = vmul.f32 %v6445_v49, %v22752_v51  ;;  %v6450_v57 = vsel %vm136_vm1, %v19083_v50, %v19067_v59  ;;  %v6449_v59 = vsel %vm136_vm1, %v19057_v56, %v19027_v33 }
 0x90b   :  { %v6481_v32 = vpop.permute.xlu1 %6480 }
 0x90c   :  { %v6503_v30 = vpop.permute.xlu0 %6502 }
 0x90d   :  { %8256 = vrot.lane.b32.xlu1 %v19039_v58, %s15531_s29  ;;  %v6520_v54 = vsel %vm247_vm0, %v6503_v30, %v6479_v10 }
 0x90e   :  { %8533 = vrot.lane.b32.xlu0 %v18863_v28, %s15532_s6  ;;  %v6530_v10 = vmul.f32 %v6520_v54, %v22749_v31 }
 0x90f   :  { %v6489_v24 = vpop.permute.xlu1 %6488 }
 0x910   :  { %v6517_v43 = vsel %vm247_vm0, %v6481_v32, %v6489_v24  ;;  %v6495_v6 = vpop.permute.xlu0 %6494 }
 0x911   :  { %v6535_v53 = vmul.f32 %v6517_v43, %v22883_v41  ;;  %8240 = vrot.lane.b32.xlu1 %v19007_v39, %s15531_s29  ;;  %v6508_v54 = vsel %vm247_vm0, %v6495_v6, %v6503_v30 }
 0x912   :  { %8521 = vrot.lane.b32.xlu0 %v18999_v29, %s15532_s6  ;;  %v6512_v29 = vsel %vm247_vm0, %v6487_v27, %v6495_v6  ;;  %v6457_v27 = vmul.f32 %v6450_v57, %v22753_v45 }
 0x913   :  { %v6505_v44 = vpop.permute.xlu1 %6504  ;;  %v14204_v28 = vpack.c.bf16 %v6535_v53, %v6531_v36  ;;  %v14216_v36 = vpack.c.bf16 %v6458_v17, %v6454_v35  ;;  %v6532_v30 = vmul.f32 %v6512_v29, %v22751_v2  ;;  %v6470_v35 = vld [vmem:[#allocation7 + $0x20] sm:$0xff]  ;;  %v6453_v29 = vmul.f32 %v6449_v59, %v22753_v45 }
 0x914   :  { %v6521_v43 = vsel %vm247_vm0, %v6505_v44, %v6481_v32  ;;  %v6410_v41 = vpop.permute.xlu0 %6409  ;;  %v6437_v32 = vsel %vm136_vm1, %v19069_v23, %v19057_v56  ;;  %v6442_v56 = vsel %vm136_vm1, %v19075_v16, %v19091_v15 }
 0x915   :  { %v6534_v40 = vmul.f32 %v6521_v43, %v22749_v31  ;;  %8264 = vrot.lane.b32.xlu1 %v19029_v42, %s15531_s29  ;;  %14205 = vmatprep.subr.bf16.mxu0 %v14204_v28  ;;  %v6438_v28 = vsel %vm136_vm1, %v19091_v15, %v19083_v50  ;;  %v6533_v43 = vmul.f32 %v6508_v54, %v22750_v47 }
 0x916   :  { %8529 = vrot.lane.b32.xlu0 %v19019_v34, %s15532_s6  ;;  %v6460_v16 = vmul.f32 %v6438_v28, %v22755_v13  ;;  %v14218_v54 = vpack.c.bf16 %v6457_v27, %v6453_v29  ;;  %v6471_v28 = vld [vmem:[#allocation7 + $0x28] sm:$0xff]  ;;  %v6967_v29 = vsel %vm358_vm2, %v19093_v12, %v19077_v22 }
 0x917   :  { %v14206_v49 = vpack.c.bf16 %v6534_v40, %v6530_v10  ;;  %v6497_v33 = vpop.permute.xlu1 %6496  ;;  %v6456_v40 = vmul.f32 %v6437_v32, %v22755_v13 }
 0x918   :  { %v6509_v6 = vsel %vm247_vm0, %v6497_v33, %v6505_v44  ;;  %v6513_v53 = vsel %vm247_vm0, %v6489_v24, %v6497_v33  ;;  %v6418_v57 = vpop.permute.xlu0 %6417  ;;  %v6441_v44 = vsel %vm136_vm1, %v19037_v18, %v19069_v23 }
 0x919   :  { %v6536_v50 = vmul.f32 %v6513_v53, %v22751_v2  ;;  %v6537_v17 = vmul.f32 %v6509_v6, %v22750_v47  ;;  %8523 = vrot.lane.b32.xlu1 %v19017_v38, %s15532_s6  ;;  %14207 = vmatpush1.bf16.msra.mxu0 %v14206_v49  ;;  %v6459_v49 = vmul.f32 %v6442_v56, %v22754_v52 }
 0x91a   :  { %8513 = vrot.lane.b32.xlu0 %v18993_v1, %s15532_s6  ;;  %14217 = vmatprep.subr.bf16.mxu0 %v14216_v36  ;;  %v6455_v33 = vmul.f32 %v6441_v44, %v22754_v52  ;;  %v6447_v18 = vsel %vm136_vm1, %v6410_v41, %v6418_v57  ;;  %v14224_v23 = vpack.c.bf16 %v6460_v16, %v6456_v40 }
 0x91b   :  { %v14214_v15 = vpack.c.bf16 %v6536_v50, %v6532_v30  ;;  %v6412_v24 = vpop.permute.xlu1 %6411  ;;  %v14212_v10 = vpack.c.bf16 %v6537_v17, %v6533_v43  ;;  %v6964_v30 = vsel %vm358_vm2, %v19099_v48, %v19107_v37  ;;  %v6462_v6 = vmul.f32 %v6447_v18, %v22752_v51  ;;  %v6472_v43 = vld [vmem:[#allocation7 + $0x30] sm:$0xff] }
 0x91c   :  { %v6434_v59 = vpop.permute.xlu0 %6433  ;;  %13710 = vmatmul.mubr.msk.f32.vlgmr.msra.gmra.mrb[16].mxu0 %vm1397_vm8, %v6470_v35  ;;  %v14226_v27 = vpack.c.bf16 %v6459_v49, %v6455_v33  ;;  %v6963_v17 = vsel %vm358_vm2, %v19077_v22, %v19085_v20  ;;  %v6473_v49 = vld [vmem:[#allocation7 + $0x38] sm:$0xff] }
 0x91d   :  { %8531 = vrot.lane.b32.xlu1 %v19039_v58, %s15532_s6  ;;  %14213 = vmatprep.subr.bf16.mxu1 %v14212_v10  ;;  %v6451_v50 = vsel %vm136_vm1, %v6434_v59, %v6410_v41  ;;  %v6968_v41 = vsel %vm358_vm2, %v19115_v46, %v19099_v48  ;;  %v6972_v48 = vmul.f32 %v6963_v17, %v22756_v11 }
 0x91e   :  { %8537 = vrot.lane.b32.xlu0 %v19009_v25, %s15532_s6  ;;  %14219 = vmatpush1.bf16.msra.mxu0 %v14218_v54  ;;  %v6461_v22 = vmul.f32 %v6451_v50, %v22753_v45  ;;  %v6975_v18 = vmul.f32 %v6968_v41, %v22757_v4  ;;  %v6401_v50 = vld [vmem:[#allocation7] sm:$0xff]  ;;  %v6960_v17 = vsel %vm358_vm2, %v19107_v37, %v19123_v62  ;;  %v6402_v37 = vld [vmem:[#allocation7 + $0x8] sm:$0xff] }
 0x91f   :  { %14215 = vmatpush1.bf16.msra.mxu1 %v14214_v15  ;;  %v6420_v32 = vpop.permute.xlu1 %6419  ;;  %6620 = vmatprep.mubr.f32.mxu0 %v22764_v55  ;;  %v6976_v15 = vmul.f32 %v6964_v30, %v22756_v11  ;;  %v6959_v41 = vsel %vm358_vm2, %v19085_v20, %v19101_v0 }
 0x920   :  { %v6448_v36 = vsel %vm136_vm1, %v6412_v24, %v6420_v32  ;;  %14225 = vmatprep.subr.bf16.mxu1 %v14224_v23  ;;  %v6426_v56 = vpop.permute.xlu0 %6425  ;;  %13711 = vmatmul.mubr.msk.f32.gmra.mrb[18].mxu0 %vm1397_vm8, %v6471_v28  ;;  %v6956_v23 = vsel %vm358_vm2, %v19123_v62, %v19115_v46  ;;  %v6977_v62 = vmul.f32 %v6960_v17, %v22799_v61 }
 0x921   :  { %v6466_v53 = vmul.f32 %v6448_v36, %v22752_v51  ;;  %8515 = vrot.lane.b32.xlu1 %v19007_v39, %s15532_s6  ;;  %6626 = vmatprep.mubr.f32.mxu0 %v22764_v55  ;;  %v6443_v40 = vsel %vm136_vm1, %v6418_v57, %v6426_v56  ;;  %v6439_v33 = vsel %vm136_vm1, %v6426_v56, %v6434_v59 }
 0x922   :  { %13714 = vmatmul.mubr.msk.f32.vlgmr.msra.gmra.mrb[16].mxu1 %vm1397_vm8, %v6470_v35  ;;  %v6955_v57 = vsel %vm358_vm2, %v19101_v0, %v19093_v12  ;;  %v6463_v59 = vmul.f32 %v6443_v40, %v22754_v52  ;;  %v14232_v30 = vpack.c.bf16 %v6976_v15, %v6972_v48  ;;  %v6973_v20 = vmul.f32 %v6959_v41, %v22799_v61 }
 0x923   :  { %14227 = vmatpush1.bf16.msra.mxu1 %v14226_v27  ;;  %v6436_v16 = vpop.permute.xlu1 %6435  ;;  %6709 = vmatprep.mubr.f32.mxu1 %v22764_v55  ;;  %v14220_v44 = vpack.c.bf16 %v6466_v53, %v6462_v6  ;;  %v6464_v6 = vmul.f32 %v6439_v33, %v22755_v13 }
 0x924   :  { %v6452_v35 = vsel %vm136_vm1, %v6436_v16, %v6412_v24  ;;  %v19390_v10 = vpop.permute.xlu0 %6927  ;;  %13712 = vmatmul.mubr.msk.f32.gmra.mrb[20].mxu0 %vm1397_vm8, %v6472_v43  ;;  %v6971_v24 = vmul.f32 %v6967_v29, %v22757_v4 }
 0x925   :  { %v6465_v54 = vmul.f32 %v6452_v35, %v22753_v45  ;;  %8539 = vrot.lane.b32.xlu1 %v19029_v42, %s15532_s6  ;;  %14221 = vmatprep.subr.bf16.mxu0 %v14220_v44  ;;  %v6974_v35 = vmul.f32 %v6955_v57, %v22759_v14 }
 0x926   :  { %13715 = vmatmul.mubr.msk.f32.gmra.mrb[18].mxu1 %vm1397_vm8, %v6471_v28  ;;  %6632 = vmatprep.mubr.f32.mxu0 %v22764_v55  ;;  %v14234_v29 = vpack.c.bf16 %v6975_v18, %v6971_v24  ;;  %v14242_v24 = vpack.c.bf16 %v6977_v62, %v6973_v20  ;;  %v6403_v18 = vld [vmem:[#allocation7 + $0x10] sm:$0xff]  ;;  %v6919_v20 = vld [vmem:[#allocation7 + $0x40] sm:$0xff] }
 0x927   :  { %v14222_v27 = vpack.c.bf16 %v6465_v54, %v6461_v22  ;;  %v6428_v36 = vpop.permute.xlu1 %6427  ;;  %6715 = vmatprep.mubr.f32.mxu1 %v22764_v55 }
 0x928   :  { %v6440_v28 = vsel %vm136_vm1, %v6428_v36, %v6436_v16  ;;  %v6444_v56 = vsel %vm136_vm1, %v6420_v32, %v6428_v36  ;;  %v6936_v12 = vpop.permute.xlu0 %6935  ;;  %13713 = vmatmul.mubr.msk.f32.gmra.mrb[22].mxu0 %vm1397_vm8, %v6473_v49  ;;  %v6978_v32 = vmul.f32 %v6956_v23, %v22759_v14  ;;  %v7242_v36 = vsel %vm469_vm3, %v19125_v5, %v19109_v3 }
 0x929   :  { %v6467_v46 = vmul.f32 %v6444_v56, %v22754_v52  ;;  %v6468_v53 = vmul.f32 %v6440_v28, %v22755_v13  ;;  %14223 = vmatpush1.bf16.msra.mxu0 %v14222_v27  ;;  %6804 = vmatprep.mubr.f32.mxu0 %v22764_v55  ;;  %v7238_v27 = vsel %vm469_vm3, %v19109_v3, %v19117_v7 }
 0x92a   :  { %13716 = vmatmul.mubr.msk.f32.gmra.mrb[20].mxu1 %vm1397_vm8, %v6472_v43  ;;  %14233 = vmatprep.subr.bf16.mxu0 %v14232_v30  ;;  %v6965_v43 = vsel %vm358_vm2, %v19390_v10, %v6936_v12  ;;  %v14240_v40 = vpack.c.bf16 %v6978_v32, %v6974_v35  ;;  %v7246_v17 = vmul.f32 %v7242_v36, %v22800_v19 }
 0x92b   :  { %v14230_v16 = vpack.c.bf16 %v6467_v46, %v6463_v59  ;;  %v6930_v44 = vpop.permute.xlu1 %6929  ;;  %6721 = vmatprep.mubr.f32.mxu1 %v22764_v55  ;;  %v14228_v15 = vpack.c.bf16 %v6468_v53, %v6464_v6  ;;  %v6980_v33 = vmul.f32 %v6965_v43, %v22756_v11 }
 0x92c   :  { %v6952_v22 = vpop.permute.xlu0 %6951  ;;  %13718 = vmatmul.mubr.msk.f32.vlgmr.msra.gmra.mrb[16].mxu0 %vm1397_vm8, %v6401_v50 }
 0x92d   :  { %14229 = vmatprep.subr.bf16.mxu1 %v14228_v15  ;;  %14235 = vmatpush1.bf16.msra.mxu0 %v14234_v29  ;;  %v6969_v23 = vsel %vm358_vm2, %v6952_v22, %v19390_v10  ;;  %v7243_v10 = vsel %vm469_vm3, %v19147_v63, %v19131_v21 }
 0x92e   :  { %13717 = vmatmul.mubr.msk.f32.gmra.mrb[22].mxu1 %vm1397_vm8, %v6473_v49  ;;  %6810 = vmatprep.mubr.f32.mxu0 %v22764_v55  ;;  %v7239_v49 = vsel %vm469_vm3, %v19131_v21, %v19139_v60  ;;  %v6979_v3 = vmul.f32 %v6969_v23, %v22757_v4  ;;  %v7247_v21 = vmul.f32 %v7238_v27, %v22760_v26 }
 0x92f   :  { %14231 = vmatpush1.bf16.msra.mxu1 %v14230_v16  ;;  %v6938_v0 = vpop.permute.xlu1 %6937  ;;  %6893 = vmatprep.mubr.f32.mxu1 %v22764_v55  ;;  %v7251_v56 = vmul.f32 %v7239_v49, %v22760_v26  ;;  %v7250_v29 = vmul.f32 %v7243_v10, %v22800_v19  ;;  %v22886_v16 = vld [vmem:[#allocation57_spill] sm:$0xff]  ;;  %v7234_v23 = vsel %vm469_vm3, %v19117_v7, %v19133_v9 }
 0x930   :  { %v6966_v54 = vsel %vm358_vm2, %v6930_v44, %v6938_v0  ;;  %14241 = vmatprep.subr.bf16.mxu1 %v14240_v40  ;;  %v6944_v48 = vpop.permute.xlu0 %6943  ;;  %13719 = vmatmul.mubr.msk.f32.gmra.mrb[18].mxu0 %vm1397_vm8, %v6402_v37 }
 0x931   :  { %v6984_v57 = vmul.f32 %v6966_v54, %v22756_v11  ;;  %6816 = vmatprep.mubr.f32.mxu0 %v22764_v55  ;;  %v6961_v46 = vsel %vm358_vm2, %v6936_v12, %v6944_v48  ;;  %v6957_v32 = vsel %vm358_vm2, %v6944_v48, %v6952_v22  ;;  %v7230_v12 = vsel %vm469_vm3, %v19133_v9, %v19125_v5 }
 0x932   :  { %13722 = vmatmul.mubr.msk.f32.vlgmr.msra.gmra.mrb[16].mxu1 %vm1397_vm8, %v6401_v50  ;;  %v6404_v50 = vld [vmem:[#allocation7 + $0x18] sm:$0xff]  ;;  %v6981_v35 = vmul.f32 %v6961_v46, %v22799_v61  ;;  %v6982_v43 = vmul.f32 %v6957_v32, %v22759_v14  ;;  %v7235_v54 = vsel %vm469_vm3, %v19139_v60, %v22886_v16 }
 0x933   :  { %14243 = vmatpush1.bf16.msra.mxu1 %v14242_v24  ;;  %v6954_v59 = vpop.permute.xlu1 %6953  ;;  %6899 = vmatprep.mubr.f32.mxu1 %v22764_v55  ;;  %v14236_v28 = vpack.c.bf16 %v6984_v57, %v6980_v33  ;;  %v14250_v24 = vpack.c.bf16 %v7250_v29, %v7246_v17  ;;  %v22888_v60 = vld [vmem:[#allocation41_spill] sm:$0xff] }
 0x934   :  { %v6970_v30 = vsel %vm358_vm2, %v6954_v59, %v6930_v44  ;;  %v19476_v6 = vpop.permute.xlu0 %7202  ;;  %13720 = vmatmul.mubr.msk.f32.gmra.mrb[20].mxu0 %vm1397_vm8, %v6403_v18  ;;  %v7231_v44 = vsel %vm469_vm3, %v22886_v16, %v19147_v63  ;;  %v7248_v9 = vmul.f32 %v7234_v23, %v22888_v60  ;;  %v7194_v23 = vld [vmem:[#allocation7 + $0x60] sm:$0xff] }
 0x935   :  { %v6983_v53 = vmul.f32 %v6970_v30, %v22757_v4  ;;  %14237 = vmatprep.subr.bf16.mxu0 %v14236_v28  ;;  %6822 = vmatprep.mubr.f32.mxu0 %v22764_v55 }
 0x936   :  { %13723 = vmatmul.mubr.msk.f32.gmra.mrb[18].mxu1 %vm1397_vm8, %v6402_v37  ;;  %v14248_v37 = vpack.c.bf16 %v7251_v56, %v7247_v21 }
 0x937   :  { %v14238_v15 = vpack.c.bf16 %v6983_v53, %v6979_v3  ;;  %v6946_v41 = vpop.permute.xlu1 %6945  ;;  %6905 = vmatprep.mubr.f32.mxu1 %v22764_v55 }
 0x938   :  { %v6958_v22 = vsel %vm358_vm2, %v6946_v41, %v6954_v59  ;;  %v6962_v62 = vsel %vm358_vm2, %v6938_v0, %v6946_v41  ;;  %v7211_v5 = vpop.permute.xlu0 %7210  ;;  %13721 = vmatmul.mubr.msk.f32.gmra.mrb[22].mxu0 %vm1397_vm8, %v6404_v50  ;;  %v22887_v0 = vld [vmem:[#allocation32_spill] sm:$0xff]  ;;  %v7252_v59 = vmul.f32 %v7235_v54, %v22888_v60 }
 0x939   :  { %v6985_v63 = vmul.f32 %v6962_v62, %v22799_v61  ;;  %v6986_v40 = vmul.f32 %v6958_v22, %v22759_v14  ;;  %14239 = vmatpush1.bf16.msra.mxu0 %v14238_v15  ;;  %7063 = vmatprep.mubr.f32.mxu0 %v22764_v55  ;;  %v7253_v48 = vmul.f32 %v7231_v44, %v22887_v0  ;;  %v6922_v15 = vld [vmem:[#allocation7 + $0x58] sm:$0xff] }
 0x93a   :  { %13724 = vmatmul.mubr.msk.f32.gmra.mrb[20].mxu1 %vm1397_vm8, %v6403_v18  ;;  %14249 = vmatprep.subr.bf16.mxu0 %v14248_v37  ;;  %v7249_v27 = vmul.f32 %v7230_v12, %v22887_v0  ;;  %v6920_v18 = vld [vmem:[#allocation7 + $0x48] sm:$0xff]  ;;  %v7240_v28 = vsel %vm469_vm3, %v19476_v6, %v7211_v5  ;;  %v14258_v3 = vpack.c.bf16 %v7252_v59, %v7248_v9  ;;  %v22889_v62 = vld [vmem:[#allocation38_spill] sm:$0xff]  ;;  %v22895_v9 = vld [vmem:[#allocation53_spill] sm:$0xff] }
 0x93b   :  { %v14246_v49 = vpack.c.bf16 %v6985_v63, %v6981_v35  ;;  %v7205_v33 = vpop.permute.xlu1 %7204  ;;  %6911 = vmatprep.mubr.f32.mxu1 %v22764_v55  ;;  %v14244_v57 = vpack.c.bf16 %v6986_v40, %v6982_v43  ;;  %v7255_v46 = vmul.f32 %v7240_v28, %v22760_v26  ;;  %v22890_v37 = vld [vmem:[#allocation26_spill] sm:$0xff] }
 0x93c   :  { %v7227_v36 = vpop.permute.xlu0 %7226  ;;  %13726 = vmatmul.mubr.msk.f32.vlgmr.msra.gmra.mrb[16].mxu0 %vm1397_vm8, %v6919_v20  ;;  %v14256_v56 = vpack.c.bf16 %v7253_v48, %v7249_v27  ;;  %v14264_v43 = vpack.c.bf16 %v22890_v37, %v22889_v62  ;;  %v22891_v63 = vld [vmem:[#allocation18_spill] sm:$0xff]  ;;  %v22893_v27 = vld [vmem:[#allocation55_spill] sm:$0xff]  ;;  %v22904_v37 = vld [vmem:[#allocation24_spill] sm:$0xff] }
 0x93d   :  { %14245 = vmatprep.subr.bf16.mxu1 %v14244_v57  ;;  %14251 = vmatpush1.bf16.msra.mxu0 %v14250_v24  ;;  %v7244_v21 = vsel %vm469_vm3, %v7227_v36, %v19476_v6  ;;  %v22903_v62 = vld [vmem:[#allocation59_spill] sm:$0xff] }
 0x93e   :  { %13725 = vmatmul.mubr.msk.f32.gmra.mrb[22].mxu1 %vm1397_vm8, %v6404_v50  ;;  %7069 = vmatprep.mubr.f32.mxu0 %v22764_v55  ;;  %v6921_v50 = vld [vmem:[#allocation7 + $0x50] sm:$0xff]  ;;  %v7254_v16 = vmul.f32 %v7244_v21, %v22800_v19  ;;  %v7195_v21 = vld [vmem:[#allocation7 + $0x68] sm:$0xff] }
 0x93f   :  { %14247 = vmatpush1.bf16.msra.mxu1 %v14246_v49  ;;  %v7213_v7 = vpop.permute.xlu1 %7212  ;;  %7152 = vmatprep.mubr.f32.mxu1 %v22764_v55 }
 0x940   :  { %v7241_v10 = vsel %vm469_vm3, %v7205_v33, %v7213_v7  ;;  %14257 = vmatprep.subr.bf16.mxu1 %v14256_v56  ;;  %v7219_v30 = vpop.permute.xlu0 %7218  ;;  %13727 = vmatmul.mubr.msk.f32.gmra.mrb[18].mxu0 %vm1397_vm8, %v6920_v18 }
 0x941   :  { %v7259_v53 = vmul.f32 %v7241_v10, %v22760_v26  ;;  %7075 = vmatprep.mubr.f32.mxu0 %v22764_v55  ;;  %v7236_v44 = vsel %vm469_vm3, %v7211_v5, %v7219_v30  ;;  %v7232_v41 = vsel %vm469_vm3, %v7219_v30, %v7227_v36  ;;  %v22892_v5 = vld [vmem:[#allocation39_spill] sm:$0xff]  ;;  %v22897_v30 = vld [vmem:[#allocation28_spill] sm:$0xff] }
 0x942   :  { %13730 = vmatmul.mubr.msk.f32.vlgmr.msra.gmra.mrb[16].mxu1 %vm1397_vm8, %v6919_v20  ;;  %v7721_v40 = vsel %vm637_vm4, %v22892_v5, %v22891_v63  ;;  %v7256_v20 = vmul.f32 %v7236_v44, %v22888_v60  ;;  %v7257_v49 = vmul.f32 %v7232_v41, %v22887_v0  ;;  %v22894_v36 = vld [vmem:[#allocation19_spill] sm:$0xff] }
 0x943   :  { %14259 = vmatpush1.bf16.msra.mxu1 %v14258_v3  ;;  %v7229_v17 = vpop.permute.xlu1 %7228  ;;  %7158 = vmatprep.mubr.f32.mxu1 %v22764_v55  ;;  %v14252_v32 = vpack.c.bf16 %v7259_v53, %v7255_v46  ;;  %v7720_v59 = vsel %vm637_vm4, %v22894_v36, %v22893_v27  ;;  %v7737_v3 = vmul.f32 %v7721_v40, %v22897_v30  ;;  %v22898_v53 = vld [vmem:[#allocation17_spill] sm:$0xff]  ;;  %v22901_v44 = vld [vmem:[#allocation63_spill] sm:$0xff]  ;;  %v22905_v40 = vld [vmem:[#allocation22_spill] sm:$0xff] }
 0x944   :  { %v7245_v12 = vsel %vm469_vm3, %v7229_v17, %v7205_v33  ;;  %v19543_v29 = vpop.permute.xlu0 %8517  ;;  %13728 = vmatmul.mubr.msk.f32.gmra.mrb[20].mxu0 %vm1397_vm8, %v6921_v50 }
 0x945   :  { %v7258_v6 = vmul.f32 %v7245_v12, %v22800_v19  ;;  %14253 = vmatprep.subr.bf16.mxu0 %v14252_v32  ;;  %7081 = vmatprep.mubr.f32.mxu0 %v22764_v55  ;;  %v22899_v32 = vld [vmem:[#allocation54_spill] sm:$0xff]  ;;  %v22900_v12 = vld [vmem:[#allocation20_spill] sm:$0xff] }
 0x946   :  { %13731 = vmatmul.mubr.msk.f32.gmra.mrb[18].mxu1 %vm1397_vm8, %v6920_v18 }
 0x947   :  { %v14254_v35 = vpack.c.bf16 %v7258_v6, %v7254_v16  ;;  %v7221_v22 = vpop.permute.xlu1 %7220  ;;  %7164 = vmatprep.mubr.f32.mxu1 %v22764_v55  ;;  %v14272_v16 = vpack.c.bf16 %v22900_v12, %v22899_v32  ;;  %v22902_v6 = vld [vmem:[#allocation58_spill] sm:$0xff] }
 0x948   :  { %v7233_v54 = vsel %vm469_vm3, %v7221_v22, %v7229_v17  ;;  %v7237_v48 = vsel %vm469_vm3, %v7213_v7, %v7221_v22  ;;  %v19566_v24 = vpop.permute.xlu0 %7696  ;;  %13729 = vmatmul.mubr.msk.f32.gmra.mrb[22].mxu0 %vm1397_vm8, %v6922_v15  ;;  %v22896_v7 = vld [vmem:[#allocation56_spill] sm:$0xff]  ;;  %v7733_v17 = vmul.f32 %v7720_v59, %v22897_v30  ;;  %v7729_v41 = vsel %vm637_vm4, %v22902_v6, %v22901_v44 }
 0x949   :  { %v7260_v33 = vmul.f32 %v7237_v48, %v22888_v60  ;;  %v7261_v57 = vmul.f32 %v7233_v54, %v22887_v0  ;;  %14255 = vmatpush1.bf16.msra.mxu0 %v14254_v35  ;;  %7338 = vmatprep.mubr.f32.mxu0 %v22764_v55  ;;  %v14266_v10 = vpack.c.bf16 %v22896_v7, %v22895_v9  ;;  %v7196_v48 = vld [vmem:[#allocation7 + $0x70] sm:$0xff] }
 0x94a   :  { %13732 = vmatmul.mubr.msk.f32.gmra.mrb[20].mxu1 %vm1397_vm8, %v6921_v50  ;;  %14265 = vmatprep.subr.bf16.mxu0 %v14264_v43  ;;  %v14268_v50 = vpack.c.bf16 %v19017_v38, %v22898_v53  ;;  %v14270_v38 = vpack.c.bf16 %v19007_v39, %v18993_v1  ;;  %v7728_v43 = vsel %vm637_vm4, %v22904_v37, %v22903_v62 }
 0x94b   :  { %v14262_v18 = vpack.c.bf16 %v7260_v33, %v7256_v20  ;;  %v19578_v28 = vpop.permute.xlu1 %8519  ;;  %7170 = vmatprep.mubr.f32.mxu1 %v22764_v55  ;;  %v14260_v56 = vpack.c.bf16 %v7261_v57, %v7257_v49  ;;  %v22906_v20 = vld [vmem:[#allocation16_spill] sm:$0xff]  ;;  %v22907_v49 = vld [vmem:[#allocation34_spill] sm:$0xff]  ;;  %v14276_v39 = vpack.c.bf16 %v19029_v42, %v19009_v25  ;;  %v7725_v59 = vsel %vm637_vm4, %v22901_v44, %v22892_v5 }
 0x94c   :  { %v19584_v46 = vpop.permute.xlu0 %7704  ;;  %13734 = vmatmul.mubr.msk.f32.vlgmr.msra.gmra.mrb[16].mxu0 %vm1397_vm8, %v7194_v23  ;;  %v14274_v54 = vpack.c.bf16 %v22906_v20, %v22905_v40  ;;  %v7739_v1 = vmul.f32 %v7729_v41, %v22907_v49  ;;  %v7735_v57 = vmul.f32 %v7728_v43, %v22907_v49  ;;  %v14278_v25 = vpack.c.bf16 %v19039_v58, %v19019_v34  ;;  %v7197_v42 = vld [vmem:[#allocation7 + $0x78] sm:$0xff]  ;;  %v7471_v40 = vld [vmem:[#allocation7 + $0x90] sm:$0xff] }
 0x94d   :  { %14261 = vmatprep.subr.bf16.mxu1 %v14260_v56  ;;  %14267 = vmatpush1.bf16.msra.mxu0 %v14266_v10  ;;  %v22908_v56 = vld [vmem:[#allocation48_spill] sm:$0xff]  ;;  %v7717_v10 = vsel %vm637_vm4, %v22891_v63, %v22902_v6  ;;  %v7722_v12 = vsel %vm637_vm4, %v19566_v24, %v19584_v46 }
 0x94e   :  { %13733 = vmatmul.mubr.msk.f32.gmra.mrb[22].mxu1 %vm1397_vm8, %v6922_v15  ;;  %14269 = vmatprep.subr.bf16.mxu0 %v14268_v50  ;;  %v14280_v15 = vpack.c.bf16 %v7737_v3, %v7733_v17  ;;  %v14288_v5 = vpack.c.bf16 %v7739_v1, %v7735_v57  ;;  %v7736_v9 = vmul.f32 %v7725_v59, %v22908_v56  ;;  %v22909_v17 = vld [vmem:[#allocation42_spill] sm:$0xff]  ;;  %v7470_v63 = vld [vmem:[#allocation7 + $0x88] sm:$0xff] }
 0x94f   :  { %14263 = vmatpush1.bf16.msra.mxu1 %v14262_v18  ;;  %v19597_v35 = vpop.permute.xlu1 %8527  ;;  %7344 = vmatprep.mubr.f32.mxu0 %v22764_v55  ;;  %v7716_v50 = vsel %vm637_vm4, %v22893_v27, %v22904_v37  ;;  %v7738_v32 = vmul.f32 %v7717_v10, %v22909_v17  ;;  %v7741_v37 = vmul.f32 %v7722_v12, %v22897_v30 }
 0x950   :  { %14273 = vmatprep.subr.bf16.mxu1 %v14272_v16  ;;  %v19602_v22 = vpop.permute.xlu0 %7688  ;;  %13735 = vmatmul.mubr.msk.f32.gmra.mrb[18].mxu0 %vm1397_vm8, %v7195_v21  ;;  %v7734_v16 = vmul.f32 %v7716_v50, %v22909_v17  ;;  %v7472_v50 = vld [vmem:[#allocation7 + $0x98] sm:$0xff] }
 0x951   :  { %7427 = vmatprep.mubr.f32.mxu1 %v22764_v55  ;;  %14271 = vmatpush1.bf16.msra.mxu0 %v14270_v38  ;;  %v22910_v38 = vld [vmem:[#allocation62_spill] sm:$0xff]  ;;  %v7726_v20 = vsel %vm637_vm4, %v19602_v22, %v19566_v24  ;;  %v22916_v24 = vld [vmem:[#allocation71_spill] sm:$0xff] }
 0x952   :  { %13738 = vmatmul.mubr.msk.f32.vlgmr.msra.gmra.mrb[16].mxu1 %vm1397_vm8, %v7194_v23  ;;  %14281 = vmatprep.subr.bf16.mxu0 %v14280_v15  ;;  %v7724_v23 = vsel %vm637_vm4, %v22903_v62, %v22894_v36  ;;  %v7469_v36 = vld [vmem:[#allocation7 + $0x80] sm:$0xff]  ;;  %v14290_v41 = vpack.c.bf16 %v7738_v32, %v7734_v16  ;;  %v22911_v15 = vld [vmem:[#allocation60_spill] sm:$0xff] }
 0x953   :  { %14275 = vmatpush1.bf16.msra.mxu1 %v14274_v54  ;;  %v19616_v33 = vpop.permute.xlu1 %8511  ;;  %7350 = vmatprep.mubr.f32.mxu0 %v22764_v55  ;;  %v7732_v58 = vmul.f32 %v7724_v23, %v22908_v56  ;;  %v7996_v62 = vsel %vm748_vm5, %v22911_v15, %v22910_v38  ;;  %v22912_v54 = vld [vmem:[#allocation61_spill] sm:$0xff] }
 0x954   :  { %14277 = vmatprep.subr.bf16.mxu1 %v14276_v39  ;;  %v19624_v18 = vpop.permute.xlu0 %7712  ;;  %13736 = vmatmul.mubr.msk.f32.gmra.mrb[20].mxu0 %vm1397_vm8, %v7196_v48  ;;  %v22914_v39 = vld [vmem:[#allocation25_spill] sm:$0xff] }
 0x955   :  { %7433 = vmatprep.mubr.f32.mxu1 %v22764_v55  ;;  %7356 = vmatprep.mubr.f32.mxu0 %v22764_v55  ;;  %v14282_v3 = vpack.c.bf16 %v7736_v9, %v7732_v58  ;;  %v7718_v10 = vsel %vm637_vm4, %v19584_v46, %v19624_v18  ;;  %v7730_v16 = vsel %vm637_vm4, %v19624_v18, %v19602_v22 }
 0x956   :  { %13739 = vmatmul.mubr.msk.f32.gmra.mrb[18].mxu1 %vm1397_vm8, %v7195_v21  ;;  %v7742_v22 = vmul.f32 %v7718_v10, %v22909_v17 }
 0x957   :  { %14279 = vmatpush1.bf16.msra.mxu1 %v14278_v25  ;;  %v19637_v7 = vpop.permute.xlu1 %8535  ;;  %7439 = vmatprep.mubr.f32.mxu1 %v22764_v55 }
 0x958   :  { %14289 = vmatprep.subr.bf16.mxu1 %v14288_v5  ;;  %v19640_v34 = vpop.permute.xlu0 %7971  ;;  %13737 = vmatmul.mubr.msk.f32.gmra.mrb[22].mxu0 %vm1397_vm8, %v7197_v42  ;;  %v8000_v5 = vsel %vm748_vm5, %v22916_v24, %v22911_v15  ;;  %v22919_v15 = vld [vmem:[#allocation66_spill] sm:$0xff] }
 0x959   :  { %7549 = vmatprep.mubr.f32.mxu0 %v22764_v55 }
 0x95a   :  { %13740 = vmatmul.mubr.msk.f32.gmra.mrb[20].mxu1 %vm1397_vm8, %v7196_v48  ;;  %v22913_v48 = vld [vmem:[#allocation50_spill] sm:$0xff] }
 0x95b   :  { %v7699_v53 = vpop.permute.xlu1 %7698  ;;  %7445 = vmatprep.mubr.f32.mxu1 %v22764_v55  ;;  %v7995_v1 = vsel %vm748_vm5, %v22913_v48, %v22912_v54  ;;  %v7999_v57 = vsel %vm748_vm5, %v22914_v39, %v22913_v48 }
 0x95c   :  { %v19655_v21 = vpop.permute.xlu0 %7979  ;;  %13742 = vmatmul.mubr.msk.f32.vlgmr.msra.gmra.mrb[16].mxu0 %vm1397_vm8, %v7469_v36 }
 0x95d   :  { %14283 = vmatpush1.bf16.msra.mxu0 %v14282_v3  ;;  %7555 = vmatprep.mubr.f32.mxu0 %v22764_v55 }
 0x95e   :  { %13741 = vmatmul.mubr.msk.f32.gmra.mrb[22].mxu1 %vm1397_vm8, %v7197_v42  ;;  %v22915_v42 = vld [vmem:[#allocation30_spill] sm:$0xff] }
 0x95f   :  { %v7707_v27 = vpop.permute.xlu1 %7706  ;;  %7638 = vmatprep.mubr.f32.mxu1 %v22764_v55  ;;  %v8012_v23 = vmul.f32 %v7996_v62, %v22915_v42  ;;  %v8008_v32 = vmul.f32 %v7995_v1, %v22915_v42  ;;  %v8004_v62 = vsel %vm748_vm5, %v22919_v15, %v22916_v24  ;;  %v7743_v1 = vmul.f32 %v7730_v16, %v22907_v49 }
 0x960   :  { %v7723_v44 = vsel %vm637_vm4, %v7699_v53, %v7707_v27  ;;  %v19669_v6 = vpop.permute.xlu0 %7963  ;;  %13743 = vmatmul.mubr.msk.f32.gmra.mrb[18].mxu0 %vm1397_vm8, %v7470_v63  ;;  %v7997_v16 = vsel %vm748_vm5, %v19640_v34, %v19655_v21 }
 0x961   :  { %v7745_v43 = vmul.f32 %v7723_v44, %v22897_v30  ;;  %7561 = vmatprep.mubr.f32.mxu0 %v22764_v55  ;;  %v22918_v44 = vld [vmem:[#allocation65_spill] sm:$0xff]  ;;  %v14296_v48 = vpack.c.bf16 %v8012_v23, %v8008_v32 }
 0x962   :  { %13746 = vmatmul.mubr.msk.f32.vlgmr.msra.gmra.mrb[16].mxu1 %vm1397_vm8, %v7469_v36  ;;  %v7740_v36 = vmul.f32 %v7726_v20, %v22908_v56  ;;  %v8003_v46 = vsel %vm748_vm5, %v22918_v44, %v22914_v39  ;;  %v7991_v10 = vsel %vm748_vm5, %v22912_v54, %v22918_v44 }
 0x963   :  { %14291 = vmatpush1.bf16.msra.mxu1 %v14290_v41  ;;  %v7691_v59 = vpop.permute.xlu1 %7690  ;;  %7644 = vmatprep.mubr.f32.mxu1 %v22764_v55  ;;  %v14284_v25 = vpack.c.bf16 %v7745_v43, %v7741_v37 }
 0x964   :  { %v7727_v9 = vsel %vm637_vm4, %v7691_v59, %v7699_v53  ;;  %v19700_v58 = vpop.permute.xlu0 %7987  ;;  %13744 = vmatmul.mubr.msk.f32.gmra.mrb[20].mxu0 %vm1397_vm8, %v7471_v40  ;;  %v22917_v53 = vld [vmem:[#allocation49_spill] sm:$0xff] }
 0x965   :  { %v7744_v3 = vmul.f32 %v7727_v9, %v22908_v56  ;;  %14285 = vmatprep.subr.bf16.mxu0 %v14284_v25  ;;  %7567 = vmatprep.mubr.f32.mxu0 %v22764_v55  ;;  %v8007_v12 = vmul.f32 %v7999_v57, %v22917_v53  ;;  %v8011_v41 = vmul.f32 %v8000_v5, %v22917_v53  ;;  %v7680_v25 = vld [vmem:[#allocation7 + $0xa0] sm:$0xff] }
 0x966   :  { %13747 = vmatmul.mubr.msk.f32.gmra.mrb[18].mxu1 %vm1397_vm8, %v7470_v63 }
 0x967   :  { %v14286_v37 = vpack.c.bf16 %v7744_v3, %v7740_v36  ;;  %v7715_v43 = vpop.permute.xlu1 %7714  ;;  %7650 = vmatprep.mubr.f32.mxu1 %v22764_v55  ;;  %v14298_v23 = vpack.c.bf16 %v8011_v41, %v8007_v12  ;;  %v7681_v12 = vld [vmem:[#allocation7 + $0xa8] sm:$0xff] }
 0x968   :  { %v7719_v18 = vsel %vm637_vm4, %v7707_v27, %v7715_v43  ;;  %v7731_v63 = vsel %vm637_vm4, %v7715_v43, %v7691_v59  ;;  %v19732_v20 = vpop.permute.xlu0 %8246  ;;  %13745 = vmatmul.mubr.msk.f32.gmra.mrb[22].mxu0 %vm1397_vm8, %v7472_v50  ;;  %v7992_v27 = vsel %vm748_vm5, %v22910_v38, %v22919_v15  ;;  %v22920_v59 = vld [vmem:[#allocation35_spill] sm:$0xff] }
 0x969   :  { %v7746_v39 = vmul.f32 %v7719_v18, %v22909_v17  ;;  %v7747_v57 = vmul.f32 %v7731_v63, %v22907_v49  ;;  %14287 = vmatpush1.bf16.msra.mxu0 %v14286_v37  ;;  %7824 = vmatprep.mubr.f32.mxu0 %v22764_v55  ;;  %v8014_v24 = vmul.f32 %v8004_v62, %v22920_v59  ;;  %v22921_v38 = vld [vmem:[#allocation43_spill] sm:$0xff]  ;;  %v22922_v37 = vld [vmem:[#allocation70_spill] sm:$0xff]  ;;  %v7682_v63 = vld [vmem:[#allocation7 + $0xb0] sm:$0xff] }
 0x96a   :  { %13748 = vmatmul.mubr.msk.f32.gmra.mrb[20].mxu1 %vm1397_vm8, %v7471_v40  ;;  %14297 = vmatprep.subr.bf16.mxu0 %v14296_v48  ;;  %v8010_v3 = vmul.f32 %v8003_v46, %v22920_v59  ;;  %v8013_v40 = vmul.f32 %v7992_v27, %v22921_v38  ;;  %v8009_v44 = vmul.f32 %v7991_v10, %v22921_v38  ;;  %v22926_v27 = vld [vmem:[#allocation64_spill] sm:$0xff] }
 0x96b   :  { %v14294_v5 = vpack.c.bf16 %v7746_v39, %v7742_v22  ;;  %v7974_v9 = vpop.permute.xlu1 %7973  ;;  %7656 = vmatprep.mubr.f32.mxu1 %v22764_v55  ;;  %v14292_v36 = vpack.c.bf16 %v7747_v57, %v7743_v1  ;;  %v8016_v22 = vmul.f32 %v7997_v16, %v22915_v42  ;;  %v8001_v48 = vsel %vm748_vm5, %v19669_v6, %v19640_v34  ;;  %v22924_v1 = vld [vmem:[#allocation69_spill] sm:$0xff]  ;;  %v22925_v39 = vld [vmem:[#allocation67_spill] sm:$0xff] }
 0x96c   :  { %v19751_v32 = vpop.permute.xlu0 %8254  ;;  %13750 = vmatmul.mubr.msk.f32.vlgmr.msra.gmra.mrb[16].mxu0 %vm1397_vm8, %v7680_v25  ;;  %v14304_v54 = vpack.c.bf16 %v8014_v24, %v8010_v3  ;;  %v14306_v62 = vpack.c.bf16 %v8013_v40, %v8009_v44  ;;  %v8270_v57 = vsel %vm859_vm6, %v22925_v39, %v22924_v1  ;;  %v8274_v24 = vsel %vm859_vm6, %v22926_v27, %v22925_v39  ;;  %v22928_v34 = vld [vmem:[#allocation73_spill] sm:$0xff] }
 0x96d   :  { %14293 = vmatprep.subr.bf16.mxu1 %v14292_v36  ;;  %14299 = vmatpush1.bf16.msra.mxu0 %v14298_v23  ;;  %v22927_v36 = vld [vmem:[#allocation31_spill] sm:$0xff]  ;;  %v8015_v16 = vmul.f32 %v8001_v48, %v22917_v53  ;;  %v22931_v48 = vld [vmem:[#allocation74_spill] sm:$0xff] }
 0x96e   :  { %13749 = vmatmul.mubr.msk.f32.gmra.mrb[22].mxu1 %vm1397_vm8, %v7472_v50  ;;  %7830 = vmatprep.mubr.f32.mxu0 %v22764_v55  ;;  %v22923_v50 = vld [vmem:[#allocation68_spill] sm:$0xff]  ;;  %v8279_v39 = vsel %vm859_vm6, %v22931_v48, %v22928_v34 }
 0x96f   :  { %14295 = vmatpush1.bf16.msra.mxu1 %v14294_v5  ;;  %v7982_v46 = vpop.permute.xlu1 %7981  ;;  %7913 = vmatprep.mubr.f32.mxu1 %v22764_v55  ;;  %v8271_v43 = vsel %vm859_vm6, %v22923_v50, %v22922_v37 }
 0x970   :  { %v7998_v41 = vsel %vm748_vm5, %v7974_v9, %v7982_v46  ;;  %14305 = vmatprep.subr.bf16.mxu1 %v14304_v54  ;;  %v19765_v15 = vpop.permute.xlu0 %8238  ;;  %13751 = vmatmul.mubr.msk.f32.gmra.mrb[18].mxu0 %vm1397_vm8, %v7681_v12  ;;  %v8287_v10 = vmul.f32 %v8271_v43, %v22927_v36  ;;  %v7993_v54 = vsel %vm748_vm5, %v19655_v21, %v19700_v58 }
 0x971   :  { %v8020_v18 = vmul.f32 %v7998_v41, %v22915_v42  ;;  %7836 = vmatprep.mubr.f32.mxu0 %v22764_v55  ;;  %v7683_v41 = vld [vmem:[#allocation7 + $0xb8] sm:$0xff]  ;;  %v8005_v43 = vsel %vm748_vm5, %v19700_v58, %v19669_v6  ;;  %v8017_v6 = vmul.f32 %v7993_v54, %v22921_v38 }
 0x972   :  { %13754 = vmatmul.mubr.msk.f32.vlgmr.msra.gmra.mrb[16].mxu1 %vm1397_vm8, %v7680_v25  ;;  %v8275_v25 = vsel %vm859_vm6, %v22928_v34, %v22923_v50 }
 0x973   :  { %14307 = vmatpush1.bf16.msra.mxu1 %v14306_v62  ;;  %v7966_v23 = vpop.permute.xlu1 %7965  ;;  %7919 = vmatprep.mubr.f32.mxu1 %v22764_v55  ;;  %v14300_v5 = vpack.c.bf16 %v8020_v18, %v8016_v22  ;;  %v8283_v62 = vmul.f32 %v8270_v57, %v22927_v36  ;;  %v22930_v22 = vld [vmem:[#allocation72_spill] sm:$0xff] }
 0x974   :  { %v8002_v3 = vsel %vm748_vm5, %v7966_v23, %v7974_v9  ;;  %v19796_v40 = vpop.permute.xlu0 %8262  ;;  %13752 = vmatmul.mubr.msk.f32.gmra.mrb[20].mxu0 %vm1397_vm8, %v7682_v63  ;;  %v22929_v9 = vld [vmem:[#allocation51_spill] sm:$0xff]  ;;  %v8278_v21 = vsel %vm859_vm6, %v22930_v22, %v22926_v27 }
 0x975   :  { %v8019_v44 = vmul.f32 %v8002_v3, %v22917_v53  ;;  %14301 = vmatprep.subr.bf16.mxu0 %v14300_v5  ;;  %7842 = vmatprep.mubr.f32.mxu0 %v22764_v55  ;;  %v8282_v50 = vmul.f32 %v8274_v24, %v22929_v9  ;;  %v8286_v18 = vmul.f32 %v8275_v25, %v22929_v9 }
 0x976   :  { %13755 = vmatmul.mubr.msk.f32.gmra.mrb[18].mxu1 %vm1397_vm8, %v7681_v12  ;;  %v14312_v5 = vpack.c.bf16 %v8287_v10, %v8283_v62  ;;  %v8018_v25 = vmul.f32 %v8005_v43, %v22920_v59 }
 0x977   :  { %v14302_v57 = vpack.c.bf16 %v8019_v44, %v8015_v16  ;;  %v7990_v24 = vpop.permute.xlu1 %7989  ;;  %7925 = vmatprep.mubr.f32.mxu1 %v22764_v55  ;;  %v7955_v16 = vld [vmem:[#allocation7 + $0xc0] sm:$0xff]  ;;  %v14314_v10 = vpack.c.bf16 %v8286_v18, %v8282_v50  ;;  %v8272_v50 = vsel %vm859_vm6, %v19732_v20, %v19751_v32 }
 0x978   :  { %v7994_v58 = vsel %vm748_vm5, %v7982_v46, %v7990_v24  ;;  %v8006_v12 = vsel %vm748_vm5, %v7990_v24, %v7966_v23  ;;  %v19828_v27 = vpop.permute.xlu0 %8525  ;;  %13753 = vmatmul.mubr.msk.f32.gmra.mrb[22].mxu0 %vm1397_vm8, %v7683_v41  ;;  %v8267_v46 = vsel %vm859_vm6, %v22922_v37, %v22931_v48  ;;  %v22932_v23 = vld [vmem:[#allocation36_spill] sm:$0xff] }
 0x979   :  { %v8021_v34 = vmul.f32 %v7994_v58, %v22921_v38  ;;  %v8022_v3 = vmul.f32 %v8006_v12, %v22920_v59  ;;  %14303 = vmatpush1.bf16.msra.mxu0 %v14302_v57  ;;  %8099 = vmatprep.mubr.f32.mxu0 %v22764_v55  ;;  %v8289_v54 = vmul.f32 %v8279_v39, %v22932_v23  ;;  %v22933_v37 = vld [vmem:[#allocation44_spill] sm:$0xff] }
 0x97a   :  { %13756 = vmatmul.mubr.msk.f32.gmra.mrb[20].mxu1 %vm1397_vm8, %v7682_v63  ;;  %14313 = vmatprep.subr.bf16.mxu0 %v14312_v5  ;;  %v8266_v57 = vsel %vm859_vm6, %v22924_v1, %v22930_v22  ;;  %v8285_v24 = vmul.f32 %v8278_v21, %v22932_v23  ;;  %v8288_v48 = vmul.f32 %v8267_v46, %v22933_v37  ;;  %v7956_v63 = vld [vmem:[#allocation7 + $0xc8] sm:$0xff] }
 0x97b   :  { %v14310_v44 = vpack.c.bf16 %v8021_v34, %v8017_v6  ;;  %v8249_v62 = vpop.permute.xlu1 %8248  ;;  %7931 = vmatprep.mubr.f32.mxu1 %v22764_v55  ;;  %v14308_v43 = vpack.c.bf16 %v8022_v3, %v8018_v25  ;;  %v8284_v22 = vmul.f32 %v8266_v57, %v22933_v37  ;;  %v8291_v12 = vmul.f32 %v8272_v50, %v22927_v36  ;;  %v7957_v25 = vld [vmem:[#allocation7 + $0xd0] sm:$0xff] }
 0x97c   :  { %v8510_v58 = vpop.permute.xlu0 %8509  ;;  %13758 = vmatmul.mubr.msk.f32.vlgmr.msra.gmra.mrb[16].mxu0 %vm1397_vm8, %v7955_v16  ;;  %v14320_v1 = vpack.c.bf16 %v8289_v54, %v8285_v24  ;;  %v8276_v34 = vsel %vm859_vm6, %v19765_v15, %v19732_v20  ;;  %v8546_v3 = vsel %vm970_vm7, %v19578_v28, %v19597_v35  ;;  %v8550_v46 = vsel %vm970_vm7, %v19616_v33, %v19578_v28 }
 0x97d   :  { %14309 = vmatprep.subr.bf16.mxu1 %v14308_v43  ;;  %14315 = vmatpush1.bf16.msra.mxu0 %v14314_v10  ;;  %v14322_v6 = vpack.c.bf16 %v8288_v48, %v8284_v22  ;;  %v8549_v20 = vsel %vm970_vm7, %v8510_v58, %v19543_v29  ;;  %v8290_v28 = vmul.f32 %v8276_v34, %v22929_v9 }
 0x97e   :  { %13757 = vmatmul.mubr.msk.f32.gmra.mrb[22].mxu1 %vm1397_vm8, %v7683_v41  ;;  %8105 = vmatprep.mubr.f32.mxu0 %v22764_v55  ;;  %v8545_v41 = vsel %vm970_vm7, %v19543_v29, %v19828_v27  ;;  %v8268_v24 = vsel %vm859_vm6, %v19751_v32, %v19796_v40  ;;  %v7958_v29 = vld [vmem:[#allocation7 + $0xd8] sm:$0xff]  ;;  %v8280_v22 = vsel %vm859_vm6, %v19796_v40, %v19765_v15 }
 0x97f   :  { %14311 = vmatpush1.bf16.msra.mxu1 %v14310_v44  ;;  %v8257_v21 = vpop.permute.xlu1 %8256  ;;  %8188 = vmatprep.mubr.f32.mxu1 %v22764_v55  ;;  %v22934_v44 = vld [vmem:[#allocation33_spill] sm:$0xff]  ;;  %v8554_v32 = vsel %vm970_vm7, %v19637_v7, %v19616_v33  ;;  %v8293_v34 = vmul.f32 %v8280_v22, %v22932_v23 }
 0x980   :  { %v8273_v18 = vsel %vm859_vm6, %v8249_v62, %v8257_v21  ;;  %14321 = vmatprep.subr.bf16.mxu1 %v14320_v1  ;;  %v8534_v39 = vpop.permute.xlu0 %8533  ;;  %13759 = vmatmul.mubr.msk.f32.gmra.mrb[18].mxu0 %vm1397_vm8, %v7956_v63  ;;  %v8558_v43 = vmul.f32 %v8545_v41, %v22934_v44  ;;  %v8562_v50 = vmul.f32 %v8546_v3, %v22934_v44 }
 0x981   :  { %v8295_v5 = vmul.f32 %v8273_v18, %v22927_v36  ;;  %8111 = vmatprep.mubr.f32.mxu0 %v22764_v55 }
 0x982   :  { %13762 = vmatmul.mubr.msk.f32.vlgmr.msra.gmra.mrb[16].mxu1 %vm1397_vm8, %v7955_v16  ;;  %v14328_v33 = vpack.c.bf16 %v8562_v50, %v8558_v43 }
 0x983   :  { %14323 = vmatpush1.bf16.msra.mxu1 %v14322_v6  ;;  %v8241_v54 = vpop.permute.xlu1 %8240  ;;  %8194 = vmatprep.mubr.f32.mxu1 %v22764_v55  ;;  %v14316_v10 = vpack.c.bf16 %v8295_v5, %v8291_v12  ;;  %v8553_v6 = vsel %vm970_vm7, %v8534_v39, %v8510_v58  ;;  %v8292_v5 = vmul.f32 %v8268_v24, %v22933_v37 }
 0x984   :  { %v8277_v16 = vsel %vm859_vm6, %v8241_v54, %v8249_v62  ;;  %v19887_v57 = vpop.permute.xlu0 %8521  ;;  %13760 = vmatmul.mubr.msk.f32.gmra.mrb[20].mxu0 %vm1397_vm8, %v7957_v25  ;;  %v22935_v62 = vld [vmem:[#allocation52_spill] sm:$0xff]  ;;  %v8542_v24 = vsel %vm970_vm7, %v19597_v35, %v19637_v7 }
 0x985   :  { %v8294_v48 = vmul.f32 %v8277_v16, %v22929_v9  ;;  %14317 = vmatprep.subr.bf16.mxu0 %v14316_v10  ;;  %8117 = vmatprep.mubr.f32.mxu0 %v22764_v55  ;;  %v8561_v1 = vmul.f32 %v8550_v46, %v22935_v62  ;;  %v8557_v18 = vmul.f32 %v8549_v20, %v22935_v62  ;;  %v8230_v46 = vld [vmem:[#allocation7 + $0xe0] sm:$0xff]  ;;  %v22936_v10 = vld [vmem:[#allocation37_spill] sm:$0xff] }
 0x986   :  { %13763 = vmatmul.mubr.msk.f32.gmra.mrb[18].mxu1 %vm1397_vm8, %v7956_v63 }
 0x987   :  { %v14318_v12 = vpack.c.bf16 %v8294_v48, %v8290_v28  ;;  %v8265_v41 = vpop.permute.xlu1 %8264  ;;  %8200 = vmatprep.mubr.f32.mxu1 %v22764_v55  ;;  %v14330_v43 = vpack.c.bf16 %v8561_v1, %v8557_v18  ;;  %v8564_v48 = vmul.f32 %v8554_v32, %v22936_v10 }
 0x988   :  { %v8269_v15 = vsel %vm859_vm6, %v8257_v21, %v8265_v41  ;;  %v8281_v40 = vsel %vm859_vm6, %v8265_v41, %v8241_v54  ;;  %v8530_v63 = vpop.permute.xlu0 %8529  ;;  %13761 = vmatmul.mubr.msk.f32.gmra.mrb[22].mxu0 %vm1397_vm8, %v7958_v29  ;;  %v8541_v21 = vsel %vm970_vm7, %v19828_v27, %v8534_v39  ;;  %v8560_v54 = vmul.f32 %v8553_v6, %v22936_v10  ;;  %v22937_v27 = vld [vmem:[#allocation45_spill] sm:$0xff] }
 0x989   :  { %v8296_v58 = vmul.f32 %v8269_v15, %v22933_v37  ;;  %v8297_v3 = vmul.f32 %v8281_v40, %v22932_v23  ;;  %14319 = vmatpush1.bf16.msra.mxu0 %v14318_v12  ;;  %8374 = vmatprep.mubr.f32.mxu0 %v22764_v55  ;;  %v8559_v39 = vmul.f32 %v8541_v21, %v22937_v27  ;;  %v8232_v12 = vld [vmem:[#allocation7 + $0xf0] sm:$0xff] }
 0x98a   :  { %13764 = vmatmul.mubr.msk.f32.gmra.mrb[20].mxu1 %vm1397_vm8, %v7957_v25  ;;  %14329 = vmatprep.subr.bf16.mxu0 %v14328_v33  ;;  %v8231_v25 = vld [vmem:[#allocation7 + $0xe8] sm:$0xff]  ;;  %v8547_v1 = vsel %vm970_vm7, %v19887_v57, %v8530_v63  ;;  %v14336_v22 = vpack.c.bf16 %v8564_v48, %v8560_v54  ;;  %v8563_v35 = vmul.f32 %v8542_v24, %v22937_v27  ;;  %v8505_v48 = vld [vmem:[#allocation7 + $0x100] sm:$0xff] }
 0x98b   :  { %v14326_v20 = vpack.c.bf16 %v8296_v58, %v8292_v5  ;;  %v8524_v16 = vpop.permute.xlu1 %8523  ;;  %8206 = vmatprep.mubr.f32.mxu1 %v22764_v55  ;;  %v14324_v28 = vpack.c.bf16 %v8297_v3, %v8293_v34  ;;  %v8566_v6 = vmul.f32 %v8547_v1, %v22934_v44  ;;  %v8233_v3 = vld [vmem:[#allocation7 + $0xf8] sm:$0xff]  ;;  %v8507_v1 = vld [vmem:[#allocation7 + $0x110] sm:$0xff] }
 0x98c   :  { %v8514_v50 = vpop.permute.xlu0 %8513  ;;  %13766 = vmatmul.mubr.msk.f32.vlgmr.msra.gmra.mrb[16].mxu0 %vm1397_vm8, %v8230_v46  ;;  %v14338_v18 = vpack.c.bf16 %v8563_v35, %v8559_v39 }
 0x98d   :  { %14325 = vmatprep.subr.bf16.mxu1 %v14324_v28  ;;  %14331 = vmatpush1.bf16.msra.mxu0 %v14330_v43  ;;  %v8551_v41 = vsel %vm970_vm7, %v8514_v50, %v19887_v57 }
 0x98e   :  { %13765 = vmatmul.mubr.msk.f32.gmra.mrb[22].mxu1 %vm1397_vm8, %v7958_v29  ;;  %8380 = vmatprep.mubr.f32.mxu0 %v22764_v55  ;;  %v8565_v34 = vmul.f32 %v8551_v41, %v22935_v62 }
 0x98f   :  { %14327 = vmatpush1.bf16.msra.mxu1 %v14326_v20  ;;  %v8532_v7 = vpop.permute.xlu1 %8531  ;;  %8463 = vmatprep.mubr.f32.mxu1 %v22764_v55 }
 0x990   :  { %v8548_v32 = vsel %vm970_vm7, %v8524_v16, %v8532_v7  ;;  %14337 = vmatprep.subr.bf16.mxu1 %v14336_v22  ;;  %13767 = vmatmul.mubr.msk.f32.gmra.mrb[18].mxu0 %vm1397_vm8, %v8231_v25  ;;  %v8538_v5 = vpop.permute.xlu0 %8537  ;;  %v8508_v22 = vld [vmem:[#allocation7 + $0x118] sm:$0xff] }
 0x991   :  { %v8570_v29 = vmul.f32 %v8548_v32, %v22934_v44  ;;  %8386 = vmatprep.mubr.f32.mxu0 %v22764_v55  ;;  %v8543_v58 = vsel %vm970_vm7, %v8530_v63, %v8538_v5 }
 0x992   :  { %13770 = vmatmul.mubr.msk.f32.vlgmr.msra.gmra.mrb[16].mxu1 %vm1397_vm8, %v8230_v46  ;;  %v8555_v46 = vsel %vm970_vm7, %v8538_v5, %v8514_v50  ;;  %v8567_v43 = vmul.f32 %v8543_v58, %v22937_v27 }
 0x993   :  { %14339 = vmatpush1.bf16.msra.mxu1 %v14338_v18  ;;  %v8516_v15 = vpop.permute.xlu1 %8515  ;;  %8469 = vmatprep.mubr.f32.mxu1 %v22764_v55  ;;  %v14332_v40 = vpack.c.bf16 %v8570_v29, %v8566_v6 }
 0x994   :  { %v8552_v33 = vsel %vm970_vm7, %v8516_v15, %v8524_v16  ;;  %13768 = vmatmul.mubr.msk.f32.gmra.mrb[20].mxu0 %vm1397_vm8, %v8232_v12  ;;  %v8568_v16 = vmul.f32 %v8555_v46, %v22936_v10 }
 0x995   :  { %v8569_v57 = vmul.f32 %v8552_v33, %v22935_v62  ;;  %14333 = vmatprep.subr.bf16.mxu0 %v14332_v40  ;;  %8392 = vmatprep.mubr.f32.mxu0 %v22764_v55 }
 0x996   :  { %13771 = vmatmul.mubr.msk.f32.gmra.mrb[18].mxu1 %vm1397_vm8, %v8231_v25  ;;  %v8506_v25 = vld [vmem:[#allocation7 + $0x108] sm:$0xff] }
 0x997   :  { %v14334_v21 = vpack.c.bf16 %v8569_v57, %v8565_v34  ;;  %v8540_v54 = vpop.permute.xlu1 %8539  ;;  %8475 = vmatprep.mubr.f32.mxu1 %v22764_v55 }
 0x998   :  { %v8544_v63 = vsel %vm970_vm7, %v8532_v7, %v8540_v54  ;;  %v8556_v20 = vsel %vm970_vm7, %v8540_v54, %v8516_v15  ;;  %13769 = vmatmul.mubr.msk.f32.gmra.mrb[22].mxu0 %vm1397_vm8, %v8233_v3 }
 0x999   :  { %v8571_v28 = vmul.f32 %v8544_v63, %v22937_v27  ;;  %v8572_v24 = vmul.f32 %v8556_v20, %v22936_v10  ;;  %14335 = vmatpush1.bf16.msra.mxu0 %v14334_v21  ;;  %8649 = vmatprep.mubr.f32.mxu0 %v22764_v55 }
 0x99a   :  { %13772 = vmatmul.mubr.msk.f32.gmra.mrb[20].mxu1 %vm1397_vm8, %v8232_v12 }
 0x99b   :  { %v14342_v50 = vpack.c.bf16 %v8571_v28, %v8567_v43  ;;  %8481 = vmatprep.mubr.f32.mxu1 %v22764_v55  ;;  %v14340_v39 = vpack.c.bf16 %v8572_v24, %v8568_v16 }
 0x99c   :  { %13774 = vmatmul.mubr.msk.f32.vlgmr.msra.gmra.mrb[16].mxu0 %vm1397_vm8, %v8505_v48 }
 0x99d   :  { %14341 = vmatprep.subr.bf16.mxu1 %v14340_v39  ;;  %8655 = vmatprep.mubr.f32.mxu0 %v22764_v55 }
 0x99e   :  { %13773 = vmatmul.mubr.msk.f32.gmra.mrb[22].mxu1 %vm1397_vm8, %v8233_v3 }
 0x99f   :  { %14343 = vmatpush1.bf16.msra.mxu1 %v14342_v50  ;;  %8738 = vmatprep.mubr.f32.mxu1 %v22764_v55 }
 0x9a0   :  { %13775 = vmatmul.mubr.msk.f32.gmra.mrb[18].mxu0 %vm1397_vm8, %v8506_v25 }
 0x9a1   :  { %8661 = vmatprep.mubr.f32.mxu0 %v22764_v55 }
 0x9a2   :  { %13778 = vmatmul.mubr.msk.f32.vlgmr.msra.gmra.mrb[16].mxu1 %vm1397_vm8, %v8505_v48 }
 0x9a3   :  { %8744 = vmatprep.mubr.f32.mxu1 %v22764_v55 }
 0x9a4   :  { %13776 = vmatmul.mubr.msk.f32.gmra.mrb[20].mxu0 %vm1397_vm8, %v8507_v1 }
 0x9a5   :  { %8667 = vmatprep.mubr.f32.mxu0 %v22764_v55 }
 0x9a6   :  { %13779 = vmatmul.mubr.msk.f32.gmra.mrb[18].mxu1 %vm1397_vm8, %v8506_v25 }
 0x9a7   :  { %8750 = vmatprep.mubr.f32.mxu1 %v22764_v55 }
 0x9a8   :  { %13777 = vmatmul.mubr.msk.f32.gmra.mrb[22].mxu0 %vm1397_vm8, %v8508_v22 }
 0x9a9   :  { %9184 = vmatprep.mubr.f32.mxu0 %v22764_v55 }
 0x9aa   :  { %13780 = vmatmul.mubr.msk.f32.gmra.mrb[20].mxu1 %vm1397_vm8, %v8507_v1 }
 0x9ab   :  { %8756 = vmatprep.mubr.f32.mxu1 %v22764_v55 }
 0x9ae   :  { %13781 = vmatmul.mubr.msk.f32.gmra.mrb[22].mxu1 %vm1397_vm8, %v8508_v22 }
 0x9af   :  { %9273 = vmatprep.mubr.f32.mxu1 %v22764_v55 }
 0xa6f   :  { %v19995_v35 = vpop.f32.mrb[16].mxu0 }
 0xa70   :  { %v8799_v7 = vmul.f32 %v19995_v35, %v19995_v35  ;;  %v19999_v32 = vpop.f32.mrb[17].mxu0 }
 0xa71   :  { %v8779_v18 = vadd.f32 %v19999_v32, %v19995_v35  ;;  %v8800_v6 = vmul.f32 %v19999_v32, %v19999_v32 }
 0xa73   :  { %v8815_v29 = vadd.f32 %v8800_v6, %v8799_v7  ;;  %v20005_v12 = vpop.f32.mrb[18].mxu0 }
 0xa74   :  { %v8803_v41 = vmul.f32 %v20005_v12, %v20005_v12  ;;  %v20009_v5 = vpop.f32.mrb[19].mxu0 }
 0xa75   :  { %v8784_v15 = vadd.f32 %v20009_v5, %v20005_v12  ;;  %v8804_v40 = vmul.f32 %v20009_v5, %v20009_v5  ;;  %v20015_v33 = vpop.f32.mrb[16].mxu1 }
 0xa76   :  { %v8780_v34 = vadd.f32 %v8779_v18, %v20015_v33  ;;  %v8801_v58 = vmul.f32 %v20015_v33, %v20015_v33  ;;  %v20020_v57 = vpop.f32.mrb[17].mxu1 }
 0xa77   :  { %v8820_v3 = vadd.f32 %v8804_v40, %v8803_v41  ;;  %v8802_v46 = vmul.f32 %v20020_v57, %v20020_v57  ;;  %v20024_v21 = vpop.f32.mrb[20].mxu0 }
 0xa78   :  { %v8816_v54 = vadd.f32 %v8815_v29, %v8801_v58  ;;  %v8781_v43 = vadd.f32 %v8780_v34, %v20020_v57  ;;  %v8807_v63 = vmul.f32 %v20024_v21, %v20024_v21  ;;  %v20029_v20 = vpop.f32.mrb[21].mxu0 }
 0xa79   :  { %v8789_v16 = vadd.f32 %v20029_v20, %v20024_v21  ;;  %v8808_v28 = vmul.f32 %v20029_v20, %v20029_v20  ;;  %v20035_v24 = vpop.f32.mrb[18].mxu1 }
 0xa7a   :  { %v8785_v48 = vadd.f32 %v8784_v15, %v20035_v24  ;;  %v8805_v50 = vmul.f32 %v20035_v24, %v20035_v24  ;;  %8782 = vadd.xlane.f32.xlu0 %v8781_v43  ;;  %v20040_v39 = vpop.f32.mrb[19].mxu1  ;;  %v8817_v25 = vadd.f32 %v8816_v54, %v8802_v46 }
 0xa7b   :  { %v8825_v1 = vadd.f32 %v8808_v28, %v8807_v63  ;;  %v8806_v22 = vmul.f32 %v20040_v39, %v20040_v39  ;;  %v20044_v7 = vpop.f32.mrb[22].mxu0 }
 0xa7c   :  { %v8821_v18 = vadd.f32 %v8820_v3, %v8805_v50  ;;  %v8786_v6 = vadd.f32 %v8785_v48, %v20040_v39  ;;  %v8811_v29 = vmul.f32 %v20044_v7, %v20044_v7  ;;  %v20049_v41 = vpop.f32.mrb[23].mxu0 }
 0xa7d   :  { %v8794_v15 = vadd.f32 %v20049_v41, %v20044_v7  ;;  %v8812_v40 = vmul.f32 %v20049_v41, %v20049_v41  ;;  %v20055_v34 = vpop.f32.mrb[20].mxu1 }
 0xa7e   :  { %v8790_v58 = vadd.f32 %v8789_v16, %v20055_v34  ;;  %v8809_v3 = vmul.f32 %v20055_v34, %v20055_v34  ;;  %8818 = vadd.xlane.f32.xlu0 %v8817_v25  ;;  %8787 = vadd.xlane.f32.xlu1 %v8786_v6  ;;  %v20060_v46 = vpop.f32.mrb[21].mxu1  ;;  %v8822_v54 = vadd.f32 %v8821_v18, %v8806_v22 }
 0xa7f   :  { %v8830_v43 = vadd.f32 %v8812_v40, %v8811_v29  ;;  %v8810_v63 = vmul.f32 %v20060_v46, %v20060_v46 }
 0xa80   :  { %v8826_v28 = vadd.f32 %v8825_v1, %v8809_v3  ;;  %v8791_v48 = vadd.f32 %v8790_v58, %v20060_v46 }
 0xa81   :  { %v20065_v50 = vpop.f32.mrb[22].mxu1 }
 0xa82   :  { %v8795_v27 = vadd.f32 %v8794_v15, %v20065_v50  ;;  %v8813_v16 = vmul.f32 %v20065_v50, %v20065_v50  ;;  %8823 = vadd.xlane.f32.xlu0 %v8822_v54  ;;  %8792 = vadd.xlane.f32.xlu1 %v8791_v48  ;;  %v20070_v25 = vpop.f32.mrb[23].mxu1  ;;  %v8827_v6 = vadd.f32 %v8826_v28, %v8810_v63 }
 0xa83   :  { %v8814_v22 = vmul.f32 %v20070_v25, %v20070_v25 }
 0xa84   :  { %v8831_v18 = vadd.f32 %v8830_v43, %v8813_v16  ;;  %v8796_v1 = vadd.f32 %v8795_v27, %v20070_v25 }
 0xa86   :  { %8828 = vadd.xlane.f32.xlu1 %v8827_v6  ;;  %8797 = vadd.xlane.f32.xlu0 %v8796_v1  ;;  %v8832_v29 = vadd.f32 %v8831_v18, %v8814_v22 }
 0xa8a   :  { %8833 = vadd.xlane.f32.xlu0 %v8832_v29 }
 0xb07   :  { %v8783_v40 = vpop.xlane.xlu0 %8782 }
 0xb08   :  { %v8835_v15 = vmul.f32 0.001953125, %v8783_v40 }
 0xb0a   :  { %v8843_v10 = vmul.f32 %v8835_v15, %v8835_v15  ;;  %v8851_v27 = vsub.f32 %v19995_v35, %v8835_v15  ;;  %v8852_v6 = vsub.f32 %v19999_v32, %v8835_v15  ;;  %v8853_v22 = vsub.f32 %v20015_v33, %v8835_v15 }
 0xb0b   :  { %v8819_v58 = vpop.xlane.xlu0 %8818  ;;  %v8788_v3 = vpop.xlane.xlu1 %8787  ;;  %v8854_v18 = vsub.f32 %v20020_v57, %v8835_v15 }
 0xb0c   :  { %v8839_v54 = vmul.f32 0.001953125, %v8819_v58  ;;  %v8836_v48 = vmul.f32 0.001953125, %v8788_v3 }
 0xb0e   :  { %v8847_v62 = vsub.f32 %v8839_v54, %v8843_v10  ;;  %v8844_v37 = vmul.f32 %v8836_v48, %v8836_v48  ;;  %v8857_v33 = vsub.f32 %v20035_v24, %v8836_v48 }
 0xb0f   :  { %v8824_v44 = vpop.xlane.xlu0 %8823 }
 0xb10   :  { %v8867_v63 = vadd.f32 1e-05, %v8847_v62  ;;  %v8840_v28 = vmul.f32 0.001953125, %v8824_v44  ;;  %v8856_v44 = vsub.f32 %v20009_v5, %v8836_v48  ;;  %v8858_v62 = vsub.f32 %v20040_v39, %v8836_v48 }
 0xb11   :  { %v8855_v5 = vsub.f32 %v20005_v12, %v8836_v48 }
 0xb12   :  { %15318 = vrsqrt.f32 %v8867_v63  ;;  %v8848_v43 = vsub.f32 %v8840_v28, %v8844_v37 }
 0xb14   :  { %v8868_v16 = vadd.f32 1e-05, %v8848_v43 }
 0xb16   :  { %15320 = vrsqrt.f32 %v8868_v16 }
 0xb1c   :  { %v15319_v1 = vpop.eup %15318 }
 0xb1d   :  { %v8875_v29 = vmul.f32 %v15319_v1, %v8851_v27  ;;  %v8878_v40 = vmul.f32 %v15319_v1, %v8854_v18  ;;  %v8876_v10 = vmul.f32 %v15319_v1, %v8852_v6  ;;  %v8877_v58 = vmul.f32 %v15319_v1, %v8853_v22 }
 0xb1f   :  { %v8907_v37 = vmul.f32 1.442695, %v8875_v29  ;;  %v8913_v3 = vmul.f32 1.442695, %v8878_v40  ;;  %v8909_v63 = vmul.f32 1.442695, %v8876_v10 }
 0xb20   :  { %v15321_v54 = vpop.eup %15320  ;;  %v8911_v35 = vmul.f32 1.442695, %v8877_v58  ;;  %vm8891_vm13 = vcmp.gt.f32.partialorder %v8875_v29, 0.0  ;;  %vm8894_vm14 = vcmp.gt.f32.partialorder %v8878_v40, 0.0  ;;  %vm8892_vm15 = vcmp.gt.f32.partialorder %v8876_v10, 0.0 }
 0xb21   :  { %15322 = vpow2.f32 %v8907_v37  ;;  %v8880_v32 = vmul.f32 %v15321_v54, %v8856_v44  ;;  %v8882_v28 = vmul.f32 %v15321_v54, %v8858_v62  ;;  %v8881_v43 = vmul.f32 %v15321_v54, %v8857_v33 }
 0xb22   :  { %15324 = vpow2.f32 %v8913_v3  ;;  %v8879_v16 = vmul.f32 %v15321_v54, %v8855_v5  ;;  %vm8893_vm9 = vcmp.gt.f32.partialorder %v8877_v58, 0.0 }
 0xb23   :  { %15326 = vpow2.f32 %v8909_v63  ;;  %v8917_v57 = vmul.f32 1.442695, %v8880_v32  ;;  %v8921_v15 = vmul.f32 1.442695, %v8882_v28  ;;  %v8919_v39 = vmul.f32 1.442695, %v8881_v43 }
 0xb24   :  { %15328 = vpow2.f32 %v8911_v35  ;;  %v8915_v44 = vmul.f32 1.442695, %v8879_v16  ;;  %vm8896_vm10 = vcmp.gt.f32.partialorder %v8880_v32, 0.0  ;;  %vm8898_vm11 = vcmp.gt.f32.partialorder %v8882_v28, 0.0 }
 0xb25   :  { %15330 = vpow2.f32 %v8917_v57  ;;  %vm8897_vm12 = vcmp.gt.f32.partialorder %v8881_v43, 0.0 }
 0xb26   :  { %15332 = vpow2.f32 %v8921_v15 }
 0xb27   :  { %15334 = vpow2.f32 %v8919_v39 }
 0xb28   :  { %15336 = vpow2.f32 %v8915_v44 }
 0xb2b   :  { %v15323_v27 = vpop.eup %15322 }
 0xb2c   :  { %v15325_v6 = vpop.eup %15324  ;;  %v13782_v22 = vadd.f32 -1.0, %v15323_v27  ;;  %v8798_v27 = vpop.xlane.xlu0 %8797 }
 0xb2d   :  { %v15327_v18 = vpop.eup %15326  ;;  %v13785_v1 = vadd.f32 -1.0, %v15325_v6  ;;  %v8838_v44 = vmul.f32 0.001953125, %v8798_v27 }
 0xb2e   :  { %v15329_v24 = vpop.eup %15328  ;;  %v20083_v62 = vsel %vm8891_vm13, %v8875_v29, %v13782_v22  ;;  %v13783_v37 = vadd.f32 -1.0, %v15327_v18  ;;  %vm8895_vm13 = vcmp.gt.f32.partialorder %v8879_v16, 0.0 }
 0xb2f   :  { %22938 = vst [vmem:[#allocation57_spill] sm:$0xff] %v20083_v62  ;;  %v15331_v3 = vpop.eup %15330  ;;  %9044 = vrot.lane.b32.xlu1 %v20083_v62, %s15526_s1  ;;  %v20087_v12 = vsel %vm8894_vm14, %v8878_v40, %v13785_v1  ;;  %v13784_v48 = vadd.f32 -1.0, %v15329_v24 }
 0xb30   :  { %22939 = vst [vmem:[#allocation38_spill] sm:$0xff] %v20087_v12  ;;  %9068 = vrot.lane.b32.xlu0 %v20087_v12, %s15526_s1  ;;  %v20091_v54 = vsel %vm8892_vm15, %v8876_v10, %v13783_v37  ;;  %v13787_v63 = vadd.f32 -1.0, %v15331_v3  ;;  %v15333_v29 = vpop.eup %15332  ;;  %v8834_v1 = vpop.xlane.xlu0 %8833  ;;  %v8846_v3 = vmul.f32 %v8838_v44, %v8838_v44 }
 0xb31   :  { %22940 = vst [vmem:[#allocation26_spill] sm:$0xff] %v20091_v54  ;;  %v20095_v35 = vsel %vm8893_vm9, %v8877_v58, %v13784_v48  ;;  %v13789_v33 = vadd.f32 -1.0, %v15333_v29  ;;  %v15335_v57 = vpop.eup %15334  ;;  %v8842_v24 = vmul.f32 0.001953125, %v8834_v1 }
 0xb32   :  { %22941 = vst [vmem:[#allocation18_spill] sm:$0xff] %v20095_v35  ;;  %v20099_v40 = vsel %vm8896_vm10, %v8880_v32, %v13787_v63  ;;  %v13788_v15 = vadd.f32 -1.0, %v15335_v57  ;;  %v15337_v58 = vpop.eup %15336 }
 0xb33   :  { %9052 = vrot.lane.b32.xlu1 %v20091_v54, %s15526_s1  ;;  %22942 = vst [vmem:[#allocation39_spill] sm:$0xff] %v20099_v40  ;;  %v20105_v10 = vsel %vm8898_vm11, %v8882_v28, %v13789_v33  ;;  %v13786_v5 = vadd.f32 -1.0, %v15337_v58  ;;  %v8850_v48 = vsub.f32 %v8842_v24, %v8846_v3 }
 0xb34   :  { %9060 = vrot.lane.b32.xlu0 %v20095_v35, %s15526_s1  ;;  %22943 = vst [vmem:[#allocation55_spill] sm:$0xff] %v20105_v10  ;;  %v20111_v32 = vsel %vm8897_vm12, %v8881_v43, %v13788_v15  ;;  %v8793_v43 = vpop.xlane.xlu1 %8792 }
 0xb35   :  { %22944 = vst [vmem:[#allocation19_spill] sm:$0xff] %v20111_v32  ;;  %v20117_v28 = vsel %vm8895_vm13, %v8879_v16, %v13786_v5  ;;  %v8837_v16 = vmul.f32 0.001953125, %v8793_v43  ;;  %v8870_v63 = vadd.f32 1e-05, %v8850_v48 }
 0xb36   :  { %22945 = vst [vmem:[#allocation53_spill] sm:$0xff] %v20117_v28 }
 0xb37   :  { %9054 = vrot.lane.b32.xlu1 %v20099_v40, %s15526_s1  ;;  %v8845_v22 = vmul.f32 %v8837_v16, %v8837_v16  ;;  %v8859_v33 = vsub.f32 %v20024_v21, %v8837_v16  ;;  %v8860_v15 = vsub.f32 %v20029_v20, %v8837_v16  ;;  %v8862_v21 = vsub.f32 %v20060_v46, %v8837_v16 }
 0xb38   :  { %8975 = vrot.lane.b32.xlu0 %v20083_v62, %s15525_s21  ;;  %v8829_v39 = vpop.xlane.xlu1 %8828 }
 0xb39   :  { %v8841_v6 = vmul.f32 0.001953125, %v8829_v39  ;;  %v8863_v39 = vsub.f32 %v20044_v7, %v8838_v44 }
 0xb3b   :  { %9070 = vrot.lane.b32.xlu1 %v20105_v10, %s15526_s1  ;;  %v8849_v18 = vsub.f32 %v8841_v6, %v8845_v22  ;;  %v8864_v22 = vsub.f32 %v20049_v41, %v8838_v44 }
 0xb3c   :  { %8983 = vrot.lane.b32.xlu0 %v20091_v54, %s15525_s21 }
 0xb3d   :  { %v8869_v37 = vadd.f32 1e-05, %v8849_v18  ;;  %v8861_v18 = vsub.f32 %v20055_v34, %v8837_v16  ;;  %v8865_v16 = vsub.f32 %v20065_v50, %v8838_v44 }
 0xb3f   :  { %9062 = vrot.lane.b32.xlu1 %v20111_v32, %s15526_s1  ;;  %15338 = vrsqrt.f32 %v8869_v37  ;;  %v8866_v37 = vsub.f32 %v20070_v25, %v8838_v44 }
 0xb40   :  { %8999 = vrot.lane.b32.xlu0 %v20087_v12, %s15525_s21  ;;  %15340 = vrsqrt.f32 %v8870_v63 }
 0xb43   :  { %8977 = vrot.lane.b32.xlu1 %v20117_v28, %s15525_s21 }
 0xb44   :  { %8991 = vrot.lane.b32.xlu0 %v20095_v35, %s15525_s21 }
 0xb47   :  { %8985 = vrot.lane.b32.xlu1 %v20099_v40, %s15525_s21 }
 0xb48   :  { %9493 = vrot.lane.b32.xlu0 %v20083_v62, %s15527_s9 }
 0xb49   :  { %v15339_v29 = vpop.eup %15338 }
 0xb4a   :  { %v8883_v57 = vmul.f32 %v15339_v29, %v8859_v33  ;;  %v15341_v58 = vpop.eup %15340  ;;  %v8884_v43 = vmul.f32 %v15339_v29, %v8860_v15  ;;  %v8886_v20 = vmul.f32 %v15339_v29, %v8862_v21  ;;  %v8885_v24 = vmul.f32 %v15339_v29, %v8861_v18 }
 0xb4b   :  { %9001 = vrot.lane.b32.xlu1 %v20105_v10, %s15525_s21  ;;  %v8887_v27 = vmul.f32 %v15341_v58, %v8863_v39  ;;  %v8888_v1 = vmul.f32 %v15341_v58, %v8864_v22  ;;  %v8890_v3 = vmul.f32 %v15341_v58, %v8866_v37  ;;  %v8889_v63 = vmul.f32 %v15341_v58, %v8865_v16 }
 0xb4c   :  { %9501 = vrot.lane.b32.xlu0 %v20091_v54, %s15527_s9  ;;  %v8923_v5 = vmul.f32 1.442695, %v8883_v57  ;;  %v8925_v6 = vmul.f32 1.442695, %v8884_v43  ;;  %v8929_v46 = vmul.f32 1.442695, %v8886_v20 }
 0xb4d   :  { %v8931_v7 = vmul.f32 1.442695, %v8887_v27  ;;  %v8933_v41 = vmul.f32 1.442695, %v8888_v1  ;;  %v8927_v34 = vmul.f32 1.442695, %v8885_v24 }
 0xb4e   :  { %15342 = vpow2.f32 %v8923_v5  ;;  %v8937_v25 = vmul.f32 1.442695, %v8890_v3  ;;  %v8935_v50 = vmul.f32 1.442695, %v8889_v63  ;;  %vm8899_vm14 = vcmp.gt.f32.partialorder %v8883_v57, 0.0 }
 0xb4f   :  { %8993 = vrot.lane.b32.xlu1 %v20111_v32, %s15525_s21  ;;  %15344 = vpow2.f32 %v8925_v6  ;;  %vm8900_vm15 = vcmp.gt.f32.partialorder %v8884_v43, 0.0  ;;  %vm8903_vm9 = vcmp.gt.f32.partialorder %v8887_v27, 0.0  ;;  %vm8902_vm10 = vcmp.gt.f32.partialorder %v8886_v20, 0.0 }
 0xb50   :  { %9517 = vrot.lane.b32.xlu0 %v20087_v12, %s15527_s9  ;;  %15346 = vpow2.f32 %v8931_v7  ;;  %vm8904_vm11 = vcmp.gt.f32.partialorder %v8888_v1, 0.0  ;;  %vm8901_vm12 = vcmp.gt.f32.partialorder %v8885_v24, 0.0  ;;  %vm8906_vm13 = vcmp.gt.f32.partialorder %v8890_v3, 0.0 }
 0xb51   :  { %15348 = vpow2.f32 %v8929_v46 }
 0xb52   :  { %15350 = vpow2.f32 %v8933_v41 }
 0xb53   :  { %9495 = vrot.lane.b32.xlu1 %v20117_v28, %s15527_s9  ;;  %15352 = vpow2.f32 %v8927_v34 }
 0xb54   :  { %9509 = vrot.lane.b32.xlu0 %v20095_v35, %s15527_s9  ;;  %15354 = vpow2.f32 %v8937_v25 }
 0xb55   :  { %15356 = vpow2.f32 %v8935_v50 }
 0xb57   :  { %9503 = vrot.lane.b32.xlu1 %v20099_v40, %s15527_s9 }
 0xb58   :  { %9768 = vrot.lane.b32.xlu0 %v20083_v62, %s15528_s16  ;;  %v15343_v48 = vpop.eup %15342 }
 0xb59   :  { %v13790_v29 = vadd.f32 -1.0, %v15343_v48  ;;  %v15345_v33 = vpop.eup %15344 }
 0xb5a   :  { %v15347_v44 = vpop.eup %15346  ;;  %v13791_v5 = vadd.f32 -1.0, %v15345_v33 }
 0xb5b   :  { %9519 = vrot.lane.b32.xlu1 %v20105_v10, %s15527_s9  ;;  %v20217_v15 = vsel %vm8899_vm14, %v8883_v57, %v13790_v29  ;;  %v15349_v58 = vpop.eup %15348  ;;  %v13794_v39 = vadd.f32 -1.0, %v15347_v44  ;;  %vm8905_vm14 = vcmp.gt.f32.partialorder %v8889_v63, 0.0 }
 0xb5c   :  { %9776 = vrot.lane.b32.xlu0 %v20091_v54, %s15528_s16  ;;  %v15351_v21 = vpop.eup %15350  ;;  %v20223_v6 = vsel %vm8900_vm15, %v8884_v43, %v13791_v5  ;;  %v13793_v22 = vadd.f32 -1.0, %v15349_v58 }
 0xb5d   :  { %22946 = vst [vmem:[#allocation56_spill] sm:$0xff] %v20223_v6  ;;  %v15353_v18 = vpop.eup %15352  ;;  %v20231_v46 = vsel %vm8903_vm9, %v8887_v27, %v13794_v39  ;;  %v13795_v37 = vadd.f32 -1.0, %v15351_v21 }
 0xb5e   :  { %v15355_v41 = vpop.eup %15354  ;;  %v20233_v34 = vsel %vm8902_vm10, %v8886_v20, %v13793_v22  ;;  %v13792_v43 = vadd.f32 -1.0, %v15353_v18 }
 0xb5f   :  { %9511 = vrot.lane.b32.xlu1 %v20111_v32, %s15527_s9  ;;  %v20241_v25 = vsel %vm8904_vm11, %v8888_v1, %v13795_v37  ;;  %v13797_v27 = vadd.f32 -1.0, %v15355_v41  ;;  %v15357_v29 = vpop.eup %15356 }
 0xb60   :  { %9792 = vrot.lane.b32.xlu0 %v20087_v12, %s15528_s16  ;;  %v20243_v33 = vsel %vm8901_vm12, %v8885_v24, %v13792_v43  ;;  %v13796_v5 = vadd.f32 -1.0, %v15357_v29 }
 0xb61   :  { %v20253_v44 = vsel %vm8906_vm13, %v8890_v3, %v13797_v27 }
 0xb62   :  { %v20263_v58 = vsel %vm8905_vm14, %v8889_v63, %v13796_v5 }
 0xb63   :  { %9770 = vrot.lane.b32.xlu1 %v20117_v28, %s15528_s16 }
 0xb64   :  { %9784 = vrot.lane.b32.xlu0 %v20095_v35, %s15528_s16 }
 0xb67   :  { %9778 = vrot.lane.b32.xlu1 %v20099_v40, %s15528_s16 }
 0xb68   :  { %10262 = vrot.lane.b32.xlu0 %v20091_v54, %s15529_s10 }
 0xb6b   :  { %9794 = vrot.lane.b32.xlu1 %v20105_v10, %s15528_s16 }
 0xb6c   :  { %10270 = vrot.lane.b32.xlu0 %v20095_v35, %s15529_s10 }
 0xb6f   :  { %9786 = vrot.lane.b32.xlu1 %v20111_v32, %s15528_s16 }
 0xb70   :  { %10254 = vrot.lane.b32.xlu0 %v20083_v62, %s15529_s10 }
 0xb73   :  { %10264 = vrot.lane.b32.xlu1 %v20099_v40, %s15529_s10 }
 0xb74   :  { %10278 = vrot.lane.b32.xlu0 %v20087_v12, %s15529_s10 }
 0xb77   :  { %10272 = vrot.lane.b32.xlu1 %v20111_v32, %s15529_s10 }
 0xb78   :  { %10537 = vrot.lane.b32.xlu0 %v20091_v54, %s15530_s19 }
 0xb7b   :  { %10256 = vrot.lane.b32.xlu1 %v20117_v28, %s15529_s10 }
 0xb7c   :  { %10545 = vrot.lane.b32.xlu0 %v20095_v35, %s15530_s19 }
 0xb7f   :  { %10280 = vrot.lane.b32.xlu1 %v20105_v10, %s15529_s10 }
 0xb80   :  { %10529 = vrot.lane.b32.xlu0 %v20083_v62, %s15530_s19 }
 0xb83   :  { %10539 = vrot.lane.b32.xlu1 %v20099_v40, %s15530_s19 }
 0xb84   :  { %10553 = vrot.lane.b32.xlu0 %v20087_v12, %s15530_s19 }
 0xb87   :  { %10547 = vrot.lane.b32.xlu1 %v20111_v32, %s15530_s19 }
 0xb88   :  { %10812 = vrot.lane.b32.xlu0 %v20091_v54, %s15531_s29 }
 0xb8b   :  { %10531 = vrot.lane.b32.xlu1 %v20117_v28, %s15530_s19 }
 0xb8c   :  { %10820 = vrot.lane.b32.xlu0 %v20095_v35, %s15531_s29 }
 0xb8f   :  { %10555 = vrot.lane.b32.xlu1 %v20105_v10, %s15530_s19 }
 0xb90   :  { %10804 = vrot.lane.b32.xlu0 %v20083_v62, %s15531_s29 }
 0xb93   :  { %10814 = vrot.lane.b32.xlu1 %v20099_v40, %s15531_s29 }
 0xb94   :  { %10828 = vrot.lane.b32.xlu0 %v20087_v12, %s15531_s29 }
 0xb97   :  { %10822 = vrot.lane.b32.xlu1 %v20111_v32, %s15531_s29 }
 0xb98   :  { %9046 = vrot.lane.b32.xlu0 %v20117_v28, %s15526_s1 }
 0xb9b   :  { %10806 = vrot.lane.b32.xlu1 %v20117_v28, %s15531_s29 }
 0xb9c   :  { %9048 = vrot.lane.b32.xlu0 %v20217_v15, %s15526_s1 }
 0xb9f   :  { %10830 = vrot.lane.b32.xlu1 %v20105_v10, %s15531_s29 }
 0xba0   :  { %9056 = vrot.lane.b32.xlu0 %v20223_v6, %s15526_s1 }
 0xba1   :  { %v20227_v57 = vpop.permute.xlu1 %9044 }
 0xba2   :  { %v20229_v7 = vpop.permute.xlu0 %9068 }
 0xba3   :  { %9050 = vrot.lane.b32.xlu1 %v20231_v46, %s15526_s1 }
 0xba4   :  { %9072 = vrot.lane.b32.xlu0 %v20233_v34, %s15526_s1 }
 0xba5   :  { %v20239_v16 = vpop.permute.xlu1 %9052 }
 0xba6   :  { %v9061_v48 = vpop.permute.xlu0 %9060 }
 0xba7   :  { %9058 = vrot.lane.b32.xlu1 %v20241_v25, %s15526_s1  ;;  %v9076_v3 = vsel %vm247_vm0, %v9061_v48, %v20229_v7  ;;  %v9080_v39 = vsel %vm247_vm0, %v20239_v16, %v9061_v48 }
 0xba8   :  { %9064 = vrot.lane.b32.xlu0 %v20243_v33, %s15526_s1  ;;  %v9094_v37 = vmul.f32 %v9080_v39, %v22751_v2  ;;  %v9095_v41 = vmul.f32 %v9076_v3, %v22750_v47 }
 0xba9   :  { %v20249_v20 = vpop.permute.xlu1 %9054 }
 0xbaa   :  { %v20251_v50 = vpop.permute.xlu0 %8975 }
 0xbab   :  { %9074 = vrot.lane.b32.xlu1 %v20253_v44, %s15526_s1 }
 0xbac   :  { %8979 = vrot.lane.b32.xlu0 %v20217_v15, %s15525_s21 }
 0xbad   :  { %v20259_v1 = vpop.permute.xlu1 %9070 }
 0xbae   :  { %v20261_v24 = vpop.permute.xlu0 %8983 }
 0xbaf   :  { %9066 = vrot.lane.b32.xlu1 %v20263_v58, %s15526_s1 }
 0xbb0   :  { %8987 = vrot.lane.b32.xlu0 %v20223_v6, %s15525_s21 }
 0xbb1   :  { %v9063_v21 = vpop.permute.xlu1 %9062 }
 0xbb2   :  { %v9077_v63 = vsel %vm247_vm0, %v9063_v21, %v20259_v1  ;;  %v9081_v22 = vsel %vm247_vm0, %v20249_v20, %v9063_v21  ;;  %v20281_v18 = vpop.permute.xlu0 %8999 }
 0xbb3   :  { %v9098_v43 = vmul.f32 %v9081_v22, %v22751_v2  ;;  %v9099_v48 = vmul.f32 %v9077_v63, %v22750_v47  ;;  %8981 = vrot.lane.b32.xlu1 %v20231_v46, %s15525_s21 }
 0xbb4   :  { %9003 = vrot.lane.b32.xlu0 %v20233_v34, %s15525_s21 }
 0xbb5   :  { %v14354_v27 = vpack.c.bf16 %v9098_v43, %v9094_v37  ;;  %v20291_v29 = vpop.permute.xlu1 %8977  ;;  %v14352_v5 = vpack.c.bf16 %v9099_v48, %v9095_v41 }
 0xbb6   :  { %v20293_v21 = vpop.permute.xlu0 %8991 }
 0xbb7   :  { %8989 = vrot.lane.b32.xlu1 %v20241_v25, %s15525_s21  ;;  %14353 = vmatprep.subr.bf16.mxu1 %v14352_v5 }
 0xbb8   :  { %8995 = vrot.lane.b32.xlu0 %v20243_v33, %s15525_s21  ;;  %14355 = vmatpush1.bf16.msra.mxu1 %v14354_v27 }
 0xbb9   :  { %v20299_v3 = vpop.permute.xlu1 %8985 }
 0xbba   :  { %v20301_v39 = vpop.permute.xlu0 %9493 }
 0xbbb   :  { %9005 = vrot.lane.b32.xlu1 %v20253_v44, %s15525_s21 }
 0xbbc   :  { %9497 = vrot.lane.b32.xlu0 %v20217_v15, %s15527_s9 }
 0xbbd   :  { %v20307_v63 = vpop.permute.xlu1 %9001 }
 0xbbe   :  { %v20309_v22 = vpop.permute.xlu0 %9501 }
 0xbbf   :  { %8997 = vrot.lane.b32.xlu1 %v20263_v58, %s15525_s21 }
 0xbc0   :  { %9505 = vrot.lane.b32.xlu0 %v20223_v6, %s15527_s9 }
 0xbc1   :  { %v20315_v37 = vpop.permute.xlu1 %8993 }
 0xbc2   :  { %v20317_v41 = vpop.permute.xlu0 %9517 }
 0xbc3   :  { %9499 = vrot.lane.b32.xlu1 %v20231_v46, %s15527_s9 }
 0xbc4   :  { %9521 = vrot.lane.b32.xlu0 %v20233_v34, %s15527_s9 }
 0xbc5   :  { %v20323_v43 = vpop.permute.xlu1 %9495 }
 0xbc6   :  { %v20325_v48 = vpop.permute.xlu0 %9509 }
 0xbc7   :  { %9507 = vrot.lane.b32.xlu1 %v20241_v25, %s15527_s9 }
 0xbc8   :  { %9513 = vrot.lane.b32.xlu0 %v20243_v33, %s15527_s9 }
 0xbc9   :  { %v20331_v27 = vpop.permute.xlu1 %9503 }
 0xbca   :  { %v20333_v5 = vpop.permute.xlu0 %9768 }
 0xbcb   :  { %9523 = vrot.lane.b32.xlu1 %v20253_v44, %s15527_s9 }
 0xbcc   :  { %9772 = vrot.lane.b32.xlu0 %v20217_v15, %s15528_s16 }
 0xbcd   :  { %v20339_v23 = vpop.permute.xlu1 %9519 }
 0xbce   :  { %v20341_v9 = vpop.permute.xlu0 %9776 }
 0xbcf   :  { %9515 = vrot.lane.b32.xlu1 %v20263_v58, %s15527_s9 }
 0xbd0   :  { %9780 = vrot.lane.b32.xlu0 %v20223_v6, %s15528_s16 }
 0xbd1   :  { %v20347_v36 = vpop.permute.xlu1 %9511 }
 0xbd2   :  { %v20349_v38 = vpop.permute.xlu0 %9792 }
 0xbd3   :  { %9774 = vrot.lane.b32.xlu1 %v20231_v46, %s15528_s16 }
 0xbd4   :  { %9796 = vrot.lane.b32.xlu0 %v20233_v34, %s15528_s16 }
 0xbd5   :  { %v20355_v59 = vpop.permute.xlu1 %9770 }
 0xbd6   :  { %v20357_v53 = vpop.permute.xlu0 %9784 }
 0xbd7   :  { %9782 = vrot.lane.b32.xlu1 %v20241_v25, %s15528_s16 }
 0xbd8   :  { %9788 = vrot.lane.b32.xlu0 %v20243_v33, %s15528_s16 }
 0xbd9   :  { %v20363_v42 = vpop.permute.xlu1 %9778 }
 0xbda   :  { %v20365_v17 = vpop.permute.xlu0 %10262 }
 0xbdb   :  { %22947 = vst [vmem:[#allocation17_spill] sm:$0xff] %v20365_v17  ;;  %9798 = vrot.lane.b32.xlu1 %v20253_v44, %s15528_s16 }
 0xbdc   :  { %11087 = vrot.lane.b32.xlu0 %v20091_v54, %s15532_s6 }
 0xbdd   :  { %v20371_v56 = vpop.permute.xlu1 %9794 }
 0xbde   :  { %v20373_v49 = vpop.permute.xlu0 %10270 }
 0xbdf   :  { %22948 = vst [vmem:[#allocation54_spill] sm:$0xff] %v20373_v49  ;;  %9790 = vrot.lane.b32.xlu1 %v20263_v58, %s15528_s16 }
 0xbe0   :  { %10266 = vrot.lane.b32.xlu0 %v20223_v6, %s15529_s10 }
 0xbe1   :  { %v20379_v30 = vpop.permute.xlu1 %9786 }
 0xbe2   :  { %22949 = vst [vmem:[#allocation20_spill] sm:$0xff] %v20379_v30  ;;  %v20381_v60 = vpop.permute.xlu0 %10254 }
 0xbe3   :  { %22950 = vst [vmem:[#allocation63_spill] sm:$0xff] %v20381_v60  ;;  %11089 = vrot.lane.b32.xlu1 %v20099_v40, %s15532_s6 }
 0xbe4   :  { %10274 = vrot.lane.b32.xlu0 %v20243_v33, %s15529_s10 }
 0xbe5   :  { %v20387_v17 = vpop.permute.xlu1 %10264 }
 0xbe6   :  { %22951 = vst [vmem:[#allocation58_spill] sm:$0xff] %v20387_v17  ;;  %v20389_v54 = vpop.permute.xlu0 %10278 }
 0xbe7   :  { %22952 = vst [vmem:[#allocation59_spill] sm:$0xff] %v20389_v54  ;;  %11097 = vrot.lane.b32.xlu1 %v20111_v32, %s15532_s6 }
 0xbe8   :  { %10258 = vrot.lane.b32.xlu0 %v20217_v15, %s15529_s10 }
 0xbe9   :  { %v20395_v49 = vpop.permute.xlu1 %10272 }
 0xbea   :  { %22953 = vst [vmem:[#allocation24_spill] sm:$0xff] %v20395_v49  ;;  %v20397_v0 = vpop.permute.xlu0 %10537 }
 0xbeb   :  { %22954 = vst [vmem:[#allocation22_spill] sm:$0xff] %v20397_v0  ;;  %11081 = vrot.lane.b32.xlu1 %v20117_v28, %s15532_s6  ;;  %v22970_v28 = vld [vmem:[#allocation21_spill] sm:$0xff] }
 0xbec   :  { %10282 = vrot.lane.b32.xlu0 %v20233_v34, %s15529_s10 }
 0xbed   :  { %v20403_v60 = vpop.permute.xlu1 %10256 }
 0xbee   :  { %22955 = vst [vmem:[#allocation16_spill] sm:$0xff] %v20403_v60  ;;  %v20405_v17 = vpop.permute.xlu0 %10545 }
 0xbef   :  { %22956 = vst [vmem:[#allocation62_spill] sm:$0xff] %v20405_v17  ;;  %11105 = vrot.lane.b32.xlu1 %v20105_v10, %s15532_s6 }
 0xbf0   :  { %10541 = vrot.lane.b32.xlu0 %v20223_v6, %s15530_s19 }
 0xbf1   :  { %v20411_v32 = vpop.permute.xlu1 %10280 }
 0xbf2   :  { %22957 = vst [vmem:[#allocation60_spill] sm:$0xff] %v20411_v32  ;;  %v20413_v54 = vpop.permute.xlu0 %10529 }
 0xbf3   :  { %22958 = vst [vmem:[#allocation61_spill] sm:$0xff] %v20413_v54  ;;  %10268 = vrot.lane.b32.xlu1 %v20241_v25, %s15529_s10 }
 0xbf4   :  { %10549 = vrot.lane.b32.xlu0 %v20243_v33, %s15530_s19 }
 0xbf5   :  { %v20419_v0 = vpop.permute.xlu1 %10539 }
 0xbf6   :  { %22959 = vst [vmem:[#allocation50_spill] sm:$0xff] %v20419_v0  ;;  %v20421_v60 = vpop.permute.xlu0 %10553 }
 0xbf7   :  { %22960 = vst [vmem:[#allocation25_spill] sm:$0xff] %v20421_v60  ;;  %10276 = vrot.lane.b32.xlu1 %v20263_v58, %s15529_s10 }
 0xbf8   :  { %10533 = vrot.lane.b32.xlu0 %v20217_v15, %s15530_s19 }
 0xbf9   :  { %v20427_v17 = vpop.permute.xlu1 %10547 }
 0xbfa   :  { %22961 = vst [vmem:[#allocation71_spill] sm:$0xff] %v20427_v17  ;;  %v20429_v32 = vpop.permute.xlu0 %10812 }
 0xbfb   :  { %22962 = vst [vmem:[#allocation65_spill] sm:$0xff] %v20429_v32  ;;  %10260 = vrot.lane.b32.xlu1 %v20231_v46, %s15529_s10 }
 0xbfc   :  { %10557 = vrot.lane.b32.xlu0 %v20233_v34, %s15530_s19 }
 0xbfd   :  { %v20435_v54 = vpop.permute.xlu1 %10531 }
 0xbfe   :  { %22963 = vst [vmem:[#allocation66_spill] sm:$0xff] %v20435_v54  ;;  %v20437_v0 = vpop.permute.xlu0 %10820 }
 0xbff   :  { %22964 = vst [vmem:[#allocation70_spill] sm:$0xff] %v20437_v0  ;;  %10284 = vrot.lane.b32.xlu1 %v20253_v44, %s15529_s10  ;;  %v9084_v0 = vsel %vm247_vm0, %v20227_v57, %v20239_v16 }
 0xc00   :  { %10816 = vrot.lane.b32.xlu0 %v20223_v6, %s15531_s29  ;;  %v9093_v49 = vmul.f32 %v9084_v0, %v22970_v28 }
 0xc01   :  { %v20443_v60 = vpop.permute.xlu1 %10555 }
 0xc02   :  { %22965 = vst [vmem:[#allocation68_spill] sm:$0xff] %v20443_v60  ;;  %v20445_v17 = vpop.permute.xlu0 %10804 }
 0xc03   :  { %22966 = vst [vmem:[#allocation69_spill] sm:$0xff] %v20445_v17  ;;  %10543 = vrot.lane.b32.xlu1 %v20241_v25, %s15530_s19  ;;  %v9088_v17 = vsel %vm247_vm0, %v20229_v7, %v20227_v57 }
 0xc04   :  { %10824 = vrot.lane.b32.xlu0 %v20243_v33, %s15531_s29  ;;  %v9092_v7 = vmul.f32 %v9088_v17, %v22749_v31 }
 0xc05   :  { %v20451_v32 = vpop.permute.xlu1 %10814 }
 0xc06   :  { %22967 = vst [vmem:[#allocation67_spill] sm:$0xff] %v20451_v32  ;;  %v20453_v54 = vpop.permute.xlu0 %10828 }
 0xc07   :  { %22968 = vst [vmem:[#allocation64_spill] sm:$0xff] %v20453_v54  ;;  %10551 = vrot.lane.b32.xlu1 %v20263_v58, %s15530_s19 }
 0xc08   :  { %10808 = vrot.lane.b32.xlu0 %v20217_v15, %s15531_s29 }
 0xc09   :  { %v20467_v60 = vpop.permute.xlu1 %10822 }
 0xc0a   :  { %22969 = vst [vmem:[#allocation73_spill] sm:$0xff] %v20467_v60  ;;  %v9047_v32 = vpop.permute.xlu0 %9046 }
 0xc0b   :  { %v9085_v54 = vsel %vm247_vm0, %v9047_v32, %v20249_v20  ;;  %v9089_v10 = vsel %vm247_vm0, %v20259_v1, %v9047_v32  ;;  %10535 = vrot.lane.b32.xlu1 %v20231_v46, %s15530_s19  ;;  %v9016_v32 = vsel %vm136_vm1, %v20291_v29, %v20299_v3 }
 0xc0c   :  { %v9096_v57 = vmul.f32 %v9089_v10, %v22749_v31  ;;  %v9097_v16 = vmul.f32 %v9085_v54, %v22970_v28  ;;  %10832 = vrot.lane.b32.xlu0 %v20233_v34, %s15531_s29 }
 0xc0d   :  { %v20483_v60 = vpop.permute.xlu1 %10806 }
 0xc0e   :  { %22971 = vst [vmem:[#allocation72_spill] sm:$0xff] %v20483_v60  ;;  %v14346_v20 = vpack.c.bf16 %v9096_v57, %v9092_v7  ;;  %v9049_v40 = vpop.permute.xlu0 %9048  ;;  %v14344_v30 = vpack.c.bf16 %v9097_v16, %v9093_v49  ;;  %v9015_v57 = vsel %vm136_vm1, %v20251_v50, %v20261_v24  ;;  %v9028_v60 = vmul.f32 %v9016_v32, %v22752_v51 }
 0xc0f   :  { %10559 = vrot.lane.b32.xlu1 %v20253_v44, %s15530_s19 }
 0xc10   :  { %11095 = vrot.lane.b32.xlu0 %v20095_v35, %s15532_s6  ;;  %14345 = vmatprep.subr.bf16.mxu0 %v14344_v30 }
 0xc11   :  { %14347 = vmatpush1.bf16.msra.mxu0 %v14346_v20  ;;  %v20489_v0 = vpop.permute.xlu1 %10830 }
 0xc12   :  { %22972 = vst [vmem:[#allocation74_spill] sm:$0xff] %v20489_v0  ;;  %v9057_v17 = vpop.permute.xlu0 %9056 }
 0xc13   :  { %10818 = vrot.lane.b32.xlu1 %v20241_v25, %s15531_s29  ;;  %v9086_v49 = vsel %vm247_vm0, %v9049_v40, %v9057_v17 }
 0xc14   :  { %11079 = vrot.lane.b32.xlu0 %v20083_v62, %s15532_s6  ;;  %v9101_v16 = vmul.f32 %v9086_v49, %v22970_v28  ;;  %v9024_v62 = vmul.f32 %v9015_v57, %v22752_v51  ;;  %v9020_v49 = vsel %vm136_vm1, %v20307_v63, %v20291_v29  ;;  %v9019_v29 = vsel %vm136_vm1, %v20281_v18, %v20251_v50 }
 0xc15   :  { %v9051_v54 = vpop.permute.xlu1 %9050 }
 0xc16   :  { %v9073_v10 = vpop.permute.xlu0 %9072 }
 0xc17   :  { %10826 = vrot.lane.b32.xlu1 %v20263_v58, %s15531_s29  ;;  %v9090_v0 = vsel %vm247_vm0, %v9073_v10, %v9049_v40 }
 0xc18   :  { %11103 = vrot.lane.b32.xlu0 %v20087_v12, %s15532_s6  ;;  %v9100_v40 = vmul.f32 %v9090_v0, %v22749_v31 }
 0xc19   :  { %v9059_v30 = vpop.permute.xlu1 %9058 }
 0xc1a   :  { %v9087_v1 = vsel %vm247_vm0, %v9051_v54, %v9059_v30  ;;  %v9065_v7 = vpop.permute.xlu0 %9064 }
 0xc1b   :  { %v9105_v20 = vmul.f32 %v9087_v1, %v22970_v28  ;;  %10810 = vrot.lane.b32.xlu1 %v20231_v46, %s15531_s29  ;;  %v9078_v0 = vsel %vm247_vm0, %v9065_v7, %v9073_v10 }
 0xc1c   :  { %11091 = vrot.lane.b32.xlu0 %v20223_v6, %s15532_s6  ;;  %v9082_v6 = vsel %vm247_vm0, %v9057_v17, %v9065_v7  ;;  %v9027_v17 = vmul.f32 %v9020_v49, %v22753_v45 }
 0xc1d   :  { %v9075_v35 = vpop.permute.xlu1 %9074  ;;  %v14348_v12 = vpack.c.bf16 %v9105_v20, %v9101_v16  ;;  %v14360_v16 = vpack.c.bf16 %v9028_v60, %v9024_v62  ;;  %v9102_v10 = vmul.f32 %v9082_v6, %v22751_v2  ;;  %v9040_v62 = vld [vmem:[#allocation8 + $0x20] sm:$0xff]  ;;  %v9023_v6 = vmul.f32 %v9019_v29, %v22753_v45 }
 0xc1e   :  { %v9091_v1 = vsel %vm247_vm0, %v9075_v35, %v9051_v54  ;;  %v8980_v28 = vpop.permute.xlu0 %8979  ;;  %v9007_v54 = vsel %vm136_vm1, %v20293_v21, %v20281_v18  ;;  %v9012_v18 = vsel %vm136_vm1, %v20299_v3, %v20315_v37 }
 0xc1f   :  { %v9104_v32 = vmul.f32 %v9091_v1, %v22749_v31  ;;  %10834 = vrot.lane.b32.xlu1 %v20253_v44, %s15531_s29  ;;  %14349 = vmatprep.subr.bf16.mxu0 %v14348_v12  ;;  %v9008_v12 = vsel %vm136_vm1, %v20315_v37, %v20307_v63  ;;  %v9103_v1 = vmul.f32 %v9078_v0, %v22750_v47 }
 0xc20   :  { %11099 = vrot.lane.b32.xlu0 %v20243_v33, %s15532_s6  ;;  %v9030_v3 = vmul.f32 %v9008_v12, %v22755_v13  ;;  %v14362_v0 = vpack.c.bf16 %v9027_v17, %v9023_v6  ;;  %v9041_v12 = vld [vmem:[#allocation8 + $0x28] sm:$0xff]  ;;  %v9537_v6 = vsel %vm358_vm2, %v20317_v41, %v20301_v39 }
 0xc21   :  { %v14350_v57 = vpack.c.bf16 %v9104_v32, %v9100_v40  ;;  %v9067_v50 = vpop.permute.xlu1 %9066  ;;  %v9026_v32 = vmul.f32 %v9007_v54, %v22755_v13 }
 0xc22   :  { %v9079_v7 = vsel %vm247_vm0, %v9067_v50, %v9075_v35  ;;  %v9083_v20 = vsel %vm247_vm0, %v9059_v30, %v9067_v50  ;;  %v8988_v49 = vpop.permute.xlu0 %8987  ;;  %v9011_v35 = vsel %vm136_vm1, %v20261_v24, %v20293_v21 }
 0xc23   :  { %v9106_v63 = vmul.f32 %v9083_v20, %v22751_v2  ;;  %v9107_v60 = vmul.f32 %v9079_v7, %v22750_v47  ;;  %11093 = vrot.lane.b32.xlu1 %v20241_v25, %s15532_s6  ;;  %14351 = vmatpush1.bf16.msra.mxu0 %v14350_v57  ;;  %v9029_v57 = vmul.f32 %v9012_v18, %v22754_v52 }
 0xc24   :  { %11083 = vrot.lane.b32.xlu0 %v20217_v15, %s15532_s6  ;;  %14361 = vmatprep.subr.bf16.mxu0 %v14360_v16  ;;  %v9025_v50 = vmul.f32 %v9011_v35, %v22754_v52  ;;  %v9017_v24 = vsel %vm136_vm1, %v8980_v28, %v8988_v49  ;;  %v14368_v21 = vpack.c.bf16 %v9030_v3, %v9026_v32 }
 0xc25   :  { %v14358_v37 = vpack.c.bf16 %v9106_v63, %v9102_v10  ;;  %v8982_v30 = vpop.permute.xlu1 %8981  ;;  %v14356_v40 = vpack.c.bf16 %v9107_v60, %v9103_v1  ;;  %v9534_v10 = vsel %vm358_vm2, %v20323_v43, %v20331_v27  ;;  %v9032_v7 = vmul.f32 %v9017_v24, %v22752_v51  ;;  %v9042_v1 = vld [vmem:[#allocation8 + $0x30] sm:$0xff] }
 0xc26   :  { %v9004_v29 = vpop.permute.xlu0 %9003  ;;  %13798 = vmatmul.mubr.msk.f32.vlgmr.msra.gmra.mrb[24].mxu0 %vm1397_vm8, %v9040_v62  ;;  %v14370_v17 = vpack.c.bf16 %v9029_v57, %v9025_v50  ;;  %v9533_v60 = vsel %vm358_vm2, %v20301_v39, %v20309_v22  ;;  %v9043_v57 = vld [vmem:[#allocation8 + $0x38] sm:$0xff] }
 0xc27   :  { %11101 = vrot.lane.b32.xlu1 %v20263_v58, %s15532_s6  ;;  %14357 = vmatprep.subr.bf16.mxu1 %v14356_v40  ;;  %v9021_v63 = vsel %vm136_vm1, %v9004_v29, %v8980_v28  ;;  %v9538_v28 = vsel %vm358_vm2, %v20339_v23, %v20323_v43  ;;  %v9542_v43 = vmul.f32 %v9533_v60, %v22756_v11 }
 0xc28   :  { %11107 = vrot.lane.b32.xlu0 %v20233_v34, %s15532_s6  ;;  %14363 = vmatpush1.bf16.msra.mxu0 %v14362_v0  ;;  %v9031_v39 = vmul.f32 %v9021_v63, %v22753_v45  ;;  %v9545_v24 = vmul.f32 %v9538_v28, %v22757_v4  ;;  %v8971_v63 = vld [vmem:[#allocation8] sm:$0xff]  ;;  %v9530_v60 = vsel %vm358_vm2, %v20331_v27, %v20347_v36  ;;  %v8972_v27 = vld [vmem:[#allocation8 + $0x8] sm:$0xff] }
 0xc29   :  { %14359 = vmatpush1.bf16.msra.mxu1 %v14358_v37  ;;  %v8990_v54 = vpop.permute.xlu1 %8989  ;;  %9190 = vmatprep.mubr.f32.mxu0 %v22764_v55  ;;  %v9546_v37 = vmul.f32 %v9534_v10, %v22756_v11  ;;  %v9529_v28 = vsel %vm358_vm2, %v20309_v22, %v20325_v48 }
 0xc2a   :  { %v9018_v16 = vsel %vm136_vm1, %v8982_v30, %v8990_v54  ;;  %14369 = vmatprep.subr.bf16.mxu1 %v14368_v21  ;;  %v8996_v18 = vpop.permute.xlu0 %8995  ;;  %13799 = vmatmul.mubr.msk.f32.gmra.mrb[26].mxu0 %vm1397_vm8, %v9041_v12  ;;  %v9526_v21 = vsel %vm358_vm2, %v20347_v36, %v20339_v23  ;;  %v9547_v36 = vmul.f32 %v9530_v60, %v22799_v61 }
 0xc2b   :  { %v9036_v20 = vmul.f32 %v9018_v16, %v22752_v51  ;;  %11085 = vrot.lane.b32.xlu1 %v20231_v46, %s15532_s6  ;;  %9196 = vmatprep.mubr.f32.mxu0 %v22764_v55  ;;  %v9013_v32 = vsel %vm136_vm1, %v8988_v49, %v8996_v18  ;;  %v9009_v50 = vsel %vm136_vm1, %v8996_v18, %v9004_v29 }
 0xc2c   :  { %13802 = vmatmul.mubr.msk.f32.vlgmr.msra.gmra.mrb[24].mxu1 %vm1397_vm8, %v9040_v62  ;;  %v9525_v49 = vsel %vm358_vm2, %v20325_v48, %v20317_v41  ;;  %v9033_v29 = vmul.f32 %v9013_v32, %v22754_v52  ;;  %v14376_v10 = vpack.c.bf16 %v9546_v37, %v9542_v43  ;;  %v9543_v22 = vmul.f32 %v9529_v28, %v22799_v61 }
 0xc2d   :  { %14371 = vmatpush1.bf16.msra.mxu1 %v14370_v17  ;;  %v9006_v3 = vpop.permute.xlu1 %9005  ;;  %9279 = vmatprep.mubr.f32.mxu1 %v22764_v55  ;;  %v14364_v35 = vpack.c.bf16 %v9036_v20, %v9032_v7  ;;  %v9034_v7 = vmul.f32 %v9009_v50, %v22755_v13 }
 0xc2e   :  { %v9022_v62 = vsel %vm136_vm1, %v9006_v3, %v8982_v30  ;;  %v20614_v40 = vpop.permute.xlu0 %9497  ;;  %13800 = vmatmul.mubr.msk.f32.gmra.mrb[28].mxu0 %vm1397_vm8, %v9042_v1  ;;  %v9541_v30 = vmul.f32 %v9537_v6, %v22757_v4 }
 0xc2f   :  { %v9035_v0 = vmul.f32 %v9022_v62, %v22753_v45  ;;  %11109 = vrot.lane.b32.xlu1 %v20253_v44, %s15532_s6  ;;  %14365 = vmatprep.subr.bf16.mxu0 %v14364_v35  ;;  %v9544_v62 = vmul.f32 %v9525_v49, %v22759_v14 }
 0xc30   :  { %13803 = vmatmul.mubr.msk.f32.gmra.mrb[26].mxu1 %vm1397_vm8, %v9041_v12  ;;  %9202 = vmatprep.mubr.f32.mxu0 %v22764_v55  ;;  %v14378_v6 = vpack.c.bf16 %v9545_v24, %v9541_v30  ;;  %v14386_v30 = vpack.c.bf16 %v9547_v36, %v9543_v22  ;;  %v8973_v24 = vld [vmem:[#allocation8 + $0x10] sm:$0xff]  ;;  %v9489_v22 = vld [vmem:[#allocation8 + $0x40] sm:$0xff] }
 0xc31   :  { %v14366_v17 = vpack.c.bf16 %v9035_v0, %v9031_v39  ;;  %v8998_v16 = vpop.permute.xlu1 %8997  ;;  %9285 = vmatprep.mubr.f32.mxu1 %v22764_v55 }
 0xc32   :  { %v9010_v12 = vsel %vm136_vm1, %v8998_v16, %v9006_v3  ;;  %v9014_v18 = vsel %vm136_vm1, %v8990_v54, %v8998_v16  ;;  %v9506_v41 = vpop.permute.xlu0 %9505  ;;  %13801 = vmatmul.mubr.msk.f32.gmra.mrb[30].mxu0 %vm1397_vm8, %v9043_v57  ;;  %v9548_v54 = vmul.f32 %v9526_v21, %v22759_v14  ;;  %v9812_v16 = vsel %vm469_vm3, %v20349_v38, %v20333_v5 }
 0xc33   :  { %v9037_v23 = vmul.f32 %v9014_v18, %v22754_v52  ;;  %v9038_v20 = vmul.f32 %v9010_v12, %v22755_v13  ;;  %14367 = vmatpush1.bf16.msra.mxu0 %v14366_v17  ;;  %9374 = vmatprep.mubr.f32.mxu0 %v22764_v55  ;;  %v9808_v17 = vsel %vm469_vm3, %v20333_v5, %v20341_v9 }
 0xc34   :  { %13804 = vmatmul.mubr.msk.f32.gmra.mrb[28].mxu1 %vm1397_vm8, %v9042_v1  ;;  %14377 = vmatprep.subr.bf16.mxu0 %v14376_v10  ;;  %v9535_v1 = vsel %vm358_vm2, %v20614_v40, %v9506_v41  ;;  %v14384_v32 = vpack.c.bf16 %v9548_v54, %v9544_v62  ;;  %v9816_v60 = vmul.f32 %v9812_v16, %v22800_v19 }
 0xc35   :  { %v14374_v3 = vpack.c.bf16 %v9037_v23, %v9033_v29  ;;  %v9500_v35 = vpop.permute.xlu1 %9499  ;;  %9291 = vmatprep.mubr.f32.mxu1 %v22764_v55  ;;  %v14372_v37 = vpack.c.bf16 %v9038_v20, %v9034_v7  ;;  %v9550_v50 = vmul.f32 %v9535_v1, %v22756_v11 }
 0xc36   :  { %v9522_v39 = vpop.permute.xlu0 %9521  ;;  %13806 = vmatmul.mubr.msk.f32.vlgmr.msra.gmra.mrb[24].mxu0 %vm1397_vm8, %v8971_v63 }
 0xc37   :  { %14373 = vmatprep.subr.bf16.mxu1 %v14372_v37  ;;  %14379 = vmatpush1.bf16.msra.mxu0 %v14378_v6  ;;  %v9539_v21 = vsel %vm358_vm2, %v9522_v39, %v20614_v40  ;;  %v9813_v40 = vsel %vm469_vm3, %v20371_v56, %v20355_v59 }
 0xc38   :  { %13805 = vmatmul.mubr.msk.f32.gmra.mrb[30].mxu1 %vm1397_vm8, %v9043_v57  ;;  %9380 = vmatprep.mubr.f32.mxu0 %v22764_v55  ;;  %v9809_v57 = vsel %vm469_vm3, %v20355_v59, %v20363_v42  ;;  %v9549_v5 = vmul.f32 %v9539_v21, %v22757_v4  ;;  %v9817_v59 = vmul.f32 %v9808_v17, %v22760_v26 }
 0xc39   :  { %14375 = vmatpush1.bf16.msra.mxu1 %v14374_v3  ;;  %v9508_v48 = vpop.permute.xlu1 %9507  ;;  %9463 = vmatprep.mubr.f32.mxu1 %v22764_v55  ;;  %v9821_v18 = vmul.f32 %v9809_v57, %v22760_v26  ;;  %v9820_v6 = vmul.f32 %v9813_v40, %v22800_v19  ;;  %v22973_v3 = vld [vmem:[#allocation20_spill] sm:$0xff]  ;;  %v9804_v21 = vsel %vm469_vm3, %v20341_v9, %v20357_v53 }
 0xc3a   :  { %v9536_v0 = vsel %vm358_vm2, %v9500_v35, %v9508_v48  ;;  %14385 = vmatprep.subr.bf16.mxu1 %v14384_v32  ;;  %v9514_v43 = vpop.permute.xlu0 %9513  ;;  %13807 = vmatmul.mubr.msk.f32.gmra.mrb[26].mxu0 %vm1397_vm8, %v8972_v27 }
 0xc3b   :  { %v9554_v49 = vmul.f32 %v9536_v0, %v22756_v11  ;;  %9386 = vmatprep.mubr.f32.mxu0 %v22764_v55  ;;  %v9531_v23 = vsel %vm358_vm2, %v9506_v41, %v9514_v43  ;;  %v9527_v54 = vsel %vm358_vm2, %v9514_v43, %v9522_v39  ;;  %v9800_v41 = vsel %vm469_vm3, %v20357_v53, %v20349_v38 }
 0xc3c   :  { %13810 = vmatmul.mubr.msk.f32.vlgmr.msra.gmra.mrb[24].mxu1 %vm1397_vm8, %v8971_v63  ;;  %v8974_v63 = vld [vmem:[#allocation8 + $0x18] sm:$0xff]  ;;  %v9551_v62 = vmul.f32 %v9531_v23, %v22799_v61  ;;  %v9552_v1 = vmul.f32 %v9527_v54, %v22759_v14  ;;  %v9805_v0 = vsel %vm469_vm3, %v20363_v42, %v22973_v3 }
 0xc3d   :  { %14387 = vmatpush1.bf16.msra.mxu1 %v14386_v30  ;;  %v9524_v29 = vpop.permute.xlu1 %9523  ;;  %9469 = vmatprep.mubr.f32.mxu1 %v22764_v55  ;;  %v14380_v12 = vpack.c.bf16 %v9554_v49, %v9550_v50  ;;  %v14394_v30 = vpack.c.bf16 %v9820_v6, %v9816_v60  ;;  %v22975_v42 = vld [vmem:[#allocation41_spill] sm:$0xff] }
 0xc3e   :  { %v9540_v10 = vsel %vm358_vm2, %v9524_v29, %v9500_v35  ;;  %v20700_v7 = vpop.permute.xlu0 %9772  ;;  %13808 = vmatmul.mubr.msk.f32.gmra.mrb[28].mxu0 %vm1397_vm8, %v8973_v24  ;;  %v9801_v35 = vsel %vm469_vm3, %v22973_v3, %v20371_v56  ;;  %v9818_v53 = vmul.f32 %v9804_v21, %v22975_v42  ;;  %v9764_v21 = vld [vmem:[#allocation8 + $0x60] sm:$0xff] }
 0xc3f   :  { %v9553_v20 = vmul.f32 %v9540_v10, %v22757_v4  ;;  %14381 = vmatprep.subr.bf16.mxu0 %v14380_v12  ;;  %9392 = vmatprep.mubr.f32.mxu0 %v22764_v55 }
 0xc40   :  { %13811 = vmatmul.mubr.msk.f32.gmra.mrb[26].mxu1 %vm1397_vm8, %v8972_v27  ;;  %v14392_v27 = vpack.c.bf16 %v9821_v18, %v9817_v59 }
 0xc41   :  { %v14382_v37 = vpack.c.bf16 %v9553_v20, %v9549_v5  ;;  %v9516_v28 = vpop.permute.xlu1 %9515  ;;  %9475 = vmatprep.mubr.f32.mxu1 %v22764_v55 }
 0xc42   :  { %v9528_v39 = vsel %vm358_vm2, %v9516_v28, %v9524_v29  ;;  %v9532_v36 = vsel %vm358_vm2, %v9508_v48, %v9516_v28  ;;  %v9781_v38 = vpop.permute.xlu0 %9780  ;;  %13809 = vmatmul.mubr.msk.f32.gmra.mrb[30].mxu0 %vm1397_vm8, %v8974_v63  ;;  %v22974_v48 = vld [vmem:[#allocation32_spill] sm:$0xff]  ;;  %v9822_v29 = vmul.f32 %v9805_v0, %v22975_v42 }
 0xc43   :  { %v9555_v56 = vmul.f32 %v9532_v36, %v22799_v61  ;;  %v9556_v32 = vmul.f32 %v9528_v39, %v22759_v14  ;;  %14383 = vmatpush1.bf16.msra.mxu0 %v14382_v37  ;;  %9633 = vmatprep.mubr.f32.mxu0 %v22764_v55  ;;  %v9823_v43 = vmul.f32 %v9801_v35, %v22974_v48  ;;  %v9492_v37 = vld [vmem:[#allocation8 + $0x58] sm:$0xff] }
 0xc44   :  { %13812 = vmatmul.mubr.msk.f32.gmra.mrb[28].mxu1 %vm1397_vm8, %v8973_v24  ;;  %14393 = vmatprep.subr.bf16.mxu0 %v14392_v27  ;;  %v9819_v17 = vmul.f32 %v9800_v41, %v22974_v48  ;;  %v9490_v24 = vld [vmem:[#allocation8 + $0x48] sm:$0xff]  ;;  %v9810_v12 = vsel %vm469_vm3, %v20700_v7, %v9781_v38  ;;  %v14402_v5 = vpack.c.bf16 %v9822_v29, %v9818_v53  ;;  %v22976_v36 = vld [vmem:[#allocation26_spill] sm:$0xff]  ;;  %v22982_v53 = vld [vmem:[#allocation57_spill] sm:$0xff] }
 0xc45   :  { %v14390_v57 = vpack.c.bf16 %v9555_v56, %v9551_v62  ;;  %v9775_v50 = vpop.permute.xlu1 %9774  ;;  %9481 = vmatprep.mubr.f32.mxu1 %v22764_v55  ;;  %v14388_v49 = vpack.c.bf16 %v9556_v32, %v9552_v1  ;;  %v9825_v23 = vmul.f32 %v9810_v12, %v22760_v26  ;;  %v22977_v27 = vld [vmem:[#allocation39_spill] sm:$0xff]  ;;  %v22978_v56 = vld [vmem:[#allocation24_spill] sm:$0xff] }
 0xc46   :  { %v9797_v16 = vpop.permute.xlu0 %9796  ;;  %13814 = vmatmul.mubr.msk.f32.vlgmr.msra.gmra.mrb[24].mxu0 %vm1397_vm8, %v9489_v22  ;;  %v14400_v18 = vpack.c.bf16 %v9823_v43, %v9819_v17  ;;  %v14408_v1 = vpack.c.bf16 %v22977_v27, %v22976_v36  ;;  %v22980_v17 = vld [vmem:[#allocation54_spill] sm:$0xff]  ;;  %v22990_v36 = vld [vmem:[#allocation63_spill] sm:$0xff] }
 0xc47   :  { %14389 = vmatprep.subr.bf16.mxu1 %v14388_v49  ;;  %14395 = vmatpush1.bf16.msra.mxu0 %v14394_v30  ;;  %v9814_v59 = vsel %vm469_vm3, %v9797_v16, %v20700_v7  ;;  %v22991_v27 = vld [vmem:[#allocation59_spill] sm:$0xff] }
 0xc48   :  { %13813 = vmatmul.mubr.msk.f32.gmra.mrb[30].mxu1 %vm1397_vm8, %v8974_v63  ;;  %9639 = vmatprep.mubr.f32.mxu0 %v22764_v55  ;;  %v9491_v63 = vld [vmem:[#allocation8 + $0x50] sm:$0xff]  ;;  %v9824_v3 = vmul.f32 %v9814_v59, %v22800_v19  ;;  %v9765_v59 = vld [vmem:[#allocation8 + $0x68] sm:$0xff] }
 0xc49   :  { %14391 = vmatpush1.bf16.msra.mxu1 %v14390_v57  ;;  %v9783_v9 = vpop.permute.xlu1 %9782  ;;  %9722 = vmatprep.mubr.f32.mxu1 %v22764_v55 }
 0xc4a   :  { %v9811_v40 = vsel %vm469_vm3, %v9775_v50, %v9783_v9  ;;  %14401 = vmatprep.subr.bf16.mxu1 %v14400_v18  ;;  %v9789_v10 = vpop.permute.xlu0 %9788  ;;  %13815 = vmatmul.mubr.msk.f32.gmra.mrb[26].mxu0 %vm1397_vm8, %v9490_v24 }
 0xc4b   :  { %v9829_v20 = vmul.f32 %v9811_v40, %v22760_v26  ;;  %9645 = vmatprep.mubr.f32.mxu0 %v22764_v55  ;;  %v9806_v35 = vsel %vm469_vm3, %v9781_v38, %v9789_v10  ;;  %v9802_v28 = vsel %vm469_vm3, %v9789_v10, %v9797_v16  ;;  %v22979_v38 = vld [vmem:[#allocation58_spill] sm:$0xff]  ;;  %v22981_v16 = vld [vmem:[#allocation17_spill] sm:$0xff]  ;;  %v22984_v10 = vld [vmem:[#allocation28_spill] sm:$0xff] }
 0xc4c   :  { %13818 = vmatmul.mubr.msk.f32.vlgmr.msra.gmra.mrb[24].mxu1 %vm1397_vm8, %v9489_v22  ;;  %v10291_v32 = vsel %vm637_vm4, %v22979_v38, %v22978_v56  ;;  %v9826_v22 = vmul.f32 %v9806_v35, %v22975_v42  ;;  %v9827_v57 = vmul.f32 %v9802_v28, %v22974_v48  ;;  %v10290_v29 = vsel %vm637_vm4, %v22981_v16, %v22980_v17  ;;  %v22988_v35 = vld [vmem:[#allocation16_spill] sm:$0xff] }
 0xc4d   :  { %14403 = vmatpush1.bf16.msra.mxu1 %v14402_v5  ;;  %v9799_v60 = vpop.permute.xlu1 %9798  ;;  %9728 = vmatprep.mubr.f32.mxu1 %v22764_v55  ;;  %v14396_v54 = vpack.c.bf16 %v9829_v20, %v9825_v23  ;;  %v10307_v5 = vmul.f32 %v10291_v32, %v22984_v10  ;;  %v22985_v20 = vld [vmem:[#allocation56_spill] sm:$0xff]  ;;  %v22992_v32 = vld [vmem:[#allocation18_spill] sm:$0xff] }
 0xc4e   :  { %v9815_v41 = vsel %vm469_vm3, %v9799_v60, %v9775_v50  ;;  %v20767_v6 = vpop.permute.xlu0 %11087  ;;  %13816 = vmatmul.mubr.msk.f32.gmra.mrb[28].mxu0 %vm1397_vm8, %v9491_v63 }
 0xc4f   :  { %v9828_v7 = vmul.f32 %v9815_v41, %v22800_v19  ;;  %14397 = vmatprep.subr.bf16.mxu0 %v14396_v54  ;;  %9651 = vmatprep.mubr.f32.mxu0 %v22764_v55  ;;  %v22986_v54 = vld [vmem:[#allocation38_spill] sm:$0xff]  ;;  %v22987_v41 = vld [vmem:[#allocation55_spill] sm:$0xff] }
 0xc50   :  { %13819 = vmatmul.mubr.msk.f32.gmra.mrb[26].mxu1 %vm1397_vm8, %v9490_v24 }
 0xc51   :  { %v14398_v62 = vpack.c.bf16 %v9828_v7, %v9824_v3  ;;  %v9791_v39 = vpop.permute.xlu1 %9790  ;;  %9734 = vmatprep.mubr.f32.mxu1 %v22764_v55  ;;  %v14416_v3 = vpack.c.bf16 %v22987_v41, %v22986_v54  ;;  %v22989_v7 = vld [vmem:[#allocation60_spill] sm:$0xff] }
 0xc52   :  { %v9803_v0 = vsel %vm469_vm3, %v9791_v39, %v9799_v60  ;;  %v9807_v43 = vsel %vm469_vm3, %v9783_v9, %v9791_v39  ;;  %v20790_v30 = vpop.permute.xlu0 %10266  ;;  %13817 = vmatmul.mubr.msk.f32.gmra.mrb[30].mxu0 %vm1397_vm8, %v9492_v37  ;;  %v22983_v9 = vld [vmem:[#allocation53_spill] sm:$0xff]  ;;  %v10303_v60 = vmul.f32 %v10290_v29, %v22984_v10  ;;  %v10299_v28 = vsel %vm637_vm4, %v22989_v7, %v22988_v35 }
 0xc53   :  { %v9830_v50 = vmul.f32 %v9807_v43, %v22975_v42  ;;  %v9831_v49 = vmul.f32 %v9803_v0, %v22974_v48  ;;  %14399 = vmatpush1.bf16.msra.mxu0 %v14398_v62  ;;  %9908 = vmatprep.mubr.f32.mxu0 %v22764_v55  ;;  %v14410_v40 = vpack.c.bf16 %v22983_v9, %v22982_v53  ;;  %v9766_v43 = vld [vmem:[#allocation8 + $0x70] sm:$0xff] }
 0xc54   :  { %13820 = vmatmul.mubr.msk.f32.gmra.mrb[28].mxu1 %vm1397_vm8, %v9491_v63  ;;  %14409 = vmatprep.subr.bf16.mxu0 %v14408_v1  ;;  %v14412_v63 = vpack.c.bf16 %v20241_v25, %v22985_v20  ;;  %v14414_v25 = vpack.c.bf16 %v20231_v46, %v20217_v15  ;;  %v10298_v1 = vsel %vm637_vm4, %v22991_v27, %v22990_v36 }
 0xc55   :  { %v14406_v24 = vpack.c.bf16 %v9830_v50, %v9826_v22  ;;  %v20802_v12 = vpop.permute.xlu1 %11089  ;;  %9740 = vmatprep.mubr.f32.mxu1 %v22764_v55  ;;  %v14404_v18 = vpack.c.bf16 %v9831_v49, %v9827_v57  ;;  %v22993_v22 = vld [vmem:[#allocation19_spill] sm:$0xff]  ;;  %v22994_v57 = vld [vmem:[#allocation34_spill] sm:$0xff]  ;;  %v14420_v46 = vpack.c.bf16 %v20253_v44, %v20233_v34  ;;  %v10295_v29 = vsel %vm637_vm4, %v22988_v35, %v22979_v38 }
 0xc56   :  { %v20808_v23 = vpop.permute.xlu0 %10274  ;;  %13822 = vmatmul.mubr.msk.f32.vlgmr.msra.gmra.mrb[24].mxu0 %vm1397_vm8, %v9764_v21  ;;  %v14418_v0 = vpack.c.bf16 %v22993_v22, %v22992_v32  ;;  %v10309_v15 = vmul.f32 %v10299_v28, %v22994_v57  ;;  %v10305_v49 = vmul.f32 %v10298_v1, %v22994_v57  ;;  %v14422_v34 = vpack.c.bf16 %v20263_v58, %v20243_v33  ;;  %v9767_v44 = vld [vmem:[#allocation8 + $0x78] sm:$0xff]  ;;  %v10041_v32 = vld [vmem:[#allocation8 + $0x90] sm:$0xff] }
 0xc57   :  { %14405 = vmatprep.subr.bf16.mxu1 %v14404_v18  ;;  %14411 = vmatpush1.bf16.msra.mxu0 %v14410_v40  ;;  %v22995_v18 = vld [vmem:[#allocation48_spill] sm:$0xff]  ;;  %v10287_v40 = vsel %vm637_vm4, %v22978_v56, %v22989_v7  ;;  %v10292_v41 = vsel %vm637_vm4, %v20790_v30, %v20808_v23 }
 0xc58   :  { %13821 = vmatmul.mubr.msk.f32.gmra.mrb[30].mxu1 %vm1397_vm8, %v9492_v37  ;;  %14413 = vmatprep.subr.bf16.mxu0 %v14412_v63  ;;  %v14424_v37 = vpack.c.bf16 %v10307_v5, %v10303_v60  ;;  %v14432_v38 = vpack.c.bf16 %v10309_v15, %v10305_v49  ;;  %v10306_v53 = vmul.f32 %v10295_v29, %v22995_v18  ;;  %v22996_v60 = vld [vmem:[#allocation42_spill] sm:$0xff]  ;;  %v10040_v56 = vld [vmem:[#allocation8 + $0x88] sm:$0xff] }
 0xc59   :  { %14407 = vmatpush1.bf16.msra.mxu1 %v14406_v24  ;;  %v20821_v62 = vpop.permute.xlu1 %11097  ;;  %9914 = vmatprep.mubr.f32.mxu0 %v22764_v55  ;;  %v10286_v63 = vsel %vm637_vm4, %v22980_v17, %v22991_v27  ;;  %v10308_v54 = vmul.f32 %v10287_v40, %v22996_v60  ;;  %v10311_v27 = vmul.f32 %v10292_v41, %v22984_v10 }
 0xc5a   :  { %14417 = vmatprep.subr.bf16.mxu1 %v14416_v3  ;;  %v20826_v39 = vpop.permute.xlu0 %10258  ;;  %13823 = vmatmul.mubr.msk.f32.gmra.mrb[26].mxu0 %vm1397_vm8, %v9765_v59  ;;  %v10304_v3 = vmul.f32 %v10286_v63, %v22996_v60  ;;  %v10042_v63 = vld [vmem:[#allocation8 + $0x98] sm:$0xff] }
 0xc5b   :  { %9997 = vmatprep.mubr.f32.mxu1 %v22764_v55  ;;  %14415 = vmatpush1.bf16.msra.mxu0 %v14414_v25  ;;  %v22997_v25 = vld [vmem:[#allocation71_spill] sm:$0xff]  ;;  %v10296_v22 = vsel %vm637_vm4, %v20826_v39, %v20790_v30  ;;  %v23003_v30 = vld [vmem:[#allocation66_spill] sm:$0xff] }
 0xc5c   :  { %13826 = vmatmul.mubr.msk.f32.vlgmr.msra.gmra.mrb[24].mxu1 %vm1397_vm8, %v9764_v21  ;;  %14425 = vmatprep.subr.bf16.mxu0 %v14424_v37  ;;  %v10294_v21 = vsel %vm637_vm4, %v22990_v36, %v22981_v16  ;;  %v10039_v16 = vld [vmem:[#allocation8 + $0x80] sm:$0xff]  ;;  %v14434_v28 = vpack.c.bf16 %v10308_v54, %v10304_v3 }
 0xc5d   :  { %14419 = vmatpush1.bf16.msra.mxu1 %v14418_v0  ;;  %v20840_v50 = vpop.permute.xlu1 %11081  ;;  %9920 = vmatprep.mubr.f32.mxu0 %v22764_v55  ;;  %v10302_v58 = vmul.f32 %v10294_v21, %v22995_v18  ;;  %v22998_v37 = vld [vmem:[#allocation50_spill] sm:$0xff] }
 0xc5e   :  { %14421 = vmatprep.subr.bf16.mxu1 %v14420_v46  ;;  %v20848_v24 = vpop.permute.xlu0 %10282  ;;  %13824 = vmatmul.mubr.msk.f32.gmra.mrb[28].mxu0 %vm1397_vm8, %v9766_v43  ;;  %v10566_v36 = vsel %vm748_vm5, %v22998_v37, %v22997_v25  ;;  %v22999_v0 = vld [vmem:[#allocation62_spill] sm:$0xff]  ;;  %v23001_v46 = vld [vmem:[#allocation61_spill] sm:$0xff] }
 0xc5f   :  { %10003 = vmatprep.mubr.f32.mxu1 %v22764_v55  ;;  %9926 = vmatprep.mubr.f32.mxu0 %v22764_v55  ;;  %v14426_v5 = vpack.c.bf16 %v10306_v53, %v10302_v58  ;;  %v10288_v40 = vsel %vm637_vm4, %v20808_v23, %v20848_v24  ;;  %v10300_v3 = vsel %vm637_vm4, %v20848_v24, %v20826_v39 }
 0xc60   :  { %13827 = vmatmul.mubr.msk.f32.gmra.mrb[26].mxu1 %vm1397_vm8, %v9765_v59  ;;  %v10312_v39 = vmul.f32 %v10288_v40, %v22996_v60 }
 0xc61   :  { %14423 = vmatpush1.bf16.msra.mxu1 %v14422_v34  ;;  %v20861_v9 = vpop.permute.xlu1 %11105  ;;  %10009 = vmatprep.mubr.f32.mxu1 %v22764_v55 }
 0xc62   :  { %14433 = vmatprep.subr.bf16.mxu1 %v14432_v38  ;;  %v20864_v33 = vpop.permute.xlu0 %10541  ;;  %13825 = vmatmul.mubr.msk.f32.gmra.mrb[30].mxu0 %vm1397_vm8, %v9767_v44  ;;  %v10570_v38 = vsel %vm748_vm5, %v23003_v30, %v22998_v37  ;;  %v23006_v37 = vld [vmem:[#allocation68_spill] sm:$0xff] }
 0xc63   :  { %10119 = vmatprep.mubr.f32.mxu0 %v22764_v55 }
 0xc64   :  { %13828 = vmatmul.mubr.msk.f32.gmra.mrb[28].mxu1 %vm1397_vm8, %v9766_v43  ;;  %v23000_v43 = vld [vmem:[#allocation22_spill] sm:$0xff] }
 0xc65   :  { %v10269_v20 = vpop.permute.xlu1 %10268  ;;  %10015 = vmatprep.mubr.f32.mxu1 %v22764_v55  ;;  %v10565_v15 = vsel %vm748_vm5, %v23000_v43, %v22999_v0  ;;  %v10569_v49 = vsel %vm748_vm5, %v23001_v46, %v23000_v43 }
 0xc66   :  { %v20879_v59 = vpop.permute.xlu0 %10549  ;;  %13830 = vmatmul.mubr.msk.f32.vlgmr.msra.gmra.mrb[24].mxu0 %vm1397_vm8, %v10039_v16 }
 0xc67   :  { %14427 = vmatpush1.bf16.msra.mxu0 %v14426_v5  ;;  %10125 = vmatprep.mubr.f32.mxu0 %v22764_v55 }
 0xc68   :  { %13829 = vmatmul.mubr.msk.f32.gmra.mrb[30].mxu1 %vm1397_vm8, %v9767_v44  ;;  %v23002_v44 = vld [vmem:[#allocation30_spill] sm:$0xff] }
 0xc69   :  { %v10277_v17 = vpop.permute.xlu1 %10276  ;;  %10208 = vmatprep.mubr.f32.mxu1 %v22764_v55  ;;  %v10582_v21 = vmul.f32 %v10566_v36, %v23002_v44  ;;  %v10578_v54 = vmul.f32 %v10565_v15, %v23002_v44  ;;  %v10574_v36 = vsel %vm748_vm5, %v23006_v37, %v23003_v30  ;;  %v10313_v15 = vmul.f32 %v10300_v3, %v22994_v57 }
 0xc6a   :  { %v10293_v35 = vsel %vm637_vm4, %v10269_v20, %v10277_v17  ;;  %v20893_v7 = vpop.permute.xlu0 %10533  ;;  %13831 = vmatmul.mubr.msk.f32.gmra.mrb[26].mxu0 %vm1397_vm8, %v10040_v56  ;;  %v10567_v3 = vsel %vm748_vm5, %v20864_v33, %v20879_v59 }
 0xc6b   :  { %v10315_v1 = vmul.f32 %v10293_v35, %v22984_v10  ;;  %10131 = vmatprep.mubr.f32.mxu0 %v22764_v55  ;;  %v23005_v35 = vld [vmem:[#allocation25_spill] sm:$0xff]  ;;  %v14440_v43 = vpack.c.bf16 %v10582_v21, %v10578_v54 }
 0xc6c   :  { %13834 = vmatmul.mubr.msk.f32.vlgmr.msra.gmra.mrb[24].mxu1 %vm1397_vm8, %v10039_v16  ;;  %v10310_v16 = vmul.f32 %v10296_v22, %v22995_v18  ;;  %v10573_v23 = vsel %vm748_vm5, %v23005_v35, %v23001_v46  ;;  %v10561_v40 = vsel %vm748_vm5, %v22999_v0, %v23005_v35 }
 0xc6d   :  { %14435 = vmatpush1.bf16.msra.mxu1 %v14434_v28  ;;  %v10261_v29 = vpop.permute.xlu1 %10260  ;;  %10214 = vmatprep.mubr.f32.mxu1 %v22764_v55  ;;  %v14428_v34 = vpack.c.bf16 %v10315_v1, %v10311_v27 }
 0xc6e   :  { %v10297_v53 = vsel %vm637_vm4, %v10261_v29, %v10269_v20  ;;  %v20924_v58 = vpop.permute.xlu0 %10557  ;;  %13832 = vmatmul.mubr.msk.f32.gmra.mrb[28].mxu0 %vm1397_vm8, %v10041_v32  ;;  %v23004_v20 = vld [vmem:[#allocation49_spill] sm:$0xff] }
 0xc6f   :  { %v10314_v5 = vmul.f32 %v10297_v53, %v22995_v18  ;;  %14429 = vmatprep.subr.bf16.mxu0 %v14428_v34  ;;  %10137 = vmatprep.mubr.f32.mxu0 %v22764_v55  ;;  %v10577_v41 = vmul.f32 %v10569_v49, %v23004_v20  ;;  %v10581_v28 = vmul.f32 %v10570_v38, %v23004_v20  ;;  %v10250_v34 = vld [vmem:[#allocation8 + $0xa0] sm:$0xff] }
 0xc70   :  { %13835 = vmatmul.mubr.msk.f32.gmra.mrb[26].mxu1 %vm1397_vm8, %v10040_v56 }
 0xc71   :  { %v14430_v27 = vpack.c.bf16 %v10314_v5, %v10310_v16  ;;  %v10285_v1 = vpop.permute.xlu1 %10284  ;;  %10220 = vmatprep.mubr.f32.mxu1 %v22764_v55  ;;  %v14442_v21 = vpack.c.bf16 %v10581_v28, %v10577_v41  ;;  %v10251_v41 = vld [vmem:[#allocation8 + $0xa8] sm:$0xff] }
 0xc72   :  { %v10289_v24 = vsel %vm637_vm4, %v10277_v17, %v10285_v1  ;;  %v10301_v56 = vsel %vm637_vm4, %v10285_v1, %v10261_v29  ;;  %v20956_v22 = vpop.permute.xlu0 %10816  ;;  %13833 = vmatmul.mubr.msk.f32.gmra.mrb[30].mxu0 %vm1397_vm8, %v10042_v63  ;;  %v10562_v17 = vsel %vm748_vm5, %v22997_v25, %v23006_v37  ;;  %v23007_v29 = vld [vmem:[#allocation35_spill] sm:$0xff] }
 0xc73   :  { %v10316_v46 = vmul.f32 %v10289_v24, %v22996_v60  ;;  %v10317_v49 = vmul.f32 %v10301_v56, %v22994_v57  ;;  %14431 = vmatpush1.bf16.msra.mxu0 %v14430_v27  ;;  %10394 = vmatprep.mubr.f32.mxu0 %v22764_v55  ;;  %v10584_v30 = vmul.f32 %v10574_v36, %v23007_v29  ;;  %v23008_v25 = vld [vmem:[#allocation43_spill] sm:$0xff]  ;;  %v23009_v27 = vld [vmem:[#allocation73_spill] sm:$0xff] }
 0xc74   :  { %13836 = vmatmul.mubr.msk.f32.gmra.mrb[28].mxu1 %vm1397_vm8, %v10041_v32  ;;  %14441 = vmatprep.subr.bf16.mxu0 %v14440_v43  ;;  %v10580_v5 = vmul.f32 %v10573_v23, %v23007_v29  ;;  %v10583_v32 = vmul.f32 %v10562_v17, %v23008_v25  ;;  %v10579_v35 = vmul.f32 %v10561_v40, %v23008_v25  ;;  %v10252_v56 = vld [vmem:[#allocation8 + $0xb0] sm:$0xff] }
 0xc75   :  { %v14438_v38 = vpack.c.bf16 %v10316_v46, %v10312_v39  ;;  %v10544_v53 = vpop.permute.xlu1 %10543  ;;  %10226 = vmatprep.mubr.f32.mxu1 %v22764_v55  ;;  %v14436_v16 = vpack.c.bf16 %v10317_v49, %v10313_v15  ;;  %v10586_v39 = vmul.f32 %v10567_v3, %v23002_v44  ;;  %v10571_v43 = vsel %vm748_vm5, %v20893_v7, %v20864_v33  ;;  %v23011_v15 = vld [vmem:[#allocation70_spill] sm:$0xff]  ;;  %v23012_v46 = vld [vmem:[#allocation65_spill] sm:$0xff]  ;;  %v23015_v33 = vld [vmem:[#allocation72_spill] sm:$0xff] }
 0xc76   :  { %v20975_v54 = vpop.permute.xlu0 %10824  ;;  %13838 = vmatmul.mubr.msk.f32.vlgmr.msra.gmra.mrb[24].mxu0 %vm1397_vm8, %v10250_v34  ;;  %v14448_v0 = vpack.c.bf16 %v10584_v30, %v10580_v5  ;;  %v14450_v36 = vpack.c.bf16 %v10583_v32, %v10579_v35  ;;  %v10840_v49 = vsel %vm859_vm6, %v23012_v46, %v23011_v15  ;;  %v23013_v17 = vld [vmem:[#allocation69_spill] sm:$0xff]  ;;  %v10585_v3 = vmul.f32 %v10571_v43, %v23004_v20  ;;  %v23018_v43 = vld [vmem:[#allocation74_spill] sm:$0xff] }
 0xc77   :  { %14437 = vmatprep.subr.bf16.mxu1 %v14436_v16  ;;  %14443 = vmatpush1.bf16.msra.mxu0 %v14442_v21  ;;  %v10844_v30 = vsel %vm859_vm6, %v23013_v17, %v23012_v46  ;;  %v23014_v16 = vld [vmem:[#allocation31_spill] sm:$0xff]  ;;  %v10849_v46 = vsel %vm859_vm6, %v23018_v43, %v23015_v33 }
 0xc78   :  { %13837 = vmatmul.mubr.msk.f32.gmra.mrb[30].mxu1 %vm1397_vm8, %v10042_v63  ;;  %10400 = vmatprep.mubr.f32.mxu0 %v22764_v55  ;;  %v23010_v63 = vld [vmem:[#allocation67_spill] sm:$0xff] }
 0xc79   :  { %14439 = vmatpush1.bf16.msra.mxu1 %v14438_v38  ;;  %v10552_v23 = vpop.permute.xlu1 %10551  ;;  %10483 = vmatprep.mubr.f32.mxu1 %v22764_v55  ;;  %v10841_v1 = vsel %vm859_vm6, %v23010_v63, %v23009_v27 }
 0xc7a   :  { %v10568_v28 = vsel %vm748_vm5, %v10544_v53, %v10552_v23  ;;  %14449 = vmatprep.subr.bf16.mxu1 %v14448_v0  ;;  %v20989_v37 = vpop.permute.xlu0 %10808  ;;  %13839 = vmatmul.mubr.msk.f32.gmra.mrb[26].mxu0 %vm1397_vm8, %v10251_v41  ;;  %v10857_v40 = vmul.f32 %v10841_v1, %v23014_v16  ;;  %v10563_v0 = vsel %vm748_vm5, %v20879_v59, %v20924_v58 }
 0xc7b   :  { %v10590_v24 = vmul.f32 %v10568_v28, %v23002_v44  ;;  %10406 = vmatprep.mubr.f32.mxu0 %v22764_v55  ;;  %v10253_v28 = vld [vmem:[#allocation8 + $0xb8] sm:$0xff]  ;;  %v10575_v1 = vsel %vm748_vm5, %v20924_v58, %v20893_v7  ;;  %v10587_v7 = vmul.f32 %v10563_v0, %v23008_v25 }
 0xc7c   :  { %13842 = vmatmul.mubr.msk.f32.vlgmr.msra.gmra.mrb[24].mxu1 %vm1397_vm8, %v10250_v34  ;;  %v10845_v34 = vsel %vm859_vm6, %v23015_v33, %v23010_v63 }
 0xc7d   :  { %14451 = vmatpush1.bf16.msra.mxu1 %v14450_v36  ;;  %v10536_v21 = vpop.permute.xlu1 %10535  ;;  %10489 = vmatprep.mubr.f32.mxu1 %v22764_v55  ;;  %v14444_v38 = vpack.c.bf16 %v10590_v24, %v10586_v39  ;;  %v10853_v36 = vmul.f32 %v10840_v49, %v23014_v16  ;;  %v23017_v39 = vld [vmem:[#allocation64_spill] sm:$0xff] }
 0xc7e   :  { %v10572_v5 = vsel %vm748_vm5, %v10536_v21, %v10544_v53  ;;  %v21020_v32 = vpop.permute.xlu0 %10832  ;;  %13840 = vmatmul.mubr.msk.f32.gmra.mrb[28].mxu0 %vm1397_vm8, %v10252_v56  ;;  %v23016_v53 = vld [vmem:[#allocation51_spill] sm:$0xff]  ;;  %v10848_v59 = vsel %vm859_vm6, %v23017_v39, %v23013_v17 }
 0xc7f   :  { %v10589_v35 = vmul.f32 %v10572_v5, %v23004_v20  ;;  %14445 = vmatprep.subr.bf16.mxu0 %v14444_v38  ;;  %10412 = vmatprep.mubr.f32.mxu0 %v22764_v55  ;;  %v10852_v63 = vmul.f32 %v10844_v30, %v23016_v53  ;;  %v10856_v24 = vmul.f32 %v10845_v34, %v23016_v53 }
 0xc80   :  { %13843 = vmatmul.mubr.msk.f32.gmra.mrb[26].mxu1 %vm1397_vm8, %v10251_v41  ;;  %v14456_v38 = vpack.c.bf16 %v10857_v40, %v10853_v36  ;;  %v10588_v34 = vmul.f32 %v10575_v1, %v23007_v29 }
 0xc81   :  { %v14446_v49 = vpack.c.bf16 %v10589_v35, %v10585_v3  ;;  %v10560_v30 = vpop.permute.xlu1 %10559  ;;  %10495 = vmatprep.mubr.f32.mxu1 %v22764_v55  ;;  %v10525_v3 = vld [vmem:[#allocation8 + $0xc0] sm:$0xff]  ;;  %v14458_v40 = vpack.c.bf16 %v10856_v24, %v10852_v63  ;;  %v10842_v63 = vsel %vm859_vm6, %v20956_v22, %v20975_v54 }
 0xc82   :  { %v10564_v58 = vsel %vm748_vm5, %v10552_v23, %v10560_v30  ;;  %v10576_v41 = vsel %vm748_vm5, %v10560_v30, %v10536_v21  ;;  %v21052_v17 = vpop.permute.xlu0 %11095  ;;  %13841 = vmatmul.mubr.msk.f32.gmra.mrb[30].mxu0 %vm1397_vm8, %v10253_v28  ;;  %v10837_v23 = vsel %vm859_vm6, %v23009_v27, %v23018_v43  ;;  %v23019_v21 = vld [vmem:[#allocation36_spill] sm:$0xff] }
 0xc83   :  { %v10591_v33 = vmul.f32 %v10564_v58, %v23008_v25  ;;  %v10592_v5 = vmul.f32 %v10576_v41, %v23007_v29  ;;  %14447 = vmatpush1.bf16.msra.mxu0 %v14446_v49  ;;  %10669 = vmatprep.mubr.f32.mxu0 %v22764_v55  ;;  %v10859_v0 = vmul.f32 %v10849_v46, %v23019_v21  ;;  %v23020_v27 = vld [vmem:[#allocation44_spill] sm:$0xff] }
 0xc84   :  { %13844 = vmatmul.mubr.msk.f32.gmra.mrb[28].mxu1 %vm1397_vm8, %v10252_v56  ;;  %14457 = vmatprep.subr.bf16.mxu0 %v14456_v38  ;;  %v10836_v49 = vsel %vm859_vm6, %v23011_v15, %v23017_v39  ;;  %v10855_v30 = vmul.f32 %v10848_v59, %v23019_v21  ;;  %v10858_v43 = vmul.f32 %v10837_v23, %v23020_v27  ;;  %v10526_v56 = vld [vmem:[#allocation8 + $0xc8] sm:$0xff] }
 0xc85   :  { %v14454_v35 = vpack.c.bf16 %v10591_v33, %v10587_v7  ;;  %v10819_v36 = vpop.permute.xlu1 %10818  ;;  %10501 = vmatprep.mubr.f32.mxu1 %v22764_v55  ;;  %v14452_v1 = vpack.c.bf16 %v10592_v5, %v10588_v34  ;;  %v10854_v39 = vmul.f32 %v10836_v49, %v23020_v27  ;;  %v10861_v41 = vmul.f32 %v10842_v63, %v23014_v16  ;;  %v10527_v34 = vld [vmem:[#allocation8 + $0xd0] sm:$0xff] }
 0xc86   :  { %v11080_v58 = vpop.permute.xlu0 %11079  ;;  %13846 = vmatmul.mubr.msk.f32.vlgmr.msra.gmra.mrb[24].mxu0 %vm1397_vm8, %v10525_v3  ;;  %v14464_v15 = vpack.c.bf16 %v10859_v0, %v10855_v30  ;;  %v10846_v33 = vsel %vm859_vm6, %v20989_v37, %v20956_v22  ;;  %v11116_v5 = vsel %vm970_vm7, %v20802_v12, %v20821_v62  ;;  %v11120_v23 = vsel %vm970_vm7, %v20840_v50, %v20802_v12 }
 0xc87   :  { %14453 = vmatprep.subr.bf16.mxu1 %v14452_v1  ;;  %14459 = vmatpush1.bf16.msra.mxu0 %v14458_v40  ;;  %v14466_v7 = vpack.c.bf16 %v10858_v43, %v10854_v39  ;;  %v11119_v22 = vsel %vm970_vm7, %v11080_v58, %v20767_v6  ;;  %v10860_v12 = vmul.f32 %v10846_v33, %v23016_v53 }
 0xc88   :  { %13845 = vmatmul.mubr.msk.f32.gmra.mrb[30].mxu1 %vm1397_vm8, %v10253_v28  ;;  %10675 = vmatprep.mubr.f32.mxu0 %v22764_v55  ;;  %v11115_v28 = vsel %vm970_vm7, %v20767_v6, %v21052_v17  ;;  %v10838_v30 = vsel %vm859_vm6, %v20975_v54, %v21020_v32  ;;  %v10528_v6 = vld [vmem:[#allocation8 + $0xd8] sm:$0xff]  ;;  %v10850_v39 = vsel %vm859_vm6, %v21020_v32, %v20989_v37 }
 0xc89   :  { %14455 = vmatpush1.bf16.msra.mxu1 %v14454_v35  ;;  %v10827_v59 = vpop.permute.xlu1 %10826  ;;  %10758 = vmatprep.mubr.f32.mxu1 %v22764_v55  ;;  %v23021_v35 = vld [vmem:[#allocation33_spill] sm:$0xff]  ;;  %v11124_v54 = vsel %vm970_vm7, %v20861_v9, %v20840_v50  ;;  %v10863_v33 = vmul.f32 %v10850_v39, %v23019_v21 }
 0xc8a   :  { %v10843_v24 = vsel %vm859_vm6, %v10819_v36, %v10827_v59  ;;  %14465 = vmatprep.subr.bf16.mxu1 %v14464_v15  ;;  %v11104_v46 = vpop.permute.xlu0 %11103  ;;  %13847 = vmatmul.mubr.msk.f32.gmra.mrb[26].mxu0 %vm1397_vm8, %v10526_v56  ;;  %v11128_v1 = vmul.f32 %v11115_v28, %v23021_v35  ;;  %v11132_v63 = vmul.f32 %v11116_v5, %v23021_v35 }
 0xc8b   :  { %v10865_v38 = vmul.f32 %v10843_v24, %v23014_v16  ;;  %10681 = vmatprep.mubr.f32.mxu0 %v22764_v55 }
 0xc8c   :  { %13850 = vmatmul.mubr.msk.f32.vlgmr.msra.gmra.mrb[24].mxu1 %vm1397_vm8, %v10525_v3  ;;  %v14472_v50 = vpack.c.bf16 %v11132_v63, %v11128_v1 }
 0xc8d   :  { %14467 = vmatpush1.bf16.msra.mxu1 %v14466_v7  ;;  %v10811_v0 = vpop.permute.xlu1 %10810  ;;  %10764 = vmatprep.mubr.f32.mxu1 %v22764_v55  ;;  %v14460_v40 = vpack.c.bf16 %v10865_v38, %v10861_v41  ;;  %v11123_v7 = vsel %vm970_vm7, %v11104_v46, %v11080_v58  ;;  %v10862_v38 = vmul.f32 %v10838_v30, %v23020_v27 }
 0xc8e   :  { %v10847_v3 = vsel %vm859_vm6, %v10811_v0, %v10819_v36  ;;  %v21111_v49 = vpop.permute.xlu0 %11091  ;;  %13848 = vmatmul.mubr.msk.f32.gmra.mrb[28].mxu0 %vm1397_vm8, %v10527_v34  ;;  %v23022_v36 = vld [vmem:[#allocation52_spill] sm:$0xff]  ;;  %v11112_v30 = vsel %vm970_vm7, %v20821_v62, %v20861_v9 }
 0xc8f   :  { %v10864_v43 = vmul.f32 %v10847_v3, %v23016_v53  ;;  %14461 = vmatprep.subr.bf16.mxu0 %v14460_v40  ;;  %10687 = vmatprep.mubr.f32.mxu0 %v22764_v55  ;;  %v11131_v15 = vmul.f32 %v11120_v23, %v23022_v36  ;;  %v11127_v24 = vmul.f32 %v11119_v22, %v23022_v36  ;;  %v10800_v23 = vld [vmem:[#allocation8 + $0xe0] sm:$0xff]  ;;  %v23023_v40 = vld [vmem:[#allocation37_spill] sm:$0xff] }
 0xc90   :  { %13851 = vmatmul.mubr.msk.f32.gmra.mrb[26].mxu1 %vm1397_vm8, %v10526_v56 }
 0xc91   :  { %v14462_v41 = vpack.c.bf16 %v10864_v43, %v10860_v12  ;;  %v10835_v28 = vpop.permute.xlu1 %10834  ;;  %10770 = vmatprep.mubr.f32.mxu1 %v22764_v55  ;;  %v14474_v1 = vpack.c.bf16 %v11131_v15, %v11127_v24  ;;  %v11134_v43 = vmul.f32 %v11124_v54, %v23023_v40 }
 0xc92   :  { %v10839_v37 = vsel %vm859_vm6, %v10827_v59, %v10835_v28  ;;  %v10851_v32 = vsel %vm859_vm6, %v10835_v28, %v10811_v0  ;;  %v11100_v56 = vpop.permute.xlu0 %11099  ;;  %13849 = vmatmul.mubr.msk.f32.gmra.mrb[30].mxu0 %vm1397_vm8, %v10528_v6  ;;  %v11111_v59 = vsel %vm970_vm7, %v21052_v17, %v11104_v46  ;;  %v11130_v0 = vmul.f32 %v11123_v7, %v23023_v40  ;;  %v23024_v17 = vld [vmem:[#allocation45_spill] sm:$0xff] }
 0xc93   :  { %v10866_v58 = vmul.f32 %v10839_v37, %v23020_v27  ;;  %v10867_v5 = vmul.f32 %v10851_v32, %v23019_v21  ;;  %14463 = vmatpush1.bf16.msra.mxu0 %v14462_v41  ;;  %10944 = vmatprep.mubr.f32.mxu0 %v22764_v55  ;;  %v11129_v46 = vmul.f32 %v11111_v59, %v23024_v17  ;;  %v10802_v41 = vld [vmem:[#allocation8 + $0xf0] sm:$0xff] }
 0xc94   :  { %13852 = vmatmul.mubr.msk.f32.gmra.mrb[28].mxu1 %vm1397_vm8, %v10527_v34  ;;  %14473 = vmatprep.subr.bf16.mxu0 %v14472_v50  ;;  %v10801_v34 = vld [vmem:[#allocation8 + $0xe8] sm:$0xff]  ;;  %v11117_v15 = vsel %vm970_vm7, %v21111_v49, %v11100_v56  ;;  %v14480_v39 = vpack.c.bf16 %v11134_v43, %v11130_v0  ;;  %v11133_v62 = vmul.f32 %v11112_v30, %v23024_v17  ;;  %v11075_v43 = vld [vmem:[#allocation8 + $0x100] sm:$0xff] }
 0xc95   :  { %v14470_v22 = vpack.c.bf16 %v10866_v58, %v10862_v38  ;;  %v11094_v3 = vpop.permute.xlu1 %11093  ;;  %10776 = vmatprep.mubr.f32.mxu1 %v22764_v55  ;;  %v14468_v12 = vpack.c.bf16 %v10867_v5, %v10863_v33  ;;  %v11136_v7 = vmul.f32 %v11117_v15, %v23021_v35  ;;  %v10803_v5 = vld [vmem:[#allocation8 + $0xf8] sm:$0xff]  ;;  %v11077_v15 = vld [vmem:[#allocation8 + $0x110] sm:$0xff] }
 0xc96   :  { %v11084_v63 = vpop.permute.xlu0 %11083  ;;  %13854 = vmatmul.mubr.msk.f32.vlgmr.msra.gmra.mrb[24].mxu0 %vm1397_vm8, %v10800_v23  ;;  %v14482_v24 = vpack.c.bf16 %v11133_v62, %v11129_v46 }
 0xc97   :  { %14469 = vmatprep.subr.bf16.mxu1 %v14468_v12  ;;  %14475 = vmatpush1.bf16.msra.mxu0 %v14474_v1  ;;  %v11121_v28 = vsel %vm970_vm7, %v11084_v63, %v21111_v49 }
 0xc98   :  { %13853 = vmatmul.mubr.msk.f32.gmra.mrb[30].mxu1 %vm1397_vm8, %v10528_v6  ;;  %10950 = vmatprep.mubr.f32.mxu0 %v22764_v55  ;;  %v11135_v33 = vmul.f32 %v11121_v28, %v23022_v36 }
 0xc99   :  { %14471 = vmatpush1.bf16.msra.mxu1 %v14470_v22  ;;  %v11102_v9 = vpop.permute.xlu1 %11101  ;;  %11033 = vmatprep.mubr.f32.mxu1 %v22764_v55 }
 0xc9a   :  { %v11118_v54 = vsel %vm970_vm7, %v11094_v3, %v11102_v9  ;;  %14481 = vmatprep.subr.bf16.mxu1 %v14480_v39  ;;  %13855 = vmatmul.mubr.msk.f32.gmra.mrb[26].mxu0 %vm1397_vm8, %v10801_v34  ;;  %v11108_v38 = vpop.permute.xlu0 %11107  ;;  %v11078_v39 = vld [vmem:[#allocation8 + $0x118] sm:$0xff] }
 0xc9b   :  { %v11140_v6 = vmul.f32 %v11118_v54, %v23021_v35  ;;  %10956 = vmatprep.mubr.f32.mxu0 %v22764_v55  ;;  %v11113_v58 = vsel %vm970_vm7, %v11100_v56, %v11108_v38 }
 0xc9c   :  { %13858 = vmatmul.mubr.msk.f32.vlgmr.msra.gmra.mrb[24].mxu1 %vm1397_vm8, %v10800_v23  ;;  %v11125_v23 = vsel %vm970_vm7, %v11108_v38, %v11084_v63  ;;  %v11137_v1 = vmul.f32 %v11113_v58, %v23024_v17 }
 0xc9d   :  { %14483 = vmatpush1.bf16.msra.mxu1 %v14482_v24  ;;  %v11086_v37 = vpop.permute.xlu1 %11085  ;;  %11039 = vmatprep.mubr.f32.mxu1 %v22764_v55  ;;  %v14476_v32 = vpack.c.bf16 %v11140_v6, %v11136_v7 }
 0xc9e   :  { %v11122_v50 = vsel %vm970_vm7, %v11086_v37, %v11094_v3  ;;  %13856 = vmatmul.mubr.msk.f32.gmra.mrb[28].mxu0 %vm1397_vm8, %v10802_v41  ;;  %v11138_v3 = vmul.f32 %v11125_v23, %v23023_v40 }
 0xc9f   :  { %v11139_v49 = vmul.f32 %v11122_v50, %v23022_v36  ;;  %14477 = vmatprep.subr.bf16.mxu0 %v14476_v32  ;;  %10962 = vmatprep.mubr.f32.mxu0 %v22764_v55 }
 0xca0   :  { %13859 = vmatmul.mubr.msk.f32.gmra.mrb[26].mxu1 %vm1397_vm8, %v10801_v34  ;;  %v11076_v34 = vld [vmem:[#allocation8 + $0x108] sm:$0xff] }
 0xca1   :  { %v14478_v59 = vpack.c.bf16 %v11139_v49, %v11135_v33  ;;  %v11110_v0 = vpop.permute.xlu1 %11109  ;;  %11045 = vmatprep.mubr.f32.mxu1 %v22764_v55 }
 0xca2   :  { %v11114_v56 = vsel %vm970_vm7, %v11102_v9, %v11110_v0  ;;  %v11126_v22 = vsel %vm970_vm7, %v11110_v0, %v11086_v37  ;;  %13857 = vmatmul.mubr.msk.f32.gmra.mrb[30].mxu0 %vm1397_vm8, %v10803_v5 }
 0xca3   :  { %v11141_v12 = vmul.f32 %v11114_v56, %v23024_v17  ;;  %v11142_v30 = vmul.f32 %v11126_v22, %v23023_v40  ;;  %14479 = vmatpush1.bf16.msra.mxu0 %v14478_v59  ;;  %11219 = vmatprep.mubr.f32.mxu0 %v22764_v55 }
 0xca4   :  { %13860 = vmatmul.mubr.msk.f32.gmra.mrb[28].mxu1 %vm1397_vm8, %v10802_v41 }
 0xca5   :  { %v14486_v63 = vpack.c.bf16 %v11141_v12, %v11137_v1  ;;  %11051 = vmatprep.mubr.f32.mxu1 %v22764_v55  ;;  %v14484_v46 = vpack.c.bf16 %v11142_v30, %v11138_v3 }
 0xca6   :  { %13862 = vmatmul.mubr.msk.f32.vlgmr.msra.gmra.mrb[24].mxu0 %vm1397_vm8, %v11075_v43 }
 0xca7   :  { %14485 = vmatprep.subr.bf16.mxu1 %v14484_v46  ;;  %11225 = vmatprep.mubr.f32.mxu0 %v22764_v55 }
 0xca8   :  { %13861 = vmatmul.mubr.msk.f32.gmra.mrb[30].mxu1 %vm1397_vm8, %v10803_v5 }
 0xca9   :  { %14487 = vmatpush1.bf16.msra.mxu1 %v14486_v63  ;;  %11308 = vmatprep.mubr.f32.mxu1 %v22764_v55 }
 0xcaa   :  { %13863 = vmatmul.mubr.msk.f32.gmra.mrb[26].mxu0 %vm1397_vm8, %v11076_v34 }
 0xcab   :  { %11231 = vmatprep.mubr.f32.mxu0 %v22764_v55 }
 0xcac   :  { %13866 = vmatmul.mubr.msk.f32.vlgmr.msra.gmra.mrb[24].mxu1 %vm1397_vm8, %v11075_v43 }
 0xcad   :  { %11314 = vmatprep.mubr.f32.mxu1 %v22764_v55 }
 0xcae   :  { %13864 = vmatmul.mubr.msk.f32.gmra.mrb[28].mxu0 %vm1397_vm8, %v11077_v15 }
 0xcaf   :  { %11237 = vmatprep.mubr.f32.mxu0 %v22764_v55 }
 0xcb0   :  { %13867 = vmatmul.mubr.msk.f32.gmra.mrb[26].mxu1 %vm1397_vm8, %v11076_v34 }
 0xcb1   :  { %11320 = vmatprep.mubr.f32.mxu1 %v22764_v55 }
 0xcb2   :  { %13865 = vmatmul.mubr.msk.f32.gmra.mrb[30].mxu0 %vm1397_vm8, %v11078_v39 }
 0xcb3   :  { %11739 = vmatprep.mubr.f32.mxu0 %v22764_v55 }
 0xcb4   :  { %13868 = vmatmul.mubr.msk.f32.gmra.mrb[28].mxu1 %vm1397_vm8, %v11077_v15 }
 0xcb5   :  { %11326 = vmatprep.mubr.f32.mxu1 %v22764_v55 }
 0xcb8   :  { %13869 = vmatmul.mubr.msk.f32.gmra.mrb[30].mxu1 %vm1397_vm8, %v11078_v39 }
 0xcb9   :  { %11810 = vmatprep.mubr.f32.mxu1 %v22764_v55 }
 0xd79   :  { %v21219_v62 = vpop.f32.mrb[24].mxu0 }
 0xd7a   :  { %v11369_v9 = vmul.f32 %v21219_v62, %v21219_v62  ;;  %v21223_v54 = vpop.f32.mrb[25].mxu0 }
 0xd7b   :  { %v11349_v24 = vadd.f32 %v21223_v54, %v21219_v62  ;;  %v11370_v7 = vmul.f32 %v21223_v54, %v21223_v54 }
 0xd7d   :  { %v11385_v6 = vadd.f32 %v11370_v7, %v11369_v9  ;;  %v21229_v41 = vpop.f32.mrb[26].mxu0 }
 0xd7e   :  { %v11373_v28 = vmul.f32 %v21229_v41, %v21229_v41  ;;  %v21233_v38 = vpop.f32.mrb[27].mxu0 }
 0xd7f   :  { %v11354_v37 = vadd.f32 %v21233_v38, %v21229_v41  ;;  %v11374_v32 = vmul.f32 %v21233_v38, %v21233_v38  ;;  %v21239_v50 = vpop.f32.mrb[24].mxu1 }
 0xd80   :  { %v11350_v33 = vadd.f32 %v11349_v24, %v21239_v50  ;;  %v11371_v58 = vmul.f32 %v21239_v50, %v21239_v50  ;;  %v21244_v49 = vpop.f32.mrb[25].mxu1 }
 0xd81   :  { %v11390_v5 = vadd.f32 %v11374_v32, %v11373_v28  ;;  %v11372_v23 = vmul.f32 %v21244_v49, %v21244_v49  ;;  %v21248_v59 = vpop.f32.mrb[28].mxu0 }
 0xd82   :  { %v11386_v0 = vadd.f32 %v11385_v6, %v11371_v58  ;;  %v11351_v1 = vadd.f32 %v11350_v33, %v21244_v49  ;;  %v11377_v56 = vmul.f32 %v21248_v59, %v21248_v59  ;;  %v21253_v22 = vpop.f32.mrb[29].mxu0 }
 0xd83   :  { %v11359_v3 = vadd.f32 %v21253_v22, %v21248_v59  ;;  %v11378_v12 = vmul.f32 %v21253_v22, %v21253_v22  ;;  %v21259_v30 = vpop.f32.mrb[26].mxu1 }
 0xd84   :  { %v11355_v43 = vadd.f32 %v11354_v37, %v21259_v30  ;;  %v11375_v63 = vmul.f32 %v21259_v30, %v21259_v30  ;;  %11352 = vadd.xlane.f32.xlu0 %v11351_v1  ;;  %v21264_v46 = vpop.f32.mrb[27].mxu1  ;;  %v11387_v34 = vadd.f32 %v11386_v0, %v11372_v23 }
 0xd85   :  { %v11395_v15 = vadd.f32 %v11378_v12, %v11377_v56  ;;  %v11376_v39 = vmul.f32 %v21264_v46, %v21264_v46  ;;  %v21268_v9 = vpop.f32.mrb[30].mxu0 }
 0xd86   :  { %v11391_v24 = vadd.f32 %v11390_v5, %v11375_v63  ;;  %v11356_v7 = vadd.f32 %v11355_v43, %v21264_v46  ;;  %v11381_v6 = vmul.f32 %v21268_v9, %v21268_v9  ;;  %v21273_v28 = vpop.f32.mrb[31].mxu0 }
 0xd87   :  { %v11364_v37 = vadd.f32 %v21273_v28, %v21268_v9  ;;  %v11382_v32 = vmul.f32 %v21273_v28, %v21273_v28  ;;  %v21279_v33 = vpop.f32.mrb[28].mxu1 }
 0xd88   :  { %v11360_v58 = vadd.f32 %v11359_v3, %v21279_v33  ;;  %v11379_v5 = vmul.f32 %v21279_v33, %v21279_v33  ;;  %11388 = vadd.xlane.f32.xlu0 %v11387_v34  ;;  %11357 = vadd.xlane.f32.xlu1 %v11356_v7  ;;  %v21284_v23 = vpop.f32.mrb[29].mxu1  ;;  %v11392_v0 = vadd.f32 %v11391_v24, %v11376_v39 }
 0xd89   :  { %v11400_v1 = vadd.f32 %v11382_v32, %v11381_v6  ;;  %v11380_v56 = vmul.f32 %v21284_v23, %v21284_v23 }
 0xd8a   :  { %v11396_v12 = vadd.f32 %v11395_v15, %v11379_v5  ;;  %v11361_v43 = vadd.f32 %v11360_v58, %v21284_v23 }
 0xd8b   :  { %v21289_v63 = vpop.f32.mrb[30].mxu1 }
 0xd8c   :  { %v11365_v42 = vadd.f32 %v11364_v37, %v21289_v63  ;;  %v11383_v3 = vmul.f32 %v21289_v63, %v21289_v63  ;;  %11393 = vadd.xlane.f32.xlu0 %v11392_v0  ;;  %11362 = vadd.xlane.f32.xlu1 %v11361_v43  ;;  %v21294_v34 = vpop.f32.mrb[31].mxu1  ;;  %v11397_v7 = vadd.f32 %v11396_v12, %v11380_v56 }
 0xd8d   :  { %v11384_v39 = vmul.f32 %v21294_v34, %v21294_v34 }
 0xd8e   :  { %v11401_v24 = vadd.f32 %v11400_v1, %v11383_v3  ;;  %v11366_v15 = vadd.f32 %v11365_v42, %v21294_v34 }
 0xd90   :  { %11398 = vadd.xlane.f32.xlu1 %v11397_v7  ;;  %11367 = vadd.xlane.f32.xlu0 %v11366_v15  ;;  %v11402_v6 = vadd.f32 %v11401_v24, %v11384_v39 }
 0xd94   :  { %11403 = vadd.xlane.f32.xlu0 %v11402_v6 }
 0xe11   :  { %v11353_v32 = vpop.xlane.xlu0 %11352 }
 0xe12   :  { %v11405_v37 = vmul.f32 0.001953125, %v11353_v32 }
 0xe14   :  { %v11413_v19 = vmul.f32 %v11405_v37, %v11405_v37  ;;  %v11421_v42 = vsub.f32 %v21219_v62, %v11405_v37  ;;  %v11422_v7 = vsub.f32 %v21223_v54, %v11405_v37  ;;  %v11423_v39 = vsub.f32 %v21239_v50, %v11405_v37 }
 0xe15   :  { %v11389_v58 = vpop.xlane.xlu0 %11388  ;;  %v11358_v5 = vpop.xlane.xlu1 %11357  ;;  %v11424_v24 = vsub.f32 %v21244_v49, %v11405_v37 }
 0xe16   :  { %v11409_v0 = vmul.f32 0.001953125, %v11389_v58  ;;  %v11406_v43 = vmul.f32 0.001953125, %v11358_v5 }
 0xe18   :  { %v11417_v48 = vsub.f32 %v11409_v0, %v11413_v19  ;;  %v11414_v61 = vmul.f32 %v11406_v43, %v11406_v43  ;;  %v11428_v50 = vsub.f32 %v21264_v46, %v11406_v43 }
 0xe19   :  { %v11394_v26 = vpop.xlane.xlu0 %11393 }
 0xe1a   :  { %v11437_v56 = vadd.f32 1e-05, %v11417_v48  ;;  %v11410_v12 = vmul.f32 0.001953125, %v11394_v26  ;;  %v11426_v26 = vsub.f32 %v21233_v38, %v11406_v43  ;;  %v11427_v48 = vsub.f32 %v21259_v30, %v11406_v43 }
 0xe1b   :  { %v11425_v38 = vsub.f32 %v21229_v41, %v11406_v43 }
 0xe1c   :  { %15358 = vrsqrt.f32 %v11437_v56  ;;  %v11418_v1 = vsub.f32 %v11410_v12, %v11414_v61 }
 0xe1e   :  { %v11438_v3 = vadd.f32 1e-05, %v11418_v1 }
 0xe20   :  { %15360 = vrsqrt.f32 %v11438_v3 }
 0xe26   :  { %v15359_v15 = vpop.eup %15358 }
 0xe27   :  { %v11445_v6 = vmul.f32 %v15359_v15, %v11421_v42  ;;  %v11447_v32 = vmul.f32 %v15359_v15, %v11423_v39  ;;  %v11446_v19 = vmul.f32 %v15359_v15, %v11422_v7  ;;  %v11448_v58 = vmul.f32 %v15359_v15, %v11424_v24 }
 0xe29   :  { %v11477_v61 = vmul.f32 1.442695, %v11445_v6  ;;  %v11481_v5 = vmul.f32 1.442695, %v11447_v32  ;;  %v11479_v56 = vmul.f32 1.442695, %v11446_v19 }
 0xe2a   :  { %v15361_v0 = vpop.eup %15360  ;;  %v11483_v62 = vmul.f32 1.442695, %v11448_v58  ;;  %vm11461_vm15 = vcmp.gt.f32.partialorder %v11445_v6, 0.0  ;;  %vm11463_vm9 = vcmp.gt.f32.partialorder %v11447_v32, 0.0  ;;  %vm11462_vm10 = vcmp.gt.f32.partialorder %v11446_v19, 0.0 }
 0xe2b   :  { %15362 = vpow2.f32 %v11477_v61  ;;  %v11450_v54 = vmul.f32 %v15361_v0, %v11426_v26  ;;  %v11451_v12 = vmul.f32 %v15361_v0, %v11427_v48  ;;  %v11452_v1 = vmul.f32 %v15361_v0, %v11428_v50 }
 0xe2c   :  { %15364 = vpow2.f32 %v11481_v5  ;;  %v11449_v3 = vmul.f32 %v15361_v0, %v11425_v38  ;;  %vm11464_vm11 = vcmp.gt.f32.partialorder %v11448_v58, 0.0 }
 0xe2d   :  { %15366 = vpow2.f32 %v11479_v56  ;;  %v11487_v49 = vmul.f32 1.442695, %v11450_v54  ;;  %v11489_v37 = vmul.f32 1.442695, %v11451_v12  ;;  %v11491_v30 = vmul.f32 1.442695, %v11452_v1 }
 0xe2e   :  { %15368 = vpow2.f32 %v11483_v62  ;;  %v11485_v26 = vmul.f32 1.442695, %v11449_v3  ;;  %vm11466_vm12 = vcmp.gt.f32.partialorder %v11450_v54, 0.0  ;;  %vm11467_vm13 = vcmp.gt.f32.partialorder %v11451_v12, 0.0 }
 0xe2f   :  { %15370 = vpow2.f32 %v11487_v49  ;;  %vm11468_vm14 = vcmp.gt.f32.partialorder %v11452_v1, 0.0 }
 0xe30   :  { %15372 = vpow2.f32 %v11489_v37 }
 0xe31   :  { %15374 = vpow2.f32 %v11491_v30 }
 0xe32   :  { %15376 = vpow2.f32 %v11485_v26 }
 0xe35   :  { %v15363_v42 = vpop.eup %15362 }
 0xe36   :  { %v15365_v7 = vpop.eup %15364  ;;  %v13870_v39 = vadd.f32 -1.0, %v15363_v42  ;;  %v11368_v42 = vpop.xlane.xlu0 %11367 }
 0xe37   :  { %v15367_v24 = vpop.eup %15366  ;;  %v13872_v15 = vadd.f32 -1.0, %v15365_v7  ;;  %v11408_v26 = vmul.f32 0.001953125, %v11368_v42 }
 0xe38   :  { %v15369_v46 = vpop.eup %15368  ;;  %v21307_v48 = vsel %vm11461_vm15, %v11445_v6, %v13870_v39  ;;  %v13871_v61 = vadd.f32 -1.0, %v15367_v24  ;;  %vm11465_vm15 = vcmp.gt.f32.partialorder %v11449_v3, 0.0 }
 0xe39   :  { %23025 = vst [vmem:[#allocation20_spill] sm:$0xff] %v21307_v48  ;;  %v15371_v5 = vpop.eup %15370  ;;  %11608 = vrot.lane.b32.xlu1 %v21307_v48, %s15526_s1  ;;  %v21311_v41 = vsel %vm11463_vm9, %v11447_v32, %v13872_v15  ;;  %v13873_v43 = vadd.f32 -1.0, %v15369_v46 }
 0xe3a   :  { %23026 = vst [vmem:[#allocation26_spill] sm:$0xff] %v21311_v41  ;;  %11624 = vrot.lane.b32.xlu0 %v21311_v41, %s15526_s1  ;;  %v21315_v0 = vsel %vm11462_vm10, %v11446_v19, %v13871_v61  ;;  %v13875_v56 = vadd.f32 -1.0, %v15371_v5  ;;  %v15373_v6 = vpop.eup %15372  ;;  %v11404_v15 = vpop.xlane.xlu0 %11403  ;;  %v11416_v5 = vmul.f32 %v11408_v26, %v11408_v26 }
 0xe3b   :  { %23027 = vst [vmem:[#allocation39_spill] sm:$0xff] %v21315_v0  ;;  %v21319_v62 = vsel %vm11464_vm11, %v11448_v58, %v13873_v43  ;;  %v13876_v50 = vadd.f32 -1.0, %v15373_v6  ;;  %v15375_v49 = vpop.eup %15374  ;;  %v11412_v46 = vmul.f32 0.001953125, %v11404_v15 }
 0xe3c   :  { %23028 = vst [vmem:[#allocation24_spill] sm:$0xff] %v21319_v62  ;;  %v21323_v32 = vsel %vm11466_vm12, %v11450_v54, %v13875_v56  ;;  %v13877_v37 = vadd.f32 -1.0, %v15375_v49  ;;  %v15377_v58 = vpop.eup %15376 }
 0xe3d   :  { %11616 = vrot.lane.b32.xlu1 %v21315_v0, %s15526_s1  ;;  %23029 = vst [vmem:[#allocation58_spill] sm:$0xff] %v21323_v32  ;;  %v21329_v19 = vsel %vm11467_vm13, %v11451_v12, %v13876_v50  ;;  %v13874_v38 = vadd.f32 -1.0, %v15377_v58  ;;  %v11420_v43 = vsub.f32 %v11412_v46, %v11416_v5 }
 0xe3e   :  { %11632 = vrot.lane.b32.xlu0 %v21319_v62, %s15526_s1  ;;  %23030 = vst [vmem:[#allocation54_spill] sm:$0xff] %v21329_v19  ;;  %v21335_v54 = vsel %vm11468_vm14, %v11452_v1, %v13877_v37  ;;  %v11363_v1 = vpop.xlane.xlu1 %11362 }
 0xe3f   :  { %23031 = vst [vmem:[#allocation17_spill] sm:$0xff] %v21335_v54  ;;  %v21341_v12 = vsel %vm11465_vm15, %v11449_v3, %v13874_v38  ;;  %v11407_v3 = vmul.f32 0.001953125, %v11363_v1  ;;  %v11440_v56 = vadd.f32 1e-05, %v11420_v43 }
 0xe40   :  { %23032 = vst [vmem:[#allocation57_spill] sm:$0xff] %v21341_v12 }
 0xe41   :  { %11618 = vrot.lane.b32.xlu1 %v21323_v32, %s15526_s1  ;;  %v11415_v39 = vmul.f32 %v11407_v3, %v11407_v3  ;;  %v11429_v50 = vsub.f32 %v21248_v59, %v11407_v3  ;;  %v11430_v37 = vsub.f32 %v21253_v22, %v11407_v3  ;;  %v11431_v59 = vsub.f32 %v21279_v33, %v11407_v3 }
 0xe42   :  { %11542 = vrot.lane.b32.xlu0 %v21307_v48, %s15525_s21  ;;  %v11399_v30 = vpop.xlane.xlu1 %11398 }
 0xe43   :  { %v11411_v7 = vmul.f32 0.001953125, %v11399_v30  ;;  %v11433_v30 = vsub.f32 %v21268_v9, %v11408_v26  ;;  %v11432_v9 = vsub.f32 %v21284_v23, %v11407_v3 }
 0xe45   :  { %11626 = vrot.lane.b32.xlu1 %v21329_v19, %s15526_s1  ;;  %v11419_v24 = vsub.f32 %v11411_v7, %v11415_v39  ;;  %v11434_v39 = vsub.f32 %v21273_v28, %v11408_v26 }
 0xe46   :  { %11550 = vrot.lane.b32.xlu0 %v21315_v0, %s15525_s21 }
 0xe47   :  { %v11439_v61 = vadd.f32 1e-05, %v11419_v24 }
 0xe49   :  { %11634 = vrot.lane.b32.xlu1 %v21335_v54, %s15526_s1  ;;  %15378 = vrsqrt.f32 %v11439_v61  ;;  %v11435_v61 = vsub.f32 %v21289_v63, %v11408_v26 }
 0xe4a   :  { %11558 = vrot.lane.b32.xlu0 %v21311_v41, %s15525_s21  ;;  %15380 = vrsqrt.f32 %v11440_v56  ;;  %v11436_v56 = vsub.f32 %v21294_v34, %v11408_v26 }
 0xe4d   :  { %11544 = vrot.lane.b32.xlu1 %v21341_v12, %s15525_s21 }
 0xe4e   :  { %11566 = vrot.lane.b32.xlu0 %v21319_v62, %s15525_s21 }
 0xe51   :  { %11552 = vrot.lane.b32.xlu1 %v21323_v32, %s15525_s21 }
 0xe52   :  { %11964 = vrot.lane.b32.xlu0 %v21307_v48, %s15527_s9 }
 0xe53   :  { %v15379_v6 = vpop.eup %15378 }
 0xe54   :  { %v11453_v49 = vmul.f32 %v15379_v6, %v11429_v50  ;;  %v15381_v58 = vpop.eup %15380  ;;  %v11454_v1 = vmul.f32 %v15379_v6, %v11430_v37  ;;  %v21437_v7 = vmul.f32 %v15379_v6, %v11431_v59  ;;  %v21449_v46 = vmul.f32 %v15379_v6, %v11432_v9 }
 0xe55   :  { %11560 = vrot.lane.b32.xlu1 %v21329_v19, %s15525_s21  ;;  %v21435_v42 = vmul.f32 %v15381_v58, %v11433_v30  ;;  %v21446_v24 = vmul.f32 %v15381_v58, %v11434_v39  ;;  %v21459_v3 = vmul.f32 %v15381_v58, %v11435_v61  ;;  %v21470_v37 = vmul.f32 %v15381_v58, %v11436_v56 }
 0xe56   :  { %11972 = vrot.lane.b32.xlu0 %v21315_v0, %s15527_s9  ;;  %v11493_v38 = vmul.f32 1.442695, %v11453_v49  ;;  %v11495_v22 = vmul.f32 1.442695, %v11454_v1  ;;  %v11497_v15 = vmul.f32 1.442695, %v21437_v7 }
 0xe57   :  { %v11501_v33 = vmul.f32 1.442695, %v21435_v42  ;;  %v11503_v23 = vmul.f32 1.442695, %v21446_v24  ;;  %v11499_v43 = vmul.f32 1.442695, %v21449_v46 }
 0xe58   :  { %15382 = vpow2.f32 %v11493_v38  ;;  %v11505_v50 = vmul.f32 1.442695, %v21459_v3  ;;  %v11507_v59 = vmul.f32 1.442695, %v21470_v37  ;;  %vm11469_vm9 = vcmp.gt.f32.partialorder %v11453_v49, 0.0 }
 0xe59   :  { %11568 = vrot.lane.b32.xlu1 %v21335_v54, %s15525_s21  ;;  %15384 = vpow2.f32 %v11495_v22  ;;  %vm11470_vm10 = vcmp.gt.f32.partialorder %v11454_v1, 0.0  ;;  %vm11471_vm11 = vcmp.gt.f32.partialorder %v21437_v7, 0.0  ;;  %vm11473_vm12 = vcmp.gt.f32.partialorder %v21435_v42, 0.0 }
 0xe5a   :  { %11980 = vrot.lane.b32.xlu0 %v21311_v41, %s15527_s9  ;;  %15386 = vpow2.f32 %v11501_v33  ;;  %vm11474_vm13 = vcmp.gt.f32.partialorder %v21446_v24, 0.0  ;;  %vm11472_vm14 = vcmp.gt.f32.partialorder %v21449_v46, 0.0  ;;  %vm11475_vm15 = vcmp.gt.f32.partialorder %v21459_v3, 0.0 }
 0xe5b   :  { %15388 = vpow2.f32 %v11497_v15 }
 0xe5c   :  { %15390 = vpow2.f32 %v11503_v23 }
 0xe5d   :  { %11966 = vrot.lane.b32.xlu1 %v21341_v12, %s15527_s9  ;;  %15392 = vpow2.f32 %v11499_v43 }
 0xe5e   :  { %11988 = vrot.lane.b32.xlu0 %v21319_v62, %s15527_s9  ;;  %15394 = vpow2.f32 %v11505_v50 }
 0xe5f   :  { %15396 = vpow2.f32 %v11507_v59 }
 0xe61   :  { %11974 = vrot.lane.b32.xlu1 %v21323_v32, %s15527_s9 }
 0xe62   :  { %12179 = vrot.lane.b32.xlu0 %v21307_v48, %s15528_s16  ;;  %v15383_v63 = vpop.eup %15382 }
 0xe63   :  { %v13878_v34 = vadd.f32 -1.0, %v15383_v63  ;;  %v15385_v26 = vpop.eup %15384 }
 0xe64   :  { %v15387_v58 = vpop.eup %15386  ;;  %v13879_v9 = vadd.f32 -1.0, %v15385_v26 }
 0xe65   :  { %11982 = vrot.lane.b32.xlu1 %v21329_v19, %s15527_s9  ;;  %v21485_v39 = vsel %vm11469_vm9, %v11453_v49, %v13878_v34  ;;  %v15389_v33 = vpop.eup %15388  ;;  %v13882_v23 = vadd.f32 -1.0, %v15387_v58  ;;  %vm11476_vm9 = vcmp.gt.f32.partialorder %v21470_v37, 0.0 }
 0xe66   :  { %12187 = vrot.lane.b32.xlu0 %v21315_v0, %s15528_s16  ;;  %v15391_v43 = vpop.eup %15390  ;;  %v21496_v49 = vsel %vm11470_vm10, %v11454_v1, %v13879_v9  ;;  %v13880_v63 = vadd.f32 -1.0, %v15389_v33 }
 0xe67   :  { %v15393_v50 = vpop.eup %15392  ;;  %v21517_v33 = vsel %vm11473_vm12, %v21435_v42, %v13882_v23 }
 0xe69   :  { %11990 = vrot.lane.b32.xlu1 %v21335_v54, %s15527_s9 }
 0xe6a   :  { %12195 = vrot.lane.b32.xlu0 %v21311_v41, %s15528_s16 }
 0xe6d   :  { %12181 = vrot.lane.b32.xlu1 %v21341_v12, %s15528_s16 }
 0xe6e   :  { %12203 = vrot.lane.b32.xlu0 %v21319_v62, %s15528_s16 }
 0xe71   :  { %12189 = vrot.lane.b32.xlu1 %v21323_v32, %s15528_s16 }
 0xe72   :  { %12545 = vrot.lane.b32.xlu0 %v21307_v48, %s15529_s10 }
 0xe75   :  { %12197 = vrot.lane.b32.xlu1 %v21329_v19, %s15528_s16 }
 0xe76   :  { %12553 = vrot.lane.b32.xlu0 %v21315_v0, %s15529_s10 }
 0xe79   :  { %12205 = vrot.lane.b32.xlu1 %v21335_v54, %s15528_s16 }
 0xe7a   :  { %12561 = vrot.lane.b32.xlu0 %v21311_v41, %s15529_s10 }
 0xe7d   :  { %12547 = vrot.lane.b32.xlu1 %v21341_v12, %s15529_s10 }
 0xe7e   :  { %12569 = vrot.lane.b32.xlu0 %v21319_v62, %s15529_s10 }
 0xe81   :  { %12555 = vrot.lane.b32.xlu1 %v21323_v32, %s15529_s10 }
 0xe82   :  { %12760 = vrot.lane.b32.xlu0 %v21307_v48, %s15530_s19 }
 0xe85   :  { %12563 = vrot.lane.b32.xlu1 %v21329_v19, %s15529_s10 }
 0xe86   :  { %12768 = vrot.lane.b32.xlu0 %v21315_v0, %s15530_s19 }
 0xe89   :  { %12571 = vrot.lane.b32.xlu1 %v21335_v54, %s15529_s10 }
 0xe8a   :  { %12776 = vrot.lane.b32.xlu0 %v21311_v41, %s15530_s19 }
 0xe8d   :  { %12762 = vrot.lane.b32.xlu1 %v21341_v12, %s15530_s19 }
 0xe8e   :  { %12784 = vrot.lane.b32.xlu0 %v21319_v62, %s15530_s19 }
 0xe91   :  { %12770 = vrot.lane.b32.xlu1 %v21323_v32, %s15530_s19 }
 0xe92   :  { %12975 = vrot.lane.b32.xlu0 %v21307_v48, %s15531_s29 }
 0xe95   :  { %12778 = vrot.lane.b32.xlu1 %v21329_v19, %s15530_s19 }
 0xe96   :  { %12983 = vrot.lane.b32.xlu0 %v21315_v0, %s15531_s29 }
 0xe99   :  { %12786 = vrot.lane.b32.xlu1 %v21335_v54, %s15530_s19 }
 0xe9a   :  { %12991 = vrot.lane.b32.xlu0 %v21311_v41, %s15531_s29 }
 0xe9d   :  { %12977 = vrot.lane.b32.xlu1 %v21341_v12, %s15531_s29 }
 0xe9e   :  { %12999 = vrot.lane.b32.xlu0 %v21319_v62, %s15531_s29 }
 0xea1   :  { %12985 = vrot.lane.b32.xlu1 %v21323_v32, %s15531_s29 }
 0xea2   :  { %13190 = vrot.lane.b32.xlu0 %v21307_v48, %s15532_s6  ;;  %v21522_v48 = vsel %vm11471_vm11, %v21437_v7, %v13880_v63 }
 0xea5   :  { %12993 = vrot.lane.b32.xlu1 %v21329_v19, %s15531_s29 }
 0xea6   :  { %13198 = vrot.lane.b32.xlu0 %v21315_v0, %s15532_s6 }
 0xea9   :  { %13001 = vrot.lane.b32.xlu1 %v21335_v54, %s15531_s29 }
 0xeaa   :  { %13206 = vrot.lane.b32.xlu0 %v21311_v41, %s15532_s6  ;;  %v15395_v41 = vpop.eup %15394 }
 0xeab   :  { %v21456_v28 = vpop.permute.xlu1 %11608  ;;  %v13884_v63 = vadd.f32 -1.0, %v15395_v41 }
 0xeac   :  { %v11625_v5 = vpop.permute.xlu0 %11624 }
 0xead   :  { %13192 = vrot.lane.b32.xlu1 %v21341_v12, %s15532_s6  ;;  %v21551_v41 = vsel %vm11475_vm15, %v21459_v3, %v13884_v63 }
 0xeae   :  { %13214 = vrot.lane.b32.xlu0 %v21319_v62, %s15532_s6 }
 0xeaf   :  { %v21467_v6 = vpop.permute.xlu1 %11616 }
 0xeb0   :  { %v21472_v38 = vpop.permute.xlu0 %11632  ;;  %v11644_v26 = vsel %vm247_vm0, %v21467_v6, %v11625_v5 }
 0xeb1   :  { %13200 = vrot.lane.b32.xlu1 %v21323_v32, %s15532_s6  ;;  %v11640_v34 = vsel %vm247_vm0, %v11625_v5, %v21472_v38 }
 0xeb2   :  { %11610 = vrot.lane.b32.xlu0 %v21341_v12, %s15526_s1  ;;  %v11659_v5 = vmul.f32 %v11640_v34, %v22750_v47 }
 0xeb3   :  { %v21478_v30 = vpop.permute.xlu1 %11618 }
 0xeb4   :  { %v21481_v22 = vpop.permute.xlu0 %11542 }
 0xeb5   :  { %13208 = vrot.lane.b32.xlu1 %v21329_v19, %s15532_s6  ;;  %v13883_v19 = vadd.f32 -1.0, %v15391_v43 }
 0xeb6   :  { %11612 = vrot.lane.b32.xlu0 %v21485_v39, %s15526_s1 }
 0xeb7   :  { %v11627_v15 = vpop.permute.xlu1 %11626  ;;  %v21536_v7 = vsel %vm11474_vm13, %v21446_v24, %v13883_v19 }
 0xeb8   :  { %v21489_v61 = vpop.permute.xlu0 %11550  ;;  %v11645_v56 = vsel %vm247_vm0, %v21478_v30, %v11627_v15 }
 0xeb9   :  { %13216 = vrot.lane.b32.xlu1 %v21335_v54, %s15532_s6  ;;  %v11662_v1 = vmul.f32 %v11645_v56, %v22751_v2  ;;  %v13881_v56 = vadd.f32 -1.0, %v15393_v50  ;;  %v15397_v50 = vpop.eup %15396 }
 0xeba   :  { %11620 = vrot.lane.b32.xlu0 %v21496_v49, %s15526_s1  ;;  %v13885_v19 = vadd.f32 -1.0, %v15397_v50 }
 0xebb   :  { %v21506_v59 = vpop.permute.xlu1 %11634 }
 0xebc   :  { %v11641_v58 = vsel %vm247_vm0, %v11627_v15, %v21506_v59  ;;  %v21514_v9 = vpop.permute.xlu0 %11558  ;;  %v11658_v15 = vmul.f32 %v11644_v26, %v22751_v2  ;;  %v21539_v26 = vsel %vm11472_vm14, %v21449_v46, %v13881_v56 }
 0xebd   :  { %v11663_v12 = vmul.f32 %v11641_v58, %v22750_v47  ;;  %11614 = vrot.lane.b32.xlu1 %v21517_v33, %s15526_s1  ;;  %v21563_v58 = vsel %vm11476_vm9, %v21470_v37, %v13885_v19 }
 0xebe   :  { %11628 = vrot.lane.b32.xlu0 %v21522_v48, %s15526_s1  ;;  %v14498_v43 = vpack.c.bf16 %v11662_v1, %v11658_v15 }
 0xebf   :  { %v21529_v42 = vpop.permute.xlu1 %11544  ;;  %v14496_v23 = vpack.c.bf16 %v11663_v12, %v11659_v5 }
 0xec0   :  { %v21532_v34 = vpop.permute.xlu0 %11566 }
 0xec1   :  { %11622 = vrot.lane.b32.xlu1 %v21536_v7, %s15526_s1  ;;  %14497 = vmatprep.subr.bf16.mxu1 %v14496_v23 }
 0xec2   :  { %11636 = vrot.lane.b32.xlu0 %v21539_v26, %s15526_s1  ;;  %14499 = vmatpush1.bf16.msra.mxu1 %v14498_v43 }
 0xec3   :  { %v21545_v12 = vpop.permute.xlu1 %11552 }
 0xec4   :  { %v21548_v1 = vpop.permute.xlu0 %11964 }
 0xec5   :  { %23033 = vst [vmem:[#allocation53_spill] sm:$0xff] %v21548_v1  ;;  %11630 = vrot.lane.b32.xlu1 %v21551_v41, %s15526_s1 }
 0xec6   :  { %11546 = vrot.lane.b32.xlu0 %v21485_v39, %s15525_s21 }
 0xec7   :  { %v21557_v24 = vpop.permute.xlu1 %11560 }
 0xec8   :  { %v21560_v46 = vpop.permute.xlu0 %11972 }
 0xec9   :  { %23034 = vst [vmem:[#allocation56_spill] sm:$0xff] %v21560_v46  ;;  %11638 = vrot.lane.b32.xlu1 %v21563_v58, %s15526_s1 }
 0xeca   :  { %11554 = vrot.lane.b32.xlu0 %v21496_v49, %s15525_s21 }
 0xecb   :  { %v21569_v3 = vpop.permute.xlu1 %11568 }
 0xecc   :  { %v21571_v5 = vpop.permute.xlu0 %11980 }
 0xecd   :  { %23035 = vst [vmem:[#allocation38_spill] sm:$0xff] %v21571_v5  ;;  %11548 = vrot.lane.b32.xlu1 %v21517_v33, %s15525_s21 }
 0xece   :  { %11562 = vrot.lane.b32.xlu0 %v21522_v48, %s15525_s21 }
 0xecf   :  { %v21577_v56 = vpop.permute.xlu1 %11966 }
 0xed0   :  { %v21579_v37 = vpop.permute.xlu0 %11988 }
 0xed1   :  { %23036 = vst [vmem:[#allocation55_spill] sm:$0xff] %v21579_v37  ;;  %11556 = vrot.lane.b32.xlu1 %v21536_v7, %s15525_s21 }
 0xed2   :  { %11570 = vrot.lane.b32.xlu0 %v21539_v26, %s15525_s21 }
 0xed3   :  { %v21585_v15 = vpop.permute.xlu1 %11974 }
 0xed4   :  { %v21587_v23 = vpop.permute.xlu0 %12179 }
 0xed5   :  { %23037 = vst [vmem:[#allocation16_spill] sm:$0xff] %v21587_v23  ;;  %11564 = vrot.lane.b32.xlu1 %v21551_v41, %s15525_s21 }
 0xed6   :  { %11968 = vrot.lane.b32.xlu0 %v21485_v39, %s15527_s9 }
 0xed7   :  { %v21593_v43 = vpop.permute.xlu1 %11982 }
 0xed8   :  { %23038 = vst [vmem:[#allocation60_spill] sm:$0xff] %v21593_v43  ;;  %v21595_v63 = vpop.permute.xlu0 %12187 }
 0xed9   :  { %23039 = vst [vmem:[#allocation63_spill] sm:$0xff] %v21595_v63  ;;  %11572 = vrot.lane.b32.xlu1 %v21563_v58, %s15525_s21 }
 0xeda   :  { %11976 = vrot.lane.b32.xlu0 %v21496_v49, %s15527_s9 }
 0xedb   :  { %v21601_v50 = vpop.permute.xlu1 %11990 }
 0xedc   :  { %23040 = vst [vmem:[#allocation59_spill] sm:$0xff] %v21601_v50  ;;  %v21603_v19 = vpop.permute.xlu0 %12195 }
 0xedd   :  { %23041 = vst [vmem:[#allocation18_spill] sm:$0xff] %v21603_v19  ;;  %11970 = vrot.lane.b32.xlu1 %v21517_v33, %s15527_s9 }
 0xede   :  { %11984 = vrot.lane.b32.xlu0 %v21522_v48, %s15527_s9 }
 0xedf   :  { %v21609_v54 = vpop.permute.xlu1 %12181 }
 0xee0   :  { %23042 = vst [vmem:[#allocation19_spill] sm:$0xff] %v21609_v54  ;;  %v21611_v62 = vpop.permute.xlu0 %12203 }
 0xee1   :  { %23043 = vst [vmem:[#allocation71_spill] sm:$0xff] %v21611_v62  ;;  %11978 = vrot.lane.b32.xlu1 %v21536_v7, %s15527_s9 }
 0xee2   :  { %11992 = vrot.lane.b32.xlu0 %v21539_v26, %s15527_s9 }
 0xee3   :  { %v21617_v32 = vpop.permute.xlu1 %12189 }
 0xee4   :  { %23044 = vst [vmem:[#allocation50_spill] sm:$0xff] %v21617_v32  ;;  %v12546_v0 = vpop.permute.xlu0 %12545 }
 0xee5   :  { %11986 = vrot.lane.b32.xlu1 %v21551_v41, %s15527_s9 }
 0xee6   :  { %12183 = vrot.lane.b32.xlu0 %v21485_v39, %s15528_s16 }
 0xee7   :  { %v21623_v19 = vpop.permute.xlu1 %12197 }
 0xee8   :  { %23045 = vst [vmem:[#allocation62_spill] sm:$0xff] %v21623_v19  ;;  %v12554_v23 = vpop.permute.xlu0 %12553 }
 0xee9   :  { %v12585_v62 = vsel %vm637_vm4, %v12546_v0, %v12554_v23  ;;  %11994 = vrot.lane.b32.xlu1 %v21563_v58, %s15527_s9 }
 0xeea   :  { %12191 = vrot.lane.b32.xlu0 %v21496_v49, %s15528_s16  ;;  %v21650_v37 = vmul.f32 %v12585_v62, %v22995_v18 }
 0xeeb   :  { %v21631_v63 = vpop.permute.xlu1 %12205 }
 0xeec   :  { %23046 = vst [vmem:[#allocation22_spill] sm:$0xff] %v21631_v63  ;;  %v12562_v54 = vpop.permute.xlu0 %12561  ;;  %23047 = vst [vmem:[#allocation61_spill] sm:$0xff] %v21650_v37 }
 0xeed   :  { %v12581_v32 = vsel %vm637_vm4, %v12554_v23, %v12562_v54  ;;  %12185 = vrot.lane.b32.xlu1 %v21517_v33, %s15528_s16 }
 0xeee   :  { %12199 = vrot.lane.b32.xlu0 %v21522_v48, %s15528_s16  ;;  %v21664_v62 = vmul.f32 %v12581_v32, %v22984_v10 }
 0xeef   :  { %v12548_v19 = vpop.permute.xlu1 %12547 }
 0xef0   :  { %v12570_v4 = vpop.permute.xlu0 %12569 }
 0xef1   :  { %v12577_v14 = vsel %vm637_vm4, %v12562_v54, %v12570_v4  ;;  %v12589_v11 = vsel %vm637_vm4, %v12570_v4, %v12546_v0  ;;  %12193 = vrot.lane.b32.xlu1 %v21536_v7, %s15528_s16 }
 0xef2   :  { %12207 = vrot.lane.b32.xlu0 %v21539_v26, %s15528_s16  ;;  %v21678_v37 = vmul.f32 %v12577_v14, %v22996_v60 }
 0xef3   :  { %v12556_v23 = vpop.permute.xlu1 %12555 }
 0xef4   :  { %v12586_v63 = vsel %vm637_vm4, %v12548_v19, %v12556_v23  ;;  %v12761_v5 = vpop.permute.xlu0 %12760  ;;  %23049 = vst [vmem:[#allocation25_spill] sm:$0xff] %v21678_v37 }
 0xef5   :  { %v21653_v1 = vmul.f32 %v12586_v63, %v22995_v18  ;;  %12201 = vrot.lane.b32.xlu1 %v21551_v41, %s15528_s16 }
 0xef6   :  { %12549 = vrot.lane.b32.xlu0 %v21485_v39, %s15529_s10 }
 0xef7   :  { %23048 = vst [vmem:[#allocation66_spill] sm:$0xff] %v21653_v1  ;;  %v12564_v0 = vpop.permute.xlu1 %12563 }
 0xef8   :  { %v12582_v54 = vsel %vm637_vm4, %v12556_v23, %v12564_v0  ;;  %v12769_v46 = vpop.permute.xlu0 %12768 }
 0xef9   :  { %v21667_v63 = vmul.f32 %v12582_v54, %v22984_v10  ;;  %v12800_v18 = vsel %vm748_vm5, %v12761_v5, %v12769_v46  ;;  %12209 = vrot.lane.b32.xlu1 %v21563_v58, %s15528_s16  ;;  %v21685_v10 = vmul.f32 %v12589_v11, %v22994_v57 }
 0xefa   :  { %12557 = vrot.lane.b32.xlu0 %v21496_v49, %s15529_s10 }
 0xefb   :  { %v12572_v4 = vpop.permute.xlu1 %12571 }
 0xefc   :  { %v12578_v32 = vsel %vm637_vm4, %v12564_v0, %v12572_v4  ;;  %v12590_v54 = vsel %vm637_vm4, %v12572_v4, %v12548_v19  ;;  %v12777_v1 = vpop.permute.xlu0 %12776  ;;  %v21714_v4 = vmul.f32 %v12800_v18, %v23004_v20 }
 0xefd   :  { %v21688_v43 = vmul.f32 %v12578_v32, %v22996_v60  ;;  %v21691_v50 = vmul.f32 %v12590_v54, %v22994_v57  ;;  %v12796_v14 = vsel %vm748_vm5, %v12769_v46, %v12777_v1  ;;  %12551 = vrot.lane.b32.xlu1 %v21517_v33, %s15529_s10 }
 0xefe   :  { %12565 = vrot.lane.b32.xlu0 %v21522_v48, %s15529_s10  ;;  %23051 = vst [vmem:[#allocation73_spill] sm:$0xff] %v21714_v4  ;;  %v21728_v18 = vmul.f32 %v12796_v14, %v23002_v44 }
 0xeff   :  { %23050 = vst [vmem:[#allocation68_spill] sm:$0xff] %v21688_v43  ;;  %v12763_v11 = vpop.permute.xlu1 %12762 }
 0xf00   :  { %v12785_v0 = vpop.permute.xlu0 %12784 }
 0xf01   :  { %v12792_v32 = vsel %vm748_vm5, %v12777_v1, %v12785_v0  ;;  %v12804_v46 = vsel %vm748_vm5, %v12785_v0, %v12761_v5  ;;  %12559 = vrot.lane.b32.xlu1 %v21536_v7, %s15529_s10 }
 0xf02   :  { %12573 = vrot.lane.b32.xlu0 %v21539_v26, %s15529_s10  ;;  %v21742_v4 = vmul.f32 %v12792_v32, %v23008_v25 }
 0xf03   :  { %v12771_v54 = vpop.permute.xlu1 %12770 }
 0xf04   :  { %v12801_v19 = vsel %vm748_vm5, %v12763_v11, %v12771_v54  ;;  %v12976_v23 = vpop.permute.xlu0 %12975  ;;  %23053 = vst [vmem:[#allocation70_spill] sm:$0xff] %v21742_v4 }
 0xf05   :  { %v21717_v37 = vmul.f32 %v12801_v19, %v23004_v20  ;;  %12567 = vrot.lane.b32.xlu1 %v21551_v41, %s15529_s10 }
 0xf06   :  { %12764 = vrot.lane.b32.xlu0 %v21485_v39, %s15530_s19 }
 0xf07   :  { %23052 = vst [vmem:[#allocation67_spill] sm:$0xff] %v21717_v37  ;;  %v12779_v5 = vpop.permute.xlu1 %12778  ;;  %v21749_v37 = vmul.f32 %v12804_v46, %v23007_v29 }
 0xf08   :  { %v12797_v0 = vsel %vm748_vm5, %v12771_v54, %v12779_v5  ;;  %v12984_v43 = vpop.permute.xlu0 %12983 }
 0xf09   :  { %v21731_v19 = vmul.f32 %v12797_v0, %v23002_v44  ;;  %v13015_v20 = vsel %vm859_vm6, %v12976_v23, %v12984_v43  ;;  %12575 = vrot.lane.b32.xlu1 %v21563_v58, %s15529_s10 }
 0xf0a   :  { %12772 = vrot.lane.b32.xlu0 %v21496_v49, %s15530_s19 }
 0xf0b   :  { %v12787_v1 = vpop.permute.xlu1 %12786 }
 0xf0c   :  { %v12793_v14 = vsel %vm748_vm5, %v12779_v5, %v12787_v1  ;;  %v12805_v0 = vsel %vm748_vm5, %v12787_v1, %v12763_v11  ;;  %v12992_v44 = vpop.permute.xlu0 %12991  ;;  %v21778_v1 = vmul.f32 %v13015_v20, %v23016_v53 }
 0xf0d   :  { %v21752_v57 = vmul.f32 %v12793_v14, %v23008_v25  ;;  %v21755_v60 = vmul.f32 %v12805_v0, %v23007_v29  ;;  %v13011_v32 = vsel %vm859_vm6, %v12984_v43, %v12992_v44  ;;  %12766 = vrot.lane.b32.xlu1 %v21517_v33, %s15530_s19 }
 0xf0e   :  { %12780 = vrot.lane.b32.xlu0 %v21522_v48, %s15530_s19  ;;  %23055 = vst [vmem:[#allocation69_spill] sm:$0xff] %v21778_v1  ;;  %v21792_v20 = vmul.f32 %v13011_v32, %v23014_v16 }
 0xf0f   :  { %23054 = vst [vmem:[#allocation65_spill] sm:$0xff] %v21752_v57  ;;  %v12978_v46 = vpop.permute.xlu1 %12977 }
 0xf10   :  { %v13000_v5 = vpop.permute.xlu0 %12999 }
 0xf11   :  { %v13007_v14 = vsel %vm859_vm6, %v12992_v44, %v13000_v5  ;;  %v13019_v43 = vsel %vm859_vm6, %v13000_v5, %v12976_v23  ;;  %12774 = vrot.lane.b32.xlu1 %v21536_v7, %s15530_s19 }
 0xf12   :  { %12788 = vrot.lane.b32.xlu0 %v21539_v26, %s15530_s19  ;;  %v21806_v1 = vmul.f32 %v13007_v14, %v23020_v27 }
 0xf13   :  { %v12986_v0 = vpop.permute.xlu1 %12985 }
 0xf14   :  { %v13016_v11 = vsel %vm859_vm6, %v12978_v46, %v12986_v0  ;;  %v13191_v54 = vpop.permute.xlu0 %13190  ;;  %23057 = vst [vmem:[#allocation64_spill] sm:$0xff] %v21806_v1 }
 0xf15   :  { %v21781_v29 = vmul.f32 %v13016_v11, %v23016_v53  ;;  %12782 = vrot.lane.b32.xlu1 %v21551_v41, %s15530_s19 }
 0xf16   :  { %12979 = vrot.lane.b32.xlu0 %v21485_v39, %s15531_s29 }
 0xf17   :  { %23056 = vst [vmem:[#allocation72_spill] sm:$0xff] %v21781_v29  ;;  %v12994_v23 = vpop.permute.xlu1 %12993  ;;  %v21813_v29 = vmul.f32 %v13019_v43, %v23019_v21 }
 0xf18   :  { %v13012_v5 = vsel %vm859_vm6, %v12986_v0, %v12994_v23  ;;  %v13199_v25 = vpop.permute.xlu0 %13198 }
 0xf19   :  { %v21795_v11 = vmul.f32 %v13012_v5, %v23014_v16  ;;  %v13230_v53 = vsel %vm970_vm7, %v13191_v54, %v13199_v25  ;;  %12790 = vrot.lane.b32.xlu1 %v21563_v58, %s15530_s19 }
 0xf1a   :  { %12987 = vrot.lane.b32.xlu0 %v21496_v49, %s15531_s29 }
 0xf1b   :  { %v13002_v44 = vpop.permute.xlu1 %13001 }
 0xf1c   :  { %v13008_v32 = vsel %vm859_vm6, %v12994_v23, %v13002_v44  ;;  %v13020_v5 = vsel %vm859_vm6, %v13002_v44, %v12978_v46  ;;  %v13207_v16 = vpop.permute.xlu0 %13206  ;;  %v11652_v46 = vsel %vm247_vm0, %v21472_v38, %v21456_v28  ;;  %v21850_v44 = vmul.f32 %v13230_v53, %v23022_v36 }
 0xf1d   :  { %v21816_v4 = vmul.f32 %v13008_v32, %v23020_v27  ;;  %v21819_v57 = vmul.f32 %v13020_v5, %v23019_v21  ;;  %v13226_v14 = vsel %vm970_vm7, %v13199_v25, %v13207_v16  ;;  %12981 = vrot.lane.b32.xlu1 %v21517_v33, %s15531_s29  ;;  %v11648_v5 = vsel %vm247_vm0, %v21456_v28, %v21467_v6  ;;  %v23059_v28 = vld [vmem:[#allocation21_spill] sm:$0xff] }
 0xf1e   :  { %12995 = vrot.lane.b32.xlu0 %v21522_v48, %s15531_s29  ;;  %v11657_v38 = vmul.f32 %v11648_v5, %v23059_v28  ;;  %v11656_v27 = vmul.f32 %v11652_v46, %v22749_v31  ;;  %v21874_v5 = vmul.f32 %v13226_v14, %v23021_v35  ;;  %v11583_v46 = vsel %vm136_vm1, %v21529_v42, %v21545_v12 }
 0xf1f   :  { %23058 = vst [vmem:[#allocation74_spill] sm:$0xff] %v21816_v4  ;;  %v13193_v43 = vpop.permute.xlu1 %13192 }
 0xf20   :  { %v13215_v23 = vpop.permute.xlu0 %13214 }
 0xf21   :  { %v13222_v32 = vsel %vm970_vm7, %v13207_v16, %v13215_v23  ;;  %v13234_v25 = vsel %vm970_vm7, %v13215_v23, %v13191_v54  ;;  %12989 = vrot.lane.b32.xlu1 %v21536_v7, %s15531_s29 }
 0xf22   :  { %13003 = vrot.lane.b32.xlu0 %v21539_v26, %s15531_s29 }
 0xf23   :  { %v13201_v16 = vpop.permute.xlu1 %13200 }
 0xf24   :  { %v13231_v54 = vsel %vm970_vm7, %v13193_v43, %v13201_v16  ;;  %v11611_v23 = vpop.permute.xlu0 %11610 }
 0xf25   :  { %v21853_v0 = vmul.f32 %v13231_v54, %v23022_v36  ;;  %v11649_v6 = vsel %vm247_vm0, %v11611_v23, %v21478_v30  ;;  %v11653_v21 = vsel %vm247_vm0, %v21506_v59, %v11611_v23  ;;  %12997 = vrot.lane.b32.xlu1 %v21551_v41, %s15531_s29 }
 0xf26   :  { %v11660_v53 = vmul.f32 %v11653_v21, %v22749_v31  ;;  %v11661_v54 = vmul.f32 %v11649_v6, %v23059_v28  ;;  %13194 = vrot.lane.b32.xlu0 %v21485_v39, %s15532_s6 }
 0xf27   :  { %v13209_v36 = vpop.permute.xlu1 %13208 }
 0xf28   :  { %v14490_v1 = vpack.c.bf16 %v11660_v53, %v11656_v27  ;;  %v13227_v59 = vsel %vm970_vm7, %v13201_v16, %v13209_v36  ;;  %v11613_v23 = vpop.permute.xlu0 %11612  ;;  %v14488_v4 = vpack.c.bf16 %v11661_v54, %v11657_v38  ;;  %v21890_v38 = vmul.f32 %v13222_v32, %v23024_v17 }
 0xf29   :  { %v21877_v21 = vmul.f32 %v13227_v59, %v23021_v35  ;;  %13005 = vrot.lane.b32.xlu1 %v21563_v58, %s15531_s29  ;;  %v21893_v53 = vmul.f32 %v13234_v25, %v23023_v40  ;;  %v11587_v35 = vsel %vm136_vm1, %v21569_v3, %v21529_v42 }
 0xf2a   :  { %13202 = vrot.lane.b32.xlu0 %v21496_v49, %s15532_s6  ;;  %14489 = vmatprep.subr.bf16.mxu0 %v14488_v4  ;;  %23060 = vst [vmem:[#allocation21_spill] sm:$0xff] %v21890_v38 }
 0xf2b   :  { %14491 = vmatpush1.bf16.msra.mxu0 %v14490_v1  ;;  %v13217_v27 = vpop.permute.xlu1 %13216  ;;  %23061 = vst [vmem:[#allocation75_spill] sm:$0xff] %v21893_v53 }
 0xf2c   :  { %v13223_v16 = vsel %vm970_vm7, %v13209_v36, %v13217_v27  ;;  %v13235_v14 = vsel %vm970_vm7, %v13217_v27, %v13193_v43  ;;  %v11621_v6 = vpop.permute.xlu0 %11620 }
 0xf2d   :  { %v21896_v4 = vmul.f32 %v13223_v16, %v23024_v17  ;;  %v21899_v1 = vmul.f32 %v13235_v14, %v23023_v40  ;;  %13196 = vrot.lane.b32.xlu1 %v21517_v33, %s15532_s6  ;;  %v11650_v54 = vsel %vm247_vm0, %v11613_v23, %v11621_v6  ;;  %v11575_v17 = vsel %vm136_vm1, %v21557_v24, %v21569_v3 }
 0xf2e   :  { %13210 = vrot.lane.b32.xlu0 %v21522_v48, %s15532_s6  ;;  %v11665_v14 = vmul.f32 %v11650_v54, %v23059_v28  ;;  %v11574_v54 = vsel %vm136_vm1, %v21514_v9, %v21532_v34  ;;  %v11597_v53 = vmul.f32 %v11575_v17, %v22755_v13  ;;  %v11578_v17 = vsel %vm136_vm1, %v21489_v61, %v21514_v9 }
 0xf2f   :  { %23062 = vst [vmem:[#allocation76_spill] sm:$0xff] %v21896_v4  ;;  %23063 = vst [vmem:[#allocation77_spill] sm:$0xff] %v21899_v1  ;;  %v11615_v43 = vpop.permute.xlu1 %11614 }
 0xf30   :  { %v11629_v25 = vpop.permute.xlu0 %11628 }
 0xf31   :  { %13204 = vrot.lane.b32.xlu1 %v21536_v7, %s15532_s6  ;;  %v11646_v38 = vsel %vm247_vm0, %v11621_v6, %v11629_v25 }
 0xf32   :  { %13218 = vrot.lane.b32.xlu0 %v21539_v26, %s15532_s6 }
 0xf33   :  { %v11623_v59 = vpop.permute.xlu1 %11622 }
 0xf34   :  { %v11651_v27 = vsel %vm247_vm0, %v11615_v43, %v11623_v59  ;;  %v11637_v16 = vpop.permute.xlu0 %11636 }
 0xf35   :  { %v11669_v36 = vmul.f32 %v11651_v27, %v23059_v28  ;;  %13212 = vrot.lane.b32.xlu1 %v21551_v41, %s15532_s6  ;;  %v11642_v27 = vsel %vm247_vm0, %v11629_v25, %v11637_v16 }
 0xf36   :  { %v11667_v1 = vmul.f32 %v11642_v27, %v22750_v47 }
 0xf37   :  { %v11631_v32 = vpop.permute.xlu1 %11630  ;;  %v14492_v30 = vpack.c.bf16 %v11669_v36, %v11665_v14  ;;  %v11582_v36 = vsel %vm136_vm1, %v21481_v22, %v21489_v61  ;;  %v11595_v14 = vmul.f32 %v11583_v46, %v22752_v51 }
 0xf38   :  { %v21925_v40 = vpop.permute.xlu0 %11546  ;;  %v11647_v28 = vsel %vm247_vm0, %v11623_v59, %v11631_v32  ;;  %v11654_v59 = vsel %vm247_vm0, %v11637_v16, %v11613_v23  ;;  %v11591_v6 = vmul.f32 %v11582_v36, %v22752_v51 }
 0xf39   :  { %13220 = vrot.lane.b32.xlu1 %v21563_v58, %s15532_s6  ;;  %14493 = vmatprep.subr.bf16.mxu0 %v14492_v30  ;;  %v11579_v30 = vsel %vm136_vm1, %v21545_v12, %v21557_v24  ;;  %v11670_v23 = vmul.f32 %v11647_v28, %v22751_v2  ;;  %v11664_v24 = vmul.f32 %v11654_v59, %v22749_v31 }
 0xf3a   :  { %v11596_v36 = vmul.f32 %v11579_v30, %v22754_v52 }
 0xf3b   :  { %v11639_v4 = vpop.permute.xlu1 %11638 }
 0xf3c   :  { %v11643_v46 = vsel %vm247_vm0, %v11631_v32, %v11639_v4  ;;  %v11655_v16 = vsel %vm247_vm0, %v11639_v4, %v11615_v43  ;;  %v11555_v12 = vpop.permute.xlu0 %11554  ;;  %v11586_v4 = vsel %vm136_vm1, %v21532_v34, %v21481_v22  ;;  %v11666_v43 = vmul.f32 %v11646_v38, %v22751_v2  ;;  %v13886_v2 = vld [vmem:[%s22387_s7 + $0x1] sm:$0x1] }
 0xf3d   :  { %v11668_v42 = vmul.f32 %v11655_v16, %v22749_v31  ;;  %v11671_v3 = vmul.f32 %v11643_v46, %v22750_v47  ;;  %v11593_v32 = vmul.f32 %v11574_v54, %v22755_v13  ;;  %v11594_v31 = vmul.f32 %v11587_v35, %v22753_v45 }
 0xf3e   :  { %v14502_v27 = vpack.c.bf16 %v11670_v23, %v11666_v43  ;;  %v14504_v46 = vpack.c.bf16 %v11595_v14, %v11591_v6  ;;  %v11590_v61 = vmul.f32 %v11586_v4, %v22753_v45  ;;  %v11592_v22 = vmul.f32 %v11578_v17, %v22754_v52  ;;  %v23065_v6 = vld [vmem:[#allocation60_spill] sm:$0xff]  ;;  %v23067_v43 = vld [vmem:[#allocation53_spill] sm:$0xff] }
 0xf3f   :  { %v14494_v25 = vpack.c.bf16 %v11668_v42, %v11664_v24  ;;  %v11549_v47 = vpop.permute.xlu1 %11548  ;;  %v14500_v28 = vpack.c.bf16 %v11671_v3, %v11667_v1  ;;  %v14512_v9 = vpack.c.bf16 %v11597_v53, %v11593_v32  ;;  %v11584_v35 = vsel %vm136_vm1, %v21925_v40, %v11555_v12  ;;  %v23064_v3 = vld [vmem:[#allocation59_spill] sm:$0xff]  ;;  %v23066_v4 = vld [vmem:[#allocation56_spill] sm:$0xff] }
 0xf40   :  { %v11563_v59 = vpop.permute.xlu0 %11562  ;;  %v14506_v34 = vpack.c.bf16 %v11594_v31, %v11590_v61  ;;  %v14514_v1 = vpack.c.bf16 %v11596_v36, %v11592_v22  ;;  %v11599_v14 = vmul.f32 %v11584_v35, %v22752_v51  ;;  %v12005_v24 = vsel %vm358_vm2, %v21577_v56, %v21585_v15  ;;  %v23068_v31 = vld [vmem:[#allocation55_spill] sm:$0xff] }
 0xf41   :  { %14495 = vmatpush1.bf16.msra.mxu0 %v14494_v25  ;;  %14501 = vmatprep.subr.bf16.mxu1 %v14500_v28  ;;  %v12004_v32 = vsel %vm358_vm2, %v23067_v43, %v23066_v4  ;;  %v23069_v25 = vld [vmem:[#allocation38_spill] sm:$0xff]  ;;  %v11580_v22 = vsel %vm136_vm1, %v11555_v12, %v11563_v59 }
 0xf42   :  { %14503 = vmatpush1.bf16.msra.mxu1 %v14502_v27  ;;  %14505 = vmatprep.subr.bf16.mxu0 %v14504_v46  ;;  %v11996_v28 = vsel %vm358_vm2, %v23069_v25, %v23068_v31  ;;  %v23070_v46 = vld [vmem:[#allocation23_spill] sm:$0xff] }
 0xf43   :  { %v11557_v38 = vpop.permute.xlu1 %11556  ;;  %14513 = vmatprep.subr.bf16.mxu1 %v14512_v9  ;;  %v12017_v61 = vmul.f32 %v12005_v24, %v23070_v46  ;;  %v12001_v9 = vsel %vm358_vm2, %v21585_v15, %v23065_v6  ;;  %v23072_v24 = vld [vmem:[#allocation46_spill] sm:$0xff] }
 0xf44   :  { %v11585_v54 = vsel %vm136_vm1, %v11549_v47, %v11557_v38  ;;  %v11571_v53 = vpop.permute.xlu0 %11570  ;;  %13887 = vmatmul.mubr.msk.f32.vlgmr.msra.gmra.mrb[32].mxu0 %vm1397_vm8, %v13886_v2 }
 0xf45   :  { %v11603_v30 = vmul.f32 %v11585_v54, %v22752_v51  ;;  %14507 = vmatpush1.bf16.msra.mxu0 %v14506_v34  ;;  %13888 = vmatmul.mubr.msk.f32.vlgmr.msra.gmra.mrb[32].mxu1 %vm1397_vm8, %v13886_v2  ;;  %v11997_v51 = vsel %vm358_vm2, %v23065_v6, %v23064_v3  ;;  %v11576_v36 = vsel %vm136_vm1, %v11563_v59, %v11571_v53  ;;  %v23071_v34 = vld [vmem:[#allocation29_spill] sm:$0xff] }
 0xf46   :  { %14515 = vmatpush1.bf16.msra.mxu1 %v14514_v1  ;;  %11884 = vmatprep.mubr.f32.mxu0 %v22764_v55  ;;  %v11588_v27 = vsel %vm136_vm1, %v11571_v53, %v21925_v40  ;;  %v12009_v2 = vsel %vm358_vm2, %v23064_v3, %v21577_v56  ;;  %v12013_v59 = vmul.f32 %v12004_v32, %v23070_v46 }
 0xf47   :  { %v11565_v23 = vpop.permute.xlu1 %11564  ;;  %v14508_v16 = vpack.c.bf16 %v11603_v30, %v11599_v14  ;;  %11955 = vmatprep.mubr.f32.mxu1 %v22764_v55  ;;  %v11598_v53 = vmul.f32 %v11588_v27, %v22753_v45  ;;  %v11601_v14 = vmul.f32 %v11576_v36, %v22755_v13  ;;  %v12000_v30 = vsel %vm358_vm2, %v23066_v4, %v23069_v25 }
 0xf48   :  { %v22001_v42 = vpop.permute.xlu0 %11968  ;;  %v11581_v17 = vsel %vm136_vm1, %v11557_v38, %v11565_v23  ;;  %v12019_v38 = vmul.f32 %v11997_v51, %v23071_v34  ;;  %v23073_v51 = vld [vmem:[#allocation40_spill] sm:$0xff]  ;;  %v14520_v27 = vpack.c.bf16 %v12017_v61, %v12013_v59  ;;  %v23077_v59 = vld [vmem:[#allocation62_spill] sm:$0xff] }
 0xf49   :  { %14509 = vmatprep.subr.bf16.mxu0 %v14508_v16  ;;  %v11604_v40 = vmul.f32 %v11581_v17, %v22754_v52  ;;  %v12015_v16 = vmul.f32 %v11996_v28, %v23071_v34  ;;  %v12018_v17 = vmul.f32 %v12001_v9, %v23073_v51 }
 0xf4b   :  { %v11573_v35 = vpop.permute.xlu1 %11572  ;;  %v14528_v25 = vpack.c.bf16 %v12019_v38, %v12015_v16 }
 0xf4c   :  { %v11577_v1 = vsel %vm136_vm1, %v11565_v23, %v11573_v35  ;;  %v11589_v54 = vsel %vm136_vm1, %v11573_v35, %v11549_v47  ;;  %v11977_v15 = vpop.permute.xlu0 %11976  ;;  %v12008_v47 = vsel %vm358_vm2, %v23068_v31, %v23067_v43  ;;  %v11600_v23 = vmul.f32 %v11580_v22, %v22754_v52  ;;  %v11541_v52 = vld [vmem:[%s22387_s7] sm:$0x1] }
 0xf4d   :  { %v11602_v56 = vmul.f32 %v11589_v54, %v22753_v45  ;;  %v11605_v12 = vmul.f32 %v11577_v1, %v22755_v13  ;;  %v12016_v45 = vmul.f32 %v12009_v2, %v23072_v24  ;;  %v12012_v4 = vmul.f32 %v12008_v47, %v23072_v24  ;;  %v23074_v54 = vld [vmem:[#allocation50_spill] sm:$0xff]  ;;  %v23078_v47 = vld [vmem:[#allocation63_spill] sm:$0xff] }
 0xf4e   :  { %v14518_v32 = vpack.c.bf16 %v11604_v40, %v11600_v23  ;;  %v12014_v43 = vmul.f32 %v12000_v30, %v23073_v51  ;;  %v12006_v31 = vsel %vm358_vm2, %v22001_v42, %v11977_v15  ;;  %v23079_v23 = vld [vmem:[#allocation16_spill] sm:$0xff] }
 0xf4f   :  { %v14510_v3 = vpack.c.bf16 %v11602_v56, %v11598_v53  ;;  %v11971_v13 = vpop.permute.xlu1 %11970  ;;  %v14516_v6 = vpack.c.bf16 %v11605_v12, %v11601_v14  ;;  %v14522_v28 = vpack.c.bf16 %v12016_v45, %v12012_v4  ;;  %v12021_v35 = vmul.f32 %v12006_v31, %v23070_v46  ;;  %v23075_v53 = vld [vmem:[#allocation19_spill] sm:$0xff]  ;;  %v23076_v12 = vld [vmem:[#allocation22_spill] sm:$0xff] }
 0xf50   :  { %v11985_v36 = vpop.permute.xlu0 %11984  ;;  %v14530_v61 = vpack.c.bf16 %v12018_v17, %v12014_v43  ;;  %v12220_v14 = vsel %vm469_vm3, %v23075_v53, %v23074_v54  ;;  %v12219_v16 = vsel %vm469_vm3, %v23079_v23, %v23078_v47  ;;  %v23080_v45 = vld [vmem:[#allocation71_spill] sm:$0xff] }
 0xf51   :  { %14511 = vmatpush1.bf16.msra.mxu0 %v14510_v3  ;;  %14517 = vmatprep.subr.bf16.mxu1 %v14516_v6  ;;  %v23081_v3 = vld [vmem:[#allocation18_spill] sm:$0xff]  ;;  %v12002_v43 = vsel %vm358_vm2, %v11977_v15, %v11985_v36 }
 0xf52   :  { %14519 = vmatpush1.bf16.msra.mxu1 %v14518_v32  ;;  %14521 = vmatprep.subr.bf16.mxu0 %v14520_v27  ;;  %v12211_v6 = vsel %vm469_vm3, %v23081_v3, %v23080_v45  ;;  %v23082_v27 = vld [vmem:[#allocation27_spill] sm:$0xff] }
 0xf53   :  { %v11979_v9 = vpop.permute.xlu1 %11978  ;;  %14529 = vmatprep.subr.bf16.mxu1 %v14528_v25  ;;  %v12232_v4 = vmul.f32 %v12220_v14, %v23082_v27  ;;  %v12216_v25 = vsel %vm469_vm3, %v23074_v54, %v23077_v59  ;;  %v12215_v54 = vsel %vm469_vm3, %v23078_v47, %v23081_v3  ;;  %v23084_v14 = vld [vmem:[#allocation47_spill] sm:$0xff] }
 0xf54   :  { %v12007_v2 = vsel %vm358_vm2, %v11971_v13, %v11979_v9  ;;  %v11993_v22 = vpop.permute.xlu0 %11992  ;;  %13889 = vmatmul.mubr.msk.f32.vlgmr.msra.gmra.mrb[32].mxu0 %vm1397_vm8, %v11541_v52 }
 0xf55   :  { %v12025_v38 = vmul.f32 %v12007_v2, %v23070_v46  ;;  %14523 = vmatpush1.bf16.msra.mxu0 %v14522_v28  ;;  %13890 = vmatmul.mubr.msk.f32.vlgmr.msra.gmra.mrb[32].mxu1 %vm1397_vm8, %v11541_v52  ;;  %v12212_v46 = vsel %vm469_vm3, %v23077_v59, %v23076_v12  ;;  %v11998_v17 = vsel %vm358_vm2, %v11985_v36, %v11993_v22  ;;  %v23083_v28 = vld [vmem:[#allocation32_spill] sm:$0xff] }
 0xf56   :  { %14531 = vmatpush1.bf16.msra.mxu1 %v14530_v61  ;;  %12095 = vmatprep.mubr.f32.mxu0 %v22764_v55  ;;  %v12010_v32 = vsel %vm358_vm2, %v11993_v22, %v22001_v42  ;;  %v12224_v52 = vsel %vm469_vm3, %v23076_v12, %v23075_v53  ;;  %v12228_v36 = vmul.f32 %v12219_v16, %v23082_v27 }
 0xf57   :  { %v11987_v40 = vpop.permute.xlu1 %11986  ;;  %v14524_v1 = vpack.c.bf16 %v12025_v38, %v12021_v35  ;;  %12166 = vmatprep.mubr.f32.mxu1 %v22764_v55  ;;  %v12020_v35 = vmul.f32 %v12010_v32, %v23072_v24  ;;  %v12023_v38 = vmul.f32 %v11998_v17, %v23071_v34  ;;  %v12230_v53 = vmul.f32 %v12211_v6, %v23083_v28 }
 0xf58   :  { %v22076_v56 = vpop.permute.xlu0 %12183  ;;  %v12003_v30 = vsel %vm358_vm2, %v11979_v9, %v11987_v40  ;;  %v12234_v9 = vmul.f32 %v12212_v46, %v23083_v28  ;;  %v23085_v46 = vld [vmem:[#allocation41_spill] sm:$0xff]  ;;  %v14536_v32 = vpack.c.bf16 %v12232_v4, %v12228_v36 }
 0xf59   :  { %14525 = vmatprep.subr.bf16.mxu0 %v14524_v1  ;;  %v12026_v42 = vmul.f32 %v12003_v30, %v23073_v51  ;;  %v12233_v30 = vmul.f32 %v12216_v25, %v23085_v46 }
 0xf5a   :  { %v14544_v3 = vpack.c.bf16 %v12234_v9, %v12230_v53 }
 0xf5b   :  { %v11995_v31 = vpop.permute.xlu1 %11994 }
 0xf5c   :  { %v11999_v61 = vsel %vm358_vm2, %v11987_v40, %v11995_v31  ;;  %v12011_v2 = vsel %vm358_vm2, %v11995_v31, %v11971_v13  ;;  %v12192_v22 = vpop.permute.xlu0 %12191  ;;  %v12223_v13 = vsel %vm469_vm3, %v23080_v45, %v23079_v23  ;;  %v12022_v40 = vmul.f32 %v12002_v43, %v23073_v51  ;;  %v13891_v51 = vld [vmem:[%s22387_s7 + $0x2] sm:$0x1] }
 0xf5d   :  { %v12024_v1 = vmul.f32 %v12011_v2, %v23072_v24  ;;  %v12027_v15 = vmul.f32 %v11999_v61, %v23071_v34  ;;  %v12231_v24 = vmul.f32 %v12224_v52, %v23084_v14  ;;  %v12227_v47 = vmul.f32 %v12223_v13, %v23084_v14 }
 0xf5e   :  { %v14534_v16 = vpack.c.bf16 %v12026_v42, %v12022_v40  ;;  %v12229_v23 = vmul.f32 %v12215_v54, %v23085_v46  ;;  %v12221_v45 = vsel %vm469_vm3, %v22076_v56, %v12192_v22 }
 0xf5f   :  { %v14526_v12 = vpack.c.bf16 %v12024_v1, %v12020_v35  ;;  %v12186_v34 = vpop.permute.xlu1 %12185  ;;  %v14532_v59 = vpack.c.bf16 %v12027_v15, %v12023_v38  ;;  %v14538_v6 = vpack.c.bf16 %v12231_v24, %v12227_v47  ;;  %v12236_v31 = vmul.f32 %v12221_v45, %v23082_v27  ;;  %v23086_v47 = vld [vmem:[#allocation39_spill] sm:$0xff] }
 0xf60   :  { %v12200_v17 = vpop.permute.xlu0 %12199  ;;  %v14546_v4 = vpack.c.bf16 %v12233_v30, %v12229_v23  ;;  %v23089_v23 = vld [vmem:[#allocation17_spill] sm:$0xff] }
 0xf61   :  { %14527 = vmatpush1.bf16.msra.mxu0 %v14526_v12  ;;  %14533 = vmatprep.subr.bf16.mxu1 %v14532_v59  ;;  %v12217_v1 = vsel %vm469_vm3, %v12192_v22, %v12200_v17 }
 0xf62   :  { %14535 = vmatpush1.bf16.msra.mxu1 %v14534_v16  ;;  %14537 = vmatprep.subr.bf16.mxu0 %v14536_v32  ;;  %v12237_v22 = vmul.f32 %v12217_v1, %v23085_v46  ;;  %v23094_v1 = vld [vmem:[#allocation28_spill] sm:$0xff] }
 0xf63   :  { %v12194_v25 = vpop.permute.xlu1 %12193  ;;  %14545 = vmatprep.subr.bf16.mxu1 %v14544_v3  ;;  %v23087_v3 = vld [vmem:[#allocation58_spill] sm:$0xff] }
 0xf64   :  { %v12222_v52 = vsel %vm469_vm3, %v12186_v34, %v12194_v25  ;;  %v12208_v43 = vpop.permute.xlu0 %12207  ;;  %13892 = vmatmul.mubr.msk.f32.vlgmr.msra.gmra.mrb[32].mxu0 %vm1397_vm8, %v13891_v51 }
 0xf65   :  { %v12240_v9 = vmul.f32 %v12222_v52, %v23082_v27  ;;  %14539 = vmatpush1.bf16.msra.mxu0 %v14538_v6  ;;  %13893 = vmatmul.mubr.msk.f32.vlgmr.msra.gmra.mrb[32].mxu1 %vm1397_vm8, %v13891_v51  ;;  %v12213_v38 = vsel %vm469_vm3, %v12200_v17, %v12208_v43  ;;  %v12225_v27 = vsel %vm469_vm3, %v12208_v43, %v22076_v56  ;;  %v23091_v6 = vld [vmem:[#allocation57_spill] sm:$0xff]  ;;  %v23092_v43 = vld [vmem:[#allocation26_spill] sm:$0xff] }
 0xf66   :  { %14547 = vmatpush1.bf16.msra.mxu1 %v14546_v4  ;;  %12310 = vmatprep.mubr.f32.mxu0 %v22764_v55  ;;  %v12235_v53 = vmul.f32 %v12225_v27, %v23084_v14  ;;  %v12238_v24 = vmul.f32 %v12213_v38, %v23083_v28  ;;  %v14552_v51 = vpack.c.bf16 %v23087_v3, %v23086_v47  ;;  %v23103_v3 = vld [vmem:[#allocation68_spill] sm:$0xff] }
 0xf67   :  { %v12202_v42 = vpop.permute.xlu1 %12201  ;;  %v14540_v61 = vpack.c.bf16 %v12240_v9, %v12236_v31  ;;  %12381 = vmatprep.mubr.f32.mxu1 %v22764_v55  ;;  %v14556_v52 = vpack.c.bf16 %v21536_v7, %v21496_v49  ;;  %v23093_v31 = vld [vmem:[#allocation54_spill] sm:$0xff]  ;;  %v14558_v38 = vpack.c.bf16 %v21517_v33, %v21485_v39 }
 0xf68   :  { %v12550_v2 = vpop.permute.xlu0 %12549  ;;  %v12218_v35 = vsel %vm469_vm3, %v12194_v25, %v12202_v42  ;;  %v14562_v9 = vpack.c.bf16 %v23093_v31, %v23092_v43  ;;  %v23108_v31 = vld [vmem:[#allocation67_spill] sm:$0xff] }
 0xf69   :  { %14541 = vmatprep.subr.bf16.mxu0 %v14540_v61  ;;  %v12241_v36 = vmul.f32 %v12218_v35, %v23085_v46  ;;  %v23090_v46 = vld [vmem:[#allocation20_spill] sm:$0xff] }
 0xf6a   :  { %v14554_v25 = vpack.c.bf16 %v23091_v6, %v23090_v46  ;;  %v13900_v46 = vld [vmem:[%s22387_s7 + $0x5] sm:$0x1]  ;;  %v23106_v6 = vpack.c.bf16 %v21731_v19, %v21728_v18  ;;  %v23111_v19 = vld [vmem:[#allocation65_spill] sm:$0xff] }
 0xf6b   :  { %v12210_v15 = vpop.permute.xlu1 %12209  ;;  %v14550_v17 = vpack.c.bf16 %v12241_v36, %v12237_v22  ;;  %v13897_v36 = vld [vmem:[%s22387_s7 + $0x4] sm:$0x1] }
 0xf6c   :  { %v12214_v54 = vsel %vm469_vm3, %v12202_v42, %v12210_v15  ;;  %v12226_v13 = vsel %vm469_vm3, %v12210_v15, %v12186_v34  ;;  %v12558_v40 = vpop.permute.xlu0 %12557  ;;  %v23088_v34 = vld [vmem:[#allocation24_spill] sm:$0xff]  ;;  %v14564_v42 = vpack.c.bf16 %v21563_v58, %v21539_v26  ;;  %v14566_v26 = vpack.c.bf16 %v21551_v41, %v21522_v48 }
 0xf6d   :  { %v12239_v12 = vmul.f32 %v12226_v13, %v23084_v14  ;;  %v12242_v56 = vmul.f32 %v12214_v54, %v23083_v28  ;;  %v14560_v45 = vpack.c.bf16 %v23089_v23, %v23088_v34  ;;  %v13894_v14 = vld [vmem:[%s22387_s7 + $0x3] sm:$0x1]  ;;  %v12587_v58 = vsel %vm637_vm4, %v12550_v2, %v12558_v40  ;;  %v23096_v54 = vld [vmem:[#allocation48_spill] sm:$0xff] }
 0xf6e   :  { %v23095_v41 = vpack.c.bf16 %v21667_v63, %v21664_v62  ;;  %v23099_v63 = vld [vmem:[#allocation34_spill] sm:$0xff] }
 0xf6f   :  { %v14542_v59 = vpack.c.bf16 %v12239_v12, %v12235_v53  ;;  %v12552_v30 = vpop.permute.xlu1 %12551  ;;  %v14548_v16 = vpack.c.bf16 %v12242_v56, %v12238_v24  ;;  %v23097_v53 = vpack.c.bf16 %v21691_v50, %v21685_v10  ;;  %v12601_v12 = vmul.f32 %v12587_v58, %v23096_v54  ;;  %v23098_v56 = vld [vmem:[#allocation42_spill] sm:$0xff] }
 0xf70   :  { %v12566_v32 = vpop.permute.xlu0 %12565  ;;  %v23100_v50 = vld [vmem:[#allocation66_spill] sm:$0xff] }
 0xf71   :  { %14543 = vmatpush1.bf16.msra.mxu0 %v14542_v59  ;;  %14549 = vmatprep.subr.bf16.mxu1 %v14548_v16  ;;  %v12583_v61 = vsel %vm637_vm4, %v12558_v40, %v12566_v32  ;;  %v23115_v58 = vld [vmem:[#allocation30_spill] sm:$0xff] }
 0xf72   :  { %14551 = vmatpush1.bf16.msra.mxu1 %v14550_v17  ;;  %14553 = vmatprep.subr.bf16.mxu0 %v14552_v51  ;;  %v12602_v15 = vmul.f32 %v12583_v61, %v23094_v1  ;;  %v23104_v51 = vld [vmem:[#allocation25_spill] sm:$0xff]  ;;  %v23112_v61 = vld [vmem:[#allocation70_spill] sm:$0xff] }
 0xf73   :  { %v12560_v28 = vpop.permute.xlu1 %12559  ;;  %14561 = vmatprep.subr.bf16.mxu1 %v14560_v45  ;;  %v23105_v34 = vpack.c.bf16 %v23103_v3, %v23104_v51  ;;  %v23122_v51 = vpack.c.bf16 %v21819_v57, %v21813_v29 }
 0xf74   :  { %v12574_v4 = vpop.permute.xlu0 %12573  ;;  %13895 = vmatmul.mubr.msk.f32.vlgmr.msra.gmra.mrb[32].mxu0 %vm1397_vm8, %v13894_v14  ;;  %v12588_v49 = vsel %vm637_vm4, %v12552_v30, %v12560_v28 }
 0xf75   :  { %14555 = vmatpush1.bf16.msra.mxu0 %v14554_v25  ;;  %13896 = vmatmul.mubr.msk.f32.vlgmr.msra.gmra.mrb[32].mxu1 %vm1397_vm8, %v13894_v14  ;;  %v12579_v39 = vsel %vm637_vm4, %v12566_v32, %v12574_v4  ;;  %v12591_v48 = vsel %vm637_vm4, %v12574_v4, %v12550_v2  ;;  %v12605_v13 = vmul.f32 %v12588_v49, %v23096_v54  ;;  %v23101_v32 = vld [vmem:[#allocation61_spill] sm:$0xff] }
 0xf76   :  { %14557 = vmatprep.subr.bf16.mxu0 %v14556_v52  ;;  %14563 = vmatpush1.bf16.msra.mxu1 %v14562_v9  ;;  %v12603_v22 = vmul.f32 %v12579_v39, %v23098_v56  ;;  %v12604_v16 = vmul.f32 %v12591_v48, %v23099_v63  ;;  %v23102_v47 = vpack.c.bf16 %v23100_v50, %v23101_v32  ;;  %v23109_v9 = vld [vmem:[#allocation73_spill] sm:$0xff]  ;;  %v23119_v50 = vld [vmem:[#allocation72_spill] sm:$0xff] }
 0xf77   :  { %v12568_v35 = vpop.permute.xlu1 %12567  ;;  %14565 = vmatprep.subr.bf16.mxu1 %v14564_v42  ;;  %12461 = vmatprep.mubr.f32.mxu0 %v22764_v55  ;;  %v23107_v4 = vpack.c.bf16 %v21755_v60, %v21749_v37  ;;  %v23110_v42 = vpack.c.bf16 %v23108_v31, %v23109_v9  ;;  %v23120_v32 = vld [vmem:[#allocation69_spill] sm:$0xff] }
 0xf78   :  { %v12584_v7 = vsel %vm637_vm4, %v12560_v28, %v12568_v35  ;;  %v12765_v27 = vpop.permute.xlu0 %12764  ;;  %12532 = vmatprep.mubr.f32.mxu1 %v22764_v55 }
 0xf79   :  { %v12606_v33 = vmul.f32 %v12584_v7, %v23094_v1  ;;  %14559 = vmatpush1.bf16.msra.mxu0 %v14558_v38  ;;  %v23114_v38 = vld [vmem:[#allocation49_spill] sm:$0xff] }
 0xf7a   :  { %14567 = vmatpush1.bf16.msra.mxu1 %v14566_v26  ;;  %14569 = vmatprep.subr.bf16.mxu0 %v23095_v41 }
 0xf7b   :  { %v12576_v40 = vpop.permute.xlu1 %12575  ;;  %14577 = vmatprep.subr.bf16.mxu1 %v23097_v53  ;;  %v14572_v24 = vpack.c.bf16 %v12606_v33, %v12602_v15 }
 0xf7c   :  { %v12580_v2 = vsel %vm637_vm4, %v12568_v35, %v12576_v40  ;;  %v12592_v59 = vsel %vm637_vm4, %v12576_v40, %v12552_v30  ;;  %v12773_v62 = vpop.permute.xlu0 %12772  ;;  %13898 = vmatmul.mubr.msk.f32.vlgmr.msra.gmra.mrb[32].mxu0 %vm1397_vm8, %v13897_v36  ;;  %v14574_v30 = vpack.c.bf16 %v12605_v13, %v12601_v12  ;;  %v23113_v35 = vpack.c.bf16 %v23111_v19, %v23112_v61 }
 0xf7d   :  { %v12607_v17 = vmul.f32 %v12580_v2, %v23098_v56  ;;  %v12608_v10 = vmul.f32 %v12592_v59, %v23099_v63  ;;  %14571 = vmatpush1.bf16.msra.mxu0 %v23102_v47  ;;  %13899 = vmatmul.mubr.msk.f32.vlgmr.msra.gmra.mrb[32].mxu1 %vm1397_vm8, %v13897_v36  ;;  %v12802_v60 = vsel %vm748_vm5, %v12765_v27, %v12773_v62  ;;  %v23117_v56 = vld [vmem:[#allocation35_spill] sm:$0xff] }
 0xf7e   :  { %14573 = vmatprep.subr.bf16.mxu0 %v14572_v24  ;;  %14579 = vmatpush1.bf16.msra.mxu1 %v23105_v34  ;;  %v12816_v39 = vmul.f32 %v12802_v60, %v23114_v38  ;;  %v23116_v24 = vld [vmem:[#allocation43_spill] sm:$0xff]  ;;  %v23121_v47 = vpack.c.bf16 %v23119_v50, %v23120_v32 }
 0xf7f   :  { %v14582_v23 = vpack.c.bf16 %v12607_v17, %v12603_v22  ;;  %v12767_v45 = vpop.permute.xlu1 %12766  ;;  %v14580_v14 = vpack.c.bf16 %v12608_v10, %v12604_v16  ;;  %12676 = vmatprep.mubr.f32.mxu0 %v22764_v55  ;;  %12747 = vmatprep.mubr.f32.mxu1 %v22764_v55  ;;  %v23118_v16 = vpack.c.bf16 %v21795_v11, %v21792_v20 }
 0xf80   :  { %v12781_v28 = vpop.permute.xlu0 %12780 }
 0xf81   :  { %14575 = vmatpush1.bf16.msra.mxu0 %v14574_v30  ;;  %14581 = vmatprep.subr.bf16.mxu1 %v14580_v14  ;;  %v12798_v18 = vsel %vm748_vm5, %v12773_v62, %v12781_v28  ;;  %v23123_v30 = vld [vmem:[#allocation74_spill] sm:$0xff]  ;;  %v23126_v14 = vld [vmem:[#allocation51_spill] sm:$0xff] }
 0xf82   :  { %14583 = vmatpush1.bf16.msra.mxu1 %v14582_v23  ;;  %14585 = vmatprep.subr.bf16.mxu0 %v23106_v6  ;;  %v12817_v1 = vmul.f32 %v12798_v18, %v23115_v58  ;;  %v23124_v23 = vld [vmem:[#allocation64_spill] sm:$0xff] }
 0xf83   :  { %v12775_v25 = vpop.permute.xlu1 %12774  ;;  %14593 = vmatprep.subr.bf16.mxu1 %v23107_v4 }
 0xf84   :  { %v12789_v52 = vpop.permute.xlu0 %12788  ;;  %13901 = vmatmul.mubr.msk.f32.vlgmr.msra.gmra.mrb[32].mxu0 %vm1397_vm8, %v13900_v46  ;;  %v12803_v43 = vsel %vm748_vm5, %v12767_v45, %v12775_v25 }
 0xf85   :  { %14587 = vmatpush1.bf16.msra.mxu0 %v23110_v42  ;;  %13902 = vmatmul.mubr.msk.f32.vlgmr.msra.gmra.mrb[32].mxu1 %vm1397_vm8, %v13900_v46  ;;  %v12820_v49 = vmul.f32 %v12803_v43, %v23114_v38  ;;  %v12794_v33 = vsel %vm748_vm5, %v12781_v28, %v12789_v52  ;;  %v12806_v36 = vsel %vm748_vm5, %v12789_v52, %v12765_v27  ;;  %v13903_v27 = vld [vmem:[%s22387_s7 + $0x6] sm:$0x1] }
 0xf86   :  { %14595 = vmatpush1.bf16.msra.mxu1 %v23113_v35  ;;  %12891 = vmatprep.mubr.f32.mxu0 %v22764_v55  ;;  %v12818_v12 = vmul.f32 %v12794_v33, %v23116_v24  ;;  %v12819_v22 = vmul.f32 %v12806_v36, %v23117_v56  ;;  %v23130_v33 = vpack.c.bf16 %v21877_v21, %v21874_v5 }
 0xf87   :  { %v12783_v37 = vpop.permute.xlu1 %12782  ;;  %12962 = vmatprep.mubr.f32.mxu1 %v22764_v55  ;;  %v14590_v54 = vpack.c.bf16 %v12820_v49, %v12816_v39  ;;  %v23129_v49 = vld [vmem:[#allocation36_spill] sm:$0xff] }
 0xf88   :  { %v12799_v7 = vsel %vm748_vm5, %v12775_v25, %v12783_v37  ;;  %v12980_v26 = vpop.permute.xlu0 %12979  ;;  %v23127_v25 = vld [vmem:[#allocation31_spill] sm:$0xff] }
 0xf89   :  { %v12821_v15 = vmul.f32 %v12799_v7, %v23115_v58 }
 0xf8b   :  { %v12791_v48 = vpop.permute.xlu1 %12790  ;;  %v14588_v41 = vpack.c.bf16 %v12821_v15, %v12817_v1 }
 0xf8c   :  { %v12795_v13 = vsel %vm748_vm5, %v12783_v37, %v12791_v48  ;;  %v12807_v40 = vsel %vm748_vm5, %v12791_v48, %v12767_v45  ;;  %v12988_v53 = vpop.permute.xlu0 %12987  ;;  %v23125_v45 = vpack.c.bf16 %v23123_v30, %v23124_v23  ;;  %v23128_v37 = vld [vmem:[#allocation44_spill] sm:$0xff] }
 0xf8d   :  { %v12822_v2 = vmul.f32 %v12795_v13, %v23116_v24  ;;  %v12823_v59 = vmul.f32 %v12807_v40, %v23117_v56  ;;  %14589 = vmatprep.subr.bf16.mxu0 %v14588_v41  ;;  %v13017_v57 = vsel %vm859_vm6, %v12980_v26, %v12988_v53  ;;  %v23131_v41 = vpack.c.bf16 %v21853_v0, %v21850_v44  ;;  %v23132_v13 = vld [vmem:[#allocation77_spill] sm:$0xff]  ;;  %v23133_v40 = vld [vmem:[#allocation75_spill] sm:$0xff]  ;;  %v23135_v24 = vld [vmem:[#allocation76_spill] sm:$0xff] }
 0xf8e   :  { %14591 = vmatpush1.bf16.msra.mxu0 %v14590_v54  ;;  %v13031_v43 = vmul.f32 %v13017_v57, %v23126_v14  ;;  %v13909_v57 = vld [vmem:[%s22387_s7 + $0x8] sm:$0x1] }
 0xf8f   :  { %v14598_v62 = vpack.c.bf16 %v12822_v2, %v12818_v12  ;;  %v12982_v63 = vpop.permute.xlu1 %12981  ;;  %14601 = vmatprep.subr.bf16.mxu0 %v23118_v16  ;;  %v14596_v17 = vpack.c.bf16 %v12823_v59, %v12819_v22  ;;  %v23136_v12 = vld [vmem:[#allocation21_spill] sm:$0xff]  ;;  %v23138_v2 = vld [vmem:[#allocation52_spill] sm:$0xff] }
 0xf90   :  { %v12996_v10 = vpop.permute.xlu0 %12995  ;;  %v23137_v56 = vpack.c.bf16 %v23135_v24, %v23136_v12 }
 0xf91   :  { %14597 = vmatprep.subr.bf16.mxu1 %v14596_v17  ;;  %13904 = vmatmul.mubr.msk.f32.vlgmr.msra.gmra.mrb[32].mxu0 %vm1397_vm8, %v13903_v27  ;;  %v13013_v11 = vsel %vm859_vm6, %v12988_v53, %v12996_v10  ;;  %v23134_v53 = vpack.c.bf16 %v23132_v13, %v23133_v40 }
 0xf92   :  { %14599 = vmatpush1.bf16.msra.mxu1 %v14598_v62  ;;  %14603 = vmatpush1.bf16.msra.mxu0 %v23121_v47  ;;  %v13032_v4 = vmul.f32 %v13013_v11, %v23127_v25  ;;  %v23139_v62 = vld [vmem:[#allocation33_spill] sm:$0xff] }
 0xf93   :  { %v12990_v3 = vpop.permute.xlu1 %12989  ;;  %14609 = vmatprep.subr.bf16.mxu1 %v23122_v51  ;;  %13106 = vmatprep.mubr.f32.mxu0 %v22764_v55  ;;  %v23141_v11 = vld [vmem:[#allocation37_spill] sm:$0xff] }
 0xf94   :  { %v13004_v34 = vpop.permute.xlu0 %13003  ;;  %v13018_v20 = vsel %vm859_vm6, %v12982_v63, %v12990_v3 }
 0xf95   :  { %13905 = vmatmul.mubr.msk.f32.vlgmr.msra.gmra.mrb[32].mxu1 %vm1397_vm8, %v13903_v27  ;;  %v13035_v28 = vmul.f32 %v13018_v20, %v23126_v14  ;;  %v13009_v31 = vsel %vm859_vm6, %v12996_v10, %v13004_v34  ;;  %v13021_v9 = vsel %vm859_vm6, %v13004_v34, %v12980_v26  ;;  %v13906_v26 = vld [vmem:[%s22387_s7 + $0x7] sm:$0x1]  ;;  %v23140_v34 = vld [vmem:[#allocation45_spill] sm:$0xff]  ;;  %s15535_s7 = smov [#allocation10]  }
 0xf96   :  { %14611 = vmatpush1.bf16.msra.mxu1 %v23125_v45  ;;  %13177 = vmatprep.mubr.f32.mxu1 %v22764_v55  ;;  %v13033_v38 = vmul.f32 %v13009_v31, %v23128_v37  ;;  %v13034_v7 = vmul.f32 %v13021_v9, %v23129_v49  ;;  %s13443_s23 = sshll.u32 %s15535_s7, 4  ;;  %s13444_s23 = int_to_ptr.vmem [resolvable:$true] %s13443_s23 }
 0xf97   :  { %v12998_v29 = vpop.permute.xlu1 %12997  ;;  %v14606_v19 = vpack.c.bf16 %v13035_v28, %v13031_v43  ;;  %v13410_v28 = vunpack.c.l.s4 %v15534_v8  ;;  %s15486_s0 = scalar_lea.vmem %s13444_s23, 64  ;;  %p15491_p5 = scmp.lt.s32.totalorder %s13444_s23, %s13444_s23 }
 0xf98   :  { %v13014_v46 = vsel %vm859_vm6, %v12990_v3, %v12998_v29  ;;  %v13195_v6 = vpop.permute.xlu0 %13194  ;;  %p15487_p4 = scmp.ne.s32.totalorder %s13444_s23, %s15486_s0  ;;  %p15492_p6 = scmp.lt.s32.totalorder %s15486_s0, %s15486_s0 }
 0xf99   :  { %v13036_v52 = vmul.f32 %v13014_v46, %v23127_v25 }
 0xf9a   :  { %p15493_p7 = por %p15492_p6, %p15491_p5 }
 0xf9b   :  { %v13006_v42 = vpop.permute.xlu1 %13005  ;;  %v14604_v18 = vpack.c.bf16 %v13036_v52, %v13032_v4  ;;  %v23142_v52 = vld [vmem:[#allocation15_spill] sm:$0xff] }
 0xf9c   :  { %v13010_v61 = vsel %vm859_vm6, %v12998_v29, %v13006_v42  ;;  %v13022_v35 = vsel %vm859_vm6, %v13006_v42, %v12982_v63  ;;  %v13203_v60 = vpop.permute.xlu0 %13202  ;;  %p15494_p8 = pnand %p15493_p7, %p15487_p4 }
 0xf9d   :  { %v13037_v58 = vmul.f32 %v13010_v61, %v23128_v37  ;;  %v13038_v1 = vmul.f32 %v13022_v35, %v23129_v49  ;;  %14605 = vmatprep.subr.bf16.mxu0 %v14604_v18  ;;  %v13232_v0 = vsel %vm970_vm7, %v13195_v6, %v13203_v60  ;;  %v23143_v35 = vlaneseq }
 0xf9e   :  { %14607 = vmatpush1.bf16.msra.mxu0 %v14606_v19  ;;  %v13246_v17 = vmul.f32 %v13232_v0, %v23138_v2 }
 0xf9f   :  { %v14614_v15 = vpack.c.bf16 %v13037_v58, %v13033_v38  ;;  %v13197_v39 = vpop.permute.xlu1 %13196  ;;  %14617 = vmatprep.subr.bf16.mxu0 %v23130_v33  ;;  %v14612_v36 = vpack.c.bf16 %v13038_v1, %v13034_v7  ;;  %vm13434_vm0 = vcmp.lt.s32.totalorder %v23143_v35, 512 }
 0xfa0   :  { %v13211_v48 = vpop.permute.xlu0 %13210 }
 0xfa1   :  { %14613 = vmatprep.subr.bf16.mxu1 %v14612_v36  ;;  %13907 = vmatmul.mubr.msk.f32.vlgmr.msra.gmra.mrb[32].mxu0 %vm1397_vm8, %v13906_v26  ;;  %v13228_v21 = vsel %vm970_vm7, %v13203_v60, %v13211_v48 }
 0xfa2   :  { %14615 = vmatpush1.bf16.msra.mxu1 %v14614_v15  ;;  %14619 = vmatpush1.bf16.msra.mxu0 %v23131_v41  ;;  %v13247_v63 = vmul.f32 %v13228_v21, %v23139_v62 }
 0xfa3   :  { %v13205_v54 = vpop.permute.xlu1 %13204  ;;  %14625 = vmatprep.subr.bf16.mxu1 %v23134_v53  ;;  %13321 = vmatprep.mubr.f32.mxu0 %v22764_v55 }
 0xfa4   :  { %v13233_v5 = vsel %vm970_vm7, %v13197_v39, %v13205_v54  ;;  %v13219_v44 = vpop.permute.xlu0 %13218 }
 0xfa5   :  { %13908 = vmatmul.mubr.msk.f32.vlgmr.msra.gmra.mrb[32].mxu1 %vm1397_vm8, %v13906_v26  ;;  %v13250_v59 = vmul.f32 %v13233_v5, %v23138_v2  ;;  %v13224_v10 = vsel %vm970_vm7, %v13211_v48, %v13219_v44 }
 0xfa6   :  { %14627 = vmatpush1.bf16.msra.mxu1 %v23137_v56  ;;  %13392 = vmatprep.mubr.f32.mxu1 %v22764_v55  ;;  %v13236_v55 = vsel %vm970_vm7, %v13219_v44, %v13195_v6  ;;  %v13248_v20 = vmul.f32 %v13224_v10, %v23140_v34  ;;  %v13411_v6 = vunpack.c.0.s8 %v13410_v28 }
 0xfa7   :  { %v13213_v22 = vpop.permute.xlu1 %13212  ;;  %v14622_v47 = vpack.c.bf16 %v13250_v59, %v13246_v17  ;;  %v13249_v30 = vmul.f32 %v13236_v55, %v23141_v11 }
 0xfa8   :  { %v13229_v27 = vsel %vm970_vm7, %v13205_v54, %v13213_v22  ;;  %v13414_v43 = vsub.s32 %v13411_v6, %v23142_v52 }
 0xfa9   :  { %v13251_v16 = vmul.f32 %v13229_v27, %v23139_v62 }
 0xfab   :  { %v13221_v50 = vpop.permute.xlu1 %13220  ;;  %v14620_v32 = vpack.c.bf16 %v13251_v16, %v13247_v63 }
 0xfac   :  { %v13225_v3 = vsel %vm970_vm7, %v13213_v22, %v13221_v50  ;;  %v13237_v51 = vsel %vm970_vm7, %v13221_v50, %v13197_v39 }
 0xfad   :  { %v13252_v23 = vmul.f32 %v13225_v3, %v23140_v34  ;;  %v13253_v45 = vmul.f32 %v13237_v51, %v23141_v11  ;;  %14621 = vmatprep.subr.bf16.mxu0 %v14620_v32 }
 0xfae   :  { %14623 = vmatpush1.bf16.msra.mxu0 %v14622_v47 }
 0xfaf   :  { %v14630_v29 = vpack.c.bf16 %v13252_v23, %v13248_v20  ;;  %v14628_v14 = vpack.c.bf16 %v13253_v45, %v13249_v30 }
 0xfb1   :  { %13910 = vmatmul.mubr.msk.f32.vlgmr.msra.gmra.mrb[32].mxu0 %vm1397_vm8, %v13909_v57  ;;  %14629 = vmatprep.subr.bf16.mxu1 %v14628_v14 }
 0xfb2   :  { %14631 = vmatpush1.bf16.msra.mxu1 %v14630_v29 }
 0xfb5   :  { %13911 = vmatmul.mubr.msk.f32.vlgmr.msra.gmra.mrb[32].mxu1 %vm1397_vm8, %v13909_v57 }
0x1084   :  { %v13323_v46 = vpop.f32.mrb[32].mxu0 }
0x1085   :  { %v13325_v25 = vpop.f32.mrb[33].mxu0 }
0x1086   :  { %v13407_v4 = vcombine.low %v13323_v46, %v13325_v25 }
0x1088   :  { %v13394_v31 = vpop.f32.mrb[32].mxu1  ;;  %v13415_v18 = vrot.slane %v13407_v4, %v13414_v43 }
0x1089   :  { %v13396_v9 = vpop.f32.mrb[33].mxu1 }
0x108a   :  { %v13408_v42 = vcombine.low %v13394_v31, %v13396_v9 }
0x108c   :  { %v13422_v19 = vrot.slane %v13408_v42, %v13414_v43 }
0x108e   :  { %v13423_v61 = vcombine.low %v13415_v18, %v13422_v19 }
0x1090   :  { %v13430_v60 = vrot.slane %v13423_v61, %v13414_v43 }
0x1092   :  { %13436 = vst.msk [vmem:[#allocation10] sm:$0xf] %vm13434_vm0, %v13430_v60 }
0x1093   :  { %15497 = shalt.err (!%p15494_p8)
}
0x1094   :  { %s15498_s25 = scalar_lea.hbm %s22388_s8, 64 }
0x1095   :  { %p15499_p9 = scmp.ne.s32.totalorder %s22388_s8, %s15498_s25  ;;  %p15502_p10 = scmp.lt.u32.totalorder %s15498_s25, %s22388_s8 }
0x1097   :  { %p15504_p11 = pnand %p15502_p10, %p15499_p9 }
0x1099   :  { %15507 = shalt.err (!%p15504_p11)
}
0x109a   :  { %13446 = dma.vmem_to_hbm [thread:$0]  %s13444_s23, 64, %s22388_s8, [#allocation4]  }
0x109b   :  { %15514 = dma.done.wait [#allocation4], 64  }
0x109c   :  { %15515 = vsyncadd [#allocation4], 4294967232 }
0x109d   :  { %13450 = vsyncpa [#allocation3], 1 }
0x109e   :  { %13451 = vsyncpa [#allocation6], 1 }
0x109f   :  { %13452 = vsyncpa [#allocation9], 1 }
0x10a0   :  { %13453 = vsyncpa [#allocation4], 1 }

</bundles_post_ra>
